<compile_context>
chip_gen: v7x
topology: tpu7x:2x2x1
jax: 0.10.0
libtpu: 0.0.40
codegen_flags: <defaults>
</compile_context>

<pallas_src>
import numpy as np
import jax
import jax.numpy as jnp
from jax import lax
from jax.experimental import pallas as pl
from jax.experimental.pallas import tpu as pltpu


def _fused_conv_kernel(w_ref, beff_ref, bound_ref, x_ref, out_ref,
                       xsh_ref, xst_ref):
    """
    w_ref    : SMEM (CO*KH*KW,)       fused weights, flat idx (o*KH + kh)*KW + kw
    beff_ref : SMEM (CO,)             fused bias (includes +other)
    bound_ref: SMEM (CO,)             boundary-column constant  bb[o] + other
    x_ref    : VMEM (1, 1, H, W)      raw input (no padding)
    out_ref  : VMEM (1, CO, HO, WO)   final output, written directly
    xsh_ref  : VMEM (KW, HP, WL)      kw-shifted, zero-padded input slabs
    xst_ref  : VMEM (KW, KH, HOP, WL) (8,128)-aligned kh/kw-shifted tiles
    """
    KW, HP, WL = xsh_ref.shape
    _, KH, HOP, _ = xst_ref.shape
    _, CO, HO, WO = out_ref.shape
    H, W = x_ref.shape[2], x_ref.shape[3]

    x = x_ref[0, 0, :, :]                       # (H, W) fp32, loaded once

    # ---- prologue: kw-shifted slabs via zero-store + offset stores (no
    # jnp.concatenate).  xsh[kw][r, j] = x[r, j + kw - 2] (zero out of range),
    # i.e. x occupies lanes (2-kw) .. (2-kw+W-1).  Requires W + 2 <= 128 so
    # each store stays inside a single 128-lane tile.
    zero_slab = jnp.zeros((HP, WL), jnp.float32)
    for kw in range(KW):
        off = 2 - kw
        xsh_ref[kw] = zero_slab
        xsh_ref[kw, 0:H, off:off + W] = x

    # ---- stage the 21 (8,128)-aligned tiles once:
    #   xst[kw, kh][i, j] = xsh[kw][i + kh, j] = x[i + kh, j + kw - 2]
    # so the hot loop below only does aligned full-tile reads (the misaligned
    # sublane offsets kh=1..6 are paid once here, in the prologue).
    for kw in range(KW):
        for kh in range(KH):
            xst_ref[kw, kh] = xsh_ref[kw, kh:kh + HOP, :]

    # Interior lanes of the final output are columns 1..W; lanes 0 and W+1
    # (== WO-1) are the constant boundary columns from convb's width padding.
    lane = lax.broadcasted_iota(jnp.int32, (HOP, WL), 1)
    interior = (lane >= 1) & (lane <= W)

    # ---- hot loop: taps (kh, kw) outer, channels in groups of 4 live
    # accumulators (4 x 8 vregs + 8-vreg tile stays well under the 64-vreg
    # file), so each staged tile is loaded once per (tap, group).
    GROUP = 4
    for g0 in range(0, CO, GROUP):
        chans = list(range(g0, min(g0 + GROUP, CO)))
        accs = [jnp.full((HOP, WL), beff_ref[o], jnp.float32) for o in chans]
        for kh in range(KH):
            for kw in range(KW):
                tile = xst_ref[kw, kh]                  # aligned (HOP, WL) load
                for idx, o in enumerate(chans):
                    w = w_ref[(o * KH + kh) * KW + kw]
                    accs[idx] = accs[idx] + w * tile
        for idx, o in enumerate(chans):
            final = jnp.where(interior, accs[idx], bound_ref[o])
            out_ref[0, o, :, :] = final[0:HO, 0:WO]


def model_forward(x, wa, ba, wb, bb, other=1.0):
    """x: (1, 1, H, W) NCHW fp32.  Returns (1, 8, H-6, W+2) fp32."""
    N, CIN, H, W = x.shape
    assert N == 1 and CIN == 1
    CO, CMID, KH, KW = 8, 4, 7, 3
    HO, WO = H - KH + 1, W + 2
    WL = 128                              # single lane-tile working width
    HOP = ((HO + 7) // 8) * 8             # accumulator rows, sublane-aligned
    HP = ((HOP + KH - 1 + 7) // 8) * 8    # staged slab rows
    assert HO >= 1 and WO <= WL           # staging assumes W <= 126

    # Analytic fusion of the two convolutions (tiny weight-only einsums).
    wa2 = wa.reshape(CMID, KW).astype(jnp.float32)            # (4, 3)
    wb2 = wb.reshape(CO, CMID, KH).astype(jnp.float32)        # (8, 4, 7)
    w_eff = jnp.einsum('och,cw->ohw', wb2, wa2)               # (8, 7, 3)
    b_eff = (jnp.einsum('och,c->o', wb2, ba.astype(jnp.float32))
             + bb.astype(jnp.float32) + other)                # (8,)
    bound = bb.astype(jnp.float32) + other                    # (8,)

    # TODO(synk): once H/W grow well beyond 64x64, add a grid over HO with
    # dimension_semantics=("parallel",) (2 TCs on v7x) and per-block
    # BlockSpecs to respect v7x's 64 MiB VMEM; at this size per-step overhead
    # would exceed the compute.
    # TODO(synk): optional MXU path — per kw, contract the KH axis with one
    # jnp.dot((CO,KH) @ (KH, HOP*WL)) if a reshuffle-free Xwin layout of the
    # staged tiles can be built; second-order win at this size.
    out = pl.pallas_call(
        _fused_conv_kernel,
        out_shape=jax.ShapeDtypeStruct((1, CO, HO, WO), jnp.float32),
        in_specs=[
            pl.BlockSpec(memory_space=pltpu.MemorySpace.SMEM),  # w_eff (flat)
            pl.BlockSpec(memory_space=pltpu.MemorySpace.SMEM),  # b_eff
            pl.BlockSpec(memory_space=pltpu.MemorySpace.SMEM),  # bound
            pl.BlockSpec(memory_space=pltpu.MemorySpace.VMEM),  # x
        ],
        out_specs=pl.BlockSpec(memory_space=pltpu.MemorySpace.VMEM),
        scratch_shapes=[
            pltpu.VMEM((KW, HP, WL), jnp.float32),        # kw-shifted slabs
            pltpu.VMEM((KW, KH, HOP, WL), jnp.float32),   # aligned tap tiles
        ],
    )(w_eff.reshape(-1), b_eff, bound, x.astype(jnp.float32))

    return out                            # (1, 8, HO, WO) — no wrapper slice


def reference_forward(x, wa, ba, wb, bb, other=1.0):
    dn = ("NCHW", "OIHW", "NCHW")
    va = lax.conv_general_dilated(x, wa, (1, 1), ((0, 0), (1, 1)),
                                  dimension_numbers=dn) + ba.reshape(1, 4, 1, 1)
    vb = lax.conv_general_dilated(va, wb, (1, 1), ((0, 0), (1, 1)),
                                  dimension_numbers=dn) + bb.reshape(1, 8, 1, 1)
    return vb + other


if __name__ == "__main__":
    key = jax.random.PRNGKey(0)
    k1, k2, k3, k4, k5 = jax.random.split(key, 5)

    # Deterministic parameter init (shapes from the torch module's __init__).
    wa = jax.random.normal(k1, (4, 1, 1, 3), jnp.float32) * 0.5   # conva weight
    ba = jax.random.normal(k2, (4,), jnp.float32) * 0.1           # conva bias
    wb = jax.random.normal(k3, (8, 4, 7, 1), jnp.float32) * 0.2   # convb weight
    bb = jax.random.normal(k4, (8,), jnp.float32) * 0.1           # convb bias

    # Input consistent with the module's example: (1, 1, 64, 64) NCHW.
    x = jax.random.normal(k5, (1, 1, 64, 64), jnp.float32)

    fwd = jax.jit(model_forward)
    out = jax.block_until_ready(fwd(x, wa, ba, wb, bb))

    ref = reference_forward(x, wa, ba, wb, bb, other=1.0)
    assert out.shape == (1, 8, 58, 66), out.shape
    np.testing.assert_allclose(np.asarray(out), np.asarray(ref),
                               rtol=1e-4, atol=1e-4)

    print("KERNEL_OK")
</pallas_src>

<mosaic_0001>
module attributes {stable_mosaic.version = 11 : i64} {
  func.func @_fused_conv_kernel(%arg0: memref<168xf32, #tpu.memory_space<smem>>, %arg1: memref<8xf32, #tpu.memory_space<smem>>, %arg2: memref<8xf32, #tpu.memory_space<smem>>, %arg3: memref<1x1x64x64xf32, #tpu.memory_space<vmem>>, %arg4: memref<1x8x58x66xf32, #tpu.memory_space<vmem>>, %arg5: memref<3x72x128xf32, #tpu.memory_space<vmem>>, %arg6: memref<3x7x64x128xf32, #tpu.memory_space<vmem>>) attributes {dimension_semantics = [], scalar_prefetch = 0 : i64, scratch_operands = 2 : i64, tpu.core_type = #tpu.core_type<tc>} {
    %c0 = arith.constant 0 : index
    %c0_0 = arith.constant 0 : index
    %c0_1 = arith.constant 0 : index
    %c0_2 = arith.constant 0 : index
    %0 = vector.load %arg3[%c0, %c0_0, %c0_1, %c0_2] : memref<1x1x64x64xf32, #tpu.memory_space<vmem>>, vector<1x1x64x64xf32>
    %1 = vector.shape_cast %0 : vector<1x1x64x64xf32> to vector<64x64xf32>
    %cst = arith.constant 0.000000e+00 : f32
    %2 = vector.broadcast %cst : f32 to vector<72x128xf32>
    %c0_3 = arith.constant 0 : index
    %c0_4 = arith.constant 0 : index
    %c0_5 = arith.constant 0 : index
    %3 = vector.load %arg5[%c0_3, %c0_4, %c0_5] : memref<3x72x128xf32, #tpu.memory_space<vmem>>, vector<1x72x128xf32>
    %4 = vector.shape_cast %3 : vector<1x72x128xf32> to vector<72x128xf32>
    %5 = vector.shape_cast %2 : vector<72x128xf32> to vector<1x72x128xf32>
    tpu.vector_store %arg5[%c0_3, %c0_4, %c0_5], %5 {strides = array<i32>} : memref<3x72x128xf32, #tpu.memory_space<vmem>>, vector<1x72x128xf32>,
    %c0_6 = arith.constant 0 : index
    %c0_7 = arith.constant 0 : index
    %c2 = arith.constant 2 : index
    %6 = vector.load %arg5[%c0_6, %c0_7, %c2] : memref<3x72x128xf32, #tpu.memory_space<vmem>>, vector<1x64x64xf32>
    %7 = vector.shape_cast %6 : vector<1x64x64xf32> to vector<64x64xf32>
    %8 = vector.shape_cast %1 : vector<64x64xf32> to vector<1x64x64xf32>
    tpu.vector_store %arg5[%c0_6, %c0_7, %c2], %8 {strides = array<i32>} : memref<3x72x128xf32, #tpu.memory_space<vmem>>, vector<1x64x64xf32>,
    %c1 = arith.constant 1 : index
    %c0_8 = arith.constant 0 : index
    %c0_9 = arith.constant 0 : index
    %9 = vector.load %arg5[%c1, %c0_8, %c0_9] : memref<3x72x128xf32, #tpu.memory_space<vmem>>, vector<1x72x128xf32>
    %10 = vector.shape_cast %9 : vector<1x72x128xf32> to vector<72x128xf32>
    %11 = vector.shape_cast %2 : vector<72x128xf32> to vector<1x72x128xf32>
    tpu.vector_store %arg5[%c1, %c0_8, %c0_9], %11 {strides = array<i32>} : memref<3x72x128xf32, #tpu.memory_space<vmem>>, vector<1x72x128xf32>,
    %c1_10 = arith.constant 1 : index
    %c0_11 = arith.constant 0 : index
    %c1_12 = arith.constant 1 : index
    %12 = vector.load %arg5[%c1_10, %c0_11, %c1_12] : memref<3x72x128xf32, #tpu.memory_space<vmem>>, vector<1x64x64xf32>
    %13 = vector.shape_cast %12 : vector<1x64x64xf32> to vector<64x64xf32>
    %14 = vector.shape_cast %1 : vector<64x64xf32> to vector<1x64x64xf32>
    tpu.vector_store %arg5[%c1_10, %c0_11, %c1_12], %14 {strides = array<i32>} : memref<3x72x128xf32, #tpu.memory_space<vmem>>, vector<1x64x64xf32>,
    %c2_13 = arith.constant 2 : index
    %c0_14 = arith.constant 0 : index
    %c0_15 = arith.constant 0 : index
    %15 = vector.load %arg5[%c2_13, %c0_14, %c0_15] : memref<3x72x128xf32, #tpu.memory_space<vmem>>, vector<1x72x128xf32>
    %16 = vector.shape_cast %15 : vector<1x72x128xf32> to vector<72x128xf32>
    %17 = vector.shape_cast %2 : vector<72x128xf32> to vector<1x72x128xf32>
    tpu.vector_store %arg5[%c2_13, %c0_14, %c0_15], %17 {strides = array<i32>} : memref<3x72x128xf32, #tpu.memory_space<vmem>>, vector<1x72x128xf32>,
    %c2_16 = arith.constant 2 : index
    %c0_17 = arith.constant 0 : index
    %c0_18 = arith.constant 0 : index
    %18 = vector.load %arg5[%c2_16, %c0_17, %c0_18] : memref<3x72x128xf32, #tpu.memory_space<vmem>>, vector<1x64x64xf32>
    %19 = vector.shape_cast %18 : vector<1x64x64xf32> to vector<64x64xf32>
    %20 = vector.shape_cast %1 : vector<64x64xf32> to vector<1x64x64xf32>
    tpu.vector_store %arg5[%c2_16, %c0_17, %c0_18], %20 {strides = array<i32>} : memref<3x72x128xf32, #tpu.memory_space<vmem>>, vector<1x64x64xf32>,
    %c0_19 = arith.constant 0 : index
    %c0_20 = arith.constant 0 : index
    %c0_21 = arith.constant 0 : index
    %21 = vector.load %arg5[%c0_19, %c0_20, %c0_21] : memref<3x72x128xf32, #tpu.memory_space<vmem>>, vector<1x64x128xf32>
    %22 = vector.shape_cast %21 : vector<1x64x128xf32> to vector<64x128xf32>
    %c0_22 = arith.constant 0 : index
    %c0_23 = arith.constant 0 : index
    %c0_24 = arith.constant 0 : index
    %c0_25 = arith.constant 0 : index
    %23 = vector.load %arg6[%c0_22, %c0_23, %c0_24, %c0_25] : memref<3x7x64x128xf32, #tpu.memory_space<vmem>>, vector<1x1x64x128xf32>
    %24 = vector.shape_cast %23 : vector<1x1x64x128xf32> to vector<64x128xf32>
    %25 = vector.shape_cast %22 : vector<64x128xf32> to vector<1x1x64x128xf32>
    tpu.vector_store %arg6[%c0_22, %c0_23, %c0_24, %c0_25], %25 {strides = array<i32>} : memref<3x7x64x128xf32, #tpu.memory_space<vmem>>, vector<1x1x64x128xf32>,
    %c0_26 = arith.constant 0 : index
    %c1_27 = arith.constant 1 : index
    %c0_28 = arith.constant 0 : index
    %26 = vector.load %arg5[%c0_26, %c1_27, %c0_28] : memref<3x72x128xf32, #tpu.memory_space<vmem>>, vector<1x64x128xf32>
    %27 = vector.shape_cast %26 : vector<1x64x128xf32> to vector<64x128xf32>
    %c0_29 = arith.constant 0 : index
    %c1_30 = arith.constant 1 : index
    %c0_31 = arith.constant 0 : index
    %c0_32 = arith.constant 0 : index
    %28 = vector.load %arg6[%c0_29, %c1_30, %c0_31, %c0_32] : memref<3x7x64x128xf32, #tpu.memory_space<vmem>>, vector<1x1x64x128xf32>
    %29 = vector.shape_cast %28 : vector<1x1x64x128xf32> to vector<64x128xf32>
    %30 = vector.shape_cast %27 : vector<64x128xf32> to vector<1x1x64x128xf32>
    tpu.vector_store %arg6[%c0_29, %c1_30, %c0_31, %c0_32], %30 {strides = array<i32>} : memref<3x7x64x128xf32, #tpu.memory_space<vmem>>, vector<1x1x64x128xf32>,
    %c0_33 = arith.constant 0 : index
    %c2_34 = arith.constant 2 : index
    %c0_35 = arith.constant 0 : index
    %31 = vector.load %arg5[%c0_33, %c2_34, %c0_35] : memref<3x72x128xf32, #tpu.memory_space<vmem>>, vector<1x64x128xf32>
    %32 = vector.shape_cast %31 : vector<1x64x128xf32> to vector<64x128xf32>
    %c0_36 = arith.constant 0 : index
    %c2_37 = arith.constant 2 : index
    %c0_38 = arith.constant 0 : index
    %c0_39 = arith.constant 0 : index
    %33 = vector.load %arg6[%c0_36, %c2_37, %c0_38, %c0_39] : memref<3x7x64x128xf32, #tpu.memory_space<vmem>>, vector<1x1x64x128xf32>
    %34 = vector.shape_cast %33 : vector<1x1x64x128xf32> to vector<64x128xf32>
    %35 = vector.shape_cast %32 : vector<64x128xf32> to vector<1x1x64x128xf32>
    tpu.vector_store %arg6[%c0_36, %c2_37, %c0_38, %c0_39], %35 {strides = array<i32>} : memref<3x7x64x128xf32, #tpu.memory_space<vmem>>, vector<1x1x64x128xf32>,
    %c0_40 = arith.constant 0 : index
    %c3 = arith.constant 3 : index
    %c0_41 = arith.constant 0 : index
    %36 = vector.load %arg5[%c0_40, %c3, %c0_41] : memref<3x72x128xf32, #tpu.memory_space<vmem>>, vector<1x64x128xf32>
    %37 = vector.shape_cast %36 : vector<1x64x128xf32> to vector<64x128xf32>
    %c0_42 = arith.constant 0 : index
    %c3_43 = arith.constant 3 : index
    %c0_44 = arith.constant 0 : index
    %c0_45 = arith.constant 0 : index
    %38 = vector.load %arg6[%c0_42, %c3_43, %c0_44, %c0_45] : memref<3x7x64x128xf32, #tpu.memory_space<vmem>>, vector<1x1x64x128xf32>
    %39 = vector.shape_cast %38 : vector<1x1x64x128xf32> to vector<64x128xf32>
    %40 = vector.shape_cast %37 : vector<64x128xf32> to vector<1x1x64x128xf32>
    tpu.vector_store %arg6[%c0_42, %c3_43, %c0_44, %c0_45], %40 {strides = array<i32>} : memref<3x7x64x128xf32, #tpu.memory_space<vmem>>, vector<1x1x64x128xf32>,
    %c0_46 = arith.constant 0 : index
    %c4 = arith.constant 4 : index
    %c0_47 = arith.constant 0 : index
    %41 = vector.load %arg5[%c0_46, %c4, %c0_47] : memref<3x72x128xf32, #tpu.memory_space<vmem>>, vector<1x64x128xf32>
    %42 = vector.shape_cast %41 : vector<1x64x128xf32> to vector<64x128xf32>
    %c0_48 = arith.constant 0 : index
    %c4_49 = arith.constant 4 : index
    %c0_50 = arith.constant 0 : index
    %c0_51 = arith.constant 0 : index
    %43 = vector.load %arg6[%c0_48, %c4_49, %c0_50, %c0_51] : memref<3x7x64x128xf32, #tpu.memory_space<vmem>>, vector<1x1x64x128xf32>
    %44 = vector.shape_cast %43 : vector<1x1x64x128xf32> to vector<64x128xf32>
    %45 = vector.shape_cast %42 : vector<64x128xf32> to vector<1x1x64x128xf32>
    tpu.vector_store %arg6[%c0_48, %c4_49, %c0_50, %c0_51], %45 {strides = array<i32>} : memref<3x7x64x128xf32, #tpu.memory_space<vmem>>, vector<1x1x64x128xf32>,
    %c0_52 = arith.constant 0 : index
    %c5 = arith.constant 5 : index
    %c0_53 = arith.constant 0 : index
    %46 = vector.load %arg5[%c0_52, %c5, %c0_53] : memref<3x72x128xf32, #tpu.memory_space<vmem>>, vector<1x64x128xf32>
    %47 = vector.shape_cast %46 : vector<1x64x128xf32> to vector<64x128xf32>
    %c0_54 = arith.constant 0 : index
    %c5_55 = arith.constant 5 : index
    %c0_56 = arith.constant 0 : index
    %c0_57 = arith.constant 0 : index
    %48 = vector.load %arg6[%c0_54, %c5_55, %c0_56, %c0_57] : memref<3x7x64x128xf32, #tpu.memory_space<vmem>>, vector<1x1x64x128xf32>
    %49 = vector.shape_cast %48 : vector<1x1x64x128xf32> to vector<64x128xf32>
    %50 = vector.shape_cast %47 : vector<64x128xf32> to vector<1x1x64x128xf32>
    tpu.vector_store %arg6[%c0_54, %c5_55, %c0_56, %c0_57], %50 {strides = array<i32>} : memref<3x7x64x128xf32, #tpu.memory_space<vmem>>, vector<1x1x64x128xf32>,
    %c0_58 = arith.constant 0 : index
    %c6 = arith.constant 6 : index
    %c0_59 = arith.constant 0 : index
    %51 = vector.load %arg5[%c0_58, %c6, %c0_59] : memref<3x72x128xf32, #tpu.memory_space<vmem>>, vector<1x64x128xf32>
    %52 = vector.shape_cast %51 : vector<1x64x128xf32> to vector<64x128xf32>
    %c0_60 = arith.constant 0 : index
    %c6_61 = arith.constant 6 : index
    %c0_62 = arith.constant 0 : index
    %c0_63 = arith.constant 0 : index
    %53 = vector.load %arg6[%c0_60, %c6_61, %c0_62, %c0_63] : memref<3x7x64x128xf32, #tpu.memory_space<vmem>>, vector<1x1x64x128xf32>
    %54 = vector.shape_cast %53 : vector<1x1x64x128xf32> to vector<64x128xf32>
    %55 = vector.shape_cast %52 : vector<64x128xf32> to vector<1x1x64x128xf32>
    tpu.vector_store %arg6[%c0_60, %c6_61, %c0_62, %c0_63], %55 {strides = array<i32>} : memref<3x7x64x128xf32, #tpu.memory_space<vmem>>, vector<1x1x64x128xf32>,
    %c1_64 = arith.constant 1 : index
    %c0_65 = arith.constant 0 : index
    %c0_66 = arith.constant 0 : index
    %56 = vector.load %arg5[%c1_64, %c0_65, %c0_66] : memref<3x72x128xf32, #tpu.memory_space<vmem>>, vector<1x64x128xf32>
    %57 = vector.shape_cast %56 : vector<1x64x128xf32> to vector<64x128xf32>
    %c1_67 = arith.constant 1 : index
    %c0_68 = arith.constant 0 : index
    %c0_69 = arith.constant 0 : index
    %c0_70 = arith.constant 0 : index
    %58 = vector.load %arg6[%c1_67, %c0_68, %c0_69, %c0_70] : memref<3x7x64x128xf32, #tpu.memory_space<vmem>>, vector<1x1x64x128xf32>
    %59 = vector.shape_cast %58 : vector<1x1x64x128xf32> to vector<64x128xf32>
    %60 = vector.shape_cast %57 : vector<64x128xf32> to vector<1x1x64x128xf32>
    tpu.vector_store %arg6[%c1_67, %c0_68, %c0_69, %c0_70], %60 {strides = array<i32>} : memref<3x7x64x128xf32, #tpu.memory_space<vmem>>, vector<1x1x64x128xf32>,
    %c1_71 = arith.constant 1 : index
    %c1_72 = arith.constant 1 : index
    %c0_73 = arith.constant 0 : index
    %61 = vector.load %arg5[%c1_71, %c1_72, %c0_73] : memref<3x72x128xf32, #tpu.memory_space<vmem>>, vector<1x64x128xf32>
    %62 = vector.shape_cast %61 : vector<1x64x128xf32> to vector<64x128xf32>
    %c1_74 = arith.constant 1 : index
    %c1_75 = arith.constant 1 : index
    %c0_76 = arith.constant 0 : index
    %c0_77 = arith.constant 0 : index
    %63 = vector.load %arg6[%c1_74, %c1_75, %c0_76, %c0_77] : memref<3x7x64x128xf32, #tpu.memory_space<vmem>>, vector<1x1x64x128xf32>
    %64 = vector.shape_cast %63 : vector<1x1x64x128xf32> to vector<64x128xf32>
    %65 = vector.shape_cast %62 : vector<64x128xf32> to vector<1x1x64x128xf32>
    tpu.vector_store %arg6[%c1_74, %c1_75, %c0_76, %c0_77], %65 {strides = array<i32>} : memref<3x7x64x128xf32, #tpu.memory_space<vmem>>, vector<1x1x64x128xf32>,
    %c1_78 = arith.constant 1 : index
    %c2_79 = arith.constant 2 : index
    %c0_80 = arith.constant 0 : index
    %66 = vector.load %arg5[%c1_78, %c2_79, %c0_80] : memref<3x72x128xf32, #tpu.memory_space<vmem>>, vector<1x64x128xf32>
    %67 = vector.shape_cast %66 : vector<1x64x128xf32> to vector<64x128xf32>
    %c1_81 = arith.constant 1 : index
    %c2_82 = arith.constant 2 : index
    %c0_83 = arith.constant 0 : index
    %c0_84 = arith.constant 0 : index
    %68 = vector.load %arg6[%c1_81, %c2_82, %c0_83, %c0_84] : memref<3x7x64x128xf32, #tpu.memory_space<vmem>>, vector<1x1x64x128xf32>
    %69 = vector.shape_cast %68 : vector<1x1x64x128xf32> to vector<64x128xf32>
    %70 = vector.shape_cast %67 : vector<64x128xf32> to vector<1x1x64x128xf32>
    tpu.vector_store %arg6[%c1_81, %c2_82, %c0_83, %c0_84], %70 {strides = array<i32>} : memref<3x7x64x128xf32, #tpu.memory_space<vmem>>, vector<1x1x64x128xf32>,
    %c1_85 = arith.constant 1 : index
    %c3_86 = arith.constant 3 : index
    %c0_87 = arith.constant 0 : index
    %71 = vector.load %arg5[%c1_85, %c3_86, %c0_87] : memref<3x72x128xf32, #tpu.memory_space<vmem>>, vector<1x64x128xf32>
    %72 = vector.shape_cast %71 : vector<1x64x128xf32> to vector<64x128xf32>
    %c1_88 = arith.constant 1 : index
    %c3_89 = arith.constant 3 : index
    %c0_90 = arith.constant 0 : index
    %c0_91 = arith.constant 0 : index
    %73 = vector.load %arg6[%c1_88, %c3_89, %c0_90, %c0_91] : memref<3x7x64x128xf32, #tpu.memory_space<vmem>>, vector<1x1x64x128xf32>
    %74 = vector.shape_cast %73 : vector<1x1x64x128xf32> to vector<64x128xf32>
    %75 = vector.shape_cast %72 : vector<64x128xf32> to vector<1x1x64x128xf32>
    tpu.vector_store %arg6[%c1_88, %c3_89, %c0_90, %c0_91], %75 {strides = array<i32>} : memref<3x7x64x128xf32, #tpu.memory_space<vmem>>, vector<1x1x64x128xf32>,
    %c1_92 = arith.constant 1 : index
    %c4_93 = arith.constant 4 : index
    %c0_94 = arith.constant 0 : index
    %76 = vector.load %arg5[%c1_92, %c4_93, %c0_94] : memref<3x72x128xf32, #tpu.memory_space<vmem>>, vector<1x64x128xf32>
    %77 = vector.shape_cast %76 : vector<1x64x128xf32> to vector<64x128xf32>
    %c1_95 = arith.constant 1 : index
    %c4_96 = arith.constant 4 : index
    %c0_97 = arith.constant 0 : index
    %c0_98 = arith.constant 0 : index
    %78 = vector.load %arg6[%c1_95, %c4_96, %c0_97, %c0_98] : memref<3x7x64x128xf32, #tpu.memory_space<vmem>>, vector<1x1x64x128xf32>
    %79 = vector.shape_cast %78 : vector<1x1x64x128xf32> to vector<64x128xf32>
    %80 = vector.shape_cast %77 : vector<64x128xf32> to vector<1x1x64x128xf32>
    tpu.vector_store %arg6[%c1_95, %c4_96, %c0_97, %c0_98], %80 {strides = array<i32>} : memref<3x7x64x128xf32, #tpu.memory_space<vmem>>, vector<1x1x64x128xf32>,
    %c1_99 = arith.constant 1 : index
    %c5_100 = arith.constant 5 : index
    %c0_101 = arith.constant 0 : index
    %81 = vector.load %arg5[%c1_99, %c5_100, %c0_101] : memref<3x72x128xf32, #tpu.memory_space<vmem>>, vector<1x64x128xf32>
    %82 = vector.shape_cast %81 : vector<1x64x128xf32> to vector<64x128xf32>
    %c1_102 = arith.constant 1 : index
    %c5_103 = arith.constant 5 : index
    %c0_104 = arith.constant 0 : index
    %c0_105 = arith.constant 0 : index
    %83 = vector.load %arg6[%c1_102, %c5_103, %c0_104, %c0_105] : memref<3x7x64x128xf32, #tpu.memory_space<vmem>>, vector<1x1x64x128xf32>
    %84 = vector.shape_cast %83 : vector<1x1x64x128xf32> to vector<64x128xf32>
    %85 = vector.shape_cast %82 : vector<64x128xf32> to vector<1x1x64x128xf32>
    tpu.vector_store %arg6[%c1_102, %c5_103, %c0_104, %c0_105], %85 {strides = array<i32>} : memref<3x7x64x128xf32, #tpu.memory_space<vmem>>, vector<1x1x64x128xf32>,
    %c1_106 = arith.constant 1 : index
    %c6_107 = arith.constant 6 : index
    %c0_108 = arith.constant 0 : index
    %86 = vector.load %arg5[%c1_106, %c6_107, %c0_108] : memref<3x72x128xf32, #tpu.memory_space<vmem>>, vector<1x64x128xf32>
    %87 = vector.shape_cast %86 : vector<1x64x128xf32> to vector<64x128xf32>
    %c1_109 = arith.constant 1 : index
    %c6_110 = arith.constant 6 : index
    %c0_111 = arith.constant 0 : index
    %c0_112 = arith.constant 0 : index
    %88 = vector.load %arg6[%c1_109, %c6_110, %c0_111, %c0_112] : memref<3x7x64x128xf32, #tpu.memory_space<vmem>>, vector<1x1x64x128xf32>
    %89 = vector.shape_cast %88 : vector<1x1x64x128xf32> to vector<64x128xf32>
    %90 = vector.shape_cast %87 : vector<64x128xf32> to vector<1x1x64x128xf32>
    tpu.vector_store %arg6[%c1_109, %c6_110, %c0_111, %c0_112], %90 {strides = array<i32>} : memref<3x7x64x128xf32, #tpu.memory_space<vmem>>, vector<1x1x64x128xf32>,
    %c2_113 = arith.constant 2 : index
    %c0_114 = arith.constant 0 : index
    %c0_115 = arith.constant 0 : index
    %91 = vector.load %arg5[%c2_113, %c0_114, %c0_115] : memref<3x72x128xf32, #tpu.memory_space<vmem>>, vector<1x64x128xf32>
    %92 = vector.shape_cast %91 : vector<1x64x128xf32> to vector<64x128xf32>
    %c2_116 = arith.constant 2 : index
    %c0_117 = arith.constant 0 : index
    %c0_118 = arith.constant 0 : index
    %c0_119 = arith.constant 0 : index
    %93 = vector.load %arg6[%c2_116, %c0_117, %c0_118, %c0_119] : memref<3x7x64x128xf32, #tpu.memory_space<vmem>>, vector<1x1x64x128xf32>
    %94 = vector.shape_cast %93 : vector<1x1x64x128xf32> to vector<64x128xf32>
    %95 = vector.shape_cast %92 : vector<64x128xf32> to vector<1x1x64x128xf32>
    tpu.vector_store %arg6[%c2_116, %c0_117, %c0_118, %c0_119], %95 {strides = array<i32>} : memref<3x7x64x128xf32, #tpu.memory_space<vmem>>, vector<1x1x64x128xf32>,
    %c2_120 = arith.constant 2 : index
    %c1_121 = arith.constant 1 : index
    %c0_122 = arith.constant 0 : index
    %96 = vector.load %arg5[%c2_120, %c1_121, %c0_122] : memref<3x72x128xf32, #tpu.memory_space<vmem>>, vector<1x64x128xf32>
    %97 = vector.shape_cast %96 : vector<1x64x128xf32> to vector<64x128xf32>
    %c2_123 = arith.constant 2 : index
    %c1_124 = arith.constant 1 : index
    %c0_125 = arith.constant 0 : index
    %c0_126 = arith.constant 0 : index
    %98 = vector.load %arg6[%c2_123, %c1_124, %c0_125, %c0_126] : memref<3x7x64x128xf32, #tpu.memory_space<vmem>>, vector<1x1x64x128xf32>
    %99 = vector.shape_cast %98 : vector<1x1x64x128xf32> to vector<64x128xf32>
    %100 = vector.shape_cast %97 : vector<64x128xf32> to vector<1x1x64x128xf32>
    tpu.vector_store %arg6[%c2_123, %c1_124, %c0_125, %c0_126], %100 {strides = array<i32>} : memref<3x7x64x128xf32, #tpu.memory_space<vmem>>, vector<1x1x64x128xf32>,
    %c2_127 = arith.constant 2 : index
    %c2_128 = arith.constant 2 : index
    %c0_129 = arith.constant 0 : index
    %101 = vector.load %arg5[%c2_127, %c2_128, %c0_129] : memref<3x72x128xf32, #tpu.memory_space<vmem>>, vector<1x64x128xf32>
    %102 = vector.shape_cast %101 : vector<1x64x128xf32> to vector<64x128xf32>
    %c2_130 = arith.constant 2 : index
    %c2_131 = arith.constant 2 : index
    %c0_132 = arith.constant 0 : index
    %c0_133 = arith.constant 0 : index
    %103 = vector.load %arg6[%c2_130, %c2_131, %c0_132, %c0_133] : memref<3x7x64x128xf32, #tpu.memory_space<vmem>>, vector<1x1x64x128xf32>
    %104 = vector.shape_cast %103 : vector<1x1x64x128xf32> to vector<64x128xf32>
    %105 = vector.shape_cast %102 : vector<64x128xf32> to vector<1x1x64x128xf32>
    tpu.vector_store %arg6[%c2_130, %c2_131, %c0_132, %c0_133], %105 {strides = array<i32>} : memref<3x7x64x128xf32, #tpu.memory_space<vmem>>, vector<1x1x64x128xf32>,
    %c2_134 = arith.constant 2 : index
    %c3_135 = arith.constant 3 : index
    %c0_136 = arith.constant 0 : index
    %106 = vector.load %arg5[%c2_134, %c3_135, %c0_136] : memref<3x72x128xf32, #tpu.memory_space<vmem>>, vector<1x64x128xf32>
    %107 = vector.shape_cast %106 : vector<1x64x128xf32> to vector<64x128xf32>
    %c2_137 = arith.constant 2 : index
    %c3_138 = arith.constant 3 : index
    %c0_139 = arith.constant 0 : index
    %c0_140 = arith.constant 0 : index
    %108 = vector.load %arg6[%c2_137, %c3_138, %c0_139, %c0_140] : memref<3x7x64x128xf32, #tpu.memory_space<vmem>>, vector<1x1x64x128xf32>
    %109 = vector.shape_cast %108 : vector<1x1x64x128xf32> to vector<64x128xf32>
    %110 = vector.shape_cast %107 : vector<64x128xf32> to vector<1x1x64x128xf32>
    tpu.vector_store %arg6[%c2_137, %c3_138, %c0_139, %c0_140], %110 {strides = array<i32>} : memref<3x7x64x128xf32, #tpu.memory_space<vmem>>, vector<1x1x64x128xf32>,
    %c2_141 = arith.constant 2 : index
    %c4_142 = arith.constant 4 : index
    %c0_143 = arith.constant 0 : index
    %111 = vector.load %arg5[%c2_141, %c4_142, %c0_143] : memref<3x72x128xf32, #tpu.memory_space<vmem>>, vector<1x64x128xf32>
    %112 = vector.shape_cast %111 : vector<1x64x128xf32> to vector<64x128xf32>
    %c2_144 = arith.constant 2 : index
    %c4_145 = arith.constant 4 : index
    %c0_146 = arith.constant 0 : index
    %c0_147 = arith.constant 0 : index
    %113 = vector.load %arg6[%c2_144, %c4_145, %c0_146, %c0_147] : memref<3x7x64x128xf32, #tpu.memory_space<vmem>>, vector<1x1x64x128xf32>
    %114 = vector.shape_cast %113 : vector<1x1x64x128xf32> to vector<64x128xf32>
    %115 = vector.shape_cast %112 : vector<64x128xf32> to vector<1x1x64x128xf32>
    tpu.vector_store %arg6[%c2_144, %c4_145, %c0_146, %c0_147], %115 {strides = array<i32>} : memref<3x7x64x128xf32, #tpu.memory_space<vmem>>, vector<1x1x64x128xf32>,
    %c2_148 = arith.constant 2 : index
    %c5_149 = arith.constant 5 : index
    %c0_150 = arith.constant 0 : index
    %116 = vector.load %arg5[%c2_148, %c5_149, %c0_150] : memref<3x72x128xf32, #tpu.memory_space<vmem>>, vector<1x64x128xf32>
    %117 = vector.shape_cast %116 : vector<1x64x128xf32> to vector<64x128xf32>
    %c2_151 = arith.constant 2 : index
    %c5_152 = arith.constant 5 : index
    %c0_153 = arith.constant 0 : index
    %c0_154 = arith.constant 0 : index
    %118 = vector.load %arg6[%c2_151, %c5_152, %c0_153, %c0_154] : memref<3x7x64x128xf32, #tpu.memory_space<vmem>>, vector<1x1x64x128xf32>
    %119 = vector.shape_cast %118 : vector<1x1x64x128xf32> to vector<64x128xf32>
    %120 = vector.shape_cast %117 : vector<64x128xf32> to vector<1x1x64x128xf32>
    tpu.vector_store %arg6[%c2_151, %c5_152, %c0_153, %c0_154], %120 {strides = array<i32>} : memref<3x7x64x128xf32, #tpu.memory_space<vmem>>, vector<1x1x64x128xf32>,
    %c2_155 = arith.constant 2 : index
    %c6_156 = arith.constant 6 : index
    %c0_157 = arith.constant 0 : index
    %121 = vector.load %arg5[%c2_155, %c6_156, %c0_157] : memref<3x72x128xf32, #tpu.memory_space<vmem>>, vector<1x64x128xf32>
    %122 = vector.shape_cast %121 : vector<1x64x128xf32> to vector<64x128xf32>
    %c2_158 = arith.constant 2 : index
    %c6_159 = arith.constant 6 : index
    %c0_160 = arith.constant 0 : index
    %c0_161 = arith.constant 0 : index
    %123 = vector.load %arg6[%c2_158, %c6_159, %c0_160, %c0_161] : memref<3x7x64x128xf32, #tpu.memory_space<vmem>>, vector<1x1x64x128xf32>
    %124 = vector.shape_cast %123 : vector<1x1x64x128xf32> to vector<64x128xf32>
    %125 = vector.shape_cast %122 : vector<64x128xf32> to vector<1x1x64x128xf32>
    tpu.vector_store %arg6[%c2_158, %c6_159, %c0_160, %c0_161], %125 {strides = array<i32>} : memref<3x7x64x128xf32, #tpu.memory_space<vmem>>, vector<1x1x64x128xf32>,
    %126 = tpu.iota {dimensions = array<i32: 1>} : vector<64x128xi32>
    %c1_i32 = arith.constant 1 : i32
    %127 = vector.broadcast %c1_i32 : i32 to vector<64x128xi32>
    %128 = arith.cmpi sge, %126, %127 : vector<64x128xi32>
    %c64_i32 = arith.constant 64 : i32
    %129 = vector.broadcast %c64_i32 : i32 to vector<64x128xi32>
    %130 = arith.cmpi sle, %126, %129 : vector<64x128xi32>
    %131 = arith.andi %128, %130 : vector<64x128xi1>
    %c0_162 = arith.constant 0 : index
    %132 = memref.load %arg1[%c0_162] : memref<8xf32, #tpu.memory_space<smem>>
    %133 = vector.broadcast %132 : f32 to vector<64x128xf32>
    %c1_163 = arith.constant 1 : index
    %134 = memref.load %arg1[%c1_163] : memref<8xf32, #tpu.memory_space<smem>>
    %135 = vector.broadcast %134 : f32 to vector<64x128xf32>
    %c2_164 = arith.constant 2 : index
    %136 = memref.load %arg1[%c2_164] : memref<8xf32, #tpu.memory_space<smem>>
    %137 = vector.broadcast %136 : f32 to vector<64x128xf32>
    %c3_165 = arith.constant 3 : index
    %138 = memref.load %arg1[%c3_165] : memref<8xf32, #tpu.memory_space<smem>>
    %139 = vector.broadcast %138 : f32 to vector<64x128xf32>
    %c0_166 = arith.constant 0 : index
    %c0_167 = arith.constant 0 : index
    %c0_168 = arith.constant 0 : index
    %c0_169 = arith.constant 0 : index
    %140 = vector.load %arg6[%c0_166, %c0_167, %c0_168, %c0_169] : memref<3x7x64x128xf32, #tpu.memory_space<vmem>>, vector<1x1x64x128xf32>
    %141 = vector.shape_cast %140 : vector<1x1x64x128xf32> to vector<64x128xf32>
    %c0_170 = arith.constant 0 : index
    %142 = memref.load %arg0[%c0_170] : memref<168xf32, #tpu.memory_space<smem>>
    %143 = vector.broadcast %142 : f32 to vector<64x128xf32>
    %144 = arith.mulf %143, %141 : vector<64x128xf32>
    %145 = arith.addf %133, %144 : vector<64x128xf32>
    %c21 = arith.constant 21 : index
    %146 = memref.load %arg0[%c21] : memref<168xf32, #tpu.memory_space<smem>>
    %147 = vector.broadcast %146 : f32 to vector<64x128xf32>
    %148 = arith.mulf %147, %141 : vector<64x128xf32>
    %149 = arith.addf %135, %148 : vector<64x128xf32>
    %c42 = arith.constant 42 : index
    %150 = memref.load %arg0[%c42] : memref<168xf32, #tpu.memory_space<smem>>
    %151 = vector.broadcast %150 : f32 to vector<64x128xf32>
    %152 = arith.mulf %151, %141 : vector<64x128xf32>
    %153 = arith.addf %137, %152 : vector<64x128xf32>
    %c63 = arith.constant 63 : index
    %154 = memref.load %arg0[%c63] : memref<168xf32, #tpu.memory_space<smem>>
    %155 = vector.broadcast %154 : f32 to vector<64x128xf32>
    %156 = arith.mulf %155, %141 : vector<64x128xf32>
    %157 = arith.addf %139, %156 : vector<64x128xf32>
    %c1_171 = arith.constant 1 : index
    %c0_172 = arith.constant 0 : index
    %c0_173 = arith.constant 0 : index
    %c0_174 = arith.constant 0 : index
    %158 = vector.load %arg6[%c1_171, %c0_172, %c0_173, %c0_174] : memref<3x7x64x128xf32, #tpu.memory_space<vmem>>, vector<1x1x64x128xf32>
    %159 = vector.shape_cast %158 : vector<1x1x64x128xf32> to vector<64x128xf32>
    %c1_175 = arith.constant 1 : index
    %160 = memref.load %arg0[%c1_175] : memref<168xf32, #tpu.memory_space<smem>>
    %161 = vector.broadcast %160 : f32 to vector<64x128xf32>
    %162 = arith.mulf %161, %159 : vector<64x128xf32>
    %163 = arith.addf %145, %162 : vector<64x128xf32>
    %c22 = arith.constant 22 : index
    %164 = memref.load %arg0[%c22] : memref<168xf32, #tpu.memory_space<smem>>
    %165 = vector.broadcast %164 : f32 to vector<64x128xf32>
    %166 = arith.mulf %165, %159 : vector<64x128xf32>
    %167 = arith.addf %149, %166 : vector<64x128xf32>
    %c43 = arith.constant 43 : index
    %168 = memref.load %arg0[%c43] : memref<168xf32, #tpu.memory_space<smem>>
    %169 = vector.broadcast %168 : f32 to vector<64x128xf32>
    %170 = arith.mulf %169, %159 : vector<64x128xf32>
    %171 = arith.addf %153, %170 : vector<64x128xf32>
    %c64 = arith.constant 64 : index
    %172 = memref.load %arg0[%c64] : memref<168xf32, #tpu.memory_space<smem>>
    %173 = vector.broadcast %172 : f32 to vector<64x128xf32>
    %174 = arith.mulf %173, %159 : vector<64x128xf32>
    %175 = arith.addf %157, %174 : vector<64x128xf32>
    %c2_176 = arith.constant 2 : index
    %c0_177 = arith.constant 0 : index
    %c0_178 = arith.constant 0 : index
    %c0_179 = arith.constant 0 : index
    %176 = vector.load %arg6[%c2_176, %c0_177, %c0_178, %c0_179] : memref<3x7x64x128xf32, #tpu.memory_space<vmem>>, vector<1x1x64x128xf32>
    %177 = vector.shape_cast %176 : vector<1x1x64x128xf32> to vector<64x128xf32>
    %c2_180 = arith.constant 2 : index
    %178 = memref.load %arg0[%c2_180] : memref<168xf32, #tpu.memory_space<smem>>
    %179 = vector.broadcast %178 : f32 to vector<64x128xf32>
    %180 = arith.mulf %179, %177 : vector<64x128xf32>
    %181 = arith.addf %163, %180 : vector<64x128xf32>
    %c23 = arith.constant 23 : index
    %182 = memref.load %arg0[%c23] : memref<168xf32, #tpu.memory_space<smem>>
    %183 = vector.broadcast %182 : f32 to vector<64x128xf32>
    %184 = arith.mulf %183, %177 : vector<64x128xf32>
    %185 = arith.addf %167, %184 : vector<64x128xf32>
    %c44 = arith.constant 44 : index
    %186 = memref.load %arg0[%c44] : memref<168xf32, #tpu.memory_space<smem>>
    %187 = vector.broadcast %186 : f32 to vector<64x128xf32>
    %188 = arith.mulf %187, %177 : vector<64x128xf32>
    %189 = arith.addf %171, %188 : vector<64x128xf32>
    %c65 = arith.constant 65 : index
    %190 = memref.load %arg0[%c65] : memref<168xf32, #tpu.memory_space<smem>>
    %191 = vector.broadcast %190 : f32 to vector<64x128xf32>
    %192 = arith.mulf %191, %177 : vector<64x128xf32>
    %193 = arith.addf %175, %192 : vector<64x128xf32>
    %c0_181 = arith.constant 0 : index
    %c1_182 = arith.constant 1 : index
    %c0_183 = arith.constant 0 : index
    %c0_184 = arith.constant 0 : index
    %194 = vector.load %arg6[%c0_181, %c1_182, %c0_183, %c0_184] : memref<3x7x64x128xf32, #tpu.memory_space<vmem>>, vector<1x1x64x128xf32>
    %195 = vector.shape_cast %194 : vector<1x1x64x128xf32> to vector<64x128xf32>
    %c3_185 = arith.constant 3 : index
    %196 = memref.load %arg0[%c3_185] : memref<168xf32, #tpu.memory_space<smem>>
    %197 = vector.broadcast %196 : f32 to vector<64x128xf32>
    %198 = arith.mulf %197, %195 : vector<64x128xf32>
    %199 = arith.addf %181, %198 : vector<64x128xf32>
    %c24 = arith.constant 24 : index
    %200 = memref.load %arg0[%c24] : memref<168xf32, #tpu.memory_space<smem>>
    %201 = vector.broadcast %200 : f32 to vector<64x128xf32>
    %202 = arith.mulf %201, %195 : vector<64x128xf32>
    %203 = arith.addf %185, %202 : vector<64x128xf32>
    %c45 = arith.constant 45 : index
    %204 = memref.load %arg0[%c45] : memref<168xf32, #tpu.memory_space<smem>>
    %205 = vector.broadcast %204 : f32 to vector<64x128xf32>
    %206 = arith.mulf %205, %195 : vector<64x128xf32>
    %207 = arith.addf %189, %206 : vector<64x128xf32>
    %c66 = arith.constant 66 : index
    %208 = memref.load %arg0[%c66] : memref<168xf32, #tpu.memory_space<smem>>
    %209 = vector.broadcast %208 : f32 to vector<64x128xf32>
    %210 = arith.mulf %209, %195 : vector<64x128xf32>
    %211 = arith.addf %193, %210 : vector<64x128xf32>
    %c1_186 = arith.constant 1 : index
    %c1_187 = arith.constant 1 : index
    %c0_188 = arith.constant 0 : index
    %c0_189 = arith.constant 0 : index
    %212 = vector.load %arg6[%c1_186, %c1_187, %c0_188, %c0_189] : memref<3x7x64x128xf32, #tpu.memory_space<vmem>>, vector<1x1x64x128xf32>
    %213 = vector.shape_cast %212 : vector<1x1x64x128xf32> to vector<64x128xf32>
    %c4_190 = arith.constant 4 : index
    %214 = memref.load %arg0[%c4_190] : memref<168xf32, #tpu.memory_space<smem>>
    %215 = vector.broadcast %214 : f32 to vector<64x128xf32>
    %216 = arith.mulf %215, %213 : vector<64x128xf32>
    %217 = arith.addf %199, %216 : vector<64x128xf32>
    %c25 = arith.constant 25 : index
    %218 = memref.load %arg0[%c25] : memref<168xf32, #tpu.memory_space<smem>>
    %219 = vector.broadcast %218 : f32 to vector<64x128xf32>
    %220 = arith.mulf %219, %213 : vector<64x128xf32>
    %221 = arith.addf %203, %220 : vector<64x128xf32>
    %c46 = arith.constant 46 : index
    %222 = memref.load %arg0[%c46] : memref<168xf32, #tpu.memory_space<smem>>
    %223 = vector.broadcast %222 : f32 to vector<64x128xf32>
    %224 = arith.mulf %223, %213 : vector<64x128xf32>
    %225 = arith.addf %207, %224 : vector<64x128xf32>
    %c67 = arith.constant 67 : index
    %226 = memref.load %arg0[%c67] : memref<168xf32, #tpu.memory_space<smem>>
    %227 = vector.broadcast %226 : f32 to vector<64x128xf32>
    %228 = arith.mulf %227, %213 : vector<64x128xf32>
    %229 = arith.addf %211, %228 : vector<64x128xf32>
    %c2_191 = arith.constant 2 : index
    %c1_192 = arith.constant 1 : index
    %c0_193 = arith.constant 0 : index
    %c0_194 = arith.constant 0 : index
    %230 = vector.load %arg6[%c2_191, %c1_192, %c0_193, %c0_194] : memref<3x7x64x128xf32, #tpu.memory_space<vmem>>, vector<1x1x64x128xf32>
    %231 = vector.shape_cast %230 : vector<1x1x64x128xf32> to vector<64x128xf32>
    %c5_195 = arith.constant 5 : index
    %232 = memref.load %arg0[%c5_195] : memref<168xf32, #tpu.memory_space<smem>>
    %233 = vector.broadcast %232 : f32 to vector<64x128xf32>
    %234 = arith.mulf %233, %231 : vector<64x128xf32>
    %235 = arith.addf %217, %234 : vector<64x128xf32>
    %c26 = arith.constant 26 : index
    %236 = memref.load %arg0[%c26] : memref<168xf32, #tpu.memory_space<smem>>
    %237 = vector.broadcast %236 : f32 to vector<64x128xf32>
    %238 = arith.mulf %237, %231 : vector<64x128xf32>
    %239 = arith.addf %221, %238 : vector<64x128xf32>
    %c47 = arith.constant 47 : index
    %240 = memref.load %arg0[%c47] : memref<168xf32, #tpu.memory_space<smem>>
    %241 = vector.broadcast %240 : f32 to vector<64x128xf32>
    %242 = arith.mulf %241, %231 : vector<64x128xf32>
    %243 = arith.addf %225, %242 : vector<64x128xf32>
    %c68 = arith.constant 68 : index
    %244 = memref.load %arg0[%c68] : memref<168xf32, #tpu.memory_space<smem>>
    %245 = vector.broadcast %244 : f32 to vector<64x128xf32>
    %246 = arith.mulf %245, %231 : vector<64x128xf32>
    %247 = arith.addf %229, %246 : vector<64x128xf32>
    %c0_196 = arith.constant 0 : index
    %c2_197 = arith.constant 2 : index
    %c0_198 = arith.constant 0 : index
    %c0_199 = arith.constant 0 : index
    %248 = vector.load %arg6[%c0_196, %c2_197, %c0_198, %c0_199] : memref<3x7x64x128xf32, #tpu.memory_space<vmem>>, vector<1x1x64x128xf32>
    %249 = vector.shape_cast %248 : vector<1x1x64x128xf32> to vector<64x128xf32>
    %c6_200 = arith.constant 6 : index
    %250 = memref.load %arg0[%c6_200] : memref<168xf32, #tpu.memory_space<smem>>
    %251 = vector.broadcast %250 : f32 to vector<64x128xf32>
    %252 = arith.mulf %251, %249 : vector<64x128xf32>
    %253 = arith.addf %235, %252 : vector<64x128xf32>
    %c27 = arith.constant 27 : index
    %254 = memref.load %arg0[%c27] : memref<168xf32, #tpu.memory_space<smem>>
    %255 = vector.broadcast %254 : f32 to vector<64x128xf32>
    %256 = arith.mulf %255, %249 : vector<64x128xf32>
    %257 = arith.addf %239, %256 : vector<64x128xf32>
    %c48 = arith.constant 48 : index
    %258 = memref.load %arg0[%c48] : memref<168xf32, #tpu.memory_space<smem>>
    %259 = vector.broadcast %258 : f32 to vector<64x128xf32>
    %260 = arith.mulf %259, %249 : vector<64x128xf32>
    %261 = arith.addf %243, %260 : vector<64x128xf32>
    %c69 = arith.constant 69 : index
    %262 = memref.load %arg0[%c69] : memref<168xf32, #tpu.memory_space<smem>>
    %263 = vector.broadcast %262 : f32 to vector<64x128xf32>
    %264 = arith.mulf %263, %249 : vector<64x128xf32>
    %265 = arith.addf %247, %264 : vector<64x128xf32>
    %c1_201 = arith.constant 1 : index
    %c2_202 = arith.constant 2 : index
    %c0_203 = arith.constant 0 : index
    %c0_204 = arith.constant 0 : index
    %266 = vector.load %arg6[%c1_201, %c2_202, %c0_203, %c0_204] : memref<3x7x64x128xf32, #tpu.memory_space<vmem>>, vector<1x1x64x128xf32>
    %267 = vector.shape_cast %266 : vector<1x1x64x128xf32> to vector<64x128xf32>
    %c7 = arith.constant 7 : index
    %268 = memref.load %arg0[%c7] : memref<168xf32, #tpu.memory_space<smem>>
    %269 = vector.broadcast %268 : f32 to vector<64x128xf32>
    %270 = arith.mulf %269, %267 : vector<64x128xf32>
    %271 = arith.addf %253, %270 : vector<64x128xf32>
    %c28 = arith.constant 28 : index
    %272 = memref.load %arg0[%c28] : memref<168xf32, #tpu.memory_space<smem>>
    %273 = vector.broadcast %272 : f32 to vector<64x128xf32>
    %274 = arith.mulf %273, %267 : vector<64x128xf32>
    %275 = arith.addf %257, %274 : vector<64x128xf32>
    %c49 = arith.constant 49 : index
    %276 = memref.load %arg0[%c49] : memref<168xf32, #tpu.memory_space<smem>>
    %277 = vector.broadcast %276 : f32 to vector<64x128xf32>
    %278 = arith.mulf %277, %267 : vector<64x128xf32>
    %279 = arith.addf %261, %278 : vector<64x128xf32>
    %c70 = arith.constant 70 : index
    %280 = memref.load %arg0[%c70] : memref<168xf32, #tpu.memory_space<smem>>
    %281 = vector.broadcast %280 : f32 to vector<64x128xf32>
    %282 = arith.mulf %281, %267 : vector<64x128xf32>
    %283 = arith.addf %265, %282 : vector<64x128xf32>
    %c2_205 = arith.constant 2 : index
    %c2_206 = arith.constant 2 : index
    %c0_207 = arith.constant 0 : index
    %c0_208 = arith.constant 0 : index
    %284 = vector.load %arg6[%c2_205, %c2_206, %c0_207, %c0_208] : memref<3x7x64x128xf32, #tpu.memory_space<vmem>>, vector<1x1x64x128xf32>
    %285 = vector.shape_cast %284 : vector<1x1x64x128xf32> to vector<64x128xf32>
    %c8 = arith.constant 8 : index
    %286 = memref.load %arg0[%c8] : memref<168xf32, #tpu.memory_space<smem>>
    %287 = vector.broadcast %286 : f32 to vector<64x128xf32>
    %288 = arith.mulf %287, %285 : vector<64x128xf32>
    %289 = arith.addf %271, %288 : vector<64x128xf32>
    %c29 = arith.constant 29 : index
    %290 = memref.load %arg0[%c29] : memref<168xf32, #tpu.memory_space<smem>>
    %291 = vector.broadcast %290 : f32 to vector<64x128xf32>
    %292 = arith.mulf %291, %285 : vector<64x128xf32>
    %293 = arith.addf %275, %292 : vector<64x128xf32>
    %c50 = arith.constant 50 : index
    %294 = memref.load %arg0[%c50] : memref<168xf32, #tpu.memory_space<smem>>
    %295 = vector.broadcast %294 : f32 to vector<64x128xf32>
    %296 = arith.mulf %295, %285 : vector<64x128xf32>
    %297 = arith.addf %279, %296 : vector<64x128xf32>
    %c71 = arith.constant 71 : index
    %298 = memref.load %arg0[%c71] : memref<168xf32, #tpu.memory_space<smem>>
    %299 = vector.broadcast %298 : f32 to vector<64x128xf32>
    %300 = arith.mulf %299, %285 : vector<64x128xf32>
    %301 = arith.addf %283, %300 : vector<64x128xf32>
    %c0_209 = arith.constant 0 : index
    %c3_210 = arith.constant 3 : index
    %c0_211 = arith.constant 0 : index
    %c0_212 = arith.constant 0 : index
    %302 = vector.load %arg6[%c0_209, %c3_210, %c0_211, %c0_212] : memref<3x7x64x128xf32, #tpu.memory_space<vmem>>, vector<1x1x64x128xf32>
    %303 = vector.shape_cast %302 : vector<1x1x64x128xf32> to vector<64x128xf32>
    %c9 = arith.constant 9 : index
    %304 = memref.load %arg0[%c9] : memref<168xf32, #tpu.memory_space<smem>>
    %305 = vector.broadcast %304 : f32 to vector<64x128xf32>
    %306 = arith.mulf %305, %303 : vector<64x128xf32>
    %307 = arith.addf %289, %306 : vector<64x128xf32>
    %c30 = arith.constant 30 : index
    %308 = memref.load %arg0[%c30] : memref<168xf32, #tpu.memory_space<smem>>
    %309 = vector.broadcast %308 : f32 to vector<64x128xf32>
    %310 = arith.mulf %309, %303 : vector<64x128xf32>
    %311 = arith.addf %293, %310 : vector<64x128xf32>
    %c51 = arith.constant 51 : index
    %312 = memref.load %arg0[%c51] : memref<168xf32, #tpu.memory_space<smem>>
    %313 = vector.broadcast %312 : f32 to vector<64x128xf32>
    %314 = arith.mulf %313, %303 : vector<64x128xf32>
    %315 = arith.addf %297, %314 : vector<64x128xf32>
    %c72 = arith.constant 72 : index
    %316 = memref.load %arg0[%c72] : memref<168xf32, #tpu.memory_space<smem>>
    %317 = vector.broadcast %316 : f32 to vector<64x128xf32>
    %318 = arith.mulf %317, %303 : vector<64x128xf32>
    %319 = arith.addf %301, %318 : vector<64x128xf32>
    %c1_213 = arith.constant 1 : index
    %c3_214 = arith.constant 3 : index
    %c0_215 = arith.constant 0 : index
    %c0_216 = arith.constant 0 : index
    %320 = vector.load %arg6[%c1_213, %c3_214, %c0_215, %c0_216] : memref<3x7x64x128xf32, #tpu.memory_space<vmem>>, vector<1x1x64x128xf32>
    %321 = vector.shape_cast %320 : vector<1x1x64x128xf32> to vector<64x128xf32>
    %c10 = arith.constant 10 : index
    %322 = memref.load %arg0[%c10] : memref<168xf32, #tpu.memory_space<smem>>
    %323 = vector.broadcast %322 : f32 to vector<64x128xf32>
    %324 = arith.mulf %323, %321 : vector<64x128xf32>
    %325 = arith.addf %307, %324 : vector<64x128xf32>
    %c31 = arith.constant 31 : index
    %326 = memref.load %arg0[%c31] : memref<168xf32, #tpu.memory_space<smem>>
    %327 = vector.broadcast %326 : f32 to vector<64x128xf32>
    %328 = arith.mulf %327, %321 : vector<64x128xf32>
    %329 = arith.addf %311, %328 : vector<64x128xf32>
    %c52 = arith.constant 52 : index
    %330 = memref.load %arg0[%c52] : memref<168xf32, #tpu.memory_space<smem>>
    %331 = vector.broadcast %330 : f32 to vector<64x128xf32>
    %332 = arith.mulf %331, %321 : vector<64x128xf32>
    %333 = arith.addf %315, %332 : vector<64x128xf32>
    %c73 = arith.constant 73 : index
    %334 = memref.load %arg0[%c73] : memref<168xf32, #tpu.memory_space<smem>>
    %335 = vector.broadcast %334 : f32 to vector<64x128xf32>
    %336 = arith.mulf %335, %321 : vector<64x128xf32>
    %337 = arith.addf %319, %336 : vector<64x128xf32>
    %c2_217 = arith.constant 2 : index
    %c3_218 = arith.constant 3 : index
    %c0_219 = arith.constant 0 : index
    %c0_220 = arith.constant 0 : index
    %338 = vector.load %arg6[%c2_217, %c3_218, %c0_219, %c0_220] : memref<3x7x64x128xf32, #tpu.memory_space<vmem>>, vector<1x1x64x128xf32>
    %339 = vector.shape_cast %338 : vector<1x1x64x128xf32> to vector<64x128xf32>
    %c11 = arith.constant 11 : index
    %340 = memref.load %arg0[%c11] : memref<168xf32, #tpu.memory_space<smem>>
    %341 = vector.broadcast %340 : f32 to vector<64x128xf32>
    %342 = arith.mulf %341, %339 : vector<64x128xf32>
    %343 = arith.addf %325, %342 : vector<64x128xf32>
    %c32 = arith.constant 32 : index
    %344 = memref.load %arg0[%c32] : memref<168xf32, #tpu.memory_space<smem>>
    %345 = vector.broadcast %344 : f32 to vector<64x128xf32>
    %346 = arith.mulf %345, %339 : vector<64x128xf32>
    %347 = arith.addf %329, %346 : vector<64x128xf32>
    %c53 = arith.constant 53 : index
    %348 = memref.load %arg0[%c53] : memref<168xf32, #tpu.memory_space<smem>>
    %349 = vector.broadcast %348 : f32 to vector<64x128xf32>
    %350 = arith.mulf %349, %339 : vector<64x128xf32>
    %351 = arith.addf %333, %350 : vector<64x128xf32>
    %c74 = arith.constant 74 : index
    %352 = memref.load %arg0[%c74] : memref<168xf32, #tpu.memory_space<smem>>
    %353 = vector.broadcast %352 : f32 to vector<64x128xf32>
    %354 = arith.mulf %353, %339 : vector<64x128xf32>
    %355 = arith.addf %337, %354 : vector<64x128xf32>
    %c0_221 = arith.constant 0 : index
    %c4_222 = arith.constant 4 : index
    %c0_223 = arith.constant 0 : index
    %c0_224 = arith.constant 0 : index
    %356 = vector.load %arg6[%c0_221, %c4_222, %c0_223, %c0_224] : memref<3x7x64x128xf32, #tpu.memory_space<vmem>>, vector<1x1x64x128xf32>
    %357 = vector.shape_cast %356 : vector<1x1x64x128xf32> to vector<64x128xf32>
    %c12 = arith.constant 12 : index
    %358 = memref.load %arg0[%c12] : memref<168xf32, #tpu.memory_space<smem>>
    %359 = vector.broadcast %358 : f32 to vector<64x128xf32>
    %360 = arith.mulf %359, %357 : vector<64x128xf32>
    %361 = arith.addf %343, %360 : vector<64x128xf32>
    %c33 = arith.constant 33 : index
    %362 = memref.load %arg0[%c33] : memref<168xf32, #tpu.memory_space<smem>>
    %363 = vector.broadcast %362 : f32 to vector<64x128xf32>
    %364 = arith.mulf %363, %357 : vector<64x128xf32>
    %365 = arith.addf %347, %364 : vector<64x128xf32>
    %c54 = arith.constant 54 : index
    %366 = memref.load %arg0[%c54] : memref<168xf32, #tpu.memory_space<smem>>
    %367 = vector.broadcast %366 : f32 to vector<64x128xf32>
    %368 = arith.mulf %367, %357 : vector<64x128xf32>
    %369 = arith.addf %351, %368 : vector<64x128xf32>
    %c75 = arith.constant 75 : index
    %370 = memref.load %arg0[%c75] : memref<168xf32, #tpu.memory_space<smem>>
    %371 = vector.broadcast %370 : f32 to vector<64x128xf32>
    %372 = arith.mulf %371, %357 : vector<64x128xf32>
    %373 = arith.addf %355, %372 : vector<64x128xf32>
    %c1_225 = arith.constant 1 : index
    %c4_226 = arith.constant 4 : index
    %c0_227 = arith.constant 0 : index
    %c0_228 = arith.constant 0 : index
    %374 = vector.load %arg6[%c1_225, %c4_226, %c0_227, %c0_228] : memref<3x7x64x128xf32, #tpu.memory_space<vmem>>, vector<1x1x64x128xf32>
    %375 = vector.shape_cast %374 : vector<1x1x64x128xf32> to vector<64x128xf32>
    %c13 = arith.constant 13 : index
    %376 = memref.load %arg0[%c13] : memref<168xf32, #tpu.memory_space<smem>>
    %377 = vector.broadcast %376 : f32 to vector<64x128xf32>
    %378 = arith.mulf %377, %375 : vector<64x128xf32>
    %379 = arith.addf %361, %378 : vector<64x128xf32>
    %c34 = arith.constant 34 : index
    %380 = memref.load %arg0[%c34] : memref<168xf32, #tpu.memory_space<smem>>
    %381 = vector.broadcast %380 : f32 to vector<64x128xf32>
    %382 = arith.mulf %381, %375 : vector<64x128xf32>
    %383 = arith.addf %365, %382 : vector<64x128xf32>
    %c55 = arith.constant 55 : index
    %384 = memref.load %arg0[%c55] : memref<168xf32, #tpu.memory_space<smem>>
    %385 = vector.broadcast %384 : f32 to vector<64x128xf32>
    %386 = arith.mulf %385, %375 : vector<64x128xf32>
    %387 = arith.addf %369, %386 : vector<64x128xf32>
    %c76 = arith.constant 76 : index
    %388 = memref.load %arg0[%c76] : memref<168xf32, #tpu.memory_space<smem>>
    %389 = vector.broadcast %388 : f32 to vector<64x128xf32>
    %390 = arith.mulf %389, %375 : vector<64x128xf32>
    %391 = arith.addf %373, %390 : vector<64x128xf32>
    %c2_229 = arith.constant 2 : index
    %c4_230 = arith.constant 4 : index
    %c0_231 = arith.constant 0 : index
    %c0_232 = arith.constant 0 : index
    %392 = vector.load %arg6[%c2_229, %c4_230, %c0_231, %c0_232] : memref<3x7x64x128xf32, #tpu.memory_space<vmem>>, vector<1x1x64x128xf32>
    %393 = vector.shape_cast %392 : vector<1x1x64x128xf32> to vector<64x128xf32>
    %c14 = arith.constant 14 : index
    %394 = memref.load %arg0[%c14] : memref<168xf32, #tpu.memory_space<smem>>
    %395 = vector.broadcast %394 : f32 to vector<64x128xf32>
    %396 = arith.mulf %395, %393 : vector<64x128xf32>
    %397 = arith.addf %379, %396 : vector<64x128xf32>
    %c35 = arith.constant 35 : index
    %398 = memref.load %arg0[%c35] : memref<168xf32, #tpu.memory_space<smem>>
    %399 = vector.broadcast %398 : f32 to vector<64x128xf32>
    %400 = arith.mulf %399, %393 : vector<64x128xf32>
    %401 = arith.addf %383, %400 : vector<64x128xf32>
    %c56 = arith.constant 56 : index
    %402 = memref.load %arg0[%c56] : memref<168xf32, #tpu.memory_space<smem>>
    %403 = vector.broadcast %402 : f32 to vector<64x128xf32>
    %404 = arith.mulf %403, %393 : vector<64x128xf32>
    %405 = arith.addf %387, %404 : vector<64x128xf32>
    %c77 = arith.constant 77 : index
    %406 = memref.load %arg0[%c77] : memref<168xf32, #tpu.memory_space<smem>>
    %407 = vector.broadcast %406 : f32 to vector<64x128xf32>
    %408 = arith.mulf %407, %393 : vector<64x128xf32>
    %409 = arith.addf %391, %408 : vector<64x128xf32>
    %c0_233 = arith.constant 0 : index
    %c5_234 = arith.constant 5 : index
    %c0_235 = arith.constant 0 : index
    %c0_236 = arith.constant 0 : index
    %410 = vector.load %arg6[%c0_233, %c5_234, %c0_235, %c0_236] : memref<3x7x64x128xf32, #tpu.memory_space<vmem>>, vector<1x1x64x128xf32>
    %411 = vector.shape_cast %410 : vector<1x1x64x128xf32> to vector<64x128xf32>
    %c15 = arith.constant 15 : index
    %412 = memref.load %arg0[%c15] : memref<168xf32, #tpu.memory_space<smem>>
    %413 = vector.broadcast %412 : f32 to vector<64x128xf32>
    %414 = arith.mulf %413, %411 : vector<64x128xf32>
    %415 = arith.addf %397, %414 : vector<64x128xf32>
    %c36 = arith.constant 36 : index
    %416 = memref.load %arg0[%c36] : memref<168xf32, #tpu.memory_space<smem>>
    %417 = vector.broadcast %416 : f32 to vector<64x128xf32>
    %418 = arith.mulf %417, %411 : vector<64x128xf32>
    %419 = arith.addf %401, %418 : vector<64x128xf32>
    %c57 = arith.constant 57 : index
    %420 = memref.load %arg0[%c57] : memref<168xf32, #tpu.memory_space<smem>>
    %421 = vector.broadcast %420 : f32 to vector<64x128xf32>
    %422 = arith.mulf %421, %411 : vector<64x128xf32>
    %423 = arith.addf %405, %422 : vector<64x128xf32>
    %c78 = arith.constant 78 : index
    %424 = memref.load %arg0[%c78] : memref<168xf32, #tpu.memory_space<smem>>
    %425 = vector.broadcast %424 : f32 to vector<64x128xf32>
    %426 = arith.mulf %425, %411 : vector<64x128xf32>
    %427 = arith.addf %409, %426 : vector<64x128xf32>
    %c1_237 = arith.constant 1 : index
    %c5_238 = arith.constant 5 : index
    %c0_239 = arith.constant 0 : index
    %c0_240 = arith.constant 0 : index
    %428 = vector.load %arg6[%c1_237, %c5_238, %c0_239, %c0_240] : memref<3x7x64x128xf32, #tpu.memory_space<vmem>>, vector<1x1x64x128xf32>
    %429 = vector.shape_cast %428 : vector<1x1x64x128xf32> to vector<64x128xf32>
    %c16 = arith.constant 16 : index
    %430 = memref.load %arg0[%c16] : memref<168xf32, #tpu.memory_space<smem>>
    %431 = vector.broadcast %430 : f32 to vector<64x128xf32>
    %432 = arith.mulf %431, %429 : vector<64x128xf32>
    %433 = arith.addf %415, %432 : vector<64x128xf32>
    %c37 = arith.constant 37 : index
    %434 = memref.load %arg0[%c37] : memref<168xf32, #tpu.memory_space<smem>>
    %435 = vector.broadcast %434 : f32 to vector<64x128xf32>
    %436 = arith.mulf %435, %429 : vector<64x128xf32>
    %437 = arith.addf %419, %436 : vector<64x128xf32>
    %c58 = arith.constant 58 : index
    %438 = memref.load %arg0[%c58] : memref<168xf32, #tpu.memory_space<smem>>
    %439 = vector.broadcast %438 : f32 to vector<64x128xf32>
    %440 = arith.mulf %439, %429 : vector<64x128xf32>
    %441 = arith.addf %423, %440 : vector<64x128xf32>
    %c79 = arith.constant 79 : index
    %442 = memref.load %arg0[%c79] : memref<168xf32, #tpu.memory_space<smem>>
    %443 = vector.broadcast %442 : f32 to vector<64x128xf32>
    %444 = arith.mulf %443, %429 : vector<64x128xf32>
    %445 = arith.addf %427, %444 : vector<64x128xf32>
    %c2_241 = arith.constant 2 : index
    %c5_242 = arith.constant 5 : index
    %c0_243 = arith.constant 0 : index
    %c0_244 = arith.constant 0 : index
    %446 = vector.load %arg6[%c2_241, %c5_242, %c0_243, %c0_244] : memref<3x7x64x128xf32, #tpu.memory_space<vmem>>, vector<1x1x64x128xf32>
    %447 = vector.shape_cast %446 : vector<1x1x64x128xf32> to vector<64x128xf32>
    %c17 = arith.constant 17 : index
    %448 = memref.load %arg0[%c17] : memref<168xf32, #tpu.memory_space<smem>>
    %449 = vector.broadcast %448 : f32 to vector<64x128xf32>
    %450 = arith.mulf %449, %447 : vector<64x128xf32>
    %451 = arith.addf %433, %450 : vector<64x128xf32>
    %c38 = arith.constant 38 : index
    %452 = memref.load %arg0[%c38] : memref<168xf32, #tpu.memory_space<smem>>
    %453 = vector.broadcast %452 : f32 to vector<64x128xf32>
    %454 = arith.mulf %453, %447 : vector<64x128xf32>
    %455 = arith.addf %437, %454 : vector<64x128xf32>
    %c59 = arith.constant 59 : index
    %456 = memref.load %arg0[%c59] : memref<168xf32, #tpu.memory_space<smem>>
    %457 = vector.broadcast %456 : f32 to vector<64x128xf32>
    %458 = arith.mulf %457, %447 : vector<64x128xf32>
    %459 = arith.addf %441, %458 : vector<64x128xf32>
    %c80 = arith.constant 80 : index
    %460 = memref.load %arg0[%c80] : memref<168xf32, #tpu.memory_space<smem>>
    %461 = vector.broadcast %460 : f32 to vector<64x128xf32>
    %462 = arith.mulf %461, %447 : vector<64x128xf32>
    %463 = arith.addf %445, %462 : vector<64x128xf32>
    %c0_245 = arith.constant 0 : index
    %c6_246 = arith.constant 6 : index
    %c0_247 = arith.constant 0 : index
    %c0_248 = arith.constant 0 : index
    %464 = vector.load %arg6[%c0_245, %c6_246, %c0_247, %c0_248] : memref<3x7x64x128xf32, #tpu.memory_space<vmem>>, vector<1x1x64x128xf32>
    %465 = vector.shape_cast %464 : vector<1x1x64x128xf32> to vector<64x128xf32>
    %c18 = arith.constant 18 : index
    %466 = memref.load %arg0[%c18] : memref<168xf32, #tpu.memory_space<smem>>
    %467 = vector.broadcast %466 : f32 to vector<64x128xf32>
    %468 = arith.mulf %467, %465 : vector<64x128xf32>
    %469 = arith.addf %451, %468 : vector<64x128xf32>
    %c39 = arith.constant 39 : index
    %470 = memref.load %arg0[%c39] : memref<168xf32, #tpu.memory_space<smem>>
    %471 = vector.broadcast %470 : f32 to vector<64x128xf32>
    %472 = arith.mulf %471, %465 : vector<64x128xf32>
    %473 = arith.addf %455, %472 : vector<64x128xf32>
    %c60 = arith.constant 60 : index
    %474 = memref.load %arg0[%c60] : memref<168xf32, #tpu.memory_space<smem>>
    %475 = vector.broadcast %474 : f32 to vector<64x128xf32>
    %476 = arith.mulf %475, %465 : vector<64x128xf32>
    %477 = arith.addf %459, %476 : vector<64x128xf32>
    %c81 = arith.constant 81 : index
    %478 = memref.load %arg0[%c81] : memref<168xf32, #tpu.memory_space<smem>>
    %479 = vector.broadcast %478 : f32 to vector<64x128xf32>
    %480 = arith.mulf %479, %465 : vector<64x128xf32>
    %481 = arith.addf %463, %480 : vector<64x128xf32>
    %c1_249 = arith.constant 1 : index
    %c6_250 = arith.constant 6 : index
    %c0_251 = arith.constant 0 : index
    %c0_252 = arith.constant 0 : index
    %482 = vector.load %arg6[%c1_249, %c6_250, %c0_251, %c0_252] : memref<3x7x64x128xf32, #tpu.memory_space<vmem>>, vector<1x1x64x128xf32>
    %483 = vector.shape_cast %482 : vector<1x1x64x128xf32> to vector<64x128xf32>
    %c19 = arith.constant 19 : index
    %484 = memref.load %arg0[%c19] : memref<168xf32, #tpu.memory_space<smem>>
    %485 = vector.broadcast %484 : f32 to vector<64x128xf32>
    %486 = arith.mulf %485, %483 : vector<64x128xf32>
    %487 = arith.addf %469, %486 : vector<64x128xf32>
    %c40 = arith.constant 40 : index
    %488 = memref.load %arg0[%c40] : memref<168xf32, #tpu.memory_space<smem>>
    %489 = vector.broadcast %488 : f32 to vector<64x128xf32>
    %490 = arith.mulf %489, %483 : vector<64x128xf32>
    %491 = arith.addf %473, %490 : vector<64x128xf32>
    %c61 = arith.constant 61 : index
    %492 = memref.load %arg0[%c61] : memref<168xf32, #tpu.memory_space<smem>>
    %493 = vector.broadcast %492 : f32 to vector<64x128xf32>
    %494 = arith.mulf %493, %483 : vector<64x128xf32>
    %495 = arith.addf %477, %494 : vector<64x128xf32>
    %c82 = arith.constant 82 : index
    %496 = memref.load %arg0[%c82] : memref<168xf32, #tpu.memory_space<smem>>
    %497 = vector.broadcast %496 : f32 to vector<64x128xf32>
    %498 = arith.mulf %497, %483 : vector<64x128xf32>
    %499 = arith.addf %481, %498 : vector<64x128xf32>
    %c2_253 = arith.constant 2 : index
    %c6_254 = arith.constant 6 : index
    %c0_255 = arith.constant 0 : index
    %c0_256 = arith.constant 0 : index
    %500 = vector.load %arg6[%c2_253, %c6_254, %c0_255, %c0_256] : memref<3x7x64x128xf32, #tpu.memory_space<vmem>>, vector<1x1x64x128xf32>
    %501 = vector.shape_cast %500 : vector<1x1x64x128xf32> to vector<64x128xf32>
    %c20 = arith.constant 20 : index
    %502 = memref.load %arg0[%c20] : memref<168xf32, #tpu.memory_space<smem>>
    %503 = vector.broadcast %502 : f32 to vector<64x128xf32>
    %504 = arith.mulf %503, %501 : vector<64x128xf32>
    %505 = arith.addf %487, %504 : vector<64x128xf32>
    %c41 = arith.constant 41 : index
    %506 = memref.load %arg0[%c41] : memref<168xf32, #tpu.memory_space<smem>>
    %507 = vector.broadcast %506 : f32 to vector<64x128xf32>
    %508 = arith.mulf %507, %501 : vector<64x128xf32>
    %509 = arith.addf %491, %508 : vector<64x128xf32>
    %c62 = arith.constant 62 : index
    %510 = memref.load %arg0[%c62] : memref<168xf32, #tpu.memory_space<smem>>
    %511 = vector.broadcast %510 : f32 to vector<64x128xf32>
    %512 = arith.mulf %511, %501 : vector<64x128xf32>
    %513 = arith.addf %495, %512 : vector<64x128xf32>
    %c83 = arith.constant 83 : index
    %514 = memref.load %arg0[%c83] : memref<168xf32, #tpu.memory_space<smem>>
    %515 = vector.broadcast %514 : f32 to vector<64x128xf32>
    %516 = arith.mulf %515, %501 : vector<64x128xf32>
    %517 = arith.addf %499, %516 : vector<64x128xf32>
    %c0_257 = arith.constant 0 : index
    %518 = memref.load %arg2[%c0_257] : memref<8xf32, #tpu.memory_space<smem>>
    %519 = vector.broadcast %518 : f32 to vector<64x128xf32>
    %520 = arith.select %131, %505, %519 : vector<64x128xi1>, vector<64x128xf32>
    %521 = vector.extract_strided_slice %520 {offsets = [0, 0], sizes = [58, 66], strides = [1, 1]} : vector<64x128xf32> to vector<58x66xf32>
    %c0_258 = arith.constant 0 : index
    %c0_259 = arith.constant 0 : index
    %c0_260 = arith.constant 0 : index
    %c0_261 = arith.constant 0 : index
    %522 = vector.load %arg4[%c0_258, %c0_259, %c0_260, %c0_261] : memref<1x8x58x66xf32, #tpu.memory_space<vmem>>, vector<1x1x58x66xf32>
    %523 = vector.shape_cast %522 : vector<1x1x58x66xf32> to vector<58x66xf32>
    %524 = vector.shape_cast %521 : vector<58x66xf32> to vector<1x1x58x66xf32>
    tpu.vector_store %arg4[%c0_258, %c0_259, %c0_260, %c0_261], %524 {strides = array<i32>} : memref<1x8x58x66xf32, #tpu.memory_space<vmem>>, vector<1x1x58x66xf32>,
    %c1_262 = arith.constant 1 : index
    %525 = memref.load %arg2[%c1_262] : memref<8xf32, #tpu.memory_space<smem>>
    %526 = vector.broadcast %525 : f32 to vector<64x128xf32>
    %527 = arith.select %131, %509, %526 : vector<64x128xi1>, vector<64x128xf32>
    %528 = vector.extract_strided_slice %527 {offsets = [0, 0], sizes = [58, 66], strides = [1, 1]} : vector<64x128xf32> to vector<58x66xf32>
    %c0_263 = arith.constant 0 : index
    %c1_264 = arith.constant 1 : index
    %c0_265 = arith.constant 0 : index
    %c0_266 = arith.constant 0 : index
    %529 = vector.load %arg4[%c0_263, %c1_264, %c0_265, %c0_266] : memref<1x8x58x66xf32, #tpu.memory_space<vmem>>, vector<1x1x58x66xf32>
    %530 = vector.shape_cast %529 : vector<1x1x58x66xf32> to vector<58x66xf32>
    %531 = vector.shape_cast %528 : vector<58x66xf32> to vector<1x1x58x66xf32>
    tpu.vector_store %arg4[%c0_263, %c1_264, %c0_265, %c0_266], %531 {strides = array<i32>} : memref<1x8x58x66xf32, #tpu.memory_space<vmem>>, vector<1x1x58x66xf32>,
    %c2_267 = arith.constant 2 : index
    %532 = memref.load %arg2[%c2_267] : memref<8xf32, #tpu.memory_space<smem>>
    %533 = vector.broadcast %532 : f32 to vector<64x128xf32>
    %534 = arith.select %131, %513, %533 : vector<64x128xi1>, vector<64x128xf32>
    %535 = vector.extract_strided_slice %534 {offsets = [0, 0], sizes = [58, 66], strides = [1, 1]} : vector<64x128xf32> to vector<58x66xf32>
    %c0_268 = arith.constant 0 : index
    %c2_269 = arith.constant 2 : index
    %c0_270 = arith.constant 0 : index
    %c0_271 = arith.constant 0 : index
    %536 = vector.load %arg4[%c0_268, %c2_269, %c0_270, %c0_271] : memref<1x8x58x66xf32, #tpu.memory_space<vmem>>, vector<1x1x58x66xf32>
    %537 = vector.shape_cast %536 : vector<1x1x58x66xf32> to vector<58x66xf32>
    %538 = vector.shape_cast %535 : vector<58x66xf32> to vector<1x1x58x66xf32>
    tpu.vector_store %arg4[%c0_268, %c2_269, %c0_270, %c0_271], %538 {strides = array<i32>} : memref<1x8x58x66xf32, #tpu.memory_space<vmem>>, vector<1x1x58x66xf32>,
    %c3_272 = arith.constant 3 : index
    %539 = memref.load %arg2[%c3_272] : memref<8xf32, #tpu.memory_space<smem>>
    %540 = vector.broadcast %539 : f32 to vector<64x128xf32>
    %541 = arith.select %131, %517, %540 : vector<64x128xi1>, vector<64x128xf32>
    %542 = vector.extract_strided_slice %541 {offsets = [0, 0], sizes = [58, 66], strides = [1, 1]} : vector<64x128xf32> to vector<58x66xf32>
    %c0_273 = arith.constant 0 : index
    %c3_274 = arith.constant 3 : index
    %c0_275 = arith.constant 0 : index
    %c0_276 = arith.constant 0 : index
    %543 = vector.load %arg4[%c0_273, %c3_274, %c0_275, %c0_276] : memref<1x8x58x66xf32, #tpu.memory_space<vmem>>, vector<1x1x58x66xf32>
    %544 = vector.shape_cast %543 : vector<1x1x58x66xf32> to vector<58x66xf32>
    %545 = vector.shape_cast %542 : vector<58x66xf32> to vector<1x1x58x66xf32>
    tpu.vector_store %arg4[%c0_273, %c3_274, %c0_275, %c0_276], %545 {strides = array<i32>} : memref<1x8x58x66xf32, #tpu.memory_space<vmem>>, vector<1x1x58x66xf32>,
    %c4_277 = arith.constant 4 : index
    %546 = memref.load %arg1[%c4_277] : memref<8xf32, #tpu.memory_space<smem>>
    %547 = vector.broadcast %546 : f32 to vector<64x128xf32>
    %c5_278 = arith.constant 5 : index
    %548 = memref.load %arg1[%c5_278] : memref<8xf32, #tpu.memory_space<smem>>
    %549 = vector.broadcast %548 : f32 to vector<64x128xf32>
    %c6_279 = arith.constant 6 : index
    %550 = memref.load %arg1[%c6_279] : memref<8xf32, #tpu.memory_space<smem>>
    %551 = vector.broadcast %550 : f32 to vector<64x128xf32>
    %c7_280 = arith.constant 7 : index
    %552 = memref.load %arg1[%c7_280] : memref<8xf32, #tpu.memory_space<smem>>
    %553 = vector.broadcast %552 : f32 to vector<64x128xf32>
    %c0_281 = arith.constant 0 : index
    %c0_282 = arith.constant 0 : index
    %c0_283 = arith.constant 0 : index
    %c0_284 = arith.constant 0 : index
    %554 = vector.load %arg6[%c0_281, %c0_282, %c0_283, %c0_284] : memref<3x7x64x128xf32, #tpu.memory_space<vmem>>, vector<1x1x64x128xf32>
    %555 = vector.shape_cast %554 : vector<1x1x64x128xf32> to vector<64x128xf32>
    %c84 = arith.constant 84 : index
    %556 = memref.load %arg0[%c84] : memref<168xf32, #tpu.memory_space<smem>>
    %557 = vector.broadcast %556 : f32 to vector<64x128xf32>
    %558 = arith.mulf %557, %555 : vector<64x128xf32>
    %559 = arith.addf %547, %558 : vector<64x128xf32>
    %c105 = arith.constant 105 : index
    %560 = memref.load %arg0[%c105] : memref<168xf32, #tpu.memory_space<smem>>
    %561 = vector.broadcast %560 : f32 to vector<64x128xf32>
    %562 = arith.mulf %561, %555 : vector<64x128xf32>
    %563 = arith.addf %549, %562 : vector<64x128xf32>
    %c126 = arith.constant 126 : index
    %564 = memref.load %arg0[%c126] : memref<168xf32, #tpu.memory_space<smem>>
    %565 = vector.broadcast %564 : f32 to vector<64x128xf32>
    %566 = arith.mulf %565, %555 : vector<64x128xf32>
    %567 = arith.addf %551, %566 : vector<64x128xf32>
    %c147 = arith.constant 147 : index
    %568 = memref.load %arg0[%c147] : memref<168xf32, #tpu.memory_space<smem>>
    %569 = vector.broadcast %568 : f32 to vector<64x128xf32>
    %570 = arith.mulf %569, %555 : vector<64x128xf32>
    %571 = arith.addf %553, %570 : vector<64x128xf32>
    %c1_285 = arith.constant 1 : index
    %c0_286 = arith.constant 0 : index
    %c0_287 = arith.constant 0 : index
    %c0_288 = arith.constant 0 : index
    %572 = vector.load %arg6[%c1_285, %c0_286, %c0_287, %c0_288] : memref<3x7x64x128xf32, #tpu.memory_space<vmem>>, vector<1x1x64x128xf32>
    %573 = vector.shape_cast %572 : vector<1x1x64x128xf32> to vector<64x128xf32>
    %c85 = arith.constant 85 : index
    %574 = memref.load %arg0[%c85] : memref<168xf32, #tpu.memory_space<smem>>
    %575 = vector.broadcast %574 : f32 to vector<64x128xf32>
    %576 = arith.mulf %575, %573 : vector<64x128xf32>
    %577 = arith.addf %559, %576 : vector<64x128xf32>
    %c106 = arith.constant 106 : index
    %578 = memref.load %arg0[%c106] : memref<168xf32, #tpu.memory_space<smem>>
    %579 = vector.broadcast %578 : f32 to vector<64x128xf32>
    %580 = arith.mulf %579, %573 : vector<64x128xf32>
    %581 = arith.addf %563, %580 : vector<64x128xf32>
    %c127 = arith.constant 127 : index
    %582 = memref.load %arg0[%c127] : memref<168xf32, #tpu.memory_space<smem>>
    %583 = vector.broadcast %582 : f32 to vector<64x128xf32>
    %584 = arith.mulf %583, %573 : vector<64x128xf32>
    %585 = arith.addf %567, %584 : vector<64x128xf32>
    %c148 = arith.constant 148 : index
    %586 = memref.load %arg0[%c148] : memref<168xf32, #tpu.memory_space<smem>>
    %587 = vector.broadcast %586 : f32 to vector<64x128xf32>
    %588 = arith.mulf %587, %573 : vector<64x128xf32>
    %589 = arith.addf %571, %588 : vector<64x128xf32>
    %c2_289 = arith.constant 2 : index
    %c0_290 = arith.constant 0 : index
    %c0_291 = arith.constant 0 : index
    %c0_292 = arith.constant 0 : index
    %590 = vector.load %arg6[%c2_289, %c0_290, %c0_291, %c0_292] : memref<3x7x64x128xf32, #tpu.memory_space<vmem>>, vector<1x1x64x128xf32>
    %591 = vector.shape_cast %590 : vector<1x1x64x128xf32> to vector<64x128xf32>
    %c86 = arith.constant 86 : index
    %592 = memref.load %arg0[%c86] : memref<168xf32, #tpu.memory_space<smem>>
    %593 = vector.broadcast %592 : f32 to vector<64x128xf32>
    %594 = arith.mulf %593, %591 : vector<64x128xf32>
    %595 = arith.addf %577, %594 : vector<64x128xf32>
    %c107 = arith.constant 107 : index
    %596 = memref.load %arg0[%c107] : memref<168xf32, #tpu.memory_space<smem>>
    %597 = vector.broadcast %596 : f32 to vector<64x128xf32>
    %598 = arith.mulf %597, %591 : vector<64x128xf32>
    %599 = arith.addf %581, %598 : vector<64x128xf32>
    %c128 = arith.constant 128 : index
    %600 = memref.load %arg0[%c128] : memref<168xf32, #tpu.memory_space<smem>>
    %601 = vector.broadcast %600 : f32 to vector<64x128xf32>
    %602 = arith.mulf %601, %591 : vector<64x128xf32>
    %603 = arith.addf %585, %602 : vector<64x128xf32>
    %c149 = arith.constant 149 : index
    %604 = memref.load %arg0[%c149] : memref<168xf32, #tpu.memory_space<smem>>
    %605 = vector.broadcast %604 : f32 to vector<64x128xf32>
    %606 = arith.mulf %605, %591 : vector<64x128xf32>
    %607 = arith.addf %589, %606 : vector<64x128xf32>
    %c0_293 = arith.constant 0 : index
    %c1_294 = arith.constant 1 : index
    %c0_295 = arith.constant 0 : index
    %c0_296 = arith.constant 0 : index
    %608 = vector.load %arg6[%c0_293, %c1_294, %c0_295, %c0_296] : memref<3x7x64x128xf32, #tpu.memory_space<vmem>>, vector<1x1x64x128xf32>
    %609 = vector.shape_cast %608 : vector<1x1x64x128xf32> to vector<64x128xf32>
    %c87 = arith.constant 87 : index
    %610 = memref.load %arg0[%c87] : memref<168xf32, #tpu.memory_space<smem>>
    %611 = vector.broadcast %610 : f32 to vector<64x128xf32>
    %612 = arith.mulf %611, %609 : vector<64x128xf32>
    %613 = arith.addf %595, %612 : vector<64x128xf32>
    %c108 = arith.constant 108 : index
    %614 = memref.load %arg0[%c108] : memref<168xf32, #tpu.memory_space<smem>>
    %615 = vector.broadcast %614 : f32 to vector<64x128xf32>
    %616 = arith.mulf %615, %609 : vector<64x128xf32>
    %617 = arith.addf %599, %616 : vector<64x128xf32>
    %c129 = arith.constant 129 : index
    %618 = memref.load %arg0[%c129] : memref<168xf32, #tpu.memory_space<smem>>
    %619 = vector.broadcast %618 : f32 to vector<64x128xf32>
    %620 = arith.mulf %619, %609 : vector<64x128xf32>
    %621 = arith.addf %603, %620 : vector<64x128xf32>
    %c150 = arith.constant 150 : index
    %622 = memref.load %arg0[%c150] : memref<168xf32, #tpu.memory_space<smem>>
    %623 = vector.broadcast %622 : f32 to vector<64x128xf32>
    %624 = arith.mulf %623, %609 : vector<64x128xf32>
    %625 = arith.addf %607, %624 : vector<64x128xf32>
    %c1_297 = arith.constant 1 : index
    %c1_298 = arith.constant 1 : index
    %c0_299 = arith.constant 0 : index
    %c0_300 = arith.constant 0 : index
    %626 = vector.load %arg6[%c1_297, %c1_298, %c0_299, %c0_300] : memref<3x7x64x128xf32, #tpu.memory_space<vmem>>, vector<1x1x64x128xf32>
    %627 = vector.shape_cast %626 : vector<1x1x64x128xf32> to vector<64x128xf32>
    %c88 = arith.constant 88 : index
    %628 = memref.load %arg0[%c88] : memref<168xf32, #tpu.memory_space<smem>>
    %629 = vector.broadcast %628 : f32 to vector<64x128xf32>
    %630 = arith.mulf %629, %627 : vector<64x128xf32>
    %631 = arith.addf %613, %630 : vector<64x128xf32>
    %c109 = arith.constant 109 : index
    %632 = memref.load %arg0[%c109] : memref<168xf32, #tpu.memory_space<smem>>
    %633 = vector.broadcast %632 : f32 to vector<64x128xf32>
    %634 = arith.mulf %633, %627 : vector<64x128xf32>
    %635 = arith.addf %617, %634 : vector<64x128xf32>
    %c130 = arith.constant 130 : index
    %636 = memref.load %arg0[%c130] : memref<168xf32, #tpu.memory_space<smem>>
    %637 = vector.broadcast %636 : f32 to vector<64x128xf32>
    %638 = arith.mulf %637, %627 : vector<64x128xf32>
    %639 = arith.addf %621, %638 : vector<64x128xf32>
    %c151 = arith.constant 151 : index
    %640 = memref.load %arg0[%c151] : memref<168xf32, #tpu.memory_space<smem>>
    %641 = vector.broadcast %640 : f32 to vector<64x128xf32>
    %642 = arith.mulf %641, %627 : vector<64x128xf32>
    %643 = arith.addf %625, %642 : vector<64x128xf32>
    %c2_301 = arith.constant 2 : index
    %c1_302 = arith.constant 1 : index
    %c0_303 = arith.constant 0 : index
    %c0_304 = arith.constant 0 : index
    %644 = vector.load %arg6[%c2_301, %c1_302, %c0_303, %c0_304] : memref<3x7x64x128xf32, #tpu.memory_space<vmem>>, vector<1x1x64x128xf32>
    %645 = vector.shape_cast %644 : vector<1x1x64x128xf32> to vector<64x128xf32>
    %c89 = arith.constant 89 : index
    %646 = memref.load %arg0[%c89] : memref<168xf32, #tpu.memory_space<smem>>
    %647 = vector.broadcast %646 : f32 to vector<64x128xf32>
    %648 = arith.mulf %647, %645 : vector<64x128xf32>
    %649 = arith.addf %631, %648 : vector<64x128xf32>
    %c110 = arith.constant 110 : index
    %650 = memref.load %arg0[%c110] : memref<168xf32, #tpu.memory_space<smem>>
    %651 = vector.broadcast %650 : f32 to vector<64x128xf32>
    %652 = arith.mulf %651, %645 : vector<64x128xf32>
    %653 = arith.addf %635, %652 : vector<64x128xf32>
    %c131 = arith.constant 131 : index
    %654 = memref.load %arg0[%c131] : memref<168xf32, #tpu.memory_space<smem>>
    %655 = vector.broadcast %654 : f32 to vector<64x128xf32>
    %656 = arith.mulf %655, %645 : vector<64x128xf32>
    %657 = arith.addf %639, %656 : vector<64x128xf32>
    %c152 = arith.constant 152 : index
    %658 = memref.load %arg0[%c152] : memref<168xf32, #tpu.memory_space<smem>>
    %659 = vector.broadcast %658 : f32 to vector<64x128xf32>
    %660 = arith.mulf %659, %645 : vector<64x128xf32>
    %661 = arith.addf %643, %660 : vector<64x128xf32>
    %c0_305 = arith.constant 0 : index
    %c2_306 = arith.constant 2 : index
    %c0_307 = arith.constant 0 : index
    %c0_308 = arith.constant 0 : index
    %662 = vector.load %arg6[%c0_305, %c2_306, %c0_307, %c0_308] : memref<3x7x64x128xf32, #tpu.memory_space<vmem>>, vector<1x1x64x128xf32>
    %663 = vector.shape_cast %662 : vector<1x1x64x128xf32> to vector<64x128xf32>
    %c90 = arith.constant 90 : index
    %664 = memref.load %arg0[%c90] : memref<168xf32, #tpu.memory_space<smem>>
    %665 = vector.broadcast %664 : f32 to vector<64x128xf32>
    %666 = arith.mulf %665, %663 : vector<64x128xf32>
    %667 = arith.addf %649, %666 : vector<64x128xf32>
    %c111 = arith.constant 111 : index
    %668 = memref.load %arg0[%c111] : memref<168xf32, #tpu.memory_space<smem>>
    %669 = vector.broadcast %668 : f32 to vector<64x128xf32>
    %670 = arith.mulf %669, %663 : vector<64x128xf32>
    %671 = arith.addf %653, %670 : vector<64x128xf32>
    %c132 = arith.constant 132 : index
    %672 = memref.load %arg0[%c132] : memref<168xf32, #tpu.memory_space<smem>>
    %673 = vector.broadcast %672 : f32 to vector<64x128xf32>
    %674 = arith.mulf %673, %663 : vector<64x128xf32>
    %675 = arith.addf %657, %674 : vector<64x128xf32>
    %c153 = arith.constant 153 : index
    %676 = memref.load %arg0[%c153] : memref<168xf32, #tpu.memory_space<smem>>
    %677 = vector.broadcast %676 : f32 to vector<64x128xf32>
    %678 = arith.mulf %677, %663 : vector<64x128xf32>
    %679 = arith.addf %661, %678 : vector<64x128xf32>
    %c1_309 = arith.constant 1 : index
    %c2_310 = arith.constant 2 : index
    %c0_311 = arith.constant 0 : index
    %c0_312 = arith.constant 0 : index
    %680 = vector.load %arg6[%c1_309, %c2_310, %c0_311, %c0_312] : memref<3x7x64x128xf32, #tpu.memory_space<vmem>>, vector<1x1x64x128xf32>
    %681 = vector.shape_cast %680 : vector<1x1x64x128xf32> to vector<64x128xf32>
    %c91 = arith.constant 91 : index
    %682 = memref.load %arg0[%c91] : memref<168xf32, #tpu.memory_space<smem>>
    %683 = vector.broadcast %682 : f32 to vector<64x128xf32>
    %684 = arith.mulf %683, %681 : vector<64x128xf32>
    %685 = arith.addf %667, %684 : vector<64x128xf32>
    %c112 = arith.constant 112 : index
    %686 = memref.load %arg0[%c112] : memref<168xf32, #tpu.memory_space<smem>>
    %687 = vector.broadcast %686 : f32 to vector<64x128xf32>
    %688 = arith.mulf %687, %681 : vector<64x128xf32>
    %689 = arith.addf %671, %688 : vector<64x128xf32>
    %c133 = arith.constant 133 : index
    %690 = memref.load %arg0[%c133] : memref<168xf32, #tpu.memory_space<smem>>
    %691 = vector.broadcast %690 : f32 to vector<64x128xf32>
    %692 = arith.mulf %691, %681 : vector<64x128xf32>
    %693 = arith.addf %675, %692 : vector<64x128xf32>
    %c154 = arith.constant 154 : index
    %694 = memref.load %arg0[%c154] : memref<168xf32, #tpu.memory_space<smem>>
    %695 = vector.broadcast %694 : f32 to vector<64x128xf32>
    %696 = arith.mulf %695, %681 : vector<64x128xf32>
    %697 = arith.addf %679, %696 : vector<64x128xf32>
    %c2_313 = arith.constant 2 : index
    %c2_314 = arith.constant 2 : index
    %c0_315 = arith.constant 0 : index
    %c0_316 = arith.constant 0 : index
    %698 = vector.load %arg6[%c2_313, %c2_314, %c0_315, %c0_316] : memref<3x7x64x128xf32, #tpu.memory_space<vmem>>, vector<1x1x64x128xf32>
    %699 = vector.shape_cast %698 : vector<1x1x64x128xf32> to vector<64x128xf32>
    %c92 = arith.constant 92 : index
    %700 = memref.load %arg0[%c92] : memref<168xf32, #tpu.memory_space<smem>>
    %701 = vector.broadcast %700 : f32 to vector<64x128xf32>
    %702 = arith.mulf %701, %699 : vector<64x128xf32>
    %703 = arith.addf %685, %702 : vector<64x128xf32>
    %c113 = arith.constant 113 : index
    %704 = memref.load %arg0[%c113] : memref<168xf32, #tpu.memory_space<smem>>
    %705 = vector.broadcast %704 : f32 to vector<64x128xf32>
    %706 = arith.mulf %705, %699 : vector<64x128xf32>
    %707 = arith.addf %689, %706 : vector<64x128xf32>
    %c134 = arith.constant 134 : index
    %708 = memref.load %arg0[%c134] : memref<168xf32, #tpu.memory_space<smem>>
    %709 = vector.broadcast %708 : f32 to vector<64x128xf32>
    %710 = arith.mulf %709, %699 : vector<64x128xf32>
    %711 = arith.addf %693, %710 : vector<64x128xf32>
    %c155 = arith.constant 155 : index
    %712 = memref.load %arg0[%c155] : memref<168xf32, #tpu.memory_space<smem>>
    %713 = vector.broadcast %712 : f32 to vector<64x128xf32>
    %714 = arith.mulf %713, %699 : vector<64x128xf32>
    %715 = arith.addf %697, %714 : vector<64x128xf32>
    %c0_317 = arith.constant 0 : index
    %c3_318 = arith.constant 3 : index
    %c0_319 = arith.constant 0 : index
    %c0_320 = arith.constant 0 : index
    %716 = vector.load %arg6[%c0_317, %c3_318, %c0_319, %c0_320] : memref<3x7x64x128xf32, #tpu.memory_space<vmem>>, vector<1x1x64x128xf32>
    %717 = vector.shape_cast %716 : vector<1x1x64x128xf32> to vector<64x128xf32>
    %c93 = arith.constant 93 : index
    %718 = memref.load %arg0[%c93] : memref<168xf32, #tpu.memory_space<smem>>
    %719 = vector.broadcast %718 : f32 to vector<64x128xf32>
    %720 = arith.mulf %719, %717 : vector<64x128xf32>
    %721 = arith.addf %703, %720 : vector<64x128xf32>
    %c114 = arith.constant 114 : index
    %722 = memref.load %arg0[%c114] : memref<168xf32, #tpu.memory_space<smem>>
    %723 = vector.broadcast %722 : f32 to vector<64x128xf32>
    %724 = arith.mulf %723, %717 : vector<64x128xf32>
    %725 = arith.addf %707, %724 : vector<64x128xf32>
    %c135 = arith.constant 135 : index
    %726 = memref.load %arg0[%c135] : memref<168xf32, #tpu.memory_space<smem>>
    %727 = vector.broadcast %726 : f32 to vector<64x128xf32>
    %728 = arith.mulf %727, %717 : vector<64x128xf32>
    %729 = arith.addf %711, %728 : vector<64x128xf32>
    %c156 = arith.constant 156 : index
    %730 = memref.load %arg0[%c156] : memref<168xf32, #tpu.memory_space<smem>>
    %731 = vector.broadcast %730 : f32 to vector<64x128xf32>
    %732 = arith.mulf %731, %717 : vector<64x128xf32>
    %733 = arith.addf %715, %732 : vector<64x128xf32>
    %c1_321 = arith.constant 1 : index
    %c3_322 = arith.constant 3 : index
    %c0_323 = arith.constant 0 : index
    %c0_324 = arith.constant 0 : index
    %734 = vector.load %arg6[%c1_321, %c3_322, %c0_323, %c0_324] : memref<3x7x64x128xf32, #tpu.memory_space<vmem>>, vector<1x1x64x128xf32>
    %735 = vector.shape_cast %734 : vector<1x1x64x128xf32> to vector<64x128xf32>
    %c94 = arith.constant 94 : index
    %736 = memref.load %arg0[%c94] : memref<168xf32, #tpu.memory_space<smem>>
    %737 = vector.broadcast %736 : f32 to vector<64x128xf32>
    %738 = arith.mulf %737, %735 : vector<64x128xf32>
    %739 = arith.addf %721, %738 : vector<64x128xf32>
    %c115 = arith.constant 115 : index
    %740 = memref.load %arg0[%c115] : memref<168xf32, #tpu.memory_space<smem>>
    %741 = vector.broadcast %740 : f32 to vector<64x128xf32>
    %742 = arith.mulf %741, %735 : vector<64x128xf32>
    %743 = arith.addf %725, %742 : vector<64x128xf32>
    %c136 = arith.constant 136 : index
    %744 = memref.load %arg0[%c136] : memref<168xf32, #tpu.memory_space<smem>>
    %745 = vector.broadcast %744 : f32 to vector<64x128xf32>
    %746 = arith.mulf %745, %735 : vector<64x128xf32>
    %747 = arith.addf %729, %746 : vector<64x128xf32>
    %c157 = arith.constant 157 : index
    %748 = memref.load %arg0[%c157] : memref<168xf32, #tpu.memory_space<smem>>
    %749 = vector.broadcast %748 : f32 to vector<64x128xf32>
    %750 = arith.mulf %749, %735 : vector<64x128xf32>
    %751 = arith.addf %733, %750 : vector<64x128xf32>
    %c2_325 = arith.constant 2 : index
    %c3_326 = arith.constant 3 : index
    %c0_327 = arith.constant 0 : index
    %c0_328 = arith.constant 0 : index
    %752 = vector.load %arg6[%c2_325, %c3_326, %c0_327, %c0_328] : memref<3x7x64x128xf32, #tpu.memory_space<vmem>>, vector<1x1x64x128xf32>
    %753 = vector.shape_cast %752 : vector<1x1x64x128xf32> to vector<64x128xf32>
    %c95 = arith.constant 95 : index
    %754 = memref.load %arg0[%c95] : memref<168xf32, #tpu.memory_space<smem>>
    %755 = vector.broadcast %754 : f32 to vector<64x128xf32>
    %756 = arith.mulf %755, %753 : vector<64x128xf32>
    %757 = arith.addf %739, %756 : vector<64x128xf32>
    %c116 = arith.constant 116 : index
    %758 = memref.load %arg0[%c116] : memref<168xf32, #tpu.memory_space<smem>>
    %759 = vector.broadcast %758 : f32 to vector<64x128xf32>
    %760 = arith.mulf %759, %753 : vector<64x128xf32>
    %761 = arith.addf %743, %760 : vector<64x128xf32>
    %c137 = arith.constant 137 : index
    %762 = memref.load %arg0[%c137] : memref<168xf32, #tpu.memory_space<smem>>
    %763 = vector.broadcast %762 : f32 to vector<64x128xf32>
    %764 = arith.mulf %763, %753 : vector<64x128xf32>
    %765 = arith.addf %747, %764 : vector<64x128xf32>
    %c158 = arith.constant 158 : index
    %766 = memref.load %arg0[%c158] : memref<168xf32, #tpu.memory_space<smem>>
    %767 = vector.broadcast %766 : f32 to vector<64x128xf32>
    %768 = arith.mulf %767, %753 : vector<64x128xf32>
    %769 = arith.addf %751, %768 : vector<64x128xf32>
    %c0_329 = arith.constant 0 : index
    %c4_330 = arith.constant 4 : index
    %c0_331 = arith.constant 0 : index
    %c0_332 = arith.constant 0 : index
    %770 = vector.load %arg6[%c0_329, %c4_330, %c0_331, %c0_332] : memref<3x7x64x128xf32, #tpu.memory_space<vmem>>, vector<1x1x64x128xf32>
    %771 = vector.shape_cast %770 : vector<1x1x64x128xf32> to vector<64x128xf32>
    %c96 = arith.constant 96 : index
    %772 = memref.load %arg0[%c96] : memref<168xf32, #tpu.memory_space<smem>>
    %773 = vector.broadcast %772 : f32 to vector<64x128xf32>
    %774 = arith.mulf %773, %771 : vector<64x128xf32>
    %775 = arith.addf %757, %774 : vector<64x128xf32>
    %c117 = arith.constant 117 : index
    %776 = memref.load %arg0[%c117] : memref<168xf32, #tpu.memory_space<smem>>
    %777 = vector.broadcast %776 : f32 to vector<64x128xf32>
    %778 = arith.mulf %777, %771 : vector<64x128xf32>
    %779 = arith.addf %761, %778 : vector<64x128xf32>
    %c138 = arith.constant 138 : index
    %780 = memref.load %arg0[%c138] : memref<168xf32, #tpu.memory_space<smem>>
    %781 = vector.broadcast %780 : f32 to vector<64x128xf32>
    %782 = arith.mulf %781, %771 : vector<64x128xf32>
    %783 = arith.addf %765, %782 : vector<64x128xf32>
    %c159 = arith.constant 159 : index
    %784 = memref.load %arg0[%c159] : memref<168xf32, #tpu.memory_space<smem>>
    %785 = vector.broadcast %784 : f32 to vector<64x128xf32>
    %786 = arith.mulf %785, %771 : vector<64x128xf32>
    %787 = arith.addf %769, %786 : vector<64x128xf32>
    %c1_333 = arith.constant 1 : index
    %c4_334 = arith.constant 4 : index
    %c0_335 = arith.constant 0 : index
    %c0_336 = arith.constant 0 : index
    %788 = vector.load %arg6[%c1_333, %c4_334, %c0_335, %c0_336] : memref<3x7x64x128xf32, #tpu.memory_space<vmem>>, vector<1x1x64x128xf32>
    %789 = vector.shape_cast %788 : vector<1x1x64x128xf32> to vector<64x128xf32>
    %c97 = arith.constant 97 : index
    %790 = memref.load %arg0[%c97] : memref<168xf32, #tpu.memory_space<smem>>
    %791 = vector.broadcast %790 : f32 to vector<64x128xf32>
    %792 = arith.mulf %791, %789 : vector<64x128xf32>
    %793 = arith.addf %775, %792 : vector<64x128xf32>
    %c118 = arith.constant 118 : index
    %794 = memref.load %arg0[%c118] : memref<168xf32, #tpu.memory_space<smem>>
    %795 = vector.broadcast %794 : f32 to vector<64x128xf32>
    %796 = arith.mulf %795, %789 : vector<64x128xf32>
    %797 = arith.addf %779, %796 : vector<64x128xf32>
    %c139 = arith.constant 139 : index
    %798 = memref.load %arg0[%c139] : memref<168xf32, #tpu.memory_space<smem>>
    %799 = vector.broadcast %798 : f32 to vector<64x128xf32>
    %800 = arith.mulf %799, %789 : vector<64x128xf32>
    %801 = arith.addf %783, %800 : vector<64x128xf32>
    %c160 = arith.constant 160 : index
    %802 = memref.load %arg0[%c160] : memref<168xf32, #tpu.memory_space<smem>>
    %803 = vector.broadcast %802 : f32 to vector<64x128xf32>
    %804 = arith.mulf %803, %789 : vector<64x128xf32>
    %805 = arith.addf %787, %804 : vector<64x128xf32>
    %c2_337 = arith.constant 2 : index
    %c4_338 = arith.constant 4 : index
    %c0_339 = arith.constant 0 : index
    %c0_340 = arith.constant 0 : index
    %806 = vector.load %arg6[%c2_337, %c4_338, %c0_339, %c0_340] : memref<3x7x64x128xf32, #tpu.memory_space<vmem>>, vector<1x1x64x128xf32>
    %807 = vector.shape_cast %806 : vector<1x1x64x128xf32> to vector<64x128xf32>
    %c98 = arith.constant 98 : index
    %808 = memref.load %arg0[%c98] : memref<168xf32, #tpu.memory_space<smem>>
    %809 = vector.broadcast %808 : f32 to vector<64x128xf32>
    %810 = arith.mulf %809, %807 : vector<64x128xf32>
    %811 = arith.addf %793, %810 : vector<64x128xf32>
    %c119 = arith.constant 119 : index
    %812 = memref.load %arg0[%c119] : memref<168xf32, #tpu.memory_space<smem>>
    %813 = vector.broadcast %812 : f32 to vector<64x128xf32>
    %814 = arith.mulf %813, %807 : vector<64x128xf32>
    %815 = arith.addf %797, %814 : vector<64x128xf32>
    %c140 = arith.constant 140 : index
    %816 = memref.load %arg0[%c140] : memref<168xf32, #tpu.memory_space<smem>>
    %817 = vector.broadcast %816 : f32 to vector<64x128xf32>
    %818 = arith.mulf %817, %807 : vector<64x128xf32>
    %819 = arith.addf %801, %818 : vector<64x128xf32>
    %c161 = arith.constant 161 : index
    %820 = memref.load %arg0[%c161] : memref<168xf32, #tpu.memory_space<smem>>
    %821 = vector.broadcast %820 : f32 to vector<64x128xf32>
    %822 = arith.mulf %821, %807 : vector<64x128xf32>
    %823 = arith.addf %805, %822 : vector<64x128xf32>
    %c0_341 = arith.constant 0 : index
    %c5_342 = arith.constant 5 : index
    %c0_343 = arith.constant 0 : index
    %c0_344 = arith.constant 0 : index
    %824 = vector.load %arg6[%c0_341, %c5_342, %c0_343, %c0_344] : memref<3x7x64x128xf32, #tpu.memory_space<vmem>>, vector<1x1x64x128xf32>
    %825 = vector.shape_cast %824 : vector<1x1x64x128xf32> to vector<64x128xf32>
    %c99 = arith.constant 99 : index
    %826 = memref.load %arg0[%c99] : memref<168xf32, #tpu.memory_space<smem>>
    %827 = vector.broadcast %826 : f32 to vector<64x128xf32>
    %828 = arith.mulf %827, %825 : vector<64x128xf32>
    %829 = arith.addf %811, %828 : vector<64x128xf32>
    %c120 = arith.constant 120 : index
    %830 = memref.load %arg0[%c120] : memref<168xf32, #tpu.memory_space<smem>>
    %831 = vector.broadcast %830 : f32 to vector<64x128xf32>
    %832 = arith.mulf %831, %825 : vector<64x128xf32>
    %833 = arith.addf %815, %832 : vector<64x128xf32>
    %c141 = arith.constant 141 : index
    %834 = memref.load %arg0[%c141] : memref<168xf32, #tpu.memory_space<smem>>
    %835 = vector.broadcast %834 : f32 to vector<64x128xf32>
    %836 = arith.mulf %835, %825 : vector<64x128xf32>
    %837 = arith.addf %819, %836 : vector<64x128xf32>
    %c162 = arith.constant 162 : index
    %838 = memref.load %arg0[%c162] : memref<168xf32, #tpu.memory_space<smem>>
    %839 = vector.broadcast %838 : f32 to vector<64x128xf32>
    %840 = arith.mulf %839, %825 : vector<64x128xf32>
    %841 = arith.addf %823, %840 : vector<64x128xf32>
    %c1_345 = arith.constant 1 : index
    %c5_346 = arith.constant 5 : index
    %c0_347 = arith.constant 0 : index
    %c0_348 = arith.constant 0 : index
    %842 = vector.load %arg6[%c1_345, %c5_346, %c0_347, %c0_348] : memref<3x7x64x128xf32, #tpu.memory_space<vmem>>, vector<1x1x64x128xf32>
    %843 = vector.shape_cast %842 : vector<1x1x64x128xf32> to vector<64x128xf32>
    %c100 = arith.constant 100 : index
    %844 = memref.load %arg0[%c100] : memref<168xf32, #tpu.memory_space<smem>>
    %845 = vector.broadcast %844 : f32 to vector<64x128xf32>
    %846 = arith.mulf %845, %843 : vector<64x128xf32>
    %847 = arith.addf %829, %846 : vector<64x128xf32>
    %c121 = arith.constant 121 : index
    %848 = memref.load %arg0[%c121] : memref<168xf32, #tpu.memory_space<smem>>
    %849 = vector.broadcast %848 : f32 to vector<64x128xf32>
    %850 = arith.mulf %849, %843 : vector<64x128xf32>
    %851 = arith.addf %833, %850 : vector<64x128xf32>
    %c142 = arith.constant 142 : index
    %852 = memref.load %arg0[%c142] : memref<168xf32, #tpu.memory_space<smem>>
    %853 = vector.broadcast %852 : f32 to vector<64x128xf32>
    %854 = arith.mulf %853, %843 : vector<64x128xf32>
    %855 = arith.addf %837, %854 : vector<64x128xf32>
    %c163 = arith.constant 163 : index
    %856 = memref.load %arg0[%c163] : memref<168xf32, #tpu.memory_space<smem>>
    %857 = vector.broadcast %856 : f32 to vector<64x128xf32>
    %858 = arith.mulf %857, %843 : vector<64x128xf32>
    %859 = arith.addf %841, %858 : vector<64x128xf32>
    %c2_349 = arith.constant 2 : index
    %c5_350 = arith.constant 5 : index
    %c0_351 = arith.constant 0 : index
    %c0_352 = arith.constant 0 : index
    %860 = vector.load %arg6[%c2_349, %c5_350, %c0_351, %c0_352] : memref<3x7x64x128xf32, #tpu.memory_space<vmem>>, vector<1x1x64x128xf32>
    %861 = vector.shape_cast %860 : vector<1x1x64x128xf32> to vector<64x128xf32>
    %c101 = arith.constant 101 : index
    %862 = memref.load %arg0[%c101] : memref<168xf32, #tpu.memory_space<smem>>
    %863 = vector.broadcast %862 : f32 to vector<64x128xf32>
    %864 = arith.mulf %863, %861 : vector<64x128xf32>
    %865 = arith.addf %847, %864 : vector<64x128xf32>
    %c122 = arith.constant 122 : index
    %866 = memref.load %arg0[%c122] : memref<168xf32, #tpu.memory_space<smem>>
    %867 = vector.broadcast %866 : f32 to vector<64x128xf32>
    %868 = arith.mulf %867, %861 : vector<64x128xf32>
    %869 = arith.addf %851, %868 : vector<64x128xf32>
    %c143 = arith.constant 143 : index
    %870 = memref.load %arg0[%c143] : memref<168xf32, #tpu.memory_space<smem>>
    %871 = vector.broadcast %870 : f32 to vector<64x128xf32>
    %872 = arith.mulf %871, %861 : vector<64x128xf32>
    %873 = arith.addf %855, %872 : vector<64x128xf32>
    %c164 = arith.constant 164 : index
    %874 = memref.load %arg0[%c164] : memref<168xf32, #tpu.memory_space<smem>>
    %875 = vector.broadcast %874 : f32 to vector<64x128xf32>
    %876 = arith.mulf %875, %861 : vector<64x128xf32>
    %877 = arith.addf %859, %876 : vector<64x128xf32>
    %c0_353 = arith.constant 0 : index
    %c6_354 = arith.constant 6 : index
    %c0_355 = arith.constant 0 : index
    %c0_356 = arith.constant 0 : index
    %878 = vector.load %arg6[%c0_353, %c6_354, %c0_355, %c0_356] : memref<3x7x64x128xf32, #tpu.memory_space<vmem>>, vector<1x1x64x128xf32>
    %879 = vector.shape_cast %878 : vector<1x1x64x128xf32> to vector<64x128xf32>
    %c102 = arith.constant 102 : index
    %880 = memref.load %arg0[%c102] : memref<168xf32, #tpu.memory_space<smem>>
    %881 = vector.broadcast %880 : f32 to vector<64x128xf32>
    %882 = arith.mulf %881, %879 : vector<64x128xf32>
    %883 = arith.addf %865, %882 : vector<64x128xf32>
    %c123 = arith.constant 123 : index
    %884 = memref.load %arg0[%c123] : memref<168xf32, #tpu.memory_space<smem>>
    %885 = vector.broadcast %884 : f32 to vector<64x128xf32>
    %886 = arith.mulf %885, %879 : vector<64x128xf32>
    %887 = arith.addf %869, %886 : vector<64x128xf32>
    %c144 = arith.constant 144 : index
    %888 = memref.load %arg0[%c144] : memref<168xf32, #tpu.memory_space<smem>>
    %889 = vector.broadcast %888 : f32 to vector<64x128xf32>
    %890 = arith.mulf %889, %879 : vector<64x128xf32>
    %891 = arith.addf %873, %890 : vector<64x128xf32>
    %c165 = arith.constant 165 : index
    %892 = memref.load %arg0[%c165] : memref<168xf32, #tpu.memory_space<smem>>
    %893 = vector.broadcast %892 : f32 to vector<64x128xf32>
    %894 = arith.mulf %893, %879 : vector<64x128xf32>
    %895 = arith.addf %877, %894 : vector<64x128xf32>
    %c1_357 = arith.constant 1 : index
    %c6_358 = arith.constant 6 : index
    %c0_359 = arith.constant 0 : index
    %c0_360 = arith.constant 0 : index
    %896 = vector.load %arg6[%c1_357, %c6_358, %c0_359, %c0_360] : memref<3x7x64x128xf32, #tpu.memory_space<vmem>>, vector<1x1x64x128xf32>
    %897 = vector.shape_cast %896 : vector<1x1x64x128xf32> to vector<64x128xf32>
    %c103 = arith.constant 103 : index
    %898 = memref.load %arg0[%c103] : memref<168xf32, #tpu.memory_space<smem>>
    %899 = vector.broadcast %898 : f32 to vector<64x128xf32>
    %900 = arith.mulf %899, %897 : vector<64x128xf32>
    %901 = arith.addf %883, %900 : vector<64x128xf32>
    %c124 = arith.constant 124 : index
    %902 = memref.load %arg0[%c124] : memref<168xf32, #tpu.memory_space<smem>>
    %903 = vector.broadcast %902 : f32 to vector<64x128xf32>
    %904 = arith.mulf %903, %897 : vector<64x128xf32>
    %905 = arith.addf %887, %904 : vector<64x128xf32>
    %c145 = arith.constant 145 : index
    %906 = memref.load %arg0[%c145] : memref<168xf32, #tpu.memory_space<smem>>
    %907 = vector.broadcast %906 : f32 to vector<64x128xf32>
    %908 = arith.mulf %907, %897 : vector<64x128xf32>
    %909 = arith.addf %891, %908 : vector<64x128xf32>
    %c166 = arith.constant 166 : index
    %910 = memref.load %arg0[%c166] : memref<168xf32, #tpu.memory_space<smem>>
    %911 = vector.broadcast %910 : f32 to vector<64x128xf32>
    %912 = arith.mulf %911, %897 : vector<64x128xf32>
    %913 = arith.addf %895, %912 : vector<64x128xf32>
    %c2_361 = arith.constant 2 : index
    %c6_362 = arith.constant 6 : index
    %c0_363 = arith.constant 0 : index
    %c0_364 = arith.constant 0 : index
    %914 = vector.load %arg6[%c2_361, %c6_362, %c0_363, %c0_364] : memref<3x7x64x128xf32, #tpu.memory_space<vmem>>, vector<1x1x64x128xf32>
    %915 = vector.shape_cast %914 : vector<1x1x64x128xf32> to vector<64x128xf32>
    %c104 = arith.constant 104 : index
    %916 = memref.load %arg0[%c104] : memref<168xf32, #tpu.memory_space<smem>>
    %917 = vector.broadcast %916 : f32 to vector<64x128xf32>
    %918 = arith.mulf %917, %915 : vector<64x128xf32>
    %919 = arith.addf %901, %918 : vector<64x128xf32>
    %c125 = arith.constant 125 : index
    %920 = memref.load %arg0[%c125] : memref<168xf32, #tpu.memory_space<smem>>
    %921 = vector.broadcast %920 : f32 to vector<64x128xf32>
    %922 = arith.mulf %921, %915 : vector<64x128xf32>
    %923 = arith.addf %905, %922 : vector<64x128xf32>
    %c146 = arith.constant 146 : index
    %924 = memref.load %arg0[%c146] : memref<168xf32, #tpu.memory_space<smem>>
    %925 = vector.broadcast %924 : f32 to vector<64x128xf32>
    %926 = arith.mulf %925, %915 : vector<64x128xf32>
    %927 = arith.addf %909, %926 : vector<64x128xf32>
    %c167 = arith.constant 167 : index
    %928 = memref.load %arg0[%c167] : memref<168xf32, #tpu.memory_space<smem>>
    %929 = vector.broadcast %928 : f32 to vector<64x128xf32>
    %930 = arith.mulf %929, %915 : vector<64x128xf32>
    %931 = arith.addf %913, %930 : vector<64x128xf32>
    %c4_365 = arith.constant 4 : index
    %932 = memref.load %arg2[%c4_365] : memref<8xf32, #tpu.memory_space<smem>>
    %933 = vector.broadcast %932 : f32 to vector<64x128xf32>
    %934 = arith.select %131, %919, %933 : vector<64x128xi1>, vector<64x128xf32>
    %935 = vector.extract_strided_slice %934 {offsets = [0, 0], sizes = [58, 66], strides = [1, 1]} : vector<64x128xf32> to vector<58x66xf32>
    %c0_366 = arith.constant 0 : index
    %c4_367 = arith.constant 4 : index
    %c0_368 = arith.constant 0 : index
    %c0_369 = arith.constant 0 : index
    %936 = vector.load %arg4[%c0_366, %c4_367, %c0_368, %c0_369] : memref<1x8x58x66xf32, #tpu.memory_space<vmem>>, vector<1x1x58x66xf32>
    %937 = vector.shape_cast %936 : vector<1x1x58x66xf32> to vector<58x66xf32>
    %938 = vector.shape_cast %935 : vector<58x66xf32> to vector<1x1x58x66xf32>
    tpu.vector_store %arg4[%c0_366, %c4_367, %c0_368, %c0_369], %938 {strides = array<i32>} : memref<1x8x58x66xf32, #tpu.memory_space<vmem>>, vector<1x1x58x66xf32>,
    %c5_370 = arith.constant 5 : index
    %939 = memref.load %arg2[%c5_370] : memref<8xf32, #tpu.memory_space<smem>>
    %940 = vector.broadcast %939 : f32 to vector<64x128xf32>
    %941 = arith.select %131, %923, %940 : vector<64x128xi1>, vector<64x128xf32>
    %942 = vector.extract_strided_slice %941 {offsets = [0, 0], sizes = [58, 66], strides = [1, 1]} : vector<64x128xf32> to vector<58x66xf32>
    %c0_371 = arith.constant 0 : index
    %c5_372 = arith.constant 5 : index
    %c0_373 = arith.constant 0 : index
    %c0_374 = arith.constant 0 : index
    %943 = vector.load %arg4[%c0_371, %c5_372, %c0_373, %c0_374] : memref<1x8x58x66xf32, #tpu.memory_space<vmem>>, vector<1x1x58x66xf32>
    %944 = vector.shape_cast %943 : vector<1x1x58x66xf32> to vector<58x66xf32>
    %945 = vector.shape_cast %942 : vector<58x66xf32> to vector<1x1x58x66xf32>
    tpu.vector_store %arg4[%c0_371, %c5_372, %c0_373, %c0_374], %945 {strides = array<i32>} : memref<1x8x58x66xf32, #tpu.memory_space<vmem>>, vector<1x1x58x66xf32>,
    %c6_375 = arith.constant 6 : index
    %946 = memref.load %arg2[%c6_375] : memref<8xf32, #tpu.memory_space<smem>>
    %947 = vector.broadcast %946 : f32 to vector<64x128xf32>
    %948 = arith.select %131, %927, %947 : vector<64x128xi1>, vector<64x128xf32>
    %949 = vector.extract_strided_slice %948 {offsets = [0, 0], sizes = [58, 66], strides = [1, 1]} : vector<64x128xf32> to vector<58x66xf32>
    %c0_376 = arith.constant 0 : index
    %c6_377 = arith.constant 6 : index
    %c0_378 = arith.constant 0 : index
    %c0_379 = arith.constant 0 : index
    %950 = vector.load %arg4[%c0_376, %c6_377, %c0_378, %c0_379] : memref<1x8x58x66xf32, #tpu.memory_space<vmem>>, vector<1x1x58x66xf32>
    %951 = vector.shape_cast %950 : vector<1x1x58x66xf32> to vector<58x66xf32>
    %952 = vector.shape_cast %949 : vector<58x66xf32> to vector<1x1x58x66xf32>
    tpu.vector_store %arg4[%c0_376, %c6_377, %c0_378, %c0_379], %952 {strides = array<i32>} : memref<1x8x58x66xf32, #tpu.memory_space<vmem>>, vector<1x1x58x66xf32>,
    %c7_380 = arith.constant 7 : index
    %953 = memref.load %arg2[%c7_380] : memref<8xf32, #tpu.memory_space<smem>>
    %954 = vector.broadcast %953 : f32 to vector<64x128xf32>
    %955 = arith.select %131, %931, %954 : vector<64x128xi1>, vector<64x128xf32>
    %956 = vector.extract_strided_slice %955 {offsets = [0, 0], sizes = [58, 66], strides = [1, 1]} : vector<64x128xf32> to vector<58x66xf32>
    %c0_381 = arith.constant 0 : index
    %c7_382 = arith.constant 7 : index
    %c0_383 = arith.constant 0 : index
    %c0_384 = arith.constant 0 : index
    %957 = vector.load %arg4[%c0_381, %c7_382, %c0_383, %c0_384] : memref<1x8x58x66xf32, #tpu.memory_space<vmem>>, vector<1x1x58x66xf32>
    %958 = vector.shape_cast %957 : vector<1x1x58x66xf32> to vector<58x66xf32>
    %959 = vector.shape_cast %956 : vector<58x66xf32> to vector<1x1x58x66xf32>
    tpu.vector_store %arg4[%c0_381, %c7_382, %c0_383, %c0_384], %959 {strides = array<i32>} : memref<1x8x58x66xf32, #tpu.memory_space<vmem>>, vector<1x1x58x66xf32>,
    return
  }
}

</mosaic_0001>

<bundles_post_ra>
// kernel: model_forward.1
= control target key start
LH: loop header
LB: loop body
LE: loop exit
PB: predicated region body
PF: predicated region fallthrough
CT: control target
= control target key end

     0   :  { %9 = vsyncpa [#allocation5], 0  ;;  %s10642_s0 = inlined_call_operand.vmem [shape: f32[168], index: 0, kind: input, shape index: {}]   ;;  %s10643_s1 = inlined_call_operand.vmem [shape: f32[8], index: 1, kind: input, shape index: {}]   ;;  %s10644_s2 = inlined_call_operand.vmem [shape: f32[8], index: 2, kind: input, shape index: {}]   ;;  %s10645_s3 = inlined_call_operand.vmem [shape: f32[1,1,64,64], index: 3, kind: input, shape index: {}]   ;;  %s10646_s4 = inlined_call_operand.vmem [shape: f32[1,8,58,66], index: 4, kind: output, shape index: {}]  }
   0x1   :  { %10 = vsyncpa [#allocation7], 0  ;;  %s27_s17 = sshll.u32 %s10643_s1, 4  ;;  %s17_s20 = sshll.u32 %s10642_s0, 4  ;;  %s28_s17 = int_to_ptr.vmem [resolvable:$true] %s27_s17  ;;  %s18_s20 = int_to_ptr.vmem [resolvable:$true] %s17_s20 }
   0x2   :  { %s4480_s21 = scalar_lea.vmem %s28_s17, 16  ;;  %p4485_p1 = scmp.lt.s32.totalorder %s28_s17, %s28_s17 }
   0x3   :  { %p4481_p0 = scmp.ne.s32.totalorder %s28_s17, %s4480_s21  ;;  %p4486_p2 = scmp.lt.s32.totalorder %s4480_s21, %s4480_s21 }
   0x5   :  { %p4487_p3 = por %p4486_p2, %p4485_p1 }
   0x7   :  { %p4488_p4 = pnand %p4487_p3, %p4481_p0 }
   0x9   :  { %4491 = shalt.err (!%p4488_p4)
}
   0xa   :  { %s4520_s22 = smov [#allocation6]   ;;  %s4492_s23 = scalar_lea.vmem %s18_s20, 32 }
   0xb   :  { %30 = dma.vmem_to_smem %s28_s17, 16, %s4520_s22, [#allocation7]  }
   0xc   :  { %p4493_p5 = scmp.ne.s32.totalorder %s18_s20, %s4492_s23  ;;  %p4497_p6 = scmp.lt.s32.totalorder %s18_s20, %s18_s20 }
   0xd   :  { %p4498_p7 = scmp.lt.s32.totalorder %s4492_s23, %s4492_s23 }
   0xf   :  { %p4499_p8 = por %p4498_p7, %p4497_p6 }
  0x11   :  { %p4500_p9 = pnand %p4499_p8, %p4493_p5 }
  0x13   :  { %4503 = shalt.err (!%p4500_p9)
}
  0x14   :  { %s4521_s1 = smov [#allocation4]   ;;  %s37_s25 = sshll.u32 %s10644_s2, 4  ;;  %s38_s25 = int_to_ptr.vmem [resolvable:$true] %s37_s25 }
  0x15   :  { %20 = dma.vmem_to_smem %s18_s20, 32, %s4521_s1, [#allocation5]  }
  0x16   :  { %s4504_s26 = scalar_lea.vmem %s38_s25, 16  ;;  %p4509_p11 = scmp.lt.s32.totalorder %s38_s25, %s38_s25 }
  0x17   :  { %p4505_p10 = scmp.ne.s32.totalorder %s38_s25, %s4504_s26  ;;  %p4510_p12 = scmp.lt.s32.totalorder %s4504_s26, %s4504_s26 }
  0x19   :  { %p4511_p13 = por %p4510_p12, %p4509_p11 }
  0x1b   :  { %p4512_p0 = pnand %p4511_p13, %p4505_p10 }
  0x1d   :  { %4515 = shalt.err (!%p4512_p0)
}
  0x1e   :  { %s4522_s27 = smov [#allocation8]  }
  0x1f   :  { %40 = dma.vmem_to_smem %s38_s25, 16, %s4522_s27, [#allocation7]  }
  0x20   :  { %4516 = dma.done.wait [#allocation5], 32  }
  0x21   :  { %4517 = vsyncadd [#allocation5], 4294967264 }
  0x22   :  { %4518 = dma.done.wait [#allocation7], 32  }
  0x23   :  { %4519 = vsyncadd [#allocation7], 4294967264 }
  0x24   :  { %52 = sfence }
  0x25   :  { %v55_v0 = vld [vmem:[%s10645_s3 + $0x10] sm:$0xff]  ;;  %v53_v1 = vld [vmem:[%s10645_s3] sm:$0xff]  ;;  %s4523_s5 = smov 2   ;;  %v4524_v2 = vmov 0.0   ;;  %v56_v3 = vld [vmem:[%s10645_s3 + $0x18] sm:$0xff]  ;;  %vm164_vm0 = vcmask 523264   ;;  %v529_v14 = vlaneseq }
  0x26   :  { %82 = vrot.lane.b32.xlu1 %v55_v0, %s4523_s5  ;;  %78 = vrot.lane.b32.xlu0 %v53_v1, %s4523_s5  ;;  %61 = vst [vmem:[#allocation2] sm:$0xff] %v4524_v2  ;;  %62 = vst [vmem:[#allocation2 + $0x8] sm:$0xff] %v4524_v2  ;;  %v54_v4 = vld [vmem:[%s10645_s3 + $0x8] sm:$0xff]  ;;  %v57_v6 = vld [vmem:[%s10645_s3 + $0x20] sm:$0xff]  ;;  %s4525_s18 = smov 1   ;;  %s4072_s19 = sld [smem:[#allocation4 + $0x15]] }
  0x27   :  { %63 = vst [vmem:[#allocation2 + $0x10] sm:$0xff] %v4524_v2  ;;  %64 = vst [vmem:[#allocation2 + $0x18] sm:$0xff] %v4524_v2  ;;  %v58_v5 = vld [vmem:[%s10645_s3 + $0x28] sm:$0xff]  ;;  %v60_v7 = vld [vmem:[%s10645_s3 + $0x38] sm:$0xff]  ;;  %s4073_s20 = sld [smem:[#allocation4 + $0x2a]]  ;;  %s4074_s21 = sld [smem:[#allocation4 + $0x3f]] }
  0x28   :  { %65 = vst [vmem:[#allocation2 + $0x20] sm:$0xff] %v4524_v2  ;;  %66 = vst [vmem:[#allocation2 + $0x28] sm:$0xff] %v4524_v2  ;;  %v59_v8 = vld [vmem:[%s10645_s3 + $0x30] sm:$0xff]  ;;  %s550_s3 = sld [smem:[#allocation4]]  ;;  %s4069_s23 = sld [smem:[#allocation6 + $0x1]]  ;;  %v4637_v37 = vand.u32 127, %v529_v14 }
  0x29   :  { %67 = vst [vmem:[#allocation2 + $0x30] sm:$0xff] %v4524_v2  ;;  %68 = vst [vmem:[#allocation2 + $0x38] sm:$0xff] %v4524_v2  ;;  %s534_s22 = sld [smem:[#allocation6]]  ;;  %s4070_s1 = sld [smem:[#allocation6 + $0x2]]  ;;  %vm102_vm1 = vcmask 539664   ;;  %vm145_vm2 = vcmask 531464  }
  0x2a   :  { %69 = vst [vmem:[#allocation2 + $0x40] sm:$0xff] %v4524_v2  ;;  %112 = vst [vmem:[#allocation2 + $0x48] sm:$0xff] %v4524_v2  ;;  %84 = vrot.lane.b32.xlu1 %v56_v3, %s4523_s5  ;;  %80 = vrot.lane.b32.xlu0 %v54_v4, %s4523_s5  ;;  %s4071_s0 = sld [smem:[#allocation6 + $0x3]]  ;;  %s4592_s25 = sld [smem:[#allocation4 + $0x18]]  ;;  %vm2232_vm5 = vcmask 539648   ;;  %vm2240_vm7 = vcmask 533504  }
  0x2b   :  { %113 = vst [vmem:[#allocation2 + $0x50] sm:$0xff] %v4524_v2  ;;  %114 = vst [vmem:[#allocation2 + $0x58] sm:$0xff] %v4524_v2  ;;  %s4083_s24 = sld [smem:[#allocation4 + $0x3]]  ;;  %s4079_s26 = sld [smem:[#allocation4 + $0x2]] }
  0x2c   :  { %115 = vst [vmem:[#allocation2 + $0x60] sm:$0xff] %v4524_v2  ;;  %116 = vst [vmem:[#allocation2 + $0x68] sm:$0xff] %v4524_v2  ;;  %s4085_s27 = sld [smem:[#allocation4 + $0x2d]]  ;;  %s4080_s28 = sld [smem:[#allocation4 + $0x17]]  ;;  %v4598_v10 = vstv %s4072_s19 }
  0x2d   :  { %117 = vst [vmem:[#allocation2 + $0x70] sm:$0xff] %v4524_v2  ;;  %118 = vst [vmem:[#allocation2 + $0x78] sm:$0xff] %v4524_v2  ;;  %s4086_s29 = sld [smem:[#allocation4 + $0x42]]  ;;  %s4075_s2 = sld [smem:[#allocation4 + $0x1]]  ;;  %v4600_v11 = vstv %s4073_s20  ;;  %v4602_v12 = vstv %s4074_s21 }
  0x2e   :  { %119 = vst [vmem:[#allocation2 + $0x80] sm:$0xff] %v4524_v2  ;;  %120 = vst [vmem:[#allocation2 + $0x88] sm:$0xff] %v4524_v2  ;;  %88 = vrot.lane.b32.xlu1 %v58_v5, %s4523_s5  ;;  %86 = vrot.lane.b32.xlu0 %v57_v6, %s4523_s5  ;;  %s4076_s30 = sld [smem:[#allocation4 + $0x16]]  ;;  %s4078_s6 = sld [smem:[#allocation4 + $0x40]]  ;;  %v4596_v9 = vstv %s550_s3  ;;  %v4608_v16 = vstv %s4069_s23 }
  0x2f   :  { %155 = vst [vmem:[#allocation2 + $0x90] sm:$0xff] %v4524_v2  ;;  %156 = vst [vmem:[#allocation2 + $0x98] sm:$0xff] %v4524_v2  ;;  %s4594_s7 = sld [smem:[#allocation4 + $0x2c]]  ;;  %s4604_s8 = sld [smem:[#allocation4 + $0x41]]  ;;  %v4606_v15 = vstv %s534_s22  ;;  %v4610_v20 = vstv %s4070_s1 }
  0x30   :  { %157 = vst [vmem:[#allocation2 + $0xa0] sm:$0xff] %v4524_v2  ;;  %158 = vst [vmem:[#allocation2 + $0xa8] sm:$0xff] %v4524_v2  ;;  %v4612_v21 = vstv %s4071_s0  ;;  %v4619_v28 = vstv %s4592_s25  ;;  %s4633_s9 = sld [smem:[#allocation4 + $0x5]]  ;;  %s4635_s10 = sld [smem:[#allocation4 + $0x6]] }
  0x31   :  { %159 = vst [vmem:[#allocation2 + $0xb0] sm:$0xff] %v4524_v2  ;;  %160 = vst [vmem:[#allocation2 + $0xb8] sm:$0xff] %v4524_v2  ;;  %v711_v17 = vstv %s4079_s26  ;;  %v4614_v23 = vstv %s4083_s24  ;;  %s4645_s11 = sld [smem:[#allocation4 + $0x4]]  ;;  %s4647_s12 = sld [smem:[#allocation4 + $0x19]] }
  0x32   :  { %161 = vst [vmem:[#allocation2 + $0xc0] sm:$0xff] %v4524_v2  ;;  %162 = vst [vmem:[#allocation2 + $0xc8] sm:$0xff] %v4524_v2  ;;  %92 = vrot.lane.b32.xlu1 %v60_v7, %s4523_s5  ;;  %90 = vrot.lane.b32.xlu0 %v59_v8, %s4523_s5  ;;  %s4077_s5 = sld [smem:[#allocation4 + $0x2b]]  ;;  %v729_v22 = vstv %s4080_s28  ;;  %v4621_v29 = vstv %s4085_s27  ;;  %s4656_s13 = sld [smem:[#allocation4 + $0x2e]] }
  0x33   :  { %163 = vst [vmem:[#allocation2 + $0xd0] sm:$0xff] %v4524_v2  ;;  %165 = vst.msk [vmem:[#allocation2 + $0x90] sm:$0xff] %vm164_vm0, %v53_v1  ;;  %v4616_v27 = vstv %s4075_s2  ;;  %v4623_v30 = vstv %s4086_s29  ;;  %s4658_s14 = sld [smem:[#allocation4 + $0x1a]]  ;;  %s4668_s15 = sld [smem:[#allocation4 + $0x43]] }
  0x34   :  { %166 = vst.msk [vmem:[#allocation2 + $0x98] sm:$0xff] %vm164_vm0, %v54_v4  ;;  %167 = vst.msk [vmem:[#allocation2 + $0xa0] sm:$0xff] %vm164_vm0, %v55_v0  ;;  %v4625_v33 = vstv %s4076_s30  ;;  %v4629_v35 = vstv %s4078_s6  ;;  %s4685_s16 = sld [smem:[#allocation4 + $0x2f]]  ;;  %s4705_s17 = sld [smem:[#allocation4 + $0x44]] }
  0x35   :  { %168 = vst.msk [vmem:[#allocation2 + $0xa8] sm:$0xff] %vm164_vm0, %v56_v3  ;;  %169 = vst.msk [vmem:[#allocation2 + $0xb0] sm:$0xff] %vm164_vm0, %v57_v6  ;;  %v747_v44 = vstv %s4594_s7  ;;  %v765_v52 = vstv %s4604_s8  ;;  %s4735_s3 = sld [smem:[#allocation4 + $0x30]]  ;;  %s4747_s19 = sld [smem:[#allocation4 + $0x45]] }
  0x36   :  { %170 = vst.msk [vmem:[#allocation2 + $0xb8] sm:$0xff] %vm164_vm0, %v58_v5  ;;  %171 = vst.msk [vmem:[#allocation2 + $0xc0] sm:$0xff] %vm164_vm0, %v59_v8  ;;  %123 = vrot.lane.b32.xlu1 %v54_v4, %s4525_s18  ;;  %121 = vrot.lane.b32.xlu0 %v53_v1, %s4525_s18  ;;  %s4749_s20 = sld [smem:[#allocation4 + $0x9]]  ;;  %s4759_s21 = sld [smem:[#allocation4 + $0x7]] }
  0x37   :  { %172 = vst.msk [vmem:[#allocation2 + $0xc8] sm:$0xff] %vm164_vm0, %v60_v7  ;;  %10671 = vst [vmem:[#allocation11_spill] sm:$0xff] %v4623_v30  ;;  %s4761_s22 = sld [smem:[#allocation4 + $0x1c]]  ;;  %s4771_s23 = sld [smem:[#allocation4 + $0x31]] }
  0x38   :  { %v4627_v34 = vstv %s4077_s5  ;;  %10673 = vst [vmem:[#allocation13_spill] sm:$0xff] %v4637_v37  ;;  %v4723_v37 = vstv %s4635_s10  ;;  %s4773_s1 = sld [smem:[#allocation4 + $0x46]]  ;;  %s4783_s0 = sld [smem:[#allocation4 + $0x8]] }
  0x39   :  { %10705 = vst [vmem:[#allocation45_spill] sm:$0xff] %v4723_v37  ;;  %s4802_s24 = sld [smem:[#allocation4 + $0x1d]]  ;;  %s4804_s25 = sld [smem:[#allocation4 + $0x1e]] }
  0x3a   :  { %127 = vrot.lane.b32.xlu1 %v56_v3, %s4525_s18  ;;  %125 = vrot.lane.b32.xlu0 %v55_v0, %s4525_s18  ;;  %v410_v13 = vld [vmem:[#allocation2 + $0x90] sm:$0xff]  ;;  %s4825_s26 = sld [smem:[#allocation4 + $0x32]]  ;;  %s4827_s27 = sld [smem:[#allocation4 + $0x47]] }
  0x3b   :  { %v411_v18 = vld [vmem:[#allocation2 + $0x98] sm:$0xff]  ;;  %v412_v19 = vld [vmem:[#allocation2 + $0xa0] sm:$0xff]  ;;  %v4631_v36 = vmul.f32 %v711_v17, %v410_v13  ;;  %v4643_v40 = vmul.f32 %v729_v22, %v410_v13  ;;  %v4681_v55 = vmul.f32 %v747_v44, %v410_v13  ;;  %v4701_v0 = vmul.f32 %v765_v52, %v410_v13  ;;  %s4849_s28 = sld [smem:[#allocation4 + $0x33]]  ;;  %s5911_s29 = sld [smem:[#allocation4 + $0x48]] }
  0x3c   :  { %v413_v24 = vld [vmem:[#allocation2 + $0xa8] sm:$0xff]  ;;  %v414_v25 = vld [vmem:[#allocation2 + $0xb0] sm:$0xff]  ;;  %v4639_v38 = vmul.f32 %v711_v17, %v411_v18  ;;  %v4641_v39 = vmul.f32 %v711_v17, %v412_v19  ;;  %v4664_v47 = vmul.f32 %v729_v22, %v411_v18  ;;  %v4666_v48 = vmul.f32 %v729_v22, %v412_v19  ;;  %v428_v2 = vld [vmem:[#allocation2 + $0x99] sm:$0xff]  ;;  %s5921_s2 = sld [smem:[#allocation4 + $0xa]]  ;;  %s5923_s30 = sld [smem:[#allocation4 + $0x1f]] }
  0x3d   :  { %v415_v26 = vld [vmem:[#allocation2 + $0xb8] sm:$0xff]  ;;  %v416_v31 = vld [vmem:[#allocation2 + $0xc0] sm:$0xff]  ;;  %10672 = vst [vmem:[#allocation12_spill] sm:$0xff] %v4631_v36  ;;  %10676 = vst [vmem:[#allocation16_spill] sm:$0xff] %v4643_v40  ;;  %v4649_v41 = vmul.f32 %v711_v17, %v413_v24  ;;  %v4651_v42 = vmul.f32 %v711_v17, %v414_v25  ;;  %v4670_v49 = vmul.f32 %v729_v22, %v413_v24  ;;  %s5933_s5 = sld [smem:[#allocation4 + $0x34]]  ;;  %s6075_s6 = sld [smem:[#allocation4 + $0x49]] }
  0x3e   :  { %131 = vrot.lane.b32.xlu1 %v58_v5, %s4525_s18  ;;  %129 = vrot.lane.b32.xlu0 %v57_v6, %s4525_s18  ;;  %v417_v32 = vld [vmem:[#allocation2 + $0xc8] sm:$0xff]  ;;  %10674 = vst [vmem:[#allocation14_spill] sm:$0xff] %v4639_v38  ;;  %10675 = vst [vmem:[#allocation15_spill] sm:$0xff] %v4641_v39  ;;  %v4653_v43 = vmul.f32 %v711_v17, %v415_v26  ;;  %v4660_v45 = vmul.f32 %v711_v17, %v416_v31  ;;  %v4695_v61 = vld [vmem:[#allocation2 + $0x91] sm:$0xff]  ;;  %s6083_s7 = sld [smem:[#allocation4 + $0xb]]  ;;  %s6085_s8 = sld [smem:[#allocation4 + $0x20]] }
  0x3f   :  { %10677 = vst [vmem:[#allocation17_spill] sm:$0xff] %v4649_v41  ;;  %10678 = vst [vmem:[#allocation18_spill] sm:$0xff] %v4651_v42  ;;  %v4662_v46 = vmul.f32 %v711_v17, %v417_v32  ;;  %v4672_v50 = vmul.f32 %v729_v22, %v414_v25  ;;  %v4674_v51 = vmul.f32 %v729_v22, %v415_v26  ;;  %v429_v3 = vld [vmem:[#allocation2 + $0xa1] sm:$0xff]  ;;  %v430_v4 = vld [vmem:[#allocation2 + $0xa9] sm:$0xff]  ;;  %s6239_s10 = sld [smem:[#allocation4 + $0xc]] }
  0x40   :  { %10679 = vst [vmem:[#allocation19_spill] sm:$0xff] %v4653_v43  ;;  %10680 = vst [vmem:[#allocation20_spill] sm:$0xff] %v4660_v45  ;;  %v4677_v53 = vmul.f32 %v729_v22, %v416_v31  ;;  %v4679_v54 = vmul.f32 %v729_v22, %v417_v32  ;;  %v4683_v56 = vmul.f32 %v747_v44, %v411_v18  ;;  %v431_v13 = vld [vmem:[#allocation2 + $0xb1] sm:$0xff]  ;;  %v432_v14 = vld [vmem:[#allocation2 + $0xb9] sm:$0xff] }
  0x41   :  { %10681 = vst [vmem:[#allocation21_spill] sm:$0xff] %v4662_v46  ;;  %10682 = vst [vmem:[#allocation22_spill] sm:$0xff] %v4664_v47  ;;  %v4687_v57 = vmul.f32 %v747_v44, %v412_v19  ;;  %v4689_v58 = vmul.f32 %v747_v44, %v413_v24  ;;  %v4691_v59 = vmul.f32 %v747_v44, %v414_v25  ;;  %v433_v17 = vld [vmem:[#allocation2 + $0xc1] sm:$0xff]  ;;  %v434_v30 = vld [vmem:[#allocation2 + $0xc9] sm:$0xff] }
  0x42   :  { %135 = vrot.lane.b32.xlu1 %v60_v7, %s4525_s18  ;;  %133 = vrot.lane.b32.xlu0 %v59_v8, %s4525_s18  ;;  %10683 = vst [vmem:[#allocation23_spill] sm:$0xff] %v4666_v48  ;;  %10684 = vst [vmem:[#allocation24_spill] sm:$0xff] %v4670_v49  ;;  %v4693_v60 = vmul.f32 %v747_v44, %v415_v26  ;;  %v4697_v62 = vmul.f32 %v747_v44, %v416_v31  ;;  %s4707_s18 = sld [smem:[#allocation4 + $0x1b]]  ;;  %v951_v8 = vstv %s4633_s9  ;;  %s6091_s9 = sld [smem:[#allocation4 + $0x35]] }
  0x43   :  { %10685 = vst [vmem:[#allocation25_spill] sm:$0xff] %v4672_v50  ;;  %10686 = vst [vmem:[#allocation26_spill] sm:$0xff] %v4674_v51  ;;  %v4699_v63 = vmul.f32 %v747_v44, %v417_v32  ;;  %v4703_v1 = vmul.f32 %v765_v52, %v411_v18  ;;  %v4709_v5 = vmul.f32 %v765_v52, %v412_v19  ;;  %v4726_v19 = vstv %s4645_s11  ;;  %s6245_s11 = sld [smem:[#allocation4 + $0x4a]] }
  0x44   :  { %10687 = vst [vmem:[#allocation27_spill] sm:$0xff] %v4677_v53  ;;  %10688 = vst [vmem:[#allocation28_spill] sm:$0xff] %v4679_v54  ;;  %v4711_v6 = vmul.f32 %v765_v52, %v413_v24  ;;  %v4713_v7 = vmul.f32 %v765_v52, %v414_v25  ;;  %v4716_v18 = vmul.f32 %v765_v52, %v415_v26  ;;  %v4729_v24 = vstv %s4647_s12  ;;  %s6247_s12 = sld [smem:[#allocation4 + $0x21]] }
  0x45   :  { %10689 = vst [vmem:[#allocation29_spill] sm:$0xff] %v4681_v55  ;;  %10690 = vst [vmem:[#allocation30_spill] sm:$0xff] %v4683_v56  ;;  %v4718_v22 = vmul.f32 %v765_v52, %v416_v31  ;;  %v4720_v44 = vmul.f32 %v765_v52, %v417_v32  ;;  %v969_v25 = vstv %s4658_s14  ;;  %v4741_v26 = vmul.f32 %v951_v8, %v4695_v61  ;;  %s6395_s14 = sld [smem:[#allocation4 + $0x4b]] }
  0x46   :  { %10691 = vst [vmem:[#allocation31_spill] sm:$0xff] %v4687_v57  ;;  %10692 = vst [vmem:[#allocation32_spill] sm:$0xff] %v4689_v58  ;;  %v4743_v31 = vmul.f32 %v951_v8, %v428_v2  ;;  %v4745_v32 = vmul.f32 %v951_v8, %v429_v3  ;;  %v4751_v52 = vmul.f32 %v951_v8, %v430_v4 }
  0x47   :  { %10693 = vst [vmem:[#allocation33_spill] sm:$0xff] %v4691_v59  ;;  %10694 = vst [vmem:[#allocation34_spill] sm:$0xff] %v4693_v60  ;;  %v4753_v37 = vmul.f32 %v951_v8, %v431_v13 }
  0x48   :  { %10695 = vst [vmem:[#allocation35_spill] sm:$0xff] %v4697_v62  ;;  %10696 = vst [vmem:[#allocation36_spill] sm:$0xff] %v4699_v63 }
  0x49   :  { %10697 = vst [vmem:[#allocation37_spill] sm:$0xff] %v4701_v0  ;;  %10698 = vst [vmem:[#allocation38_spill] sm:$0xff] %v4703_v1 }
  0x4a   :  { %10699 = vst [vmem:[#allocation39_spill] sm:$0xff] %v4709_v5  ;;  %10700 = vst [vmem:[#allocation40_spill] sm:$0xff] %v4711_v6  ;;  %v4732_v6 = vstv %s4656_s13  ;;  %s6277_s13 = sld [smem:[#allocation4 + $0x36]] }
  0x4b   :  { %10701 = vst [vmem:[#allocation41_spill] sm:$0xff] %v4713_v7  ;;  %10702 = vst [vmem:[#allocation42_spill] sm:$0xff] %v4716_v18  ;;  %v4738_v7 = vstv %s4668_s15  ;;  %s6403_s15 = sld [smem:[#allocation4 + $0xd]] }
  0x4c   :  { %10703 = vst [vmem:[#allocation43_spill] sm:$0xff] %v4718_v22  ;;  %10704 = vst [vmem:[#allocation44_spill] sm:$0xff] %v4720_v44 }
  0x4d   :  { %10706 = vst [vmem:[#allocation46_spill] sm:$0xff] %v4726_v19  ;;  %10707 = vst [vmem:[#allocation47_spill] sm:$0xff] %v4729_v24  ;;  %v4781_v24 = vmul.f32 %v969_v25, %v432_v14 }
  0x4e   :  { %10708 = vst [vmem:[#allocation48_spill] sm:$0xff] %v4732_v6  ;;  %10709 = vst [vmem:[#allocation49_spill] sm:$0xff] %v4738_v7  ;;  %v4755_v6 = vmul.f32 %v951_v8, %v432_v14  ;;  %v4757_v7 = vmul.f32 %v951_v8, %v433_v17 }
  0x4f   :  { %10710 = vst [vmem:[#allocation50_spill] sm:$0xff] %v4741_v26  ;;  %10711 = vst [vmem:[#allocation51_spill] sm:$0xff] %v4743_v31  ;;  %v4766_v31 = vmul.f32 %v969_v25, %v4695_v61  ;;  %v4768_v26 = vmul.f32 %v969_v25, %v428_v2 }
  0x50   :  { %10712 = vst [vmem:[#allocation52_spill] sm:$0xff] %v4745_v32  ;;  %10713 = vst [vmem:[#allocation53_spill] sm:$0xff] %v4751_v52  ;;  %v4763_v32 = vmul.f32 %v951_v8, %v434_v30  ;;  %v987_v52 = vstv %s4685_s16  ;;  %v4785_v8 = vmul.f32 %v969_v25, %v433_v17  ;;  %s6405_s16 = sld [smem:[#allocation4 + $0x22]] }
  0x51   :  { %10714 = vst [vmem:[#allocation54_spill] sm:$0xff] %v4753_v37  ;;  %10715 = vst [vmem:[#allocation55_spill] sm:$0xff] %v4755_v6  ;;  %v4775_v6 = vmul.f32 %v969_v25, %v429_v3  ;;  %v4779_v37 = vmul.f32 %v969_v25, %v431_v13  ;;  %v4794_v19 = vmul.f32 %v987_v52, %v4695_v61 }
  0x52   :  { %10716 = vst [vmem:[#allocation56_spill] sm:$0xff] %v4757_v7  ;;  %10717 = vst [vmem:[#allocation57_spill] sm:$0xff] %v4763_v32  ;;  %v4777_v7 = vmul.f32 %v969_v25, %v430_v4  ;;  %v4791_v32 = vstv %s4707_s18  ;;  %v4796_v44 = vmul.f32 %v987_v52, %v428_v2  ;;  %s6553_s18 = sld [smem:[#allocation4 + $0x4c]] }
  0x53   :  { %10718 = vst [vmem:[#allocation58_spill] sm:$0xff] %v4766_v31  ;;  %10719 = vst [vmem:[#allocation59_spill] sm:$0xff] %v4768_v26  ;;  %v4787_v31 = vmul.f32 %v969_v25, %v434_v30  ;;  %v1005_v26 = vstv %s4705_s17  ;;  %v4808_v25 = vmul.f32 %v987_v52, %v432_v14  ;;  %s6411_s17 = sld [smem:[#allocation4 + $0x37]] }
  0x54   :  { %10720 = vst [vmem:[#allocation60_spill] sm:$0xff] %v4775_v6  ;;  %10721 = vst [vmem:[#allocation61_spill] sm:$0xff] %v4777_v7  ;;  %v4798_v6 = vmul.f32 %v987_v52, %v429_v3  ;;  %v4800_v7 = vmul.f32 %v987_v52, %v430_v4 }
  0x55   :  { %10722 = vst [vmem:[#allocation62_spill] sm:$0xff] %v4779_v37  ;;  %10723 = vst [vmem:[#allocation63_spill] sm:$0xff] %v4781_v24  ;;  %v4806_v24 = vmul.f32 %v987_v52, %v431_v13  ;;  %v4847_v37 = vstv %s4749_s20  ;;  %s6569_s20 = sld [smem:[#allocation4 + $0x38]] }
  0x56   :  { %10724 = vst [vmem:[#allocation64_spill] sm:$0xff] %v4785_v8  ;;  %10725 = vst [vmem:[#allocation65_spill] sm:$0xff] %v4787_v31  ;;  %v4810_v31 = vmul.f32 %v987_v52, %v433_v17  ;;  %v4814_v8 = vld [vmem:[#allocation2 + $0x92] sm:$0xff] }
  0x57   :  { %10726 = vst [vmem:[#allocation66_spill] sm:$0xff] %v4791_v32  ;;  %10727 = vst [vmem:[#allocation67_spill] sm:$0xff] %v4794_v19  ;;  %v4812_v32 = vmul.f32 %v987_v52, %v434_v30  ;;  %v4823_v19 = vmul.f32 %v1005_v26, %v430_v4  ;;  %v445_v52 = vld [vmem:[#allocation2 + $0x9a] sm:$0xff]  ;;  %v4837_v4 = vmul.f32 %v1005_v26, %v434_v30  ;;  %v4860_v30 = vstv %s4771_s23  ;;  %s6725_s23 = sld [smem:[#allocation4 + $0x24]] }
  0x58   :  { %10728 = vst [vmem:[#allocation68_spill] sm:$0xff] %v4796_v44  ;;  %10729 = vst [vmem:[#allocation69_spill] sm:$0xff] %v4798_v6  ;;  %v4817_v44 = vmul.f32 %v1005_v26, %v4695_v61  ;;  %v4819_v6 = vmul.f32 %v1005_v26, %v428_v2  ;;  %v4829_v61 = vld [vmem:[#allocation2 + $0xaa] sm:$0xff]  ;;  %v4831_v2 = vmul.f32 %v1005_v26, %v431_v13 }
  0x59   :  { %10730 = vst [vmem:[#allocation70_spill] sm:$0xff] %v4800_v7  ;;  %10731 = vst [vmem:[#allocation71_spill] sm:$0xff] %v4806_v24  ;;  %v4821_v7 = vmul.f32 %v1005_v26, %v429_v3  ;;  %v4833_v3 = vmul.f32 %v1005_v26, %v432_v14  ;;  %v1191_v24 = vstv %s4783_s0  ;;  %v4851_v13 = vld [vmem:[#allocation2 + $0xca] sm:$0xff]  ;;  %v4854_v14 = vstv %s4759_s21  ;;  %s6717_s21 = sld [smem:[#allocation4 + $0xf]]  ;;  %s6873_s0 = sld [smem:[#allocation4 + $0x4e]] }
  0x5a   :  { %10732 = vst [vmem:[#allocation72_spill] sm:$0xff] %v4808_v25  ;;  %10733 = vst [vmem:[#allocation73_spill] sm:$0xff] %v4810_v31  ;;  %v4840_v31 = vstv %s4735_s3  ;;  %v4843_v25 = vstv %s4747_s19  ;;  %s6561_s3 = sld [smem:[#allocation4 + $0xe]]  ;;  %s6563_s19 = sld [smem:[#allocation4 + $0x23]] }
  0x5b   :  { %10734 = vst [vmem:[#allocation74_spill] sm:$0xff] %v4812_v32  ;;  %10735 = vst [vmem:[#allocation75_spill] sm:$0xff] %v4817_v44  ;;  %v446_v32 = vld [vmem:[#allocation2 + $0xa2] sm:$0xff] }
  0x5c   :  { %10736 = vst [vmem:[#allocation76_spill] sm:$0xff] %v4819_v6  ;;  %10737 = vst [vmem:[#allocation77_spill] sm:$0xff] %v4821_v7  ;;  %v4835_v7 = vmul.f32 %v1005_v26, %v433_v17  ;;  %v449_v6 = vld [vmem:[#allocation2 + $0xba] sm:$0xff]  ;;  %v450_v44 = vld [vmem:[#allocation2 + $0xc2] sm:$0xff]  ;;  %v4857_v17 = vstv %s4761_s22  ;;  %v4863_v26 = vstv %s4773_s1  ;;  %s6723_s22 = sld [smem:[#allocation4 + $0x4d]]  ;;  %s6755_s1 = sld [smem:[#allocation4 + $0x39]] }
  0x5d   :  { %10738 = vst [vmem:[#allocation78_spill] sm:$0xff] %v4823_v19  ;;  %10739 = vst [vmem:[#allocation79_spill] sm:$0xff] %v4831_v2  ;;  %v448_v19 = vld [vmem:[#allocation2 + $0xb2] sm:$0xff]  ;;  %v1245_v2 = vstv %s4827_s27  ;;  %s7031_s27 = sld [smem:[#allocation4 + $0x4f]] }
  0x5e   :  { %10740 = vst [vmem:[#allocation80_spill] sm:$0xff] %v4833_v3  ;;  %10741 = vst [vmem:[#allocation81_spill] sm:$0xff] %v4835_v7  ;;  %v4870_v7 = vmul.f32 %v1191_v24, %v446_v32  ;;  %v4873_v3 = vmul.f32 %v1191_v24, %v4829_v61 }
  0x5f   :  { %10742 = vst [vmem:[#allocation82_spill] sm:$0xff] %v4837_v4  ;;  %10743 = vst [vmem:[#allocation83_spill] sm:$0xff] %v4840_v31 }
  0x60   :  { %10744 = vst [vmem:[#allocation84_spill] sm:$0xff] %v4843_v25  ;;  %10745 = vst [vmem:[#allocation85_spill] sm:$0xff] %v4847_v37  ;;  %v4866_v25 = vmul.f32 %v1191_v24, %v4814_v8  ;;  %v4868_v37 = vmul.f32 %v1191_v24, %v445_v52 }
  0x61   :  { %10746 = vst [vmem:[#allocation86_spill] sm:$0xff] %v4854_v14  ;;  %10747 = vst [vmem:[#allocation87_spill] sm:$0xff] %v4857_v17  ;;  %v4881_v17 = vmul.f32 %v1191_v24, %v450_v44 }
  0x62   :  { %10748 = vst [vmem:[#allocation88_spill] sm:$0xff] %v4860_v30  ;;  %10749 = vst [vmem:[#allocation89_spill] sm:$0xff] %v4863_v26  ;;  %v4877_v30 = vmul.f32 %v1191_v24, %v448_v19  ;;  %v4879_v26 = vmul.f32 %v1191_v24, %v449_v6 }
  0x63   :  { %10750 = vst [vmem:[#allocation90_spill] sm:$0xff] %v4866_v25  ;;  %10751 = vst [vmem:[#allocation91_spill] sm:$0xff] %v4868_v37  ;;  %v1209_v25 = vstv %s4802_s24  ;;  %v4885_v37 = vmul.f32 %v1191_v24, %v4851_v13  ;;  %s6881_s24 = sld [smem:[#allocation4 + $0x10]] }
  0x64   :  { %10752 = vst [vmem:[#allocation92_spill] sm:$0xff] %v4870_v7  ;;  %10753 = vst [vmem:[#allocation93_spill] sm:$0xff] %v4873_v3  ;;  %v4888_v7 = vmul.f32 %v1209_v25, %v4814_v8  ;;  %v4890_v3 = vmul.f32 %v1209_v25, %v445_v52 }
  0x65   :  { %10754 = vst [vmem:[#allocation94_spill] sm:$0xff] %v4877_v30  ;;  %10755 = vst [vmem:[#allocation95_spill] sm:$0xff] %v4879_v26  ;;  %v4898_v30 = vmul.f32 %v1209_v25, %v4829_v61  ;;  %v4900_v26 = vmul.f32 %v1209_v25, %v448_v19 }
  0x66   :  { %10756 = vst [vmem:[#allocation96_spill] sm:$0xff] %v4881_v17  ;;  %10757 = vst [vmem:[#allocation97_spill] sm:$0xff] %v4885_v37  ;;  %v4902_v17 = vmul.f32 %v1209_v25, %v449_v6  ;;  %v4904_v37 = vmul.f32 %v1209_v25, %v450_v44 }
  0x67   :  { %10758 = vst [vmem:[#allocation98_spill] sm:$0xff] %v4888_v7  ;;  %10759 = vst [vmem:[#allocation99_spill] sm:$0xff] %v4890_v3  ;;  %v4907_v7 = vmul.f32 %v1209_v25, %v4851_v13  ;;  %v1227_v3 = vstv %s4825_s26  ;;  %s6889_s26 = sld [smem:[#allocation4 + $0x3a]] }
  0x68   :  { %10762 = vst [vmem:[#allocation102_spill] sm:$0xff] %v4898_v30  ;;  %10763 = vst [vmem:[#allocation103_spill] sm:$0xff] %v4900_v26  ;;  %v4916_v30 = vmul.f32 %v1227_v3, %v445_v52  ;;  %v4918_v26 = vmul.f32 %v1227_v3, %v446_v32 }
  0x69   :  { %10764 = vst [vmem:[#allocation104_spill] sm:$0xff] %v4902_v17  ;;  %10765 = vst [vmem:[#allocation105_spill] sm:$0xff] %v4904_v37  ;;  %v4921_v17 = vstv %s4849_s28  ;;  %v4924_v37 = vmul.f32 %v1227_v3, %v4829_v61  ;;  %s7039_s28 = sld [smem:[#allocation4 + $0x11]] }
  0x6a   :  { %10766 = vst [vmem:[#allocation106_spill] sm:$0xff] %v4907_v7  ;;  %10768 = vst [vmem:[#allocation108_spill] sm:$0xff] %v4916_v30  ;;  %v4928_v7 = vmul.f32 %v1227_v3, %v449_v6  ;;  %v4938_v30 = vmul.f32 %v1245_v2, %v445_v52 }
  0x6b   :  { %10769 = vst [vmem:[#allocation109_spill] sm:$0xff] %v4918_v26  ;;  %10770 = vst [vmem:[#allocation110_spill] sm:$0xff] %v4921_v17  ;;  %v4940_v26 = vmul.f32 %v1245_v2, %v446_v32 }
  0x6c   :  { %10771 = vst [vmem:[#allocation111_spill] sm:$0xff] %v4924_v37  ;;  %10773 = vst [vmem:[#allocation113_spill] sm:$0xff] %v4928_v7  ;;  %v4945_v7 = vmul.f32 %v1245_v2, %v448_v19 }
  0x6d   :  { %10777 = vst [vmem:[#allocation117_spill] sm:$0xff] %v4938_v30  ;;  %10778 = vst [vmem:[#allocation118_spill] sm:$0xff] %v4940_v26 }
  0x6e   :  { %10780 = vst [vmem:[#allocation120_spill] sm:$0xff] %v4945_v7 }
  0x98   :  { %v83_v31 = vpop.permute.xlu1 %82  ;;  %v79_v4 = vpop.permute.xlu0 %78 }
  0x99   :  { %103 = vst.msk [vmem:[#allocation2] sm:$0xff] %vm102_vm1, %v79_v4  ;;  %105 = vst.msk [vmem:[#allocation2 + $0x10] sm:$0xff] %vm102_vm1, %v83_v31  ;;  %v4893_v4 = vstv %s4804_s25  ;;  %v4895_v31 = vmul.f32 %v1209_v25, %v446_v32  ;;  %v4926_v25 = vmul.f32 %v1227_v3, %v448_v19  ;;  %s6883_s25 = sld [smem:[#allocation4 + $0x25]] }
  0x9a   :  { %10760 = vst [vmem:[#allocation100_spill] sm:$0xff] %v4893_v4  ;;  %v4914_v4 = vmul.f32 %v1227_v3, %v4814_v8 }
  0x9b   :  { %10761 = vst [vmem:[#allocation101_spill] sm:$0xff] %v4895_v31  ;;  %10772 = vst [vmem:[#allocation112_spill] sm:$0xff] %v4926_v25  ;;  %v4943_v25 = vmul.f32 %v1245_v2, %v4829_v61 }
  0x9c   :  { %v85_v14 = vpop.permute.xlu1 %84  ;;  %v81_v24 = vpop.permute.xlu0 %80  ;;  %10767 = vst [vmem:[#allocation107_spill] sm:$0xff] %v4914_v4  ;;  %v4936_v4 = vmul.f32 %v1245_v2, %v4814_v8 }
  0x9d   :  { %104 = vst.msk [vmem:[#allocation2 + $0x8] sm:$0xff] %vm102_vm1, %v81_v24  ;;  %106 = vst.msk [vmem:[#allocation2 + $0x18] sm:$0xff] %vm102_vm1, %v85_v14  ;;  %v4930_v24 = vmul.f32 %v1227_v3, %v450_v44  ;;  %v4933_v14 = vmul.f32 %v1227_v3, %v4851_v13  ;;  %v4949_v3 = vmul.f32 %v1245_v2, %v450_v44 }
  0x9e   :  { %10776 = vst [vmem:[#allocation116_spill] sm:$0xff] %v4936_v4  ;;  %10779 = vst [vmem:[#allocation119_spill] sm:$0xff] %v4943_v25  ;;  %v4961_v44 = vmul.f32 %v1245_v2, %v4851_v13 }
  0x9f   :  { %10774 = vst [vmem:[#allocation114_spill] sm:$0xff] %v4930_v24  ;;  %10775 = vst [vmem:[#allocation115_spill] sm:$0xff] %v4933_v14  ;;  %v4947_v24 = vmul.f32 %v1245_v2, %v449_v6 }
  0xa0   :  { %v89_v17 = vpop.permute.xlu1 %88  ;;  %v87_v31 = vpop.permute.xlu0 %86  ;;  %v173_v22 = vld [vmem:[#allocation2] sm:$0xff]  ;;  %v175_v37 = vld [vmem:[#allocation2 + $0x10] sm:$0xff]  ;;  %10782 = vst [vmem:[#allocation122_spill] sm:$0xff] %v4949_v3  ;;  %10783 = vst [vmem:[#allocation123_spill] sm:$0xff] %v4961_v44 }
  0xa1   :  { %10781 = vst [vmem:[#allocation121_spill] sm:$0xff] %v4947_v24  ;;  %107 = vst.msk [vmem:[#allocation2 + $0x20] sm:$0xff] %vm102_vm1, %v87_v31  ;;  %v552_v32 = vmul.f32 %v4596_v9, %v173_v22  ;;  %v554_v8 = vmul.f32 %v4596_v9, %v175_v37  ;;  %v570_v52 = vmul.f32 %v4598_v10, %v173_v22 }
  0xa2   :  { %108 = vst.msk [vmem:[#allocation2 + $0x28] sm:$0xff] %vm102_vm1, %v89_v17  ;;  %v572_v26 = vmul.f32 %v4598_v10, %v175_v37  ;;  %v588_v61 = vmul.f32 %v4600_v11, %v173_v22  ;;  %v590_v19 = vmul.f32 %v4600_v11, %v175_v37  ;;  %v606_v6 = vmul.f32 %v4602_v12, %v173_v22 }
  0xa3   :  { %v4964_v31 = vadd.f32 %v552_v32, %v4606_v15  ;;  %v4967_v17 = vadd.f32 %v554_v8, %v4606_v15  ;;  %v4970_v3 = vadd.f32 %v570_v52, %v4608_v16  ;;  %v608_v24 = vmul.f32 %v4602_v12, %v175_v37 }
  0xa4   :  { %v93_v7 = vpop.permute.xlu1 %92  ;;  %v91_v25 = vpop.permute.xlu0 %90  ;;  %v174_v30 = vld [vmem:[#allocation2 + $0x8] sm:$0xff]  ;;  %v176_v4 = vld [vmem:[#allocation2 + $0x18] sm:$0xff]  ;;  %v4974_v22 = vadd.f32 %v572_v26, %v4608_v16  ;;  %v4977_v2 = vadd.f32 %v588_v61, %v4610_v20  ;;  %v4980_v13 = vadd.f32 %v590_v19, %v4610_v20  ;;  %v4983_v32 = vadd.f32 %v606_v6, %v4612_v21 }
  0xa5   :  { %109 = vst.msk [vmem:[#allocation2 + $0x30] sm:$0xff] %vm102_vm1, %v91_v25  ;;  %110 = vst.msk [vmem:[#allocation2 + $0x38] sm:$0xff] %vm102_vm1, %v93_v7  ;;  %v553_v37 = vmul.f32 %v4596_v9, %v174_v30  ;;  %v555_v8 = vmul.f32 %v4596_v9, %v176_v4  ;;  %v571_v26 = vmul.f32 %v4598_v10, %v174_v30  ;;  %v5061_v51 = vld [vmem:[#allocation2 + $0x9] sm:$0xff] }
  0xa6   :  { %v573_v52 = vmul.f32 %v4598_v10, %v176_v4  ;;  %v589_v61 = vmul.f32 %v4600_v11, %v174_v30  ;;  %v591_v19 = vmul.f32 %v4600_v11, %v176_v4  ;;  %v607_v44 = vmul.f32 %v4602_v12, %v174_v30  ;;  %10785 = vst [vmem:[#allocation125_spill] sm:$0xff] %v5061_v51 }
  0xa7   :  { %v609_v6 = vmul.f32 %v4602_v12, %v176_v4  ;;  %v4996_v25 = vadd.f32 %v553_v37, %v4606_v15  ;;  %v4999_v7 = vadd.f32 %v555_v8, %v4606_v15  ;;  %v5002_v14 = vadd.f32 %v571_v26, %v4608_v16 }
  0xa8   :  { %v5005_v18 = vadd.f32 %v608_v24, %v4612_v21  ;;  %v124_v5 = vpop.permute.xlu1 %123  ;;  %v122_v1 = vpop.permute.xlu0 %121  ;;  %v177_v0 = vld [vmem:[#allocation2 + $0x20] sm:$0xff]  ;;  %v5008_v30 = vadd.f32 %v573_v52, %v4608_v16  ;;  %v5011_v4 = vadd.f32 %v589_v61, %v4610_v20  ;;  %v5014_v37 = vadd.f32 %v591_v19, %v4610_v20 }
  0xa9   :  { %v178_v63 = vld [vmem:[#allocation2 + $0x28] sm:$0xff]  ;;  %v5017_v8 = vadd.f32 %v607_v44, %v4612_v21  ;;  %146 = vst.msk [vmem:[#allocation2 + $0x48] sm:$0xff] %vm145_vm2, %v122_v1  ;;  %147 = vst.msk [vmem:[#allocation2 + $0x50] sm:$0xff] %vm145_vm2, %v124_v5  ;;  %v556_v24 = vmul.f32 %v4596_v9, %v177_v0  ;;  %v574_v52 = vmul.f32 %v4598_v10, %v177_v0 }
  0xaa   :  { %v557_v26 = vmul.f32 %v4596_v9, %v178_v63  ;;  %v575_v62 = vmul.f32 %v4598_v10, %v178_v63  ;;  %v592_v61 = vmul.f32 %v4600_v11, %v177_v0  ;;  %v593_v19 = vmul.f32 %v4600_v11, %v178_v63  ;;  %v5071_v48 = vld [vmem:[#allocation2 + $0x21] sm:$0xff] }
  0xab   :  { %v610_v60 = vmul.f32 %v4602_v12, %v177_v0  ;;  %v5029_v44 = vadd.f32 %v609_v6, %v4612_v21  ;;  %v5032_v1 = vadd.f32 %v556_v24, %v4606_v15  ;;  %v5038_v59 = vadd.f32 %v574_v52, %v4608_v16  ;;  %10788 = vst [vmem:[#allocation128_spill] sm:$0xff] %v5071_v48 }
  0xac   :  { %v5035_v5 = vadd.f32 %v557_v26, %v4606_v15  ;;  %v611_v58 = vmul.f32 %v4602_v12, %v178_v63  ;;  %v128_v57 = vpop.permute.xlu1 %127  ;;  %v126_v56 = vpop.permute.xlu0 %125  ;;  %v179_v55 = vld [vmem:[#allocation2 + $0x30] sm:$0xff]  ;;  %v180_v54 = vld [vmem:[#allocation2 + $0x38] sm:$0xff]  ;;  %v5042_v0 = vadd.f32 %v575_v62, %v4608_v16  ;;  %v5045_v6 = vadd.f32 %v592_v61, %v4610_v20  ;;  %v5055_v63 = vld [vmem:[#allocation2 + $0x1] sm:$0xff] }
  0xad   :  { %v5048_v24 = vadd.f32 %v593_v19, %v4610_v20  ;;  %v5051_v26 = vadd.f32 %v610_v60, %v4612_v21  ;;  %148 = vst.msk [vmem:[#allocation2 + $0x58] sm:$0xff] %vm145_vm2, %v126_v56  ;;  %149 = vst.msk [vmem:[#allocation2 + $0x60] sm:$0xff] %vm145_vm2, %v128_v57  ;;  %v558_v52 = vmul.f32 %v4596_v9, %v179_v55  ;;  %v5063_v19 = vld [vmem:[#allocation2 + $0x11] sm:$0xff]  ;;  %v5065_v60 = vld [vmem:[#allocation2 + $0x19] sm:$0xff] }
  0xae   :  { %10784 = vst [vmem:[#allocation124_spill] sm:$0xff] %v5055_v63  ;;  %v559_v62 = vmul.f32 %v4596_v9, %v180_v54  ;;  %v576_v53 = vmul.f32 %v4598_v10, %v179_v55  ;;  %v577_v61 = vmul.f32 %v4598_v10, %v180_v54  ;;  %10786 = vst [vmem:[#allocation126_spill] sm:$0xff] %v5063_v19  ;;  %v5073_v9 = vld [vmem:[#allocation2 + $0x29] sm:$0xff]  ;;  %v5075_v47 = vld [vmem:[#allocation2 + $0x31] sm:$0xff] }
  0xaf   :  { %10787 = vst [vmem:[#allocation127_spill] sm:$0xff] %v5065_v60  ;;  %v594_v56 = vmul.f32 %v4600_v11, %v179_v55  ;;  %v595_v57 = vmul.f32 %v4600_v11, %v180_v54  ;;  %v612_v50 = vmul.f32 %v4602_v12, %v179_v55  ;;  %v613_v49 = vmul.f32 %v4602_v12, %v180_v54  ;;  %v5089_v54 = vld [vmem:[#allocation2 + $0x39] sm:$0xff] }
  0xb0   :  { %10789 = vst [vmem:[#allocation129_spill] sm:$0xff] %v5073_v9  ;;  %10790 = vst [vmem:[#allocation130_spill] sm:$0xff] %v5075_v47  ;;  %v5078_v10 = vadd.f32 %v558_v52, %v4606_v15  ;;  %v5081_v40 = vadd.f32 %v559_v62, %v4606_v15  ;;  %v5084_v46 = vadd.f32 %v576_v53, %v4608_v16  ;;  %v132_v55 = vpop.permute.xlu1 %131  ;;  %v130_v12 = vpop.permute.xlu0 %129 }
  0xb1   :  { %v5087_v11 = vadd.f32 %v611_v58, %v4612_v21  ;;  %v5092_v45 = vadd.f32 %v577_v61, %v4608_v16  ;;  %v5095_v43 = vadd.f32 %v594_v56, %v4610_v20  ;;  %v5098_v52 = vadd.f32 %v595_v57, %v4610_v20  ;;  %150 = vst.msk [vmem:[#allocation2 + $0x68] sm:$0xff] %vm145_vm2, %v130_v12 }
  0xb2   :  { %v5101_v15 = vadd.f32 %v612_v50, %v4612_v21  ;;  %151 = vst.msk [vmem:[#allocation2 + $0x70] sm:$0xff] %vm145_vm2, %v132_v55  ;;  %v5106_v53 = vadd.f32 %v613_v49, %v4612_v21  ;;  %v5110_v16 = vmul.f32 %v4614_v23, %v5055_v63  ;;  %v5114_v58 = vmul.f32 %v4614_v23, %v5061_v51 }
  0xb3   :  { %v5118_v20 = vmul.f32 %v4614_v23, %v5063_v19  ;;  %v5122_v50 = vmul.f32 %v4614_v23, %v5065_v60  ;;  %v5126_v21 = vmul.f32 %v4614_v23, %v5071_v48  ;;  %v5130_v49 = vmul.f32 %v4614_v23, %v5073_v9 }
  0xb4   :  { %10791 = vst [vmem:[#allocation131_spill] sm:$0xff] %v5110_v16  ;;  %10792 = vst [vmem:[#allocation132_spill] sm:$0xff] %v5114_v58  ;;  %v5134_v62 = vmul.f32 %v4614_v23, %v5075_v47  ;;  %v5138_v61 = vmul.f32 %v4614_v23, %v5089_v54  ;;  %v5142_v56 = vmul.f32 %v4619_v28, %v5055_v63  ;;  %v136_v12 = vpop.permute.xlu1 %135 }
  0xb5   :  { %10793 = vst [vmem:[#allocation133_spill] sm:$0xff] %v5118_v20  ;;  %10794 = vst [vmem:[#allocation134_spill] sm:$0xff] %v5122_v50  ;;  %v5146_v57 = vmul.f32 %v4619_v28, %v5061_v51  ;;  %v5150_v55 = vmul.f32 %v4619_v28, %v5063_v19  ;;  %v5158_v23 = vmul.f32 %v4619_v28, %v5071_v48 }
  0xb6   :  { %10795 = vst [vmem:[#allocation135_spill] sm:$0xff] %v5126_v21  ;;  %10796 = vst [vmem:[#allocation136_spill] sm:$0xff] %v5130_v49  ;;  %v134_v49 = vpop.permute.xlu0 %133  ;;  %v5215_v50 = vmul.f32 %v4621_v29, %v5089_v54 }
  0xb7   :  { %10797 = vst [vmem:[#allocation137_spill] sm:$0xff] %v5134_v62  ;;  %10798 = vst [vmem:[#allocation138_spill] sm:$0xff] %v5138_v61  ;;  %v5154_v62 = vmul.f32 %v4619_v28, %v5065_v60  ;;  %v293_v61 = vld [vmem:[#allocation2 + $0x58] sm:$0xff] }
  0xb8   :  { %10799 = vst [vmem:[#allocation139_spill] sm:$0xff] %v5142_v56  ;;  %10800 = vst [vmem:[#allocation140_spill] sm:$0xff] %v5146_v57  ;;  %v5162_v56 = vmul.f32 %v4619_v28, %v5073_v9  ;;  %v5166_v57 = vmul.f32 %v4619_v28, %v5075_v47 }
  0xb9   :  { %10801 = vst [vmem:[#allocation141_spill] sm:$0xff] %v5150_v55  ;;  %10802 = vst [vmem:[#allocation142_spill] sm:$0xff] %v5154_v62  ;;  %v5172_v55 = vmul.f32 %v4619_v28, %v5089_v54  ;;  %v5176_v62 = vmul.f32 %v4621_v29, %v5055_v63  ;;  %v5192_v28 = vmul.f32 %v4621_v29, %v5071_v48  ;;  %v296_v48 = vld [vmem:[#allocation2 + $0x70] sm:$0xff] }
  0xba   :  { %10803 = vst [vmem:[#allocation143_spill] sm:$0xff] %v5158_v23  ;;  %10804 = vst [vmem:[#allocation144_spill] sm:$0xff] %v5162_v56  ;;  %v5180_v23 = vmul.f32 %v4621_v29, %v5061_v51  ;;  %v5184_v56 = vmul.f32 %v4621_v29, %v5063_v19  ;;  %v5196_v63 = vmul.f32 %v4621_v29, %v5073_v9  ;;  %v294_v19 = vld [vmem:[#allocation2 + $0x60] sm:$0xff] }
  0xbb   :  { %10805 = vst [vmem:[#allocation145_spill] sm:$0xff] %v5166_v57  ;;  %152 = vst.msk [vmem:[#allocation2 + $0x78] sm:$0xff] %vm145_vm2, %v134_v49  ;;  %v291_v57 = vld [vmem:[#allocation2 + $0x48] sm:$0xff]  ;;  %v292_v49 = vld [vmem:[#allocation2 + $0x50] sm:$0xff]  ;;  %v5200_v51 = vmul.f32 %v4621_v29, %v5075_v47  ;;  %v653_v47 = vmul.f32 %v4625_v33, %v294_v19  ;;  %v655_v38 = vmul.f32 %v4625_v33, %v296_v48 }
  0xbc   :  { %153 = vst.msk [vmem:[#allocation2 + $0x80] sm:$0xff] %vm145_vm2, %v136_v12  ;;  %10806 = vst [vmem:[#allocation146_spill] sm:$0xff] %v5172_v55  ;;  %v5188_v12 = vmul.f32 %v4621_v29, %v5065_v60  ;;  %v634_v60 = vmul.f32 %v4616_v27, %v293_v61  ;;  %v651_v9 = vmul.f32 %v4625_v33, %v292_v49 }
  0xbd   :  { %10807 = vst [vmem:[#allocation147_spill] sm:$0xff] %v5176_v62  ;;  %10808 = vst [vmem:[#allocation148_spill] sm:$0xff] %v5180_v23  ;;  %v633_v23 = vmul.f32 %v4616_v27, %v292_v49  ;;  %v295_v62 = vld [vmem:[#allocation2 + $0x68] sm:$0xff]  ;;  %v637_v55 = vmul.f32 %v4616_v27, %v296_v48 }
  0xbe   :  { %10809 = vst [vmem:[#allocation149_spill] sm:$0xff] %v5184_v56  ;;  %10810 = vst [vmem:[#allocation150_spill] sm:$0xff] %v5188_v12  ;;  %v632_v56 = vmul.f32 %v4616_v27, %v291_v57  ;;  %v650_v12 = vmul.f32 %v4625_v33, %v291_v57  ;;  %v642_v58 = vadd.f32 %v634_v60, %v4967_v17 }
  0xbf   :  { %10811 = vst [vmem:[#allocation151_spill] sm:$0xff] %v5192_v28  ;;  %10812 = vst [vmem:[#allocation152_spill] sm:$0xff] %v5196_v63  ;;  %v635_v28 = vmul.f32 %v4616_v27, %v294_v19  ;;  %v652_v63 = vmul.f32 %v4625_v33, %v293_v61  ;;  %v641_v20 = vadd.f32 %v633_v23, %v4996_v25 }
  0xc0   :  { %10813 = vst [vmem:[#allocation153_spill] sm:$0xff] %v5200_v51  ;;  %v636_v51 = vmul.f32 %v4616_v27, %v295_v62  ;;  %v640_v21 = vadd.f32 %v632_v56, %v4964_v31  ;;  %v654_v42 = vmul.f32 %v4625_v33, %v295_v62  ;;  %v645_v39 = vadd.f32 %v637_v55, %v5035_v5 }
  0xc1   :  { %v643_v16 = vadd.f32 %v635_v28, %v4999_v7  ;;  %v658_v31 = vadd.f32 %v650_v12, %v4970_v3  ;;  %v659_v29 = vadd.f32 %v651_v9, %v5002_v14  ;;  %v660_v25 = vadd.f32 %v652_v63, %v4974_v22 }
  0xc2   :  { %v644_v41 = vadd.f32 %v636_v51, %v5032_v1  ;;  %v297_v56 = vld [vmem:[#allocation2 + $0x78] sm:$0xff]  ;;  %v661_v17 = vadd.f32 %v653_v47, %v5008_v30  ;;  %v662_v7 = vadd.f32 %v654_v42, %v5038_v59  ;;  %v668_v3 = vmul.f32 %v4627_v34, %v291_v57 }
  0xc3   :  { %v298_v36 = vld [vmem:[#allocation2 + $0x80] sm:$0xff]  ;;  %v638_v60 = vmul.f32 %v4616_v27, %v297_v56  ;;  %v656_v1 = vmul.f32 %v4625_v33, %v297_v56  ;;  %v669_v55 = vmul.f32 %v4627_v34, %v292_v49  ;;  %v670_v14 = vmul.f32 %v4627_v34, %v293_v61 }
  0xc4   :  { %v639_v51 = vmul.f32 %v4616_v27, %v298_v36  ;;  %v657_v5 = vmul.f32 %v4625_v33, %v298_v36  ;;  %v671_v22 = vmul.f32 %v4627_v34, %v294_v19  ;;  %v663_v59 = vadd.f32 %v655_v38, %v5042_v0 }
  0xc5   :  { %v646_v47 = vadd.f32 %v638_v60, %v5078_v10  ;;  %v664_v27 = vadd.f32 %v656_v1, %v5084_v46  ;;  %v672_v33 = vmul.f32 %v4627_v34, %v295_v62  ;;  %v673_v63 = vmul.f32 %v4627_v34, %v296_v48  ;;  %v10816_v1 = vld [vmem:[#allocation15_spill] sm:$0xff] }
  0xc6   :  { %v647_v42 = vadd.f32 %v639_v51, %v5081_v40  ;;  %v665_v30 = vadd.f32 %v657_v5, %v5092_v45  ;;  %v674_v9 = vmul.f32 %v4627_v34, %v297_v56  ;;  %v675_v23 = vmul.f32 %v4627_v34, %v298_v36  ;;  %v10814_v51 = vld [vmem:[#allocation12_spill] sm:$0xff]  ;;  %v10817_v5 = vld [vmem:[#allocation17_spill] sm:$0xff] }
  0xc7   :  { %v676_v12 = vadd.f32 %v668_v3, %v4977_v2  ;;  %v677_v10 = vadd.f32 %v669_v55, %v5011_v4  ;;  %v678_v40 = vadd.f32 %v670_v14, %v4980_v13  ;;  %v679_v38 = vadd.f32 %v671_v22, %v5014_v37  ;;  %v10818_v3 = vld [vmem:[#allocation18_spill] sm:$0xff]  ;;  %v10819_v55 = vld [vmem:[#allocation19_spill] sm:$0xff]  ;;  %v10820_v14 = vld [vmem:[#allocation20_spill] sm:$0xff] }
  0xc8   :  { %v680_v46 = vadd.f32 %v672_v33, %v5045_v6  ;;  %v681_v45 = vadd.f32 %v673_v63, %v5048_v24  ;;  %v682_v0 = vadd.f32 %v674_v9, %v5095_v43  ;;  %v686_v28 = vmul.f32 %v4629_v35, %v291_v57  ;;  %v10821_v22 = vld [vmem:[#allocation21_spill] sm:$0xff]  ;;  %v10822_v33 = vld [vmem:[#allocation16_spill] sm:$0xff]  ;;  %v10823_v63 = vld [vmem:[#allocation22_spill] sm:$0xff] }
  0xc9   :  { %v687_v60 = vmul.f32 %v4629_v35, %v292_v49  ;;  %v688_v34 = vmul.f32 %v4629_v35, %v293_v61  ;;  %v689_v2 = vmul.f32 %v4629_v35, %v294_v19  ;;  %v690_v4 = vmul.f32 %v4629_v35, %v295_v62  ;;  %v10824_v9 = vld [vmem:[#allocation23_spill] sm:$0xff] }
  0xca   :  { %v691_v13 = vmul.f32 %v4629_v35, %v296_v48  ;;  %v692_v37 = vmul.f32 %v4629_v35, %v297_v56  ;;  %v693_v6 = vmul.f32 %v4629_v35, %v298_v36  ;;  %v683_v24 = vadd.f32 %v675_v23, %v5098_v52  ;;  %v10815_v36 = vld [vmem:[#allocation14_spill] sm:$0xff]  ;;  %v10825_v23 = vld [vmem:[#allocation24_spill] sm:$0xff] }
  0xcb   :  { %v694_v43 = vadd.f32 %v686_v28, %v4983_v32  ;;  %v695_v57 = vadd.f32 %v687_v60, %v5017_v8  ;;  %v696_v49 = vadd.f32 %v688_v34, %v5005_v18  ;;  %v697_v61 = vadd.f32 %v689_v2, %v5029_v44  ;;  %v10826_v28 = vld [vmem:[#allocation25_spill] sm:$0xff]  ;;  %v10827_v60 = vld [vmem:[#allocation26_spill] sm:$0xff]  ;;  %v10828_v34 = vld [vmem:[#allocation27_spill] sm:$0xff] }
  0xcc   :  { %v698_v19 = vadd.f32 %v690_v4, %v5051_v26  ;;  %v699_v62 = vadd.f32 %v691_v13, %v5087_v11  ;;  %v700_v48 = vadd.f32 %v692_v37, %v5101_v15  ;;  %v701_v56 = vadd.f32 %v693_v6, %v5106_v53  ;;  %v10829_v2 = vld [vmem:[#allocation28_spill] sm:$0xff]  ;;  %v10830_v4 = vld [vmem:[#allocation29_spill] sm:$0xff]  ;;  %v10831_v13 = vld [vmem:[#allocation30_spill] sm:$0xff] }
  0xcd   :  { %v720_v35 = vadd.f32 %v10814_v51, %v640_v21  ;;  %v721_v52 = vadd.f32 %v10815_v36, %v641_v20  ;;  %v722_v32 = vadd.f32 %v10816_v1, %v642_v58  ;;  %v723_v8 = vadd.f32 %v10817_v5, %v643_v16  ;;  %v10832_v37 = vld [vmem:[#allocation31_spill] sm:$0xff]  ;;  %v10833_v6 = vld [vmem:[#allocation32_spill] sm:$0xff]  ;;  %v10834_v51 = vld [vmem:[#allocation33_spill] sm:$0xff] }
  0xce   :  { %v724_v18 = vadd.f32 %v10818_v3, %v644_v41  ;;  %v725_v44 = vadd.f32 %v10819_v55, %v645_v39  ;;  %v726_v26 = vadd.f32 %v10820_v14, %v646_v47  ;;  %v727_v11 = vadd.f32 %v10821_v22, %v647_v42  ;;  %v10835_v36 = vld [vmem:[#allocation34_spill] sm:$0xff]  ;;  %v10836_v1 = vld [vmem:[#allocation35_spill] sm:$0xff]  ;;  %v10837_v5 = vld [vmem:[#allocation36_spill] sm:$0xff] }
  0xcf   :  { %v738_v15 = vadd.f32 %v10822_v33, %v658_v31  ;;  %v739_v53 = vadd.f32 %v10823_v63, %v659_v29  ;;  %v740_v21 = vadd.f32 %v10824_v9, %v660_v25  ;;  %v741_v20 = vadd.f32 %v10825_v23, %v661_v17  ;;  %v10838_v3 = vld [vmem:[#allocation37_spill] sm:$0xff]  ;;  %v10839_v55 = vld [vmem:[#allocation38_spill] sm:$0xff]  ;;  %v10840_v14 = vld [vmem:[#allocation39_spill] sm:$0xff] }
  0xd0   :  { %v742_v58 = vadd.f32 %v10826_v28, %v662_v7  ;;  %v743_v16 = vadd.f32 %v10827_v60, %v663_v59  ;;  %v744_v41 = vadd.f32 %v10828_v34, %v664_v27  ;;  %v745_v39 = vadd.f32 %v10829_v2, %v665_v30  ;;  %v10841_v22 = vld [vmem:[#allocation40_spill] sm:$0xff]  ;;  %v10842_v33 = vld [vmem:[#allocation41_spill] sm:$0xff]  ;;  %v10843_v63 = vld [vmem:[#allocation42_spill] sm:$0xff] }
  0xd1   :  { %v756_v47 = vadd.f32 %v10830_v4, %v676_v12  ;;  %v757_v42 = vadd.f32 %v10831_v13, %v677_v10  ;;  %v758_v31 = vadd.f32 %v10832_v37, %v678_v40  ;;  %v759_v29 = vadd.f32 %v10833_v6, %v679_v38  ;;  %v10844_v9 = vld [vmem:[#allocation43_spill] sm:$0xff]  ;;  %v10845_v23 = vld [vmem:[#allocation44_spill] sm:$0xff]  ;;  %v10848_v34 = vld [vmem:[#allocation133_spill] sm:$0xff] }
  0xd2   :  { %v760_v25 = vadd.f32 %v10834_v51, %v680_v46  ;;  %v761_v17 = vadd.f32 %v10835_v36, %v681_v45  ;;  %v762_v7 = vadd.f32 %v10836_v1, %v682_v0  ;;  %v763_v59 = vadd.f32 %v10837_v5, %v683_v24  ;;  %v10846_v28 = vld [vmem:[#allocation131_spill] sm:$0xff]  ;;  %v10847_v60 = vld [vmem:[#allocation132_spill] sm:$0xff]  ;;  %v10849_v2 = vld [vmem:[#allocation134_spill] sm:$0xff] }
  0xd3   :  { %v774_v27 = vadd.f32 %v10838_v3, %v694_v43  ;;  %v775_v30 = vadd.f32 %v10839_v55, %v695_v57  ;;  %v776_v12 = vadd.f32 %v10840_v14, %v696_v49  ;;  %v777_v10 = vadd.f32 %v10841_v22, %v697_v61  ;;  %v10850_v4 = vld [vmem:[#allocation135_spill] sm:$0xff]  ;;  %v10851_v13 = vld [vmem:[#allocation136_spill] sm:$0xff]  ;;  %v10852_v37 = vld [vmem:[#allocation137_spill] sm:$0xff] }
  0xd4   :  { %v778_v40 = vadd.f32 %v10842_v33, %v698_v19  ;;  %v779_v38 = vadd.f32 %v10843_v63, %v699_v62  ;;  %v780_v46 = vadd.f32 %v10844_v9, %v700_v48  ;;  %v781_v45 = vadd.f32 %v10845_v23, %v701_v56  ;;  %v10853_v6 = vld [vmem:[#allocation138_spill] sm:$0xff]  ;;  %v10854_v51 = vld [vmem:[#allocation139_spill] sm:$0xff]  ;;  %v10855_v56 = vld [vmem:[#allocation140_spill] sm:$0xff] }
  0xd5   :  { %v800_v0 = vadd.f32 %v10846_v28, %v720_v35  ;;  %v801_v24 = vadd.f32 %v10847_v60, %v721_v52  ;;  %v802_v43 = vadd.f32 %v10848_v34, %v722_v32  ;;  %v803_v57 = vadd.f32 %v10849_v2, %v723_v8  ;;  %v10856_v35 = vld [vmem:[#allocation141_spill] sm:$0xff]  ;;  %v10857_v32 = vld [vmem:[#allocation142_spill] sm:$0xff]  ;;  %v10858_v8 = vld [vmem:[#allocation143_spill] sm:$0xff] }
  0xd6   :  { %v804_v49 = vadd.f32 %v10850_v4, %v724_v18  ;;  %v805_v61 = vadd.f32 %v10851_v13, %v725_v44  ;;  %v806_v19 = vadd.f32 %v10852_v37, %v726_v26  ;;  %v807_v62 = vadd.f32 %v10853_v6, %v727_v11  ;;  %v10859_v44 = vld [vmem:[#allocation144_spill] sm:$0xff]  ;;  %v10860_v26 = vld [vmem:[#allocation145_spill] sm:$0xff]  ;;  %v10872_v2 = vld [vmem:[#allocation126_spill] sm:$0xff] }
  0xd7   :  { %v5311_v48 = vadd.f32 %v10854_v51, %v738_v15  ;;  %v5314_v36 = vadd.f32 %v10855_v56, %v739_v53  ;;  %v5317_v52 = vadd.f32 %v10856_v35, %v740_v21  ;;  %v5320_v1 = vadd.f32 %v10857_v32, %v741_v20  ;;  %v10861_v15 = vld [vmem:[#allocation146_spill] sm:$0xff]  ;;  %v10862_v53 = vld [vmem:[#allocation147_spill] sm:$0xff]  ;;  %v10863_v21 = vld [vmem:[#allocation148_spill] sm:$0xff] }
  0xd8   :  { %v5323_v18 = vadd.f32 %v10858_v8, %v742_v58  ;;  %v5326_v5 = vadd.f32 %v10859_v44, %v743_v16  ;;  %v5329_v11 = vadd.f32 %v10860_v26, %v744_v41  ;;  %v5332_v3 = vadd.f32 %v10861_v15, %v745_v39  ;;  %v10864_v20 = vld [vmem:[#allocation149_spill] sm:$0xff]  ;;  %v10865_v58 = vld [vmem:[#allocation150_spill] sm:$0xff]  ;;  %v10866_v16 = vld [vmem:[#allocation151_spill] sm:$0xff] }
  0xd9   :  { %v5335_v55 = vadd.f32 %v10862_v53, %v756_v47  ;;  %v5338_v14 = vadd.f32 %v10863_v21, %v757_v42  ;;  %v5341_v22 = vadd.f32 %v10864_v20, %v758_v31  ;;  %v5344_v33 = vadd.f32 %v10865_v58, %v759_v29  ;;  %v10867_v41 = vld [vmem:[#allocation152_spill] sm:$0xff]  ;;  %v10868_v39 = vld [vmem:[#allocation153_spill] sm:$0xff]  ;;  %v10870_v31 = vld [vmem:[#allocation11_spill] sm:$0xff] }
  0xda   :  { %v5347_v63 = vadd.f32 %v10866_v16, %v760_v25  ;;  %v5350_v9 = vadd.f32 %v10867_v41, %v761_v17  ;;  %v5353_v23 = vadd.f32 %v10868_v39, %v762_v7  ;;  %v5355_v47 = vld [vmem:[#allocation2 + $0x49] sm:$0xff]  ;;  %v5358_v42 = vadd.f32 %v5215_v50, %v763_v59  ;;  %v10869_v28 = vld [vmem:[#allocation124_spill] sm:$0xff]  ;;  %v5366_v4 = vld [vmem:[#allocation2 + $0x51] sm:$0xff] }
  0xdb   :  { %v846_v60 = vmul.f32 %v10870_v31, %v10869_v28  ;;  %v10871_v34 = vld [vmem:[#allocation125_spill] sm:$0xff]  ;;  %v848_v25 = vmul.f32 %v10870_v31, %v10872_v2  ;;  %v5368_v17 = vld [vmem:[#allocation2 + $0x59] sm:$0xff]  ;;  %v10876_v56 = vld [vmem:[#allocation130_spill] sm:$0xff]  ;;  %v853_v26 = vmul.f32 %v10870_v31, %v5089_v54 }
  0xdc   :  { %v847_v29 = vmul.f32 %v10870_v31, %v10871_v34  ;;  %v5370_v7 = vld [vmem:[#allocation2 + $0x61] sm:$0xff]  ;;  %v10873_v13 = vld [vmem:[#allocation127_spill] sm:$0xff]  ;;  %v852_v35 = vmul.f32 %v10870_v31, %v10876_v56  ;;  %v5380_v32 = vld [vmem:[#allocation2 + $0x69] sm:$0xff] }
  0xdd   :  { %v849_v37 = vmul.f32 %v10870_v31, %v10873_v13  ;;  %v10874_v50 = vld [vmem:[#allocation128_spill] sm:$0xff]  ;;  %v10875_v6 = vld [vmem:[#allocation129_spill] sm:$0xff]  ;;  %v5382_v8 = vld [vmem:[#allocation2 + $0x71] sm:$0xff]  ;;  %v5388_v15 = vadd.f32 %v846_v60, %v774_v27  ;;  %v5392_v21 = vadd.f32 %v848_v25, %v776_v12  ;;  %v5402_v28 = vadd.f32 %v853_v26, %v781_v45 }
  0xde   :  { %v850_v59 = vmul.f32 %v10870_v31, %v10874_v50  ;;  %v851_v51 = vmul.f32 %v10870_v31, %v10875_v6  ;;  %v5384_v44 = vld [vmem:[#allocation2 + $0x79] sm:$0xff]  ;;  %v5390_v53 = vadd.f32 %v847_v29, %v775_v30  ;;  %v315_v20 = vld [vmem:[#allocation2 + $0x81] sm:$0xff]  ;;  %v5400_v39 = vadd.f32 %v852_v35, %v780_v46  ;;  %v10877_v34 = vld [vmem:[#allocation46_spill] sm:$0xff] }
  0xdf   :  { %v5394_v58 = vadd.f32 %v849_v37, %v777_v10  ;;  %v872_v54 = vmul.f32 %v10877_v34, %v5355_v47  ;;  %v873_v27 = vmul.f32 %v10877_v34, %v5366_v4  ;;  %v874_v30 = vmul.f32 %v10877_v34, %v5368_v17  ;;  %v10878_v50 = vld [vmem:[#allocation47_spill] sm:$0xff] }
  0xe0   :  { %v5396_v16 = vadd.f32 %v850_v59, %v778_v40  ;;  %v5398_v41 = vadd.f32 %v851_v51, %v779_v38  ;;  %v875_v12 = vmul.f32 %v10877_v34, %v5370_v7  ;;  %v876_v10 = vmul.f32 %v10877_v34, %v5380_v32 }
  0xe1   :  { %v877_v40 = vmul.f32 %v10877_v34, %v5382_v8  ;;  %v878_v38 = vmul.f32 %v10877_v34, %v5384_v44  ;;  %v879_v46 = vmul.f32 %v10877_v34, %v315_v20  ;;  %v880_v45 = vadd.f32 %v872_v54, %v800_v0 }
  0xe2   :  { %v881_v31 = vadd.f32 %v873_v27, %v801_v24  ;;  %v882_v60 = vadd.f32 %v874_v30, %v802_v43  ;;  %v883_v29 = vadd.f32 %v875_v12, %v803_v57  ;;  %v884_v2 = vadd.f32 %v876_v10, %v804_v49  ;;  %v10879_v27 = vld [vmem:[#allocation48_spill] sm:$0xff] }
  0xe3   :  { %v885_v25 = vadd.f32 %v877_v40, %v805_v61  ;;  %v886_v13 = vadd.f32 %v878_v38, %v806_v19  ;;  %v887_v37 = vadd.f32 %v879_v46, %v807_v62  ;;  %v890_v59 = vmul.f32 %v10878_v50, %v5355_v47 }
  0xe4   :  { %v891_v6 = vmul.f32 %v10878_v50, %v5366_v4  ;;  %v892_v51 = vmul.f32 %v10878_v50, %v5368_v17  ;;  %v893_v56 = vmul.f32 %v10878_v50, %v5370_v7  ;;  %v894_v0 = vmul.f32 %v10878_v50, %v5380_v32 }
  0xe5   :  { %v895_v24 = vmul.f32 %v10878_v50, %v5382_v8  ;;  %v896_v43 = vmul.f32 %v10878_v50, %v5384_v44  ;;  %v897_v57 = vmul.f32 %v10878_v50, %v315_v20  ;;  %v898_v49 = vadd.f32 %v890_v59, %v5311_v48 }
  0xe6   :  { %v899_v61 = vadd.f32 %v891_v6, %v5314_v36  ;;  %v900_v19 = vadd.f32 %v892_v51, %v5317_v52  ;;  %v901_v62 = vadd.f32 %v893_v56, %v5320_v1  ;;  %v902_v35 = vadd.f32 %v894_v0, %v5323_v18  ;;  %v10880_v6 = vld [vmem:[#allocation49_spill] sm:$0xff]  ;;  %v10881_v0 = vld [vmem:[#allocation50_spill] sm:$0xff] }
  0xe7   :  { %v903_v26 = vadd.f32 %v895_v24, %v5326_v5  ;;  %v904_v34 = vadd.f32 %v896_v43, %v5329_v11  ;;  %v905_v54 = vadd.f32 %v897_v57, %v5332_v3  ;;  %v908_v30 = vmul.f32 %v10879_v27, %v5355_v47  ;;  %v10882_v24 = vld [vmem:[#allocation51_spill] sm:$0xff]  ;;  %v10883_v43 = vld [vmem:[#allocation52_spill] sm:$0xff]  ;;  %v10884_v57 = vld [vmem:[#allocation53_spill] sm:$0xff] }
  0xe8   :  { %v909_v48 = vmul.f32 %v10879_v27, %v5366_v4  ;;  %v910_v36 = vmul.f32 %v10879_v27, %v5368_v17  ;;  %v911_v52 = vmul.f32 %v10879_v27, %v5370_v7  ;;  %v912_v1 = vmul.f32 %v10879_v27, %v5380_v32 }
  0xe9   :  { %v913_v18 = vmul.f32 %v10879_v27, %v5382_v8  ;;  %v914_v5 = vmul.f32 %v10879_v27, %v5384_v44  ;;  %v915_v11 = vmul.f32 %v10879_v27, %v315_v20  ;;  %v916_v3 = vadd.f32 %v908_v30, %v5335_v55  ;;  %v10885_v27 = vld [vmem:[#allocation54_spill] sm:$0xff]  ;;  %v10886_v30 = vld [vmem:[#allocation55_spill] sm:$0xff] }
  0xea   :  { %v917_v12 = vadd.f32 %v909_v48, %v5338_v14  ;;  %v918_v10 = vadd.f32 %v910_v36, %v5341_v22  ;;  %v919_v40 = vadd.f32 %v911_v52, %v5344_v33  ;;  %v920_v38 = vadd.f32 %v912_v1, %v5347_v63  ;;  %v10887_v48 = vld [vmem:[#allocation56_spill] sm:$0xff]  ;;  %v10888_v36 = vld [vmem:[#allocation57_spill] sm:$0xff]  ;;  %v10889_v52 = vld [vmem:[#allocation58_spill] sm:$0xff] }
  0xeb   :  { %v921_v46 = vadd.f32 %v913_v18, %v5350_v9  ;;  %v922_v50 = vadd.f32 %v914_v5, %v5353_v23  ;;  %v923_v59 = vadd.f32 %v915_v11, %v5358_v42  ;;  %v926_v51 = vmul.f32 %v10880_v6, %v5355_v47  ;;  %v10890_v1 = vld [vmem:[#allocation59_spill] sm:$0xff]  ;;  %v10891_v18 = vld [vmem:[#allocation60_spill] sm:$0xff]  ;;  %v10892_v5 = vld [vmem:[#allocation61_spill] sm:$0xff] }
  0xec   :  { %v927_v55 = vmul.f32 %v10880_v6, %v5366_v4  ;;  %v928_v14 = vmul.f32 %v10880_v6, %v5368_v17  ;;  %v929_v22 = vmul.f32 %v10880_v6, %v5370_v7  ;;  %v930_v33 = vmul.f32 %v10880_v6, %v5380_v32  ;;  %v10893_v11 = vld [vmem:[#allocation62_spill] sm:$0xff] }
  0xed   :  { %v931_v63 = vmul.f32 %v10880_v6, %v5382_v8  ;;  %v932_v9 = vmul.f32 %v10880_v6, %v5384_v44  ;;  %v933_v23 = vmul.f32 %v10880_v6, %v315_v20  ;;  %v934_v47 = vadd.f32 %v926_v51, %v5388_v15  ;;  %v10894_v6 = vld [vmem:[#allocation63_spill] sm:$0xff]  ;;  %v10895_v51 = vld [vmem:[#allocation64_spill] sm:$0xff] }
  0xee   :  { %v935_v42 = vadd.f32 %v927_v55, %v5390_v53  ;;  %v936_v4 = vadd.f32 %v928_v14, %v5392_v21  ;;  %v937_v17 = vadd.f32 %v929_v22, %v5394_v58  ;;  %v938_v7 = vadd.f32 %v930_v33, %v5396_v16  ;;  %v5503_v55 = vld [vmem:[#allocation2 + $0x2] sm:$0xff]  ;;  %v10897_v14 = vld [vmem:[#allocation67_spill] sm:$0xff] }
  0xef   :  { %v939_v32 = vadd.f32 %v931_v63, %v5398_v41  ;;  %v940_v56 = vadd.f32 %v932_v9, %v5400_v39  ;;  %v941_v8 = vadd.f32 %v933_v23, %v5402_v28  ;;  %v960_v44 = vadd.f32 %v10881_v0, %v880_v45  ;;  %v10901_v63 = vld [vmem:[#allocation71_spill] sm:$0xff] }
  0xf0   :  { %v961_v20 = vadd.f32 %v10882_v24, %v881_v31  ;;  %v962_v15 = vadd.f32 %v10883_v43, %v882_v60  ;;  %v963_v53 = vadd.f32 %v10884_v57, %v883_v29  ;;  %v964_v21 = vadd.f32 %v10885_v27, %v884_v2  ;;  %v5525_v24 = vld [vmem:[#allocation2 + $0x22] sm:$0xff]  ;;  %v10904_v43 = vld [vmem:[#allocation74_spill] sm:$0xff]  ;;  %v10905_v27 = vld [vmem:[#allocation75_spill] sm:$0xff] }
  0xf1   :  { %v965_v58 = vadd.f32 %v10886_v30, %v885_v25  ;;  %v966_v16 = vadd.f32 %v10887_v48, %v886_v13  ;;  %v967_v41 = vadd.f32 %v10888_v36, %v887_v37  ;;  %v978_v39 = vadd.f32 %v10889_v52, %v898_v49  ;;  %v10896_v25 = vld [vmem:[#allocation65_spill] sm:$0xff]  ;;  %v10898_v49 = vld [vmem:[#allocation68_spill] sm:$0xff] }
  0xf2   :  { %v979_v28 = vadd.f32 %v10890_v1, %v899_v61  ;;  %v980_v45 = vadd.f32 %v10891_v18, %v900_v19  ;;  %v981_v31 = vadd.f32 %v10892_v5, %v901_v62  ;;  %v982_v60 = vadd.f32 %v10893_v11, %v902_v35  ;;  %v10899_v61 = vld [vmem:[#allocation69_spill] sm:$0xff]  ;;  %v5517_v35 = vld [vmem:[#allocation2 + $0x12] sm:$0xff]  ;;  %v10906_v48 = vld [vmem:[#allocation76_spill] sm:$0xff] }
  0xf3   :  { %v983_v29 = vadd.f32 %v10894_v6, %v903_v26  ;;  %v984_v2 = vadd.f32 %v10895_v51, %v904_v34  ;;  %v985_v13 = vadd.f32 %v10896_v25, %v905_v54  ;;  %v5507_v37 = vadd.f32 %v10897_v14, %v916_v3  ;;  %v5515_v62 = vld [vmem:[#allocation2 + $0xa] sm:$0xff]  ;;  %v5519_v26 = vld [vmem:[#allocation2 + $0x1a] sm:$0xff] }
  0xf4   :  { %v5510_v22 = vadd.f32 %v10898_v49, %v917_v12  ;;  %v5513_v19 = vadd.f32 %v10899_v61, %v918_v10  ;;  %v10900_v34 = vld [vmem:[#allocation70_spill] sm:$0xff]  ;;  %v1000_v9 = vadd.f32 %v10901_v63, %v920_v38  ;;  %v10902_v54 = vld [vmem:[#allocation72_spill] sm:$0xff]  ;;  %v10903_v3 = vld [vmem:[#allocation73_spill] sm:$0xff]  ;;  %v1003_v57 = vadd.f32 %v10904_v43, %v923_v59 }
  0xf5   :  { %v999_v33 = vadd.f32 %v10900_v34, %v919_v40  ;;  %v1001_v23 = vadd.f32 %v10902_v54, %v921_v46  ;;  %v1002_v0 = vadd.f32 %v10903_v3, %v922_v50  ;;  %v5527_v12 = vld [vmem:[#allocation2 + $0x2a] sm:$0xff]  ;;  %v5529_v10 = vld [vmem:[#allocation2 + $0x32] sm:$0xff]  ;;  %v5533_v30 = vadd.f32 %v10905_v27, %v934_v47  ;;  %v5541_v46 = vld [vmem:[#allocation2 + $0x3a] sm:$0xff] }
  0xf6   :  { %v5536_v36 = vadd.f32 %v10906_v48, %v935_v42  ;;  %v10907_v40 = vld [vmem:[#allocation77_spill] sm:$0xff]  ;;  %v10908_v50 = vld [vmem:[#allocation78_spill] sm:$0xff]  ;;  %v10909_v1 = vld [vmem:[#allocation79_spill] sm:$0xff] }
  0xf7   :  { %v5539_v38 = vadd.f32 %v10907_v40, %v936_v4  ;;  %v5544_v52 = vadd.f32 %v10908_v50, %v937_v17  ;;  %v5547_v18 = vadd.f32 %v10909_v1, %v938_v7  ;;  %v10910_v5 = vld [vmem:[#allocation80_spill] sm:$0xff]  ;;  %v10911_v59 = vld [vmem:[#allocation81_spill] sm:$0xff]  ;;  %v10912_v6 = vld [vmem:[#allocation82_spill] sm:$0xff] }
  0xf8   :  { %v5550_v11 = vadd.f32 %v10910_v5, %v939_v32  ;;  %v5553_v47 = vadd.f32 %v10911_v59, %v940_v56  ;;  %v5556_v42 = vadd.f32 %v10912_v6, %v941_v8  ;;  %v10913_v4 = vld [vmem:[#allocation45_spill] sm:$0xff]  ;;  %v10914_v48 = vld [vmem:[#allocation66_spill] sm:$0xff] }
  0xf9   :  { %v1032_v51 = vmul.f32 %v10913_v4, %v5503_v55  ;;  %v1033_v25 = vmul.f32 %v10913_v4, %v5515_v62  ;;  %v1034_v17 = vmul.f32 %v10913_v4, %v5517_v35  ;;  %v1035_v7 = vmul.f32 %v10913_v4, %v5519_v26 }
  0xfa   :  { %v1036_v32 = vmul.f32 %v10913_v4, %v5525_v24  ;;  %v1037_v56 = vmul.f32 %v10913_v4, %v5527_v12  ;;  %v1038_v8 = vmul.f32 %v10913_v4, %v5529_v10  ;;  %v1039_v14 = vmul.f32 %v10913_v4, %v5541_v46 }
  0xfb   :  { %v5574_v49 = vadd.f32 %v1032_v51, %v960_v44  ;;  %v5576_v61 = vadd.f32 %v1033_v25, %v961_v20  ;;  %v5578_v34 = vadd.f32 %v1034_v17, %v962_v15  ;;  %v5580_v63 = vadd.f32 %v1035_v7, %v963_v53  ;;  %v10915_v25 = vld [vmem:[#allocation83_spill] sm:$0xff] }
  0xfc   :  { %v5582_v54 = vadd.f32 %v1036_v32, %v964_v21  ;;  %v5584_v3 = vadd.f32 %v1037_v56, %v965_v58  ;;  %v5586_v43 = vadd.f32 %v1038_v8, %v966_v16  ;;  %v5588_v27 = vadd.f32 %v1039_v14, %v967_v41 }
  0xfd   :  { %v1050_v40 = vmul.f32 %v10914_v48, %v5503_v55  ;;  %v1051_v44 = vmul.f32 %v10914_v48, %v5515_v62  ;;  %v1052_v20 = vmul.f32 %v10914_v48, %v5517_v35  ;;  %v1053_v15 = vmul.f32 %v10914_v48, %v5519_v26 }
  0xfe   :  { %v1054_v53 = vmul.f32 %v10914_v48, %v5525_v24  ;;  %v1055_v21 = vmul.f32 %v10914_v48, %v5527_v12  ;;  %v1056_v58 = vmul.f32 %v10914_v48, %v5529_v10  ;;  %v1057_v16 = vmul.f32 %v10914_v48, %v5541_v46 }
  0xff   :  { %v5606_v41 = vadd.f32 %v1050_v40, %v978_v39  ;;  %v5608_v50 = vadd.f32 %v1051_v44, %v979_v28  ;;  %v5610_v1 = vadd.f32 %v1052_v20, %v980_v45  ;;  %v5612_v5 = vadd.f32 %v1053_v15, %v981_v31  ;;  %v5655_v40 = vld [vmem:[#allocation2 + $0x4a] sm:$0xff] }
 0x100   :  { %v5614_v59 = vadd.f32 %v1054_v53, %v982_v60  ;;  %v5616_v6 = vadd.f32 %v1055_v21, %v983_v29  ;;  %v5618_v4 = vadd.f32 %v1056_v58, %v984_v2  ;;  %v5620_v51 = vadd.f32 %v1057_v16, %v985_v13  ;;  %v5679_v15 = vld [vmem:[#allocation2 + $0x6a] sm:$0xff]  ;;  %v5683_v53 = vld [vmem:[#allocation2 + $0x7a] sm:$0xff]  ;;  %v332_v58 = vld [vmem:[#allocation2 + $0x82] sm:$0xff] }
 0x101   :  { %v1068_v17 = vmul.f32 %v10915_v25, %v5503_v55  ;;  %v1069_v39 = vmul.f32 %v10915_v25, %v5515_v62  ;;  %v1070_v28 = vmul.f32 %v10915_v25, %v5517_v35  ;;  %v1071_v45 = vmul.f32 %v10915_v25, %v5519_v26 }
 0x102   :  { %v1072_v31 = vmul.f32 %v10915_v25, %v5525_v24  ;;  %v1073_v60 = vmul.f32 %v10915_v25, %v5527_v12  ;;  %v1074_v29 = vmul.f32 %v10915_v25, %v5529_v10  ;;  %v1075_v2 = vmul.f32 %v10915_v25, %v5541_v46 }
 0x103   :  { %v5639_v13 = vadd.f32 %v1068_v17, %v5507_v37  ;;  %v5642_v7 = vadd.f32 %v1069_v39, %v5510_v22  ;;  %v5645_v32 = vadd.f32 %v1070_v28, %v5513_v19  ;;  %v5647_v56 = vadd.f32 %v1071_v45, %v999_v33  ;;  %v10916_v37 = vld [vmem:[#allocation84_spill] sm:$0xff]  ;;  %v5665_v33 = vld [vmem:[#allocation2 + $0x52] sm:$0xff] }
 0x104   :  { %v5649_v8 = vadd.f32 %v1072_v31, %v1000_v9  ;;  %v5651_v14 = vadd.f32 %v1073_v60, %v1001_v23  ;;  %v5653_v48 = vadd.f32 %v1074_v29, %v1002_v0  ;;  %v5657_v44 = vadd.f32 %v1075_v2, %v1003_v57  ;;  %v5667_v9 = vld [vmem:[#allocation2 + $0x5a] sm:$0xff]  ;;  %v5669_v23 = vld [vmem:[#allocation2 + $0x62] sm:$0xff] }
 0x105   :  { %v1086_v20 = vmul.f32 %v10916_v37, %v5503_v55  ;;  %v1087_v22 = vmul.f32 %v10916_v37, %v5515_v62  ;;  %v1088_v19 = vmul.f32 %v10916_v37, %v5517_v35  ;;  %v1089_v0 = vmul.f32 %v10916_v37, %v5519_v26  ;;  %v5681_v35 = vld [vmem:[#allocation2 + $0x72] sm:$0xff] }
 0x106   :  { %v1090_v57 = vmul.f32 %v10916_v37, %v5525_v24  ;;  %v1091_v55 = vmul.f32 %v10916_v37, %v5527_v12  ;;  %v1092_v62 = vmul.f32 %v10916_v37, %v5529_v10  ;;  %v1093_v21 = vmul.f32 %v10916_v37, %v5541_v46 }
 0x107   :  { %v5688_v26 = vadd.f32 %v1086_v20, %v5533_v30  ;;  %v5691_v24 = vadd.f32 %v1087_v22, %v5536_v36  ;;  %v5694_v12 = vadd.f32 %v1088_v19, %v5539_v38  ;;  %v5697_v10 = vadd.f32 %v1089_v0, %v5544_v52  ;;  %v10917_v36 = vld [vmem:[#allocation86_spill] sm:$0xff]  ;;  %v10918_v22 = vld [vmem:[#allocation87_spill] sm:$0xff] }
 0x108   :  { %v5700_v16 = vadd.f32 %v1090_v57, %v5547_v18  ;;  %v5703_v25 = vadd.f32 %v1091_v55, %v5550_v11  ;;  %v5706_v46 = vadd.f32 %v1092_v62, %v5553_v47  ;;  %v5709_v30 = vadd.f32 %v1093_v21, %v5556_v42 }
 0x109   :  { %v1112_v38 = vmul.f32 %v10917_v36, %v5655_v40  ;;  %v1113_v17 = vmul.f32 %v10917_v36, %v5665_v33  ;;  %v1114_v52 = vmul.f32 %v10917_v36, %v5667_v9  ;;  %v1115_v18 = vmul.f32 %v10917_v36, %v5669_v23 }
 0x10a   :  { %v1116_v11 = vmul.f32 %v10917_v36, %v5679_v15  ;;  %v1117_v47 = vmul.f32 %v10917_v36, %v5681_v35  ;;  %v1118_v42 = vmul.f32 %v10917_v36, %v5683_v53  ;;  %v1119_v39 = vmul.f32 %v10917_v36, %v332_v58 }
 0x10b   :  { %v1120_v28 = vadd.f32 %v1112_v38, %v5574_v49  ;;  %v1121_v45 = vadd.f32 %v1113_v17, %v5576_v61  ;;  %v1122_v31 = vadd.f32 %v1114_v52, %v5578_v34  ;;  %v1123_v60 = vadd.f32 %v1115_v18, %v5580_v63  ;;  %v10919_v17 = vld [vmem:[#allocation88_spill] sm:$0xff] }
 0x10c   :  { %v1124_v29 = vadd.f32 %v1116_v11, %v5582_v54  ;;  %v1125_v2 = vadd.f32 %v1117_v47, %v5584_v3  ;;  %v1126_v37 = vadd.f32 %v1118_v42, %v5586_v43  ;;  %v1127_v20 = vadd.f32 %v1119_v39, %v5588_v27 }
 0x10d   :  { %v1130_v19 = vmul.f32 %v10918_v22, %v5655_v40  ;;  %v1131_v49 = vmul.f32 %v10918_v22, %v5665_v33  ;;  %v1132_v61 = vmul.f32 %v10918_v22, %v5667_v9  ;;  %v1133_v34 = vmul.f32 %v10918_v22, %v5669_v23 }
 0x10e   :  { %v1134_v63 = vmul.f32 %v10918_v22, %v5679_v15  ;;  %v1135_v54 = vmul.f32 %v10918_v22, %v5681_v35  ;;  %v1136_v3 = vmul.f32 %v10918_v22, %v5683_v53  ;;  %v1137_v43 = vmul.f32 %v10918_v22, %v332_v58 }
 0x10f   :  { %v1138_v27 = vadd.f32 %v1130_v19, %v5606_v41  ;;  %v1139_v0 = vadd.f32 %v1131_v49, %v5608_v50  ;;  %v1140_v57 = vadd.f32 %v1132_v61, %v5610_v1  ;;  %v1141_v55 = vadd.f32 %v1133_v34, %v5612_v5  ;;  %v10920_v49 = vld [vmem:[#allocation89_spill] sm:$0xff] }
 0x110   :  { %v1142_v62 = vadd.f32 %v1134_v63, %v5614_v59  ;;  %v1143_v21 = vadd.f32 %v1135_v54, %v5616_v6  ;;  %v1144_v36 = vadd.f32 %v1136_v3, %v5618_v4  ;;  %v1145_v38 = vadd.f32 %v1137_v43, %v5620_v51  ;;  %v10921_v63 = vld [vmem:[#allocation90_spill] sm:$0xff]  ;;  %v10922_v54 = vld [vmem:[#allocation91_spill] sm:$0xff]  ;;  %v10923_v3 = vld [vmem:[#allocation92_spill] sm:$0xff] }
 0x111   :  { %v1148_v52 = vmul.f32 %v10919_v17, %v5655_v40  ;;  %v1149_v41 = vmul.f32 %v10919_v17, %v5665_v33  ;;  %v1150_v50 = vmul.f32 %v10919_v17, %v5667_v9  ;;  %v1151_v1 = vmul.f32 %v10919_v17, %v5669_v23  ;;  %v10924_v43 = vld [vmem:[#allocation93_spill] sm:$0xff] }
 0x112   :  { %v1152_v5 = vmul.f32 %v10919_v17, %v5679_v15  ;;  %v1153_v59 = vmul.f32 %v10919_v17, %v5681_v35  ;;  %v1154_v6 = vmul.f32 %v10919_v17, %v5683_v53  ;;  %v1155_v4 = vmul.f32 %v10919_v17, %v332_v58  ;;  %v10925_v17 = vld [vmem:[#allocation94_spill] sm:$0xff] }
 0x113   :  { %v1156_v51 = vadd.f32 %v1148_v52, %v5639_v13  ;;  %v1157_v18 = vadd.f32 %v1149_v41, %v5642_v7  ;;  %v1158_v11 = vadd.f32 %v1150_v50, %v5645_v32  ;;  %v1159_v47 = vadd.f32 %v1151_v1, %v5647_v56  ;;  %v10926_v52 = vld [vmem:[#allocation95_spill] sm:$0xff]  ;;  %v10927_v41 = vld [vmem:[#allocation96_spill] sm:$0xff]  ;;  %v10928_v50 = vld [vmem:[#allocation97_spill] sm:$0xff] }
 0x114   :  { %v1160_v42 = vadd.f32 %v1152_v5, %v5649_v8  ;;  %v1161_v39 = vadd.f32 %v1153_v59, %v5651_v14  ;;  %v1162_v22 = vadd.f32 %v1154_v6, %v5653_v48  ;;  %v1163_v19 = vadd.f32 %v1155_v4, %v5657_v44  ;;  %v10929_v1 = vld [vmem:[#allocation98_spill] sm:$0xff]  ;;  %v10930_v5 = vld [vmem:[#allocation99_spill] sm:$0xff]  ;;  %v10931_v59 = vld [vmem:[#allocation101_spill] sm:$0xff] }
 0x115   :  { %v1166_v61 = vmul.f32 %v10920_v49, %v5655_v40  ;;  %v1167_v13 = vmul.f32 %v10920_v49, %v5665_v33  ;;  %v1168_v7 = vmul.f32 %v10920_v49, %v5667_v9  ;;  %v1169_v32 = vmul.f32 %v10920_v49, %v5669_v23  ;;  %v10932_v6 = vld [vmem:[#allocation102_spill] sm:$0xff]  ;;  %v10933_v4 = vld [vmem:[#allocation103_spill] sm:$0xff] }
 0x116   :  { %v1170_v56 = vmul.f32 %v10920_v49, %v5679_v15  ;;  %v1171_v8 = vmul.f32 %v10920_v49, %v5681_v35  ;;  %v1172_v14 = vmul.f32 %v10920_v49, %v5683_v53  ;;  %v1173_v48 = vmul.f32 %v10920_v49, %v332_v58  ;;  %v10934_v49 = vld [vmem:[#allocation104_spill] sm:$0xff] }
 0x117   :  { %v1174_v40 = vadd.f32 %v1166_v61, %v5688_v26  ;;  %v1175_v44 = vadd.f32 %v1167_v13, %v5691_v24  ;;  %v1176_v33 = vadd.f32 %v1168_v7, %v5694_v12  ;;  %v1177_v9 = vadd.f32 %v1169_v32, %v5697_v10  ;;  %v10935_v61 = vld [vmem:[#allocation105_spill] sm:$0xff]  ;;  %v10937_v7 = vld [vmem:[#allocation107_spill] sm:$0xff] }
 0x118   :  { %v1178_v23 = vadd.f32 %v1170_v56, %v5700_v16  ;;  %v1179_v15 = vadd.f32 %v1171_v8, %v5703_v25  ;;  %v1180_v34 = vadd.f32 %v1172_v14, %v5706_v46  ;;  %v1181_v35 = vadd.f32 %v1173_v48, %v5709_v30  ;;  %v5818_v13 = vld [vmem:[#allocation2 + $0x3] sm:$0xff] }
 0x119   :  { %v1200_v53 = vadd.f32 %v10921_v63, %v1120_v28  ;;  %v1201_v58 = vadd.f32 %v10922_v54, %v1121_v45  ;;  %v1202_v26 = vadd.f32 %v10923_v3, %v1122_v31  ;;  %v1203_v24 = vadd.f32 %v10924_v43, %v1123_v60  ;;  %v10941_v8 = vld [vmem:[#allocation112_spill] sm:$0xff]  ;;  %v5850_v63 = vld [vmem:[#allocation2 + $0x2b] sm:$0xff]  ;;  %v5852_v54 = vld [vmem:[#allocation2 + $0x33] sm:$0xff] }
 0x11a   :  { %v1204_v12 = vadd.f32 %v10925_v17, %v1124_v29  ;;  %v1205_v10 = vadd.f32 %v10926_v52, %v1125_v2  ;;  %v1206_v16 = vadd.f32 %v10927_v41, %v1126_v37  ;;  %v1207_v25 = vadd.f32 %v10928_v50, %v1127_v20  ;;  %v10936_v2 = vld [vmem:[#allocation106_spill] sm:$0xff]  ;;  %v10944_v3 = vld [vmem:[#allocation115_spill] sm:$0xff]  ;;  %v10945_v17 = vld [vmem:[#allocation116_spill] sm:$0xff] }
 0x11b   :  { %v1218_v46 = vadd.f32 %v10929_v1, %v1138_v27  ;;  %v1219_v30 = vadd.f32 %v10930_v5, %v1139_v0  ;;  %v1220_v28 = vadd.f32 %v10931_v59, %v1140_v57  ;;  %v1221_v45 = vadd.f32 %v10932_v6, %v1141_v55  ;;  %v10938_v27 = vld [vmem:[#allocation108_spill] sm:$0xff]  ;;  %v10939_v0 = vld [vmem:[#allocation109_spill] sm:$0xff]  ;;  %v10947_v41 = vld [vmem:[#allocation118_spill] sm:$0xff] }
 0x11c   :  { %v1222_v31 = vadd.f32 %v10933_v4, %v1142_v62  ;;  %v1223_v60 = vadd.f32 %v10934_v49, %v1143_v21  ;;  %v1224_v29 = vadd.f32 %v10935_v61, %v1144_v36  ;;  %v1225_v37 = vadd.f32 %v10936_v2, %v1145_v38  ;;  %v5830_v55 = vld [vmem:[#allocation2 + $0xb] sm:$0xff]  ;;  %v5832_v62 = vld [vmem:[#allocation2 + $0x13] sm:$0xff]  ;;  %v5834_v21 = vld [vmem:[#allocation2 + $0x1b] sm:$0xff] }
 0x11d   :  { %v5822_v20 = vadd.f32 %v10937_v7, %v1156_v51  ;;  %v5825_v32 = vadd.f32 %v10938_v27, %v1157_v18  ;;  %v5828_v57 = vadd.f32 %v10939_v0, %v1158_v11  ;;  %v10940_v36 = vld [vmem:[#allocation111_spill] sm:$0xff]  ;;  %v5840_v38 = vadd.f32 %v10941_v8, %v1160_v42  ;;  %v10942_v51 = vld [vmem:[#allocation113_spill] sm:$0xff]  ;;  %v10943_v18 = vld [vmem:[#allocation114_spill] sm:$0xff] }
 0x11e   :  { %v5837_v56 = vadd.f32 %v10940_v36, %v1159_v47  ;;  %v5843_v14 = vadd.f32 %v10942_v51, %v1161_v39  ;;  %v5846_v48 = vadd.f32 %v10943_v18, %v1162_v22  ;;  %v5848_v11 = vld [vmem:[#allocation2 + $0x23] sm:$0xff]  ;;  %v1243_v43 = vadd.f32 %v10944_v3, %v1163_v19  ;;  %v5864_v50 = vld [vmem:[#allocation2 + $0x3b] sm:$0xff]  ;;  %v10951_v19 = vld [vmem:[#allocation122_spill] sm:$0xff] }
 0x11f   :  { %v5856_v47 = vadd.f32 %v10945_v17, %v1174_v40  ;;  %v10946_v52 = vld [vmem:[#allocation117_spill] sm:$0xff]  ;;  %v5862_v39 = vadd.f32 %v10947_v41, %v1176_v33  ;;  %v10948_v22 = vld [vmem:[#allocation119_spill] sm:$0xff]  ;;  %v10949_v5 = vld [vmem:[#allocation120_spill] sm:$0xff]  ;;  %v5876_v40 = vadd.f32 %v10951_v19, %v1180_v34 }
 0x120   :  { %v5859_v42 = vadd.f32 %v10946_v52, %v1175_v44  ;;  %v5867_v1 = vadd.f32 %v10948_v22, %v1177_v9  ;;  %v5870_v59 = vadd.f32 %v10949_v5, %v1178_v23  ;;  %v10950_v6 = vld [vmem:[#allocation121_spill] sm:$0xff]  ;;  %v10952_v49 = vld [vmem:[#allocation123_spill] sm:$0xff]  ;;  %v10954_v52 = vld [vmem:[#allocation100_spill] sm:$0xff] }
 0x121   :  { %v5873_v4 = vadd.f32 %v10950_v6, %v1179_v15  ;;  %v5879_v44 = vadd.f32 %v10952_v49, %v1181_v35  ;;  %v10953_v33 = vld [vmem:[#allocation85_spill] sm:$0xff] }
 0x122   :  { %v1272_v61 = vmul.f32 %v10953_v33, %v5818_v13  ;;  %v1273_v2 = vmul.f32 %v10953_v33, %v5830_v55  ;;  %v1274_v9 = vmul.f32 %v10953_v33, %v5832_v62  ;;  %v1275_v23 = vmul.f32 %v10953_v33, %v5834_v21 }
 0x123   :  { %v1276_v15 = vmul.f32 %v10953_v33, %v5848_v11  ;;  %v1277_v34 = vmul.f32 %v10953_v33, %v5850_v63  ;;  %v1278_v35 = vmul.f32 %v10953_v33, %v5852_v54  ;;  %v1279_v7 = vmul.f32 %v10953_v33, %v5864_v50 }
 0x124   :  { %v5897_v27 = vadd.f32 %v1272_v61, %v1200_v53  ;;  %v5899_v0 = vadd.f32 %v1273_v2, %v1201_v58  ;;  %v5901_v36 = vadd.f32 %v1274_v9, %v1202_v26  ;;  %v5903_v8 = vadd.f32 %v1275_v23, %v1203_v24  ;;  %v10955_v2 = vld [vmem:[#allocation110_spill] sm:$0xff] }
 0x125   :  { %v5905_v51 = vadd.f32 %v1276_v15, %v1204_v12  ;;  %v5907_v18 = vadd.f32 %v1277_v34, %v1205_v10  ;;  %v5909_v3 = vadd.f32 %v1278_v35, %v1206_v16  ;;  %v5913_v17 = vadd.f32 %v1279_v7, %v1207_v25 }
 0x126   :  { %v1290_v53 = vmul.f32 %v10954_v52, %v5818_v13  ;;  %v1291_v58 = vmul.f32 %v10954_v52, %v5830_v55  ;;  %v1292_v26 = vmul.f32 %v10954_v52, %v5832_v62  ;;  %v1293_v24 = vmul.f32 %v10954_v52, %v5834_v21 }
 0x127   :  { %v1294_v12 = vmul.f32 %v10954_v52, %v5848_v11  ;;  %v1295_v10 = vmul.f32 %v10954_v52, %v5850_v63  ;;  %v1296_v16 = vmul.f32 %v10954_v52, %v5852_v54  ;;  %v1297_v25 = vmul.f32 %v10954_v52, %v5864_v50 }
 0x128   :  { %v5937_v41 = vadd.f32 %v1290_v53, %v1218_v46  ;;  %v5939_v22 = vadd.f32 %v1291_v58, %v1219_v30  ;;  %v5941_v5 = vadd.f32 %v1292_v26, %v1220_v28  ;;  %v5943_v6 = vadd.f32 %v1293_v24, %v1221_v45  ;;  %v5995_v26 = vld [vmem:[#allocation2 + $0x4b] sm:$0xff] }
 0x129   :  { %v5945_v19 = vadd.f32 %v1294_v12, %v1222_v31  ;;  %v5947_v49 = vadd.f32 %v1295_v10, %v1223_v60  ;;  %v5949_v33 = vadd.f32 %v1296_v16, %v1224_v29  ;;  %v5951_v61 = vadd.f32 %v1297_v25, %v1225_v37  ;;  %v6005_v12 = vld [vmem:[#allocation2 + $0x5b] sm:$0xff]  ;;  %v6013_v25 = vld [vmem:[#allocation2 + $0x6b] sm:$0xff] }
 0x12a   :  { %v1308_v9 = vmul.f32 %v10955_v2, %v5818_v13  ;;  %v1309_v46 = vmul.f32 %v10955_v2, %v5830_v55  ;;  %v1310_v30 = vmul.f32 %v10955_v2, %v5832_v62  ;;  %v1311_v28 = vmul.f32 %v10955_v2, %v5834_v21 }
 0x12b   :  { %v1312_v45 = vmul.f32 %v10955_v2, %v5848_v11  ;;  %v1313_v31 = vmul.f32 %v10955_v2, %v5850_v63  ;;  %v1314_v60 = vmul.f32 %v10955_v2, %v5852_v54  ;;  %v1315_v29 = vmul.f32 %v10955_v2, %v5864_v50 }
 0x12c   :  { %v5970_v37 = vadd.f32 %v1308_v9, %v5822_v20  ;;  %v5973_v23 = vadd.f32 %v1309_v46, %v5825_v32  ;;  %v5976_v15 = vadd.f32 %v1310_v30, %v5828_v57  ;;  %v5979_v34 = vadd.f32 %v1311_v28, %v5837_v56 }
 0x12d   :  { %v5982_v35 = vadd.f32 %v1312_v45, %v5840_v38  ;;  %v5985_v7 = vadd.f32 %v1313_v31, %v5843_v14  ;;  %v5988_v52 = vadd.f32 %v1314_v60, %v5846_v48  ;;  %v5990_v20 = vadd.f32 %v1315_v29, %v1243_v43  ;;  %v6003_v14 = vld [vmem:[#allocation2 + $0x53] sm:$0xff]  ;;  %v6007_v48 = vld [vmem:[#allocation2 + $0x63] sm:$0xff] }
 0x12e   :  { %v1325_v53 = vstv %s5911_s29  ;;  %v1351_v32 = vstv %s5921_s2  ;;  %v1369_v58 = vstv %s5923_s30  ;;  %v6001_v24 = vstv %s5933_s5  ;;  %s7041_s29 = sld [smem:[#allocation4 + $0x26]]  ;;  %s7047_s2 = sld [smem:[#allocation4 + $0x3b]] }
 0x12f   :  { %v1326_v57 = vmul.f32 %v1325_v53, %v5818_v13  ;;  %v1327_v56 = vmul.f32 %v1325_v53, %v5830_v55  ;;  %v1328_v38 = vmul.f32 %v1325_v53, %v5832_v62  ;;  %v1329_v43 = vmul.f32 %v1325_v53, %v5834_v21  ;;  %v6015_v55 = vld [vmem:[#allocation2 + $0x73] sm:$0xff]  ;;  %v6017_v62 = vld [vmem:[#allocation2 + $0x7b] sm:$0xff]  ;;  %s7195_s30 = sld [smem:[#allocation4 + $0x12]]  ;;  %s7201_s5 = sld [smem:[#allocation4 + $0x50]] }
 0x130   :  { %v1330_v10 = vmul.f32 %v1325_v53, %v5848_v11  ;;  %v1331_v16 = vmul.f32 %v1325_v53, %v5850_v63  ;;  %v1332_v13 = vmul.f32 %v1325_v53, %v5852_v54  ;;  %v1333_v2 = vmul.f32 %v1325_v53, %v5864_v50  ;;  %v6029_v11 = vld [vmem:[#allocation2 + $0x83] sm:$0xff] }
 0x131   :  { %v6021_v9 = vadd.f32 %v1326_v57, %v5856_v47  ;;  %v6024_v46 = vadd.f32 %v1327_v56, %v5859_v42  ;;  %v6027_v21 = vadd.f32 %v1328_v38, %v5862_v39  ;;  %v6032_v63 = vadd.f32 %v1329_v43, %v5867_v1 }
 0x132   :  { %v6035_v54 = vadd.f32 %v1330_v10, %v5870_v59  ;;  %v6038_v30 = vadd.f32 %v1331_v16, %v5873_v4  ;;  %v6041_v47 = vadd.f32 %v1332_v13, %v5876_v40  ;;  %v6044_v42 = vadd.f32 %v1333_v2, %v5879_v44 }
 0x133   :  { %v1352_v39 = vmul.f32 %v1351_v32, %v5995_v26  ;;  %v1353_v50 = vmul.f32 %v1351_v32, %v6003_v14  ;;  %v1354_v28 = vmul.f32 %v1351_v32, %v6005_v12  ;;  %v1355_v1 = vmul.f32 %v1351_v32, %v6007_v48 }
 0x134   :  { %v1356_v59 = vmul.f32 %v1351_v32, %v6013_v25  ;;  %v1357_v45 = vmul.f32 %v1351_v32, %v6015_v55  ;;  %v1358_v4 = vmul.f32 %v1351_v32, %v6017_v62  ;;  %v1359_v40 = vmul.f32 %v1351_v32, %v6029_v11 }
 0x135   :  { %v6055_v31 = vadd.f32 %v1352_v39, %v5897_v27  ;;  %v6058_v44 = vadd.f32 %v1353_v50, %v5899_v0  ;;  %v6061_v60 = vadd.f32 %v1354_v28, %v5901_v36  ;;  %v6064_v29 = vadd.f32 %v1355_v1, %v5903_v8 }
 0x136   :  { %v6067_v53 = vadd.f32 %v1356_v59, %v5905_v51  ;;  %v6070_v57 = vadd.f32 %v1357_v45, %v5907_v18  ;;  %v6073_v32 = vadd.f32 %v1358_v4, %v5909_v3  ;;  %v6078_v27 = vadd.f32 %v1359_v40, %v5913_v17 }
 0x137   :  { %v1370_v0 = vmul.f32 %v1369_v58, %v5995_v26  ;;  %v1371_v36 = vmul.f32 %v1369_v58, %v6003_v14  ;;  %v1372_v8 = vmul.f32 %v1369_v58, %v6005_v12  ;;  %v1373_v51 = vmul.f32 %v1369_v58, %v6007_v48 }
 0x138   :  { %v1374_v18 = vmul.f32 %v1369_v58, %v6013_v25  ;;  %v1375_v3 = vmul.f32 %v1369_v58, %v6015_v55  ;;  %v1376_v56 = vmul.f32 %v1369_v58, %v6017_v62  ;;  %v1377_v17 = vmul.f32 %v1369_v58, %v6029_v11 }
 0x139   :  { %v6095_v38 = vadd.f32 %v1370_v0, %v5937_v41  ;;  %v6098_v43 = vadd.f32 %v1371_v36, %v5939_v22  ;;  %v6101_v10 = vadd.f32 %v1372_v8, %v5941_v5  ;;  %v6104_v16 = vadd.f32 %v1373_v51, %v5943_v6  ;;  %v6163_v36 = vld [vmem:[#allocation2 + $0x9b] sm:$0xff]  ;;  %v6169_v51 = vld [vmem:[#allocation2 + $0xa3] sm:$0xff] }
 0x13a   :  { %v6107_v13 = vadd.f32 %v1374_v18, %v5945_v19  ;;  %v6110_v2 = vadd.f32 %v1375_v3, %v5947_v49  ;;  %v6113_v58 = vadd.f32 %v1376_v56, %v5949_v33  ;;  %v6116_v41 = vadd.f32 %v1377_v17, %v5951_v61 }
 0x13b   :  { %v1388_v22 = vmul.f32 %v6001_v24, %v5995_v26  ;;  %v1389_v5 = vmul.f32 %v6001_v24, %v6003_v14  ;;  %v1390_v6 = vmul.f32 %v6001_v24, %v6005_v12  ;;  %v1391_v19 = vmul.f32 %v6001_v24, %v6007_v48 }
 0x13c   :  { %v1392_v49 = vmul.f32 %v6001_v24, %v6013_v25  ;;  %v1393_v33 = vmul.f32 %v6001_v24, %v6015_v55  ;;  %v1394_v61 = vmul.f32 %v6001_v24, %v6017_v62  ;;  %v1395_v39 = vmul.f32 %v6001_v24, %v6029_v11 }
 0x13d   :  { %v6135_v50 = vadd.f32 %v1388_v22, %v5970_v37  ;;  %v6138_v28 = vadd.f32 %v1389_v5, %v5973_v23  ;;  %v6141_v1 = vadd.f32 %v1390_v6, %v5976_v15  ;;  %v6144_v59 = vadd.f32 %v1391_v19, %v5979_v34  ;;  %v6161_v15 = vld [vmem:[#allocation2 + $0x93] sm:$0xff] }
 0x13e   :  { %v6147_v45 = vadd.f32 %v1392_v49, %v5982_v35  ;;  %v6150_v4 = vadd.f32 %v1393_v33, %v5985_v7  ;;  %v6153_v24 = vadd.f32 %v1394_v61, %v5988_v52  ;;  %v6156_v37 = vadd.f32 %v1395_v39, %v5990_v20  ;;  %v6171_v52 = vld [vmem:[#allocation2 + $0xab] sm:$0xff]  ;;  %v6173_v20 = vld [vmem:[#allocation2 + $0xb3] sm:$0xff] }
 0x13f   :  { %v1405_v23 = vstv %s6075_s6  ;;  %v1431_v40 = vstv %s6083_s7  ;;  %v1449_v0 = vstv %s6085_s8  ;;  %v1467_v8 = vstv %s6091_s9  ;;  %s7203_s6 = sld [smem:[#allocation4 + $0x27]]  ;;  %s7233_s7 = sld [smem:[#allocation4 + $0x3c]] }
 0x140   :  { %v1406_v34 = vmul.f32 %v1405_v23, %v5995_v26  ;;  %v1407_v35 = vmul.f32 %v1405_v23, %v6003_v14  ;;  %v1408_v7 = vmul.f32 %v1405_v23, %v6005_v12  ;;  %v1409_v18 = vmul.f32 %v1405_v23, %v6007_v48  ;;  %v6179_v26 = vld [vmem:[#allocation2 + $0xbb] sm:$0xff]  ;;  %v6181_v14 = vld [vmem:[#allocation2 + $0xc3] sm:$0xff]  ;;  %v6183_v12 = vld [vmem:[#allocation2 + $0xcb] sm:$0xff]  ;;  %s7351_s8 = sld [smem:[#allocation4 + $0x51]]  ;;  %s7359_s9 = sld [smem:[#allocation4 + $0x13]] }
 0x141   :  { %v1410_v3 = vmul.f32 %v1405_v23, %v6013_v25  ;;  %v1411_v56 = vmul.f32 %v1405_v23, %v6015_v55  ;;  %v1412_v17 = vmul.f32 %v1405_v23, %v6017_v62  ;;  %v1413_v22 = vmul.f32 %v1405_v23, %v6029_v11 }
 0x142   :  { %v6187_v5 = vadd.f32 %v1406_v34, %v6021_v9  ;;  %v6190_v6 = vadd.f32 %v1407_v35, %v6024_v46  ;;  %v6193_v48 = vadd.f32 %v1408_v7, %v6027_v21  ;;  %v6196_v25 = vadd.f32 %v1409_v18, %v6032_v63 }
 0x143   :  { %v6199_v55 = vadd.f32 %v1410_v3, %v6035_v54  ;;  %v6202_v62 = vadd.f32 %v1411_v56, %v6038_v30  ;;  %v6205_v11 = vadd.f32 %v1412_v17, %v6041_v47  ;;  %v1432_v9 = vmul.f32 %v1431_v40, %v6161_v15 }
 0x144   :  { %v1433_v46 = vmul.f32 %v1431_v40, %v6163_v36  ;;  %v1434_v19 = vmul.f32 %v1431_v40, %v6169_v51  ;;  %v1435_v21 = vmul.f32 %v1431_v40, %v6171_v52  ;;  %v1436_v63 = vmul.f32 %v1431_v40, %v6173_v20 }
 0x145   :  { %v1437_v49 = vmul.f32 %v1431_v40, %v6179_v26  ;;  %v1438_v54 = vmul.f32 %v1431_v40, %v6181_v14  ;;  %v1439_v30 = vmul.f32 %v1431_v40, %v6183_v12  ;;  %v6216_v33 = vadd.f32 %v1413_v22, %v6044_v42 }
 0x146   :  { %v6219_v47 = vadd.f32 %v1432_v9, %v6055_v31  ;;  %v6222_v61 = vadd.f32 %v1433_v46, %v6058_v44  ;;  %v6225_v39 = vadd.f32 %v1434_v19, %v6061_v60  ;;  %v6228_v23 = vadd.f32 %v1435_v21, %v6064_v29 }
 0x147   :  { %v6231_v34 = vadd.f32 %v1436_v63, %v6067_v53  ;;  %v6234_v40 = vadd.f32 %v1437_v49, %v6070_v57  ;;  %v6237_v42 = vadd.f32 %v1438_v54, %v6073_v32  ;;  %v1450_v31 = vmul.f32 %v1449_v0, %v6161_v15 }
 0x148   :  { %v1451_v44 = vmul.f32 %v1449_v0, %v6163_v36  ;;  %v1452_v60 = vmul.f32 %v1449_v0, %v6169_v51  ;;  %v1453_v29 = vmul.f32 %v1449_v0, %v6171_v52  ;;  %v6250_v53 = vadd.f32 %v1439_v30, %v6078_v27 }
 0x149   :  { %v1454_v57 = vmul.f32 %v1449_v0, %v6173_v20  ;;  %v1455_v32 = vmul.f32 %v1449_v0, %v6179_v26  ;;  %v1456_v35 = vmul.f32 %v1449_v0, %v6181_v14  ;;  %v1457_v7 = vmul.f32 %v1449_v0, %v6183_v12 }
 0x14a   :  { %v6257_v18 = vadd.f32 %v1450_v31, %v6095_v38  ;;  %v6260_v3 = vadd.f32 %v1451_v44, %v6098_v43  ;;  %v6263_v56 = vadd.f32 %v1452_v60, %v6101_v10  ;;  %v6266_v27 = vadd.f32 %v1453_v29, %v6104_v16  ;;  %v6323_v60 = vld [vmem:[#allocation2 + $0xc] sm:$0xff] }
 0x14b   :  { %v6269_v17 = vadd.f32 %v1454_v57, %v6107_v13  ;;  %v6272_v22 = vadd.f32 %v1455_v32, %v6110_v2  ;;  %v6275_v0 = vadd.f32 %v1456_v35, %v6113_v58  ;;  %v1468_v38 = vmul.f32 %v1467_v8, %v6161_v15  ;;  %v6335_v35 = vld [vmem:[#allocation2 + $0x2c] sm:$0xff] }
 0x14c   :  { %v1469_v43 = vmul.f32 %v1467_v8, %v6163_v36  ;;  %v1470_v10 = vmul.f32 %v1467_v8, %v6169_v51  ;;  %v1471_v16 = vmul.f32 %v1467_v8, %v6171_v52  ;;  %v1472_v13 = vmul.f32 %v1467_v8, %v6173_v20 }
 0x14d   :  { %v1473_v2 = vmul.f32 %v1467_v8, %v6179_v26  ;;  %v1474_v58 = vmul.f32 %v1467_v8, %v6181_v14  ;;  %v1475_v9 = vmul.f32 %v1467_v8, %v6183_v12  ;;  %v6288_v46 = vadd.f32 %v1457_v7, %v6116_v41 }
 0x14e   :  { %v6291_v19 = vadd.f32 %v1468_v38, %v6135_v50  ;;  %v6294_v21 = vadd.f32 %v1469_v43, %v6138_v28  ;;  %v6297_v63 = vadd.f32 %v1470_v10, %v6141_v1  ;;  %v6300_v49 = vadd.f32 %v1471_v16, %v6144_v59  ;;  %v6317_v1 = vld [vmem:[#allocation2 + $0x4] sm:$0xff]  ;;  %v6349_v38 = vld [vmem:[#allocation2 + $0x3c] sm:$0xff] }
 0x14f   :  { %v6303_v54 = vadd.f32 %v1472_v13, %v6147_v45  ;;  %v6306_v8 = vadd.f32 %v1473_v2, %v6150_v4  ;;  %v6309_v41 = vadd.f32 %v1474_v58, %v6153_v24  ;;  %v6312_v50 = vadd.f32 %v1475_v9, %v6156_v37  ;;  %v6325_v24 = vld [vmem:[#allocation2 + $0x14] sm:$0xff]  ;;  %v6327_v37 = vld [vmem:[#allocation2 + $0x1c] sm:$0xff] }
 0x150   :  { %v1485_v28 = vstv %s6245_s11  ;;  %v1511_v30 = vstv %s6239_s10  ;;  %v1529_v31 = vstv %s6247_s12  ;;  %s7361_s10 = sld [smem:[#allocation4 + $0x28]]  ;;  %s7367_s11 = sld [smem:[#allocation4 + $0x3d]] }
 0x151   :  { %v1486_v59 = vmul.f32 %v1485_v28, %v6161_v15  ;;  %v1487_v44 = vmul.f32 %v1485_v28, %v6163_v36  ;;  %v1488_v45 = vmul.f32 %v1485_v28, %v6169_v51  ;;  %v1489_v4 = vmul.f32 %v1485_v28, %v6171_v52  ;;  %v6333_v36 = vld [vmem:[#allocation2 + $0x24] sm:$0xff]  ;;  %v6337_v51 = vld [vmem:[#allocation2 + $0x34] sm:$0xff]  ;;  %s7509_s12 = sld [smem:[#allocation4 + $0x52]] }
 0x152   :  { %v1490_v29 = vmul.f32 %v1485_v28, %v6173_v20  ;;  %v1491_v57 = vmul.f32 %v1485_v28, %v6179_v26  ;;  %v1492_v32 = vmul.f32 %v1485_v28, %v6181_v14  ;;  %v1493_v15 = vmul.f32 %v1485_v28, %v6183_v12 }
 0x153   :  { %v6340_v52 = vadd.f32 %v1486_v59, %v6187_v5  ;;  %v6343_v7 = vadd.f32 %v1487_v44, %v6190_v6  ;;  %v6346_v20 = vadd.f32 %v1488_v45, %v6193_v48  ;;  %v1547_v26 = vstv %s6277_s13  ;;  %s7517_s13 = sld [smem:[#allocation4 + $0x14]] }
 0x154   :  { %v6352_v14 = vadd.f32 %v1489_v4, %v6196_v25  ;;  %v6355_v12 = vadd.f32 %v1490_v29, %v6199_v55  ;;  %v6358_v43 = vadd.f32 %v1491_v57, %v6202_v62  ;;  %v6361_v5 = vadd.f32 %v1492_v32, %v6205_v11 }
 0x155   :  { %v6364_v6 = vadd.f32 %v1493_v15, %v6216_v33  ;;  %v1512_v48 = vmul.f32 %v1511_v30, %v6317_v1  ;;  %v1513_v10 = vmul.f32 %v1511_v30, %v6323_v60  ;;  %v1514_v16 = vmul.f32 %v1511_v30, %v6325_v24 }
 0x156   :  { %v1515_v25 = vmul.f32 %v1511_v30, %v6327_v37  ;;  %v1516_v55 = vmul.f32 %v1511_v30, %v6333_v36  ;;  %v1517_v13 = vmul.f32 %v1511_v30, %v6335_v35  ;;  %v1518_v62 = vmul.f32 %v1511_v30, %v6337_v51 }
 0x157   :  { %v1519_v11 = vmul.f32 %v1511_v30, %v6349_v38  ;;  %v6375_v2 = vadd.f32 %v1512_v48, %v6219_v47  ;;  %v6378_v33 = vadd.f32 %v1513_v10, %v6222_v61  ;;  %v6381_v58 = vadd.f32 %v1514_v16, %v6225_v39 }
 0x158   :  { %v6384_v9 = vadd.f32 %v1515_v25, %v6228_v23  ;;  %v6387_v28 = vadd.f32 %v1516_v55, %v6231_v34  ;;  %v6390_v59 = vadd.f32 %v1517_v13, %v6234_v40  ;;  %v6393_v30 = vadd.f32 %v1518_v62, %v6237_v42 }
 0x159   :  { %v6398_v47 = vadd.f32 %v1519_v11, %v6250_v53  ;;  %v1530_v61 = vmul.f32 %v1529_v31, %v6317_v1  ;;  %v1531_v39 = vmul.f32 %v1529_v31, %v6323_v60  ;;  %v1532_v23 = vmul.f32 %v1529_v31, %v6325_v24 }
 0x15a   :  { %v1533_v34 = vmul.f32 %v1529_v31, %v6327_v37  ;;  %v1534_v40 = vmul.f32 %v1529_v31, %v6333_v36  ;;  %v1535_v42 = vmul.f32 %v1529_v31, %v6335_v35  ;;  %v1536_v44 = vmul.f32 %v1529_v31, %v6337_v51 }
 0x15b   :  { %v1537_v53 = vmul.f32 %v1529_v31, %v6349_v38  ;;  %v6415_v45 = vadd.f32 %v1530_v61, %v6257_v18  ;;  %v6418_v4 = vadd.f32 %v1531_v39, %v6260_v3  ;;  %v6421_v29 = vadd.f32 %v1532_v23, %v6263_v56 }
 0x15c   :  { %v6424_v57 = vadd.f32 %v1533_v34, %v6266_v27  ;;  %v6427_v32 = vadd.f32 %v1534_v40, %v6269_v17  ;;  %v6430_v15 = vadd.f32 %v1535_v42, %v6272_v22  ;;  %v6433_v31 = vadd.f32 %v1536_v44, %v6275_v0  ;;  %v6485_v34 = vld [vmem:[#allocation2 + $0x64] sm:$0xff]  ;;  %v6491_v44 = vld [vmem:[#allocation2 + $0x6c] sm:$0xff] }
 0x15d   :  { %v6436_v18 = vadd.f32 %v1537_v53, %v6288_v46  ;;  %v1548_v3 = vmul.f32 %v1547_v26, %v6317_v1  ;;  %v1549_v56 = vmul.f32 %v1547_v26, %v6323_v60  ;;  %v1550_v27 = vmul.f32 %v1547_v26, %v6325_v24 }
 0x15e   :  { %v1551_v17 = vmul.f32 %v1547_v26, %v6327_v37  ;;  %v1552_v22 = vmul.f32 %v1547_v26, %v6333_v36  ;;  %v1553_v48 = vmul.f32 %v1547_v26, %v6335_v35  ;;  %v1554_v0 = vmul.f32 %v1547_v26, %v6337_v51 }
 0x15f   :  { %v1555_v46 = vmul.f32 %v1547_v26, %v6349_v38  ;;  %v6447_v10 = vadd.f32 %v1548_v3, %v6291_v19  ;;  %v6450_v16 = vadd.f32 %v1549_v56, %v6294_v21  ;;  %v6453_v25 = vadd.f32 %v1550_v27, %v6297_v63  ;;  %v6473_v63 = vld [vmem:[#allocation2 + $0x4c] sm:$0xff] }
 0x160   :  { %v6456_v55 = vadd.f32 %v1551_v17, %v6300_v49  ;;  %v6459_v13 = vadd.f32 %v1552_v22, %v6303_v54  ;;  %v6462_v62 = vadd.f32 %v1553_v48, %v6306_v8  ;;  %v6465_v26 = vadd.f32 %v1554_v0, %v6309_v41  ;;  %v6481_v8 = vld [vmem:[#allocation2 + $0x54] sm:$0xff]  ;;  %v6483_v41 = vld [vmem:[#allocation2 + $0x5c] sm:$0xff] }
 0x161   :  { %v6468_v19 = vadd.f32 %v1555_v46, %v6312_v50  ;;  %v1565_v21 = vstv %s6395_s14  ;;  %v1591_v11 = vstv %s6403_s15  ;;  %v1609_v61 = vstv %s6405_s16  ;;  %s7519_s14 = sld [smem:[#allocation4 + $0x29]]  ;;  %s7525_s15 = sld [smem:[#allocation4 + $0x3e]] }
 0x162   :  { %v1566_v49 = vmul.f32 %v1565_v21, %v6317_v1  ;;  %v1567_v39 = vmul.f32 %v1565_v21, %v6323_v60  ;;  %v1568_v54 = vmul.f32 %v1565_v21, %v6325_v24  ;;  %v6479_v23 = vstv %s6411_s17  ;;  %v6493_v60 = vld [vmem:[#allocation2 + $0x74] sm:$0xff]  ;;  %v6495_v24 = vld [vmem:[#allocation2 + $0x7c] sm:$0xff]  ;;  %s7679_s16 = sld [smem:[#allocation4 + $0x53]]  ;;  %s7681_s17 = sld [smem:[#allocation8]] }
 0x163   :  { %v1569_v50 = vmul.f32 %v1565_v21, %v6327_v37  ;;  %v1570_v40 = vmul.f32 %v1565_v21, %v6333_v36  ;;  %v1571_v42 = vmul.f32 %v1565_v21, %v6335_v35  ;;  %v1572_v1 = vmul.f32 %v1565_v21, %v6337_v51  ;;  %v6507_v36 = vld [vmem:[#allocation2 + $0x84] sm:$0xff] }
 0x164   :  { %v1573_v53 = vmul.f32 %v1565_v21, %v6349_v38  ;;  %v6499_v3 = vadd.f32 %v1566_v49, %v6340_v52  ;;  %v6502_v56 = vadd.f32 %v1567_v39, %v6343_v7  ;;  %v6505_v37 = vadd.f32 %v1568_v54, %v6346_v20 }
 0x165   :  { %v6510_v35 = vadd.f32 %v1569_v50, %v6352_v14  ;;  %v6513_v51 = vadd.f32 %v1570_v40, %v6355_v12  ;;  %v6516_v27 = vadd.f32 %v1571_v42, %v6358_v43  ;;  %v6519_v52 = vadd.f32 %v1572_v1, %v6361_v5 }
 0x166   :  { %v6522_v7 = vadd.f32 %v1573_v53, %v6364_v6  ;;  %v1592_v20 = vmul.f32 %v1591_v11, %v6473_v63  ;;  %v1593_v38 = vmul.f32 %v1591_v11, %v6481_v8  ;;  %v1594_v17 = vmul.f32 %v1591_v11, %v6483_v41 }
 0x167   :  { %v1595_v14 = vmul.f32 %v1591_v11, %v6485_v34  ;;  %v1596_v12 = vmul.f32 %v1591_v11, %v6491_v44  ;;  %v1597_v22 = vmul.f32 %v1591_v11, %v6493_v60  ;;  %v1598_v43 = vmul.f32 %v1591_v11, %v6495_v24 }
 0x168   :  { %v1599_v5 = vmul.f32 %v1591_v11, %v6507_v36  ;;  %v6533_v48 = vadd.f32 %v1592_v20, %v6375_v2  ;;  %v6536_v6 = vadd.f32 %v1593_v38, %v6378_v33  ;;  %v6539_v0 = vadd.f32 %v1594_v17, %v6381_v58 }
 0x169   :  { %v6542_v46 = vadd.f32 %v1595_v14, %v6384_v9  ;;  %v6545_v21 = vadd.f32 %v1596_v12, %v6387_v28  ;;  %v6548_v49 = vadd.f32 %v1597_v22, %v6390_v59  ;;  %v6551_v11 = vadd.f32 %v1598_v43, %v6393_v30 }
 0x16a   :  { %v6556_v2 = vadd.f32 %v1599_v5, %v6398_v47  ;;  %v1610_v33 = vmul.f32 %v1609_v61, %v6473_v63  ;;  %v1611_v58 = vmul.f32 %v1609_v61, %v6481_v8  ;;  %v1612_v9 = vmul.f32 %v1609_v61, %v6483_v41 }
 0x16b   :  { %v1613_v28 = vmul.f32 %v1609_v61, %v6485_v34  ;;  %v1614_v59 = vmul.f32 %v1609_v61, %v6491_v44  ;;  %v1615_v30 = vmul.f32 %v1609_v61, %v6493_v60  ;;  %v1616_v39 = vmul.f32 %v1609_v61, %v6495_v24 }
 0x16c   :  { %v1617_v47 = vmul.f32 %v1609_v61, %v6507_v36  ;;  %v6573_v54 = vadd.f32 %v1610_v33, %v6415_v45  ;;  %v6576_v50 = vadd.f32 %v1611_v58, %v6418_v4  ;;  %v6579_v40 = vadd.f32 %v1612_v9, %v6421_v29  ;;  %v6641_v58 = vld [vmem:[#allocation2 + $0x9c] sm:$0xff] }
 0x16d   :  { %v6582_v42 = vadd.f32 %v1613_v28, %v6424_v57  ;;  %v6585_v1 = vadd.f32 %v1614_v59, %v6427_v32  ;;  %v6588_v53 = vadd.f32 %v1615_v30, %v6430_v15  ;;  %v6591_v61 = vadd.f32 %v1616_v39, %v6433_v31  ;;  %v6647_v28 = vld [vmem:[#allocation2 + $0xa4] sm:$0xff] }
 0x16e   :  { %v6594_v45 = vadd.f32 %v1617_v47, %v6436_v18  ;;  %v1628_v4 = vmul.f32 %v6479_v23, %v6473_v63  ;;  %v1629_v29 = vmul.f32 %v6479_v23, %v6481_v8  ;;  %v1630_v57 = vmul.f32 %v6479_v23, %v6483_v41 }
 0x16f   :  { %v1631_v32 = vmul.f32 %v6479_v23, %v6485_v34  ;;  %v1632_v15 = vmul.f32 %v6479_v23, %v6491_v44  ;;  %v1633_v31 = vmul.f32 %v6479_v23, %v6493_v60  ;;  %v1634_v18 = vmul.f32 %v6479_v23, %v6495_v24 }
 0x170   :  { %v1635_v20 = vmul.f32 %v6479_v23, %v6507_v36  ;;  %v6613_v38 = vadd.f32 %v1628_v4, %v6447_v10  ;;  %v6616_v17 = vadd.f32 %v1629_v29, %v6450_v16  ;;  %v6619_v14 = vadd.f32 %v1630_v57, %v6453_v25  ;;  %v6639_v25 = vld [vmem:[#allocation2 + $0x94] sm:$0xff] }
 0x171   :  { %v6622_v12 = vadd.f32 %v1631_v32, %v6456_v55  ;;  %v6625_v22 = vadd.f32 %v1632_v15, %v6459_v13  ;;  %v6628_v43 = vadd.f32 %v1633_v31, %v6462_v62  ;;  %v6631_v23 = vadd.f32 %v1634_v18, %v6465_v26  ;;  %v6649_v26 = vld [vmem:[#allocation2 + $0xac] sm:$0xff] }
 0x172   :  { %v6634_v10 = vadd.f32 %v1635_v20, %v6468_v19  ;;  %v1645_v16 = vstv %s6553_s18  ;;  %v1671_v5 = vstv %s6561_s3  ;;  %v1689_v33 = vstv %s6563_s19  ;;  %v6651_v19 = vld [vmem:[#allocation2 + $0xb4] sm:$0xff]  ;;  %s7731_s18 = sld [smem:[#allocation8 + $0x1]]  ;;  %s7745_s3 = sld [smem:[#allocation8 + $0x2]] }
 0x173   :  { %v1646_v55 = vmul.f32 %v1645_v16, %v6473_v63  ;;  %v1647_v13 = vmul.f32 %v1645_v16, %v6481_v8  ;;  %v1648_v62 = vmul.f32 %v1645_v16, %v6483_v41  ;;  %v1707_v9 = vstv %s6569_s20  ;;  %v6657_v63 = vld [vmem:[#allocation2 + $0xbc] sm:$0xff]  ;;  %v6659_v8 = vld [vmem:[#allocation2 + $0xc4] sm:$0xff]  ;;  %v6661_v41 = vld [vmem:[#allocation2 + $0xcc] sm:$0xff]  ;;  %s7747_s19 = sld [smem:[#allocation8 + $0x3]]  ;;  %s7803_s20 = sld [smem:[#allocation6 + $0x4]] }
 0x174   :  { %v1649_v59 = vmul.f32 %v1645_v16, %v6485_v34  ;;  %v1650_v30 = vmul.f32 %v1645_v16, %v6491_v44  ;;  %v1651_v39 = vmul.f32 %v1645_v16, %v6493_v60  ;;  %v1652_v47 = vmul.f32 %v1645_v16, %v6495_v24 }
 0x175   :  { %v1653_v4 = vmul.f32 %v1645_v16, %v6507_v36  ;;  %v6665_v29 = vadd.f32 %v1646_v55, %v6499_v3  ;;  %v6668_v57 = vadd.f32 %v1647_v13, %v6502_v56  ;;  %v6671_v34 = vadd.f32 %v1648_v62, %v6505_v37 }
 0x176   :  { %v6674_v44 = vadd.f32 %v1649_v59, %v6510_v35  ;;  %v6677_v60 = vadd.f32 %v1650_v30, %v6513_v51  ;;  %v6680_v24 = vadd.f32 %v1651_v39, %v6516_v27  ;;  %v6683_v36 = vadd.f32 %v1652_v47, %v6519_v52 }
 0x177   :  { %v1672_v3 = vmul.f32 %v1671_v5, %v6639_v25  ;;  %v1673_v56 = vmul.f32 %v1671_v5, %v6641_v58  ;;  %v1674_v32 = vmul.f32 %v1671_v5, %v6647_v28  ;;  %v1675_v37 = vmul.f32 %v1671_v5, %v6649_v26 }
 0x178   :  { %v1676_v35 = vmul.f32 %v1671_v5, %v6651_v19  ;;  %v1677_v15 = vmul.f32 %v1671_v5, %v6657_v63  ;;  %v1678_v51 = vmul.f32 %v1671_v5, %v6659_v8  ;;  %v1679_v27 = vmul.f32 %v1671_v5, %v6661_v41 }
 0x179   :  { %v6694_v31 = vadd.f32 %v1653_v4, %v6522_v7  ;;  %v6697_v52 = vadd.f32 %v1672_v3, %v6533_v48  ;;  %v6700_v18 = vadd.f32 %v1673_v56, %v6536_v6  ;;  %v6703_v20 = vadd.f32 %v1674_v32, %v6539_v0 }
 0x17a   :  { %v6706_v16 = vadd.f32 %v1675_v37, %v6542_v46  ;;  %v6709_v55 = vadd.f32 %v1676_v35, %v6545_v21  ;;  %v6712_v5 = vadd.f32 %v1677_v15, %v6548_v49  ;;  %v6715_v7 = vadd.f32 %v1678_v51, %v6551_v11 }
 0x17b   :  { %v1690_v48 = vmul.f32 %v1689_v33, %v6639_v25  ;;  %v1691_v6 = vmul.f32 %v1689_v33, %v6641_v58  ;;  %v1692_v0 = vmul.f32 %v1689_v33, %v6647_v28  ;;  %v1693_v46 = vmul.f32 %v1689_v33, %v6649_v26 }
 0x17c   :  { %v6728_v21 = vadd.f32 %v1679_v27, %v6556_v2  ;;  %v1694_v49 = vmul.f32 %v1689_v33, %v6651_v19  ;;  %v1695_v11 = vmul.f32 %v1689_v33, %v6657_v63  ;;  %v1696_v13 = vmul.f32 %v1689_v33, %v6659_v8 }
 0x17d   :  { %v1697_v62 = vmul.f32 %v1689_v33, %v6661_v41  ;;  %v6735_v59 = vadd.f32 %v1690_v48, %v6573_v54  ;;  %v6738_v30 = vadd.f32 %v1691_v6, %v6576_v50  ;;  %v6741_v39 = vadd.f32 %v1692_v0, %v6579_v40  ;;  %v6801_v0 = vld [vmem:[#allocation2 + $0xd] sm:$0xff] }
 0x17e   :  { %v6744_v2 = vadd.f32 %v1693_v46, %v6582_v42  ;;  %v6747_v47 = vadd.f32 %v1694_v49, %v6585_v1  ;;  %v6750_v4 = vadd.f32 %v1695_v11, %v6588_v53  ;;  %v6753_v33 = vadd.f32 %v1696_v13, %v6591_v61  ;;  %v6813_v13 = vld [vmem:[#allocation2 + $0x2d] sm:$0xff] }
 0x17f   :  { %v1708_v54 = vmul.f32 %v1707_v9, %v6639_v25  ;;  %v1709_v50 = vmul.f32 %v1707_v9, %v6641_v58  ;;  %v1710_v40 = vmul.f32 %v1707_v9, %v6647_v28  ;;  %v1711_v42 = vmul.f32 %v1707_v9, %v6649_v26 }
 0x180   :  { %v1712_v1 = vmul.f32 %v1707_v9, %v6651_v19  ;;  %v1713_v53 = vmul.f32 %v1707_v9, %v6657_v63  ;;  %v1714_v61 = vmul.f32 %v1707_v9, %v6659_v8  ;;  %v1715_v3 = vmul.f32 %v1707_v9, %v6661_v41 }
 0x181   :  { %v6766_v56 = vadd.f32 %v1697_v62, %v6594_v45  ;;  %v6769_v32 = vadd.f32 %v1708_v54, %v6613_v38  ;;  %v6772_v37 = vadd.f32 %v1709_v50, %v6616_v17  ;;  %v6775_v35 = vadd.f32 %v1710_v40, %v6619_v14  ;;  %v6795_v14 = vld [vmem:[#allocation2 + $0x5] sm:$0xff]  ;;  %v6827_v54 = vld [vmem:[#allocation2 + $0x3d] sm:$0xff] }
 0x182   :  { %v6778_v15 = vadd.f32 %v1711_v42, %v6622_v12  ;;  %v6781_v51 = vadd.f32 %v1712_v1, %v6625_v22  ;;  %v6784_v9 = vadd.f32 %v1713_v53, %v6628_v43  ;;  %v6787_v45 = vadd.f32 %v1714_v61, %v6631_v23  ;;  %v6803_v23 = vld [vmem:[#allocation2 + $0x15] sm:$0xff] }
 0x183   :  { %v6790_v38 = vadd.f32 %v1715_v3, %v6634_v10  ;;  %v1725_v17 = vstv %s6723_s22  ;;  %v1751_v27 = vstv %s6717_s21  ;;  %v1769_v48 = vstv %s6725_s23  ;;  %v6805_v10 = vld [vmem:[#allocation2 + $0x1d] sm:$0xff]  ;;  %s7805_s21 = sld [smem:[#allocation6 + $0x5]]  ;;  %s8433_s23 = sld [smem:[#allocation4 + $0x82]] }
 0x184   :  { %v1726_v12 = vmul.f32 %v1725_v17, %v6639_v25  ;;  %v1727_v6 = vmul.f32 %v1725_v17, %v6641_v58  ;;  %v1728_v22 = vmul.f32 %v1725_v17, %v6647_v28  ;;  %v1729_v43 = vmul.f32 %v1725_v17, %v6649_v26  ;;  %v6811_v58 = vld [vmem:[#allocation2 + $0x25] sm:$0xff]  ;;  %v6815_v28 = vld [vmem:[#allocation2 + $0x35] sm:$0xff]  ;;  %s8428_s22 = sld [smem:[#allocation4 + $0x6d]] }
 0x185   :  { %v1730_v46 = vmul.f32 %v1725_v17, %v6651_v19  ;;  %v1731_v49 = vmul.f32 %v1725_v17, %v6657_v63  ;;  %v1732_v11 = vmul.f32 %v1725_v17, %v6659_v8  ;;  %v1733_v25 = vmul.f32 %v1725_v17, %v6661_v41 }
 0x186   :  { %v6818_v26 = vadd.f32 %v1726_v12, %v6665_v29  ;;  %v6821_v62 = vadd.f32 %v1727_v6, %v6668_v57  ;;  %v6824_v19 = vadd.f32 %v1728_v22, %v6671_v34  ;;  %v1787_v63 = vstv %s6755_s1  ;;  %s8435_s1 = sld [smem:[#allocation4 + $0x97]] }
 0x187   :  { %v6830_v8 = vadd.f32 %v1729_v43, %v6674_v44  ;;  %v6833_v41 = vadd.f32 %v1730_v46, %v6677_v60  ;;  %v6836_v50 = vadd.f32 %v1731_v49, %v6680_v24  ;;  %v6839_v29 = vadd.f32 %v1732_v11, %v6683_v36 }
 0x188   :  { %v6842_v57 = vadd.f32 %v1733_v25, %v6694_v31  ;;  %v1752_v34 = vmul.f32 %v1751_v27, %v6795_v14  ;;  %v1753_v40 = vmul.f32 %v1751_v27, %v6801_v0  ;;  %v1754_v42 = vmul.f32 %v1751_v27, %v6803_v23 }
 0x189   :  { %v1755_v44 = vmul.f32 %v1751_v27, %v6805_v10  ;;  %v1756_v60 = vmul.f32 %v1751_v27, %v6811_v58  ;;  %v1757_v1 = vmul.f32 %v1751_v27, %v6813_v13  ;;  %v1758_v24 = vmul.f32 %v1751_v27, %v6815_v28 }
 0x18a   :  { %v1759_v36 = vmul.f32 %v1751_v27, %v6827_v54  ;;  %v6853_v53 = vadd.f32 %v1752_v34, %v6697_v52  ;;  %v6856_v31 = vadd.f32 %v1753_v40, %v6700_v18  ;;  %v6859_v61 = vadd.f32 %v1754_v42, %v6703_v20 }
 0x18b   :  { %v6862_v3 = vadd.f32 %v1755_v44, %v6706_v16  ;;  %v6865_v17 = vadd.f32 %v1756_v60, %v6709_v55  ;;  %v6868_v12 = vadd.f32 %v1757_v1, %v6712_v5  ;;  %v6871_v27 = vadd.f32 %v1758_v24, %v6715_v7 }
 0x18c   :  { %v6876_v52 = vadd.f32 %v1759_v36, %v6728_v21  ;;  %v1770_v18 = vmul.f32 %v1769_v48, %v6795_v14  ;;  %v1771_v20 = vmul.f32 %v1769_v48, %v6801_v0  ;;  %v1772_v16 = vmul.f32 %v1769_v48, %v6803_v23 }
 0x18d   :  { %v1773_v55 = vmul.f32 %v1769_v48, %v6805_v10  ;;  %v1774_v5 = vmul.f32 %v1769_v48, %v6811_v58  ;;  %v1775_v7 = vmul.f32 %v1769_v48, %v6813_v13  ;;  %v1776_v6 = vmul.f32 %v1769_v48, %v6815_v28 }
 0x18e   :  { %v1777_v21 = vmul.f32 %v1769_v48, %v6827_v54  ;;  %v6893_v22 = vadd.f32 %v1770_v18, %v6735_v59  ;;  %v6896_v43 = vadd.f32 %v1771_v20, %v6738_v30  ;;  %v6899_v46 = vadd.f32 %v1772_v16, %v6741_v39 }
 0x18f   :  { %v6902_v49 = vadd.f32 %v1773_v55, %v6744_v2  ;;  %v6905_v11 = vadd.f32 %v1774_v5, %v6747_v47  ;;  %v6908_v25 = vadd.f32 %v1775_v7, %v6750_v4  ;;  %v6911_v48 = vadd.f32 %v1776_v6, %v6753_v33  ;;  %v6963_v55 = vld [vmem:[#allocation2 + $0x65] sm:$0xff]  ;;  %v6969_v6 = vld [vmem:[#allocation2 + $0x6d] sm:$0xff] }
 0x190   :  { %v6914_v59 = vadd.f32 %v1777_v21, %v6766_v56  ;;  %v1788_v30 = vmul.f32 %v1787_v63, %v6795_v14  ;;  %v1789_v39 = vmul.f32 %v1787_v63, %v6801_v0  ;;  %v1790_v2 = vmul.f32 %v1787_v63, %v6803_v23 }
 0x191   :  { %v1791_v47 = vmul.f32 %v1787_v63, %v6805_v10  ;;  %v1792_v4 = vmul.f32 %v1787_v63, %v6811_v58  ;;  %v1793_v34 = vmul.f32 %v1787_v63, %v6813_v13  ;;  %v1794_v33 = vmul.f32 %v1787_v63, %v6815_v28 }
 0x192   :  { %v1795_v56 = vmul.f32 %v1787_v63, %v6827_v54  ;;  %v6925_v40 = vadd.f32 %v1788_v30, %v6769_v32  ;;  %v6928_v42 = vadd.f32 %v1789_v39, %v6772_v37  ;;  %v6931_v44 = vadd.f32 %v1790_v2, %v6775_v35  ;;  %v6951_v35 = vld [vmem:[#allocation2 + $0x4d] sm:$0xff] }
 0x193   :  { %v6934_v60 = vadd.f32 %v1791_v47, %v6778_v15  ;;  %v6937_v1 = vadd.f32 %v1792_v4, %v6781_v51  ;;  %v6940_v24 = vadd.f32 %v1793_v34, %v6784_v9  ;;  %v6943_v63 = vadd.f32 %v1794_v33, %v6787_v45  ;;  %v6959_v9 = vld [vmem:[#allocation2 + $0x55] sm:$0xff]  ;;  %v6961_v45 = vld [vmem:[#allocation2 + $0x5d] sm:$0xff] }
 0x194   :  { %v6946_v32 = vadd.f32 %v1795_v56, %v6790_v38  ;;  %v1805_v37 = vstv %s6873_s0  ;;  %v1831_v36 = vstv %s6881_s24  ;;  %v1849_v18 = vstv %s6883_s25  ;;  %s8437_s0 = sld [smem:[#allocation4 + $0x59]]  ;;  %s8546_s24 = sld [smem:[#allocation4 + $0x6e]] }
 0x195   :  { %v1806_v15 = vmul.f32 %v1805_v37, %v6795_v14  ;;  %v1807_v20 = vmul.f32 %v1805_v37, %v6801_v0  ;;  %v1808_v51 = vmul.f32 %v1805_v37, %v6803_v23  ;;  %v6957_v16 = vstv %s6889_s26  ;;  %v6971_v0 = vld [vmem:[#allocation2 + $0x75] sm:$0xff]  ;;  %v6973_v23 = vld [vmem:[#allocation2 + $0x7d] sm:$0xff]  ;;  %s8551_s25 = sld [smem:[#allocation4 + $0x83]]  ;;  %s8553_s26 = sld [smem:[#allocation4 + $0x98]] }
 0x196   :  { %v1809_v38 = vmul.f32 %v1805_v37, %v6805_v10  ;;  %v1810_v5 = vmul.f32 %v1805_v37, %v6811_v58  ;;  %v1811_v7 = vmul.f32 %v1805_v37, %v6813_v13  ;;  %v1812_v14 = vmul.f32 %v1805_v37, %v6815_v28  ;;  %v6985_v58 = vld [vmem:[#allocation2 + $0x85] sm:$0xff] }
 0x197   :  { %v1813_v21 = vmul.f32 %v1805_v37, %v6827_v54  ;;  %v6977_v30 = vadd.f32 %v1806_v15, %v6818_v26  ;;  %v6980_v39 = vadd.f32 %v1807_v20, %v6821_v62  ;;  %v6983_v10 = vadd.f32 %v1808_v51, %v6824_v19 }
 0x198   :  { %v6988_v13 = vadd.f32 %v1809_v38, %v6830_v8  ;;  %v6991_v28 = vadd.f32 %v1810_v5, %v6833_v41  ;;  %v6994_v2 = vadd.f32 %v1811_v7, %v6836_v50  ;;  %v6997_v26 = vadd.f32 %v1812_v14, %v6839_v29 }
 0x199   :  { %v7000_v62 = vadd.f32 %v1813_v21, %v6842_v57  ;;  %v1832_v19 = vmul.f32 %v1831_v36, %v6951_v35  ;;  %v1833_v54 = vmul.f32 %v1831_v36, %v6959_v9  ;;  %v1834_v47 = vmul.f32 %v1831_v36, %v6961_v45 }
 0x19a   :  { %v1835_v8 = vmul.f32 %v1831_v36, %v6963_v55  ;;  %v1836_v41 = vmul.f32 %v1831_v36, %v6969_v6  ;;  %v1837_v4 = vmul.f32 %v1831_v36, %v6971_v0  ;;  %v1838_v50 = vmul.f32 %v1831_v36, %v6973_v23 }
 0x19b   :  { %v1839_v29 = vmul.f32 %v1831_v36, %v6985_v58  ;;  %v7011_v34 = vadd.f32 %v1832_v19, %v6853_v53  ;;  %v7014_v57 = vadd.f32 %v1833_v54, %v6856_v31  ;;  %v7017_v33 = vadd.f32 %v1834_v47, %v6859_v61 }
 0x19c   :  { %v7020_v56 = vadd.f32 %v1835_v8, %v6862_v3  ;;  %v7023_v37 = vadd.f32 %v1836_v41, %v6865_v17  ;;  %v7026_v15 = vadd.f32 %v1837_v4, %v6868_v12  ;;  %v7029_v36 = vadd.f32 %v1838_v50, %v6871_v27 }
 0x19d   :  { %v7034_v53 = vadd.f32 %v1839_v29, %v6876_v52  ;;  %v1850_v31 = vmul.f32 %v1849_v18, %v6951_v35  ;;  %v1851_v61 = vmul.f32 %v1849_v18, %v6959_v9  ;;  %v1852_v3 = vmul.f32 %v1849_v18, %v6961_v45 }
 0x19e   :  { %v1853_v17 = vmul.f32 %v1849_v18, %v6963_v55  ;;  %v1854_v12 = vmul.f32 %v1849_v18, %v6969_v6  ;;  %v1855_v27 = vmul.f32 %v1849_v18, %v6971_v0  ;;  %v1856_v20 = vmul.f32 %v1849_v18, %v6973_v23 }
 0x19f   :  { %v1857_v52 = vmul.f32 %v1849_v18, %v6985_v58  ;;  %v7051_v51 = vadd.f32 %v1850_v31, %v6893_v22  ;;  %v7054_v38 = vadd.f32 %v1851_v61, %v6896_v43  ;;  %v7057_v5 = vadd.f32 %v1852_v3, %v6899_v46  ;;  %v7119_v61 = vld [vmem:[#allocation2 + $0x9d] sm:$0xff] }
 0x1a0   :  { %v7060_v7 = vadd.f32 %v1853_v17, %v6902_v49  ;;  %v7063_v14 = vadd.f32 %v1854_v12, %v6905_v11  ;;  %v7066_v21 = vadd.f32 %v1855_v27, %v6908_v25  ;;  %v7069_v18 = vadd.f32 %v1856_v20, %v6911_v48  ;;  %v7125_v17 = vld [vmem:[#allocation2 + $0xa5] sm:$0xff] }
 0x1a1   :  { %v7072_v22 = vadd.f32 %v1857_v52, %v6914_v59  ;;  %v1868_v43 = vmul.f32 %v6957_v16, %v6951_v35  ;;  %v1869_v46 = vmul.f32 %v6957_v16, %v6959_v9  ;;  %v1870_v49 = vmul.f32 %v6957_v16, %v6961_v45 }
 0x1a2   :  { %v1871_v11 = vmul.f32 %v6957_v16, %v6963_v55  ;;  %v1872_v25 = vmul.f32 %v6957_v16, %v6969_v6  ;;  %v1873_v48 = vmul.f32 %v6957_v16, %v6971_v0  ;;  %v1874_v59 = vmul.f32 %v6957_v16, %v6973_v23 }
 0x1a3   :  { %v1875_v19 = vmul.f32 %v6957_v16, %v6985_v58  ;;  %v7091_v54 = vadd.f32 %v1868_v43, %v6925_v40  ;;  %v7094_v47 = vadd.f32 %v1869_v46, %v6928_v42  ;;  %v7097_v8 = vadd.f32 %v1870_v49, %v6931_v44  ;;  %v7117_v44 = vld [vmem:[#allocation2 + $0x95] sm:$0xff] }
 0x1a4   :  { %v7100_v41 = vadd.f32 %v1871_v11, %v6934_v60  ;;  %v7103_v4 = vadd.f32 %v1872_v25, %v6937_v1  ;;  %v7106_v50 = vadd.f32 %v1873_v48, %v6940_v24  ;;  %v7109_v16 = vadd.f32 %v1874_v59, %v6943_v63  ;;  %v7127_v63 = vld [vmem:[#allocation2 + $0xad] sm:$0xff] }
 0x1a5   :  { %v7112_v40 = vadd.f32 %v1875_v19, %v6946_v32  ;;  %v1885_v42 = vstv %s7031_s27  ;;  %v1911_v29 = vstv %s7039_s28  ;;  %v1929_v31 = vstv %s7041_s29  ;;  %v7129_v32 = vld [vmem:[#allocation2 + $0xb5] sm:$0xff]  ;;  %s7835_s28 = sld [smem:[#allocation6 + $0x6]]  ;;  %s7837_s29 = sld [smem:[#allocation4 + $0x54]] }
 0x1a6   :  { %v1886_v60 = vmul.f32 %v1885_v42, %v6951_v35  ;;  %v1887_v1 = vmul.f32 %v1885_v42, %v6959_v9  ;;  %v1888_v24 = vmul.f32 %v1885_v42, %v6961_v45  ;;  %v1947_v3 = vstv %s7047_s2  ;;  %v7135_v35 = vld [vmem:[#allocation2 + $0xbd] sm:$0xff]  ;;  %v7137_v9 = vld [vmem:[#allocation2 + $0xc5] sm:$0xff]  ;;  %v7139_v45 = vld [vmem:[#allocation2 + $0xcd] sm:$0xff]  ;;  %s7929_s27 = sld [smem:[#allocation4 + $0x69]]  ;;  %s8576_s2 = sld [smem:[#allocation4 + $0x5a]] }
 0x1a7   :  { %v1889_v12 = vmul.f32 %v1885_v42, %v6963_v55  ;;  %v1890_v27 = vmul.f32 %v1885_v42, %v6969_v6  ;;  %v1891_v20 = vmul.f32 %v1885_v42, %v6971_v0  ;;  %v1892_v52 = vmul.f32 %v1885_v42, %v6973_v23 }
 0x1a8   :  { %v1893_v43 = vmul.f32 %v1885_v42, %v6985_v58  ;;  %v7143_v46 = vadd.f32 %v1886_v60, %v6977_v30  ;;  %v7146_v49 = vadd.f32 %v1887_v1, %v6980_v39  ;;  %v7149_v55 = vadd.f32 %v1888_v24, %v6983_v10 }
 0x1a9   :  { %v7152_v6 = vadd.f32 %v1889_v12, %v6988_v13  ;;  %v7155_v0 = vadd.f32 %v1890_v27, %v6991_v28  ;;  %v7158_v23 = vadd.f32 %v1891_v20, %v6994_v2  ;;  %v7161_v58 = vadd.f32 %v1892_v52, %v6997_v26 }
 0x1aa   :  { %v1912_v30 = vmul.f32 %v1911_v29, %v7117_v44  ;;  %v1913_v39 = vmul.f32 %v1911_v29, %v7119_v61  ;;  %v1914_v11 = vmul.f32 %v1911_v29, %v7125_v17  ;;  %v1915_v10 = vmul.f32 %v1911_v29, %v7127_v63 }
 0x1ab   :  { %v1916_v13 = vmul.f32 %v1911_v29, %v7129_v32  ;;  %v1917_v25 = vmul.f32 %v1911_v29, %v7135_v35  ;;  %v1918_v28 = vmul.f32 %v1911_v29, %v7137_v9  ;;  %v1919_v2 = vmul.f32 %v1911_v29, %v7139_v45 }
 0x1ac   :  { %v7172_v48 = vadd.f32 %v1893_v43, %v7000_v62  ;;  %v7175_v26 = vadd.f32 %v1912_v30, %v7011_v34  ;;  %v7178_v59 = vadd.f32 %v1913_v39, %v7014_v57  ;;  %v7181_v19 = vadd.f32 %v1914_v11, %v7017_v33 }
 0x1ad   :  { %v7184_v42 = vadd.f32 %v1915_v10, %v7020_v56  ;;  %v7187_v60 = vadd.f32 %v1916_v13, %v7023_v37  ;;  %v7190_v29 = vadd.f32 %v1917_v25, %v7026_v15  ;;  %v7193_v62 = vadd.f32 %v1918_v28, %v7029_v36 }
 0x1ae   :  { %v1930_v34 = vmul.f32 %v1929_v31, %v7117_v44  ;;  %v1931_v57 = vmul.f32 %v1929_v31, %v7119_v61  ;;  %v1932_v33 = vmul.f32 %v1929_v31, %v7125_v17  ;;  %v1933_v56 = vmul.f32 %v1929_v31, %v7127_v63 }
 0x1af   :  { %v7206_v37 = vadd.f32 %v1919_v2, %v7034_v53  ;;  %v1934_v15 = vmul.f32 %v1929_v31, %v7129_v32  ;;  %v1935_v36 = vmul.f32 %v1929_v31, %v7135_v35  ;;  %v1936_v1 = vmul.f32 %v1929_v31, %v7137_v9 }
 0x1b0   :  { %v1937_v24 = vmul.f32 %v1929_v31, %v7139_v45  ;;  %v7213_v12 = vadd.f32 %v1930_v34, %v7051_v51  ;;  %v7216_v27 = vadd.f32 %v1931_v57, %v7054_v38  ;;  %v7219_v20 = vadd.f32 %v1932_v33, %v7057_v5  ;;  %v7279_v33 = vld [vmem:[#allocation2 + $0xe] sm:$0xff] }
 0x1b1   :  { %v7222_v53 = vadd.f32 %v1933_v56, %v7060_v7  ;;  %v7225_v52 = vadd.f32 %v1934_v15, %v7063_v14  ;;  %v7228_v43 = vadd.f32 %v1935_v36, %v7066_v21  ;;  %v7231_v31 = vadd.f32 %v1936_v1, %v7069_v18  ;;  %v7291_v1 = vld [vmem:[#allocation2 + $0x2e] sm:$0xff] }
 0x1b2   :  { %v1948_v51 = vmul.f32 %v1947_v3, %v7117_v44  ;;  %v1949_v38 = vmul.f32 %v1947_v3, %v7119_v61  ;;  %v1950_v5 = vmul.f32 %v1947_v3, %v7125_v17  ;;  %v1951_v7 = vmul.f32 %v1947_v3, %v7127_v63 }
 0x1b3   :  { %v1952_v14 = vmul.f32 %v1947_v3, %v7129_v32  ;;  %v1953_v21 = vmul.f32 %v1947_v3, %v7135_v35  ;;  %v1954_v18 = vmul.f32 %v1947_v3, %v7137_v9  ;;  %v1955_v30 = vmul.f32 %v1947_v3, %v7139_v45 }
 0x1b4   :  { %v7244_v39 = vadd.f32 %v1937_v24, %v7072_v22  ;;  %v7247_v11 = vadd.f32 %v1948_v51, %v7091_v54  ;;  %v7250_v10 = vadd.f32 %v1949_v38, %v7094_v47  ;;  %v7253_v13 = vadd.f32 %v1950_v5, %v7097_v8  ;;  %v7273_v8 = vld [vmem:[#allocation2 + $0x6] sm:$0xff]  ;;  %v7305_v51 = vld [vmem:[#allocation2 + $0x3e] sm:$0xff] }
 0x1b5   :  { %v7256_v25 = vadd.f32 %v1951_v7, %v7100_v41  ;;  %v7259_v28 = vadd.f32 %v1952_v14, %v7103_v4  ;;  %v7262_v3 = vadd.f32 %v1953_v21, %v7106_v50  ;;  %v7265_v22 = vadd.f32 %v1954_v18, %v7109_v16  ;;  %v7281_v16 = vld [vmem:[#allocation2 + $0x16] sm:$0xff] }
 0x1b6   :  { %v7268_v54 = vadd.f32 %v1955_v30, %v7112_v40  ;;  %v1965_v47 = vstv %s7201_s5  ;;  %v1991_v2 = vstv %s7195_s30  ;;  %v2009_v34 = vstv %s7203_s6  ;;  %v7283_v40 = vld [vmem:[#allocation2 + $0x1e] sm:$0xff]  ;;  %s8018_s5 = sld [smem:[#allocation4 + $0x55]]  ;;  %s8662_s30 = sld [smem:[#allocation4 + $0x6f]] }
 0x1b7   :  { %v1966_v41 = vmul.f32 %v1965_v47, %v7117_v44  ;;  %v1967_v57 = vmul.f32 %v1965_v47, %v7119_v61  ;;  %v1968_v4 = vmul.f32 %v1965_v47, %v7125_v17  ;;  %v1969_v50 = vmul.f32 %v1965_v47, %v7127_v63  ;;  %v7289_v61 = vld [vmem:[#allocation2 + $0x26] sm:$0xff]  ;;  %v7293_v17 = vld [vmem:[#allocation2 + $0x36] sm:$0xff]  ;;  %s8666_s6 = sld [smem:[#allocation4 + $0x99]] }
 0x1b8   :  { %v1970_v56 = vmul.f32 %v1965_v47, %v7129_v32  ;;  %v1971_v15 = vmul.f32 %v1965_v47, %v7135_v35  ;;  %v1972_v36 = vmul.f32 %v1965_v47, %v7137_v9  ;;  %v1973_v44 = vmul.f32 %v1965_v47, %v7139_v45 }
 0x1b9   :  { %v7296_v63 = vadd.f32 %v1966_v41, %v7143_v46  ;;  %v7299_v24 = vadd.f32 %v1967_v57, %v7146_v49  ;;  %v7302_v32 = vadd.f32 %v1968_v4, %v7149_v55  ;;  %v2027_v35 = vstv %s7233_s7  ;;  %s8668_s7 = sld [smem:[#allocation4 + $0x5b]] }
 0x1ba   :  { %v7308_v9 = vadd.f32 %v1969_v50, %v7152_v6  ;;  %v7311_v45 = vadd.f32 %v1970_v56, %v7155_v0  ;;  %v7314_v38 = vadd.f32 %v1971_v15, %v7158_v23  ;;  %v7317_v46 = vadd.f32 %v1972_v36, %v7161_v58 }
 0x1bb   :  { %v7320_v49 = vadd.f32 %v1973_v44, %v7172_v48  ;;  %v1992_v55 = vmul.f32 %v1991_v2, %v7273_v8  ;;  %v1993_v5 = vmul.f32 %v1991_v2, %v7279_v33  ;;  %v1994_v7 = vmul.f32 %v1991_v2, %v7281_v16 }
 0x1bc   :  { %v1995_v6 = vmul.f32 %v1991_v2, %v7283_v40  ;;  %v1996_v0 = vmul.f32 %v1991_v2, %v7289_v61  ;;  %v1997_v14 = vmul.f32 %v1991_v2, %v7291_v1  ;;  %v1998_v23 = vmul.f32 %v1991_v2, %v7293_v17 }
 0x1bd   :  { %v1999_v58 = vmul.f32 %v1991_v2, %v7305_v51  ;;  %v7331_v21 = vadd.f32 %v1992_v55, %v7175_v26  ;;  %v7334_v48 = vadd.f32 %v1993_v5, %v7178_v59  ;;  %v7337_v18 = vadd.f32 %v1994_v7, %v7181_v19 }
 0x1be   :  { %v7340_v30 = vadd.f32 %v1995_v6, %v7184_v42  ;;  %v7343_v47 = vadd.f32 %v1996_v0, %v7187_v60  ;;  %v7346_v41 = vadd.f32 %v1997_v14, %v7190_v29  ;;  %v7349_v2 = vadd.f32 %v1998_v23, %v7193_v62 }
 0x1bf   :  { %v7354_v26 = vadd.f32 %v1999_v58, %v7206_v37  ;;  %v2010_v59 = vmul.f32 %v2009_v34, %v7273_v8  ;;  %v2011_v19 = vmul.f32 %v2009_v34, %v7279_v33  ;;  %v2012_v42 = vmul.f32 %v2009_v34, %v7281_v16 }
 0x1c0   :  { %v2013_v60 = vmul.f32 %v2009_v34, %v7283_v40  ;;  %v2014_v29 = vmul.f32 %v2009_v34, %v7289_v61  ;;  %v2015_v62 = vmul.f32 %v2009_v34, %v7291_v1  ;;  %v2016_v57 = vmul.f32 %v2009_v34, %v7293_v17 }
 0x1c1   :  { %v2017_v37 = vmul.f32 %v2009_v34, %v7305_v51  ;;  %v7371_v4 = vadd.f32 %v2010_v59, %v7213_v12  ;;  %v7374_v50 = vadd.f32 %v2011_v19, %v7216_v27  ;;  %v7377_v56 = vadd.f32 %v2012_v42, %v7219_v20 }
 0x1c2   :  { %v7380_v15 = vadd.f32 %v2013_v60, %v7222_v53  ;;  %v7383_v36 = vadd.f32 %v2014_v29, %v7225_v52  ;;  %v7386_v44 = vadd.f32 %v2015_v62, %v7228_v43  ;;  %v7389_v34 = vadd.f32 %v2016_v57, %v7231_v31  ;;  %v7441_v60 = vld [vmem:[#allocation2 + $0x66] sm:$0xff]  ;;  %v7447_v57 = vld [vmem:[#allocation2 + $0x6e] sm:$0xff] }
 0x1c3   :  { %v7392_v12 = vadd.f32 %v2017_v37, %v7244_v39  ;;  %v2028_v27 = vmul.f32 %v2027_v35, %v7273_v8  ;;  %v2029_v20 = vmul.f32 %v2027_v35, %v7279_v33  ;;  %v2030_v53 = vmul.f32 %v2027_v35, %v7281_v16 }
 0x1c4   :  { %v2031_v52 = vmul.f32 %v2027_v35, %v7283_v40  ;;  %v2032_v43 = vmul.f32 %v2027_v35, %v7289_v61  ;;  %v2033_v55 = vmul.f32 %v2027_v35, %v7291_v1  ;;  %v2034_v31 = vmul.f32 %v2027_v35, %v7293_v17 }
 0x1c5   :  { %v2035_v39 = vmul.f32 %v2027_v35, %v7305_v51  ;;  %v7403_v5 = vadd.f32 %v2028_v27, %v7247_v11  ;;  %v7406_v7 = vadd.f32 %v2029_v20, %v7250_v10  ;;  %v7409_v6 = vadd.f32 %v2030_v53, %v7253_v13  ;;  %v7429_v13 = vld [vmem:[#allocation2 + $0x4e] sm:$0xff] }
 0x1c6   :  { %v7412_v0 = vadd.f32 %v2031_v52, %v7256_v25  ;;  %v7415_v14 = vadd.f32 %v2032_v43, %v7259_v28  ;;  %v7418_v23 = vadd.f32 %v2033_v55, %v7262_v3  ;;  %v7421_v35 = vadd.f32 %v2034_v31, %v7265_v22  ;;  %v7437_v3 = vld [vmem:[#allocation2 + $0x56] sm:$0xff]  ;;  %v7439_v22 = vld [vmem:[#allocation2 + $0x5e] sm:$0xff] }
 0x1c7   :  { %v7424_v11 = vadd.f32 %v2035_v39, %v7268_v54  ;;  %v2045_v10 = vstv %s7351_s8  ;;  %v2071_v58 = vstv %s7359_s9  ;;  %v2089_v59 = vstv %s7361_s10  ;;  %s8772_s8 = sld [smem:[#allocation4 + $0x70]]  ;;  %s8777_s9 = sld [smem:[#allocation4 + $0x85]] }
 0x1c8   :  { %v2046_v25 = vmul.f32 %v2045_v10, %v7273_v8  ;;  %v2047_v19 = vmul.f32 %v2045_v10, %v7279_v33  ;;  %v2048_v28 = vmul.f32 %v2045_v10, %v7281_v16  ;;  %v7435_v42 = vstv %s7367_s11  ;;  %v7449_v33 = vld [vmem:[#allocation2 + $0x76] sm:$0xff]  ;;  %v7451_v16 = vld [vmem:[#allocation2 + $0x7e] sm:$0xff]  ;;  %s7959_s11 = sld [smem:[#allocation4 + $0x7e]]  ;;  %s8779_s10 = sld [smem:[#allocation4 + $0x9a]] }
 0x1c9   :  { %v2049_v54 = vmul.f32 %v2045_v10, %v7283_v40  ;;  %v2050_v29 = vmul.f32 %v2045_v10, %v7289_v61  ;;  %v2051_v62 = vmul.f32 %v2045_v10, %v7291_v1  ;;  %v2052_v8 = vmul.f32 %v2045_v10, %v7293_v17  ;;  %v7463_v61 = vld [vmem:[#allocation2 + $0x86] sm:$0xff] }
 0x1ca   :  { %v2053_v37 = vmul.f32 %v2045_v10, %v7305_v51  ;;  %v7455_v27 = vadd.f32 %v2046_v25, %v7296_v63  ;;  %v7458_v20 = vadd.f32 %v2047_v19, %v7299_v24  ;;  %v7461_v40 = vadd.f32 %v2048_v28, %v7302_v32 }
 0x1cb   :  { %v7466_v1 = vadd.f32 %v2049_v54, %v7308_v9  ;;  %v7469_v17 = vadd.f32 %v2050_v29, %v7311_v45  ;;  %v7472_v53 = vadd.f32 %v2051_v62, %v7314_v38  ;;  %v7475_v63 = vadd.f32 %v2052_v8, %v7317_v46 }
 0x1cc   :  { %v7478_v24 = vadd.f32 %v2053_v37, %v7320_v49  ;;  %v2072_v32 = vmul.f32 %v2071_v58, %v7429_v13  ;;  %v2073_v51 = vmul.f32 %v2071_v58, %v7437_v3  ;;  %v2074_v52 = vmul.f32 %v2071_v58, %v7439_v22 }
 0x1cd   :  { %v2075_v9 = vmul.f32 %v2071_v58, %v7441_v60  ;;  %v2076_v45 = vmul.f32 %v2071_v58, %v7447_v57  ;;  %v2077_v43 = vmul.f32 %v2071_v58, %v7449_v33  ;;  %v2078_v38 = vmul.f32 %v2071_v58, %v7451_v16 }
 0x1ce   :  { %v2079_v46 = vmul.f32 %v2071_v58, %v7463_v61  ;;  %v7489_v55 = vadd.f32 %v2072_v32, %v7331_v21  ;;  %v7492_v49 = vadd.f32 %v2073_v51, %v7334_v48  ;;  %v7495_v31 = vadd.f32 %v2074_v52, %v7337_v18 }
 0x1cf   :  { %v7498_v39 = vadd.f32 %v2075_v9, %v7340_v30  ;;  %v7501_v10 = vadd.f32 %v2076_v45, %v7343_v47  ;;  %v7504_v25 = vadd.f32 %v2077_v43, %v7346_v41  ;;  %v7507_v58 = vadd.f32 %v2078_v38, %v7349_v2 }
 0x1d0   :  { %v7512_v21 = vadd.f32 %v2079_v46, %v7354_v26  ;;  %v2090_v48 = vmul.f32 %v2089_v59, %v7429_v13  ;;  %v2091_v18 = vmul.f32 %v2089_v59, %v7437_v3  ;;  %v2092_v30 = vmul.f32 %v2089_v59, %v7439_v22 }
 0x1d1   :  { %v2093_v47 = vmul.f32 %v2089_v59, %v7441_v60  ;;  %v2094_v41 = vmul.f32 %v2089_v59, %v7447_v57  ;;  %v2095_v2 = vmul.f32 %v2089_v59, %v7449_v33  ;;  %v2096_v19 = vmul.f32 %v2089_v59, %v7451_v16 }
 0x1d2   :  { %v2097_v26 = vmul.f32 %v2089_v59, %v7463_v61  ;;  %v7529_v28 = vadd.f32 %v2090_v48, %v7371_v4  ;;  %v7532_v54 = vadd.f32 %v2091_v18, %v7374_v50  ;;  %v7535_v29 = vadd.f32 %v2092_v30, %v7377_v56  ;;  %v7597_v18 = vld [vmem:[#allocation2 + $0x9e] sm:$0xff] }
 0x1d3   :  { %v7538_v62 = vadd.f32 %v2093_v47, %v7380_v15  ;;  %v7541_v8 = vadd.f32 %v2094_v41, %v7383_v36  ;;  %v7544_v37 = vadd.f32 %v2095_v2, %v7386_v44  ;;  %v7547_v59 = vadd.f32 %v2096_v19, %v7389_v34  ;;  %v7603_v47 = vld [vmem:[#allocation2 + $0xa6] sm:$0xff] }
 0x1d4   :  { %v7550_v4 = vadd.f32 %v2097_v26, %v7392_v12  ;;  %v2108_v50 = vmul.f32 %v7435_v42, %v7429_v13  ;;  %v2109_v56 = vmul.f32 %v7435_v42, %v7437_v3  ;;  %v2110_v15 = vmul.f32 %v7435_v42, %v7439_v22 }
 0x1d5   :  { %v2111_v36 = vmul.f32 %v7435_v42, %v7441_v60  ;;  %v2112_v44 = vmul.f32 %v7435_v42, %v7447_v57  ;;  %v2113_v34 = vmul.f32 %v7435_v42, %v7449_v33  ;;  %v2114_v12 = vmul.f32 %v7435_v42, %v7451_v16 }
 0x1d6   :  { %v2115_v32 = vmul.f32 %v7435_v42, %v7463_v61  ;;  %v7569_v51 = vadd.f32 %v2108_v50, %v7403_v5  ;;  %v7572_v52 = vadd.f32 %v2109_v56, %v7406_v7  ;;  %v7575_v9 = vadd.f32 %v2110_v15, %v7409_v6  ;;  %v7595_v6 = vld [vmem:[#allocation2 + $0x96] sm:$0xff] }
 0x1d7   :  { %v7578_v45 = vadd.f32 %v2111_v36, %v7412_v0  ;;  %v7581_v43 = vadd.f32 %v2112_v44, %v7415_v14  ;;  %v7584_v38 = vadd.f32 %v2113_v34, %v7418_v23  ;;  %v7587_v42 = vadd.f32 %v2114_v12, %v7421_v35  ;;  %v7605_v35 = vld [vmem:[#allocation2 + $0xae] sm:$0xff] }
 0x1d8   :  { %v7590_v5 = vadd.f32 %v2115_v32, %v7424_v11  ;;  %v2125_v7 = vstv %s7509_s12  ;;  %v2151_v46 = vstv %s7517_s13  ;;  %v2169_v48 = vstv %s7519_s14  ;;  %v7607_v11 = vld [vmem:[#allocation2 + $0xb6] sm:$0xff]  ;;  %s7961_s12 = sld [smem:[#allocation4 + $0x93]]  ;;  %s8781_s13 = sld [smem:[#allocation4 + $0x5c]] }
 0x1d9   :  { %v2126_v0 = vmul.f32 %v2125_v7, %v7429_v13  ;;  %v2127_v14 = vmul.f32 %v2125_v7, %v7437_v3  ;;  %v2128_v23 = vmul.f32 %v2125_v7, %v7439_v22  ;;  %v2187_v30 = vstv %s7525_s15  ;;  %v7613_v13 = vld [vmem:[#allocation2 + $0xbe] sm:$0xff]  ;;  %v7615_v3 = vld [vmem:[#allocation2 + $0xc6] sm:$0xff]  ;;  %v7617_v22 = vld [vmem:[#allocation2 + $0xce] sm:$0xff]  ;;  %s8890_s14 = sld [smem:[#allocation4 + $0x71]]  ;;  %s8895_s15 = sld [smem:[#allocation4 + $0x86]] }
 0x1da   :  { %v2129_v41 = vmul.f32 %v2125_v7, %v7441_v60  ;;  %v2130_v2 = vmul.f32 %v2125_v7, %v7447_v57  ;;  %v2131_v19 = vmul.f32 %v2125_v7, %v7449_v33  ;;  %v2132_v26 = vmul.f32 %v2125_v7, %v7451_v16 }
 0x1db   :  { %v2133_v50 = vmul.f32 %v2125_v7, %v7463_v61  ;;  %v7621_v56 = vadd.f32 %v2126_v0, %v7455_v27  ;;  %v7624_v15 = vadd.f32 %v2127_v14, %v7458_v20  ;;  %v7627_v60 = vadd.f32 %v2128_v23, %v7461_v40  ;;  %v10956_v7 = vld [vmem:[#allocation13_spill] sm:$0xff] }
 0x1dc   :  { %v7630_v57 = vadd.f32 %v2129_v41, %v7466_v1  ;;  %v7633_v33 = vadd.f32 %v2130_v2, %v7469_v17  ;;  %v7636_v16 = vadd.f32 %v2131_v19, %v7472_v53  ;;  %v7639_v61 = vadd.f32 %v2132_v26, %v7475_v63 }
 0x1dd   :  { %v2152_v27 = vmul.f32 %v2151_v46, %v7595_v6  ;;  %v2153_v20 = vmul.f32 %v2151_v46, %v7597_v18  ;;  %v2154_v36 = vmul.f32 %v2151_v46, %v7603_v47  ;;  %v2155_v40 = vmul.f32 %v2151_v46, %v7605_v35 }
 0x1de   :  { %v2156_v1 = vmul.f32 %v2151_v46, %v7607_v11  ;;  %v2157_v44 = vmul.f32 %v2151_v46, %v7613_v13  ;;  %v2158_v17 = vmul.f32 %v2151_v46, %v7615_v3  ;;  %v2159_v53 = vmul.f32 %v2151_v46, %v7617_v22 }
 0x1df   :  { %v7650_v34 = vadd.f32 %v2133_v50, %v7478_v24  ;;  %v7653_v63 = vadd.f32 %v2152_v27, %v7489_v55  ;;  %v7656_v12 = vadd.f32 %v2153_v20, %v7492_v49  ;;  %v7659_v32 = vadd.f32 %v2154_v36, %v7495_v31 }
 0x1e0   :  { %vm531_vm3 = vcmp.ge.s32.totalorder %v10956_v7, 1  ;;  %vm532_vm4 = vcmp.le.s32.totalorder %v10956_v7, 64  ;;  %v7664_v0 = vadd.f32 %v2155_v40, %v7498_v39  ;;  %v7667_v46 = vadd.f32 %v2156_v1, %v7501_v10 }
 0x1e1   :  { %v7670_v24 = vadd.f32 %v2157_v44, %v7504_v25  ;;  %v7673_v55 = vadd.f32 %v2158_v17, %v7507_v58  ;;  %v2170_v49 = vmul.f32 %v2169_v48, %v7595_v6  ;;  %v2171_v31 = vmul.f32 %v2169_v48, %v7597_v18  ;;  %vm7762_vm6 = vmand %vm531_vm3, %vm532_vm4 }
 0x1e2   :  { %v2172_v14 = vmul.f32 %v2169_v48, %v7603_v47  ;;  %v2173_v23 = vmul.f32 %v2169_v48, %v7605_v35  ;;  %v7684_v39 = vadd.f32 %v2159_v53, %v7512_v21  ;;  %v2174_v10 = vmul.f32 %v2169_v48, %v7607_v11 }
 0x1e3   :  { %v2175_v25 = vmul.f32 %v2169_v48, %v7613_v13  ;;  %v2176_v58 = vmul.f32 %v2169_v48, %v7615_v3  ;;  %v2177_v41 = vmul.f32 %v2169_v48, %v7617_v22  ;;  %v7691_v2 = vadd.f32 %v2170_v49, %v7529_v28 }
 0x1e4   :  { %v7694_v19 = vadd.f32 %v2171_v31, %v7532_v54  ;;  %v7697_v26 = vadd.f32 %v2172_v14, %v7535_v29  ;;  %v7700_v21 = vadd.f32 %v2173_v23, %v7538_v62  ;;  %v7703_v50 = vadd.f32 %v2174_v10, %v7541_v8 }
 0x1e5   :  { %v7706_v27 = vadd.f32 %v2175_v25, %v7544_v37  ;;  %v7709_v48 = vadd.f32 %v2176_v58, %v7547_v59  ;;  %v2188_v28 = vmul.f32 %v2187_v30, %v7595_v6  ;;  %v2189_v54 = vmul.f32 %v2187_v30, %v7597_v18 }
 0x1e6   :  { %v2190_v20 = vmul.f32 %v2187_v30, %v7603_v47  ;;  %v2191_v29 = vmul.f32 %v2187_v30, %v7605_v35  ;;  %v2192_v62 = vmul.f32 %v2187_v30, %v7607_v11  ;;  %v2193_v8 = vmul.f32 %v2187_v30, %v7613_v13 }
 0x1e7   :  { %v2194_v37 = vmul.f32 %v2187_v30, %v7615_v3  ;;  %v2195_v36 = vmul.f32 %v2187_v30, %v7617_v22  ;;  %v7720_v59 = vadd.f32 %v2177_v41, %v7550_v4  ;;  %v7723_v40 = vadd.f32 %v2188_v28, %v7569_v51 }
 0x1e8   :  { %v7726_v1 = vadd.f32 %v2189_v54, %v7572_v52  ;;  %v7729_v44 = vadd.f32 %v2190_v20, %v7575_v9  ;;  %v7734_v17 = vadd.f32 %v2191_v29, %v7578_v45  ;;  %v7737_v53 = vadd.f32 %v2192_v62, %v7581_v43 }
 0x1e9   :  { %v7740_v4 = vadd.f32 %v2193_v8, %v7584_v38  ;;  %v7743_v51 = vadd.f32 %v2194_v37, %v7587_v42  ;;  %v7750_v52 = vadd.f32 %v2195_v36, %v7590_v5  ;;  %v2205_v9 = vstv %s7679_s16  ;;  %s8318_s16 = sld [smem:[#allocation4 + $0x6c]] }
 0x1ea   :  { %v2223_v30 = vstv %s7681_s17  ;;  %v2206_v45 = vmul.f32 %v2205_v9, %v7595_v6  ;;  %v2207_v43 = vmul.f32 %v2205_v9, %v7597_v18  ;;  %v2208_v38 = vmul.f32 %v2205_v9, %v7603_v47  ;;  %s8320_s17 = sld [smem:[#allocation4 + $0x81]] }
 0x1eb   :  { %v2209_v49 = vmul.f32 %v2205_v9, %v7605_v35  ;;  %v2210_v5 = vmul.f32 %v2205_v9, %v7607_v11  ;;  %v2211_v31 = vmul.f32 %v2205_v9, %v7613_v13  ;;  %v2212_v6 = vmul.f32 %v2205_v9, %v7615_v3 }
 0x1ec   :  { %v2213_v18 = vmul.f32 %v2205_v9, %v7617_v22  ;;  %v7771_v47 = vadd.f32 %v2206_v45, %v7621_v56  ;;  %v7774_v35 = vadd.f32 %v2207_v43, %v7624_v15  ;;  %v7777_v7 = vadd.f32 %v2208_v38, %v7627_v60  ;;  %v4315_v9 = vld [vmem:[#allocation2 + $0x18] sm:$0xff]  ;;  %v4316_v45 = vld [vmem:[#allocation2 + $0x20] sm:$0xff]  ;;  %v4317_v38 = vld [vmem:[#allocation2 + $0x28] sm:$0xff] }
 0x1ed   :  { %v7780_v14 = vadd.f32 %v2209_v49, %v7630_v57  ;;  %v7783_v11 = vadd.f32 %v2210_v5, %v7633_v33  ;;  %v7786_v13 = vadd.f32 %v2211_v31, %v7636_v16  ;;  %v7789_v3 = vadd.f32 %v2212_v6, %v7639_v61  ;;  %v4318_v5 = vld [vmem:[#allocation2 + $0x30] sm:$0xff]  ;;  %v4319_v6 = vld [vmem:[#allocation2 + $0x38] sm:$0xff] }
 0x1ee   :  { %v2224_v22 = vsel %vm7762_vm6, %v7653_v63, %v2223_v30  ;;  %v2225_v56 = vsel %vm7762_vm6, %v7656_v12, %v2223_v30  ;;  %v2226_v15 = vsel %vm7762_vm6, %v7659_v32, %v2223_v30  ;;  %v2227_v60 = vsel %vm7762_vm6, %v7664_v0, %v2223_v30 }
 0x1ef   :  { %v2228_v57 = vsel %vm7762_vm6, %v7667_v46, %v2223_v30  ;;  %v2229_v33 = vsel %vm7762_vm6, %v7670_v24, %v2223_v30  ;;  %v2230_v16 = vsel %vm7762_vm6, %v7673_v55, %v2223_v30  ;;  %v2231_v61 = vsel %vm7762_vm6, %v7684_v39, %v2223_v30  ;;  %2233 = vst.msk [vmem:[%s10646_s4] sm:$0xff] %vm2232_vm5, %v2224_v22 }
 0x1f0   :  { %2234 = vst.msk [vmem:[%s10646_s4 + $0x8] sm:$0xff] %vm2232_vm5, %v2225_v56  ;;  %2235 = vst.msk [vmem:[%s10646_s4 + $0x10] sm:$0xff] %vm2232_vm5, %v2226_v15  ;;  %v2221_v63 = vadd.f32 %v2213_v18, %v7650_v34  ;;  %v2243_v34 = vstv %s7731_s18  ;;  %v2262_v12 = vstv %s7745_s3  ;;  %s7899_s3 = sld [smem:[#allocation6 + $0x7]]  ;;  %s8322_s18 = sld [smem:[#allocation4 + $0x96]] }
 0x1f1   :  { %2236 = vst.msk [vmem:[%s10646_s4 + $0x18] sm:$0xff] %vm2232_vm5, %v2227_v60  ;;  %2237 = vst.msk [vmem:[%s10646_s4 + $0x20] sm:$0xff] %vm2232_vm5, %v2228_v57  ;;  %v2281_v32 = vstv %s7747_s19  ;;  %v2244_v0 = vsel %vm7762_vm6, %v7691_v2, %v2243_v34  ;;  %v2245_v46 = vsel %vm7762_vm6, %v7694_v19, %v2243_v34  ;;  %v2246_v24 = vsel %vm7762_vm6, %v7697_v26, %v2243_v34  ;;  %s8324_s19 = sld [smem:[#allocation4 + $0x58]] }
 0x1f2   :  { %2238 = vst.msk [vmem:[%s10646_s4 + $0x28] sm:$0xff] %vm2232_vm5, %v2229_v33  ;;  %2239 = vst.msk [vmem:[%s10646_s4 + $0x30] sm:$0xff] %vm2232_vm5, %v2230_v16  ;;  %v2247_v55 = vsel %vm7762_vm6, %v7700_v21, %v2243_v34  ;;  %v2248_v23 = vsel %vm7762_vm6, %v7703_v50, %v2243_v34  ;;  %v2249_v39 = vsel %vm7762_vm6, %v7706_v27, %v2243_v34  ;;  %v2300_v36 = vstv %s7803_s20  ;;  %s8102_s20 = sld [smem:[#allocation4 + $0x6a]] }
 0x1f3   :  { %2241 = vst.msk [vmem:[%s10646_s4 + $0x38] sm:$0x3] %vm2240_vm7, %v2231_v61  ;;  %v2250_v10 = vsel %vm7762_vm6, %v7709_v48, %v2243_v34  ;;  %v2251_v25 = vsel %vm7762_vm6, %v7720_v59, %v2243_v34  ;;  %v2263_v58 = vsel %vm7762_vm6, %v7723_v40, %v2262_v12  ;;  %v2264_v41 = vsel %vm7762_vm6, %v7726_v1, %v2262_v12 }
 0x1f4   :  { %4156 = vst.msk [vmem:[%s10646_s4 + $0x40] sm:$0xff] %vm2232_vm5, %v2244_v0  ;;  %4157 = vst.msk [vmem:[%s10646_s4 + $0x48] sm:$0xff] %vm2232_vm5, %v2245_v46  ;;  %v2265_v2 = vsel %vm7762_vm6, %v7729_v44, %v2262_v12  ;;  %v2266_v19 = vsel %vm7762_vm6, %v7734_v17, %v2262_v12  ;;  %v2267_v26 = vsel %vm7762_vm6, %v7737_v53, %v2262_v12  ;;  %v2302_v59 = vstv %s7805_s21  ;;  %v4312_v44 = vld [vmem:[#allocation2] sm:$0xff]  ;;  %v4313_v53 = vld [vmem:[#allocation2 + $0x8] sm:$0xff]  ;;  %s8104_s21 = sld [smem:[#allocation4 + $0x7f]] }
 0x1f5   :  { %4158 = vst.msk [vmem:[%s10646_s4 + $0x50] sm:$0xff] %vm2232_vm5, %v2246_v24  ;;  %4159 = vst.msk [vmem:[%s10646_s4 + $0x58] sm:$0xff] %vm2232_vm5, %v2247_v55  ;;  %v2268_v21 = vsel %vm7762_vm6, %v7740_v4, %v2262_v12  ;;  %v2269_v50 = vsel %vm7762_vm6, %v7743_v51, %v2262_v12  ;;  %v2270_v27 = vsel %vm7762_vm6, %v7750_v52, %v2262_v12  ;;  %v8039_v40 = vstv %s7835_s28  ;;  %v4314_v51 = vld [vmem:[#allocation2 + $0x10] sm:$0xff]  ;;  %s8106_s28 = sld [smem:[#allocation4 + $0x94]] }
 0x1f6   :  { %4160 = vst.msk [vmem:[%s10646_s4 + $0x60] sm:$0xff] %vm2232_vm5, %v2248_v23  ;;  %4161 = vst.msk [vmem:[%s10646_s4 + $0x68] sm:$0xff] %vm2232_vm5, %v2249_v39  ;;  %v2282_v48 = vsel %vm7762_vm6, %v7771_v47, %v2281_v32  ;;  %v2283_v28 = vsel %vm7762_vm6, %v7774_v35, %v2281_v32  ;;  %v2284_v54 = vsel %vm7762_vm6, %v7777_v7, %v2281_v32  ;;  %v2316_v1 = vstv %s7837_s29  ;;  %s8120_s29 = sld [smem:[#allocation4 + $0x56]] }
 0x1f7   :  { %4162 = vst.msk [vmem:[%s10646_s4 + $0x70] sm:$0xff] %vm2232_vm5, %v2250_v10  ;;  %4165 = vst.msk [vmem:[%s10646_s4 + $0x80] sm:$0xff] %vm2232_vm5, %v2263_v58  ;;  %v2285_v20 = vsel %vm7762_vm6, %v7780_v14, %v2281_v32  ;;  %v2286_v29 = vsel %vm7762_vm6, %v7783_v11, %v2281_v32  ;;  %v2287_v62 = vsel %vm7762_vm6, %v7786_v13, %v2281_v32  ;;  %v8043_v47 = vstv %s7899_s3  ;;  %s8210_s3 = sld [smem:[#allocation4 + $0x6b]] }
 0x1f8   :  { %4163 = vst.msk [vmem:[%s10646_s4 + $0x78] sm:$0x3] %vm2240_vm7, %v2251_v25  ;;  %4172 = vst.msk [vmem:[%s10646_s4 + $0xb8] sm:$0x3] %vm2240_vm7, %v2270_v27  ;;  %v2288_v8 = vsel %vm7762_vm6, %v7789_v3, %v2281_v32  ;;  %v2289_v37 = vsel %vm7762_vm6, %v2221_v63, %v2281_v32  ;;  %v2317_v17 = vmul.f32 %v4312_v44, %v2316_v1  ;;  %v2334_v15 = vstv %s7929_s27  ;;  %s8212_s27 = sld [smem:[#allocation4 + $0x80]] }
 0x1f9   :  { %4166 = vst.msk [vmem:[%s10646_s4 + $0x88] sm:$0xff] %vm2232_vm5, %v2264_v41  ;;  %4167 = vst.msk [vmem:[%s10646_s4 + $0x90] sm:$0xff] %vm2232_vm5, %v2265_v2  ;;  %v2318_v4 = vmul.f32 %v4313_v53, %v2316_v1  ;;  %v2319_v52 = vmul.f32 %v4314_v51, %v2316_v1  ;;  %v2320_v30 = vmul.f32 %v4315_v9, %v2316_v1  ;;  %v2352_v60 = vstv %s7959_s11  ;;  %s8214_s11 = sld [smem:[#allocation4 + $0x95]] }
 0x1fa   :  { %4168 = vst.msk [vmem:[%s10646_s4 + $0x98] sm:$0xff] %vm2232_vm5, %v2266_v19  ;;  %4169 = vst.msk [vmem:[%s10646_s4 + $0xa0] sm:$0xff] %vm2232_vm5, %v2267_v26  ;;  %v2321_v43 = vmul.f32 %v4316_v45, %v2316_v1  ;;  %v2322_v49 = vmul.f32 %v4317_v38, %v2316_v1  ;;  %v2323_v31 = vmul.f32 %v4318_v5, %v2316_v1  ;;  %v2370_v57 = vstv %s7961_s12  ;;  %s8240_s12 = sld [smem:[#allocation4 + $0x57]] }
 0x1fb   :  { %4170 = vst.msk [vmem:[%s10646_s4 + $0xa8] sm:$0xff] %vm2232_vm5, %v2268_v21  ;;  %4171 = vst.msk [vmem:[%s10646_s4 + $0xb0] sm:$0xff] %vm2232_vm5, %v2269_v50  ;;  %v2324_v18 = vmul.f32 %v4319_v6, %v2316_v1  ;;  %v8045_v35 = vadd.f32 %v2317_v17, %v2300_v36  ;;  %v8047_v7 = vadd.f32 %v2318_v4, %v2300_v36  ;;  %v2396_v0 = vstv %s8018_s5  ;;  %s8664_s5 = sld [smem:[#allocation4 + $0x84]] }
 0x1fc   :  { %4174 = vst.msk [vmem:[%s10646_s4 + $0xc0] sm:$0xff] %vm2232_vm5, %v2282_v48  ;;  %4175 = vst.msk [vmem:[%s10646_s4 + $0xc8] sm:$0xff] %vm2232_vm5, %v2283_v28  ;;  %v8049_v14 = vadd.f32 %v2319_v52, %v2300_v36  ;;  %v8051_v11 = vadd.f32 %v2320_v30, %v2300_v36  ;;  %v8053_v13 = vadd.f32 %v2321_v43, %v2300_v36 }
 0x1fd   :  { %4176 = vst.msk [vmem:[%s10646_s4 + $0xd0] sm:$0xff] %vm2232_vm5, %v2284_v54  ;;  %4177 = vst.msk [vmem:[%s10646_s4 + $0xd8] sm:$0xff] %vm2232_vm5, %v2285_v20  ;;  %v8055_v3 = vadd.f32 %v2322_v49, %v2300_v36  ;;  %v8057_v22 = vadd.f32 %v2323_v31, %v2300_v36  ;;  %v8059_v56 = vadd.f32 %v2324_v18, %v2300_v36 }
 0x1fe   :  { %4178 = vst.msk [vmem:[%s10646_s4 + $0xe0] sm:$0xff] %vm2232_vm5, %v2286_v29  ;;  %4179 = vst.msk [vmem:[%s10646_s4 + $0xe8] sm:$0xff] %vm2232_vm5, %v2287_v62  ;;  %v2335_v33 = vmul.f32 %v4312_v44, %v2334_v15  ;;  %v2336_v16 = vmul.f32 %v4313_v53, %v2334_v15  ;;  %v2337_v61 = vmul.f32 %v4314_v51, %v2334_v15 }
 0x1ff   :  { %4180 = vst.msk [vmem:[%s10646_s4 + $0xf0] sm:$0xff] %vm2232_vm5, %v2288_v8  ;;  %v2338_v63 = vmul.f32 %v4315_v9, %v2334_v15  ;;  %v2339_v34 = vmul.f32 %v4316_v45, %v2334_v15  ;;  %v2340_v12 = vmul.f32 %v4317_v38, %v2334_v15  ;;  %v2341_v32 = vmul.f32 %v4318_v5, %v2334_v15 }
 0x200   :  { %4181 = vst.msk [vmem:[%s10646_s4 + $0xf8] sm:$0x3] %vm2240_vm7, %v2289_v37  ;;  %v2342_v46 = vmul.f32 %v4319_v6, %v2334_v15  ;;  %v8065_v24 = vadd.f32 %v2335_v33, %v2302_v59  ;;  %v8067_v55 = vadd.f32 %v2336_v16, %v2302_v59  ;;  %v8069_v23 = vadd.f32 %v2337_v61, %v2302_v59  ;;  %v4323_v33 = vld [vmem:[#allocation2 + $0x60] sm:$0xff]  ;;  %v4324_v61 = vld [vmem:[#allocation2 + $0x68] sm:$0xff] }
 0x201   :  { %v8071_v39 = vadd.f32 %v2338_v63, %v2302_v59  ;;  %v8073_v10 = vadd.f32 %v2339_v34, %v2302_v59  ;;  %v8075_v25 = vadd.f32 %v2340_v12, %v2302_v59  ;;  %v8077_v58 = vadd.f32 %v2341_v32, %v2302_v59  ;;  %v4325_v34 = vld [vmem:[#allocation2 + $0x70] sm:$0xff]  ;;  %v4326_v32 = vld [vmem:[#allocation2 + $0x78] sm:$0xff] }
 0x202   :  { %v2353_v41 = vmul.f32 %v4312_v44, %v2352_v60  ;;  %v2354_v2 = vmul.f32 %v4313_v53, %v2352_v60  ;;  %v2355_v19 = vmul.f32 %v4314_v51, %v2352_v60  ;;  %v2356_v26 = vmul.f32 %v4315_v9, %v2352_v60 }
 0x203   :  { %v2357_v21 = vmul.f32 %v4316_v45, %v2352_v60  ;;  %v2358_v50 = vmul.f32 %v4317_v38, %v2352_v60  ;;  %v2359_v27 = vmul.f32 %v4318_v5, %v2352_v60  ;;  %v2360_v48 = vmul.f32 %v4319_v6, %v2352_v60  ;;  %v4322_v60 = vld [vmem:[#allocation2 + $0x58] sm:$0xff] }
 0x204   :  { %v8079_v28 = vadd.f32 %v2342_v46, %v2302_v59  ;;  %v8082_v54 = vadd.f32 %v2353_v41, %v8039_v40  ;;  %v8085_v20 = vadd.f32 %v2354_v2, %v8039_v40  ;;  %v8088_v29 = vadd.f32 %v2355_v19, %v8039_v40  ;;  %v4327_v41 = vld [vmem:[#allocation2 + $0x80] sm:$0xff] }
 0x205   :  { %v8091_v62 = vadd.f32 %v2356_v26, %v8039_v40  ;;  %v8094_v8 = vadd.f32 %v2357_v21, %v8039_v40  ;;  %v8097_v37 = vadd.f32 %v2358_v50, %v8039_v40  ;;  %v8100_v36 = vadd.f32 %v2359_v27, %v8039_v40 }
 0x206   :  { %v2371_v59 = vmul.f32 %v4312_v44, %v2370_v57  ;;  %v2372_v1 = vmul.f32 %v4313_v53, %v2370_v57  ;;  %v2373_v17 = vmul.f32 %v4314_v51, %v2370_v57  ;;  %v2374_v4 = vmul.f32 %v4315_v9, %v2370_v57 }
 0x207   :  { %v8109_v52 = vadd.f32 %v2360_v48, %v8039_v40  ;;  %v2375_v30 = vmul.f32 %v4316_v45, %v2370_v57  ;;  %v2376_v43 = vmul.f32 %v4317_v38, %v2370_v57  ;;  %v2377_v49 = vmul.f32 %v4318_v5, %v2370_v57  ;;  %v4320_v45 = vld [vmem:[#allocation2 + $0x48] sm:$0xff]  ;;  %v4321_v5 = vld [vmem:[#allocation2 + $0x50] sm:$0xff] }
 0x208   :  { %v2378_v31 = vmul.f32 %v4319_v6, %v2370_v57  ;;  %v8112_v18 = vadd.f32 %v2371_v59, %v8043_v47  ;;  %v8115_v15 = vadd.f32 %v2372_v1, %v8043_v47  ;;  %v8118_v44 = vadd.f32 %v2373_v17, %v8043_v47 }
 0x209   :  { %v8123_v53 = vadd.f32 %v2374_v4, %v8043_v47  ;;  %v8126_v40 = vadd.f32 %v2375_v30, %v8043_v47  ;;  %v8129_v51 = vadd.f32 %v2376_v43, %v8043_v47  ;;  %v8132_v9 = vadd.f32 %v2377_v49, %v8043_v47 }
 0x20a   :  { %v2397_v38 = vmul.f32 %v4320_v45, %v2396_v0  ;;  %v2398_v6 = vmul.f32 %v4321_v5, %v2396_v0  ;;  %v2399_v57 = vmul.f32 %v4322_v60, %v2396_v0  ;;  %v2400_v16 = vmul.f32 %v4323_v33, %v2396_v0 }
 0x20b   :  { %v2401_v63 = vmul.f32 %v4324_v61, %v2396_v0  ;;  %v2402_v12 = vmul.f32 %v4325_v34, %v2396_v0  ;;  %v2403_v46 = vmul.f32 %v4326_v32, %v2396_v0  ;;  %v2404_v2 = vmul.f32 %v4327_v41, %v2396_v0 }
 0x20c   :  { %v8135_v19 = vadd.f32 %v2378_v31, %v8043_v47  ;;  %v8138_v26 = vadd.f32 %v2397_v38, %v8045_v35  ;;  %v8141_v21 = vadd.f32 %v2398_v6, %v8047_v7  ;;  %v8144_v50 = vadd.f32 %v2399_v57, %v8049_v14 }
 0x20d   :  { %v8147_v27 = vadd.f32 %v2400_v16, %v8051_v11  ;;  %v8150_v48 = vadd.f32 %v2401_v63, %v8053_v13  ;;  %v8153_v0 = vadd.f32 %v2402_v12, %v8055_v3  ;;  %v8156_v47 = vadd.f32 %v2403_v46, %v8057_v22 }
 0x20e   :  { %v8159_v35 = vadd.f32 %v2404_v2, %v8059_v56  ;;  %v2414_v7 = vstv %s8102_s20  ;;  %v2432_v59 = vstv %s8104_s21  ;;  %v2450_v14 = vstv %s8106_s28  ;;  %s8897_s20 = sld [smem:[#allocation4 + $0x9b]]  ;;  %s8920_s21 = sld [smem:[#allocation4 + $0x5d]] }
 0x20f   :  { %v2415_v1 = vmul.f32 %v4320_v45, %v2414_v7  ;;  %v2416_v17 = vmul.f32 %v4321_v5, %v2414_v7  ;;  %v2417_v4 = vmul.f32 %v4322_v60, %v2414_v7  ;;  %v2418_v11 = vmul.f32 %v4323_v33, %v2414_v7  ;;  %s9006_s28 = sld [smem:[#allocation4 + $0x72]] }
 0x210   :  { %v2419_v30 = vmul.f32 %v4324_v61, %v2414_v7  ;;  %v2420_v43 = vmul.f32 %v4325_v34, %v2414_v7  ;;  %v2421_v13 = vmul.f32 %v4326_v32, %v2414_v7  ;;  %v2476_v49 = vstv %s8120_s29  ;;  %s9008_s29 = sld [smem:[#allocation4 + $0x87]] }
 0x211   :  { %v2422_v31 = vmul.f32 %v4327_v41, %v2414_v7  ;;  %v8166_v3 = vadd.f32 %v2415_v1, %v8065_v24  ;;  %v8169_v22 = vadd.f32 %v2416_v17, %v8067_v55  ;;  %v8172_v56 = vadd.f32 %v2417_v4, %v8069_v23 }
 0x212   :  { %v8175_v38 = vadd.f32 %v2418_v11, %v8071_v39  ;;  %v8178_v6 = vadd.f32 %v2419_v30, %v8073_v10  ;;  %v8181_v57 = vadd.f32 %v2420_v43, %v8075_v25  ;;  %v8184_v16 = vadd.f32 %v2421_v13, %v8077_v58 }
 0x213   :  { %v2433_v24 = vmul.f32 %v4320_v45, %v2432_v59  ;;  %v2434_v63 = vmul.f32 %v4321_v5, %v2432_v59  ;;  %v2435_v12 = vmul.f32 %v4322_v60, %v2432_v59  ;;  %v2436_v55 = vmul.f32 %v4323_v33, %v2432_v59 }
 0x214   :  { %v2437_v46 = vmul.f32 %v4324_v61, %v2432_v59  ;;  %v2438_v2 = vmul.f32 %v4325_v34, %v2432_v59  ;;  %v2439_v23 = vmul.f32 %v4326_v32, %v2432_v59  ;;  %v2440_v7 = vmul.f32 %v4327_v41, %v2432_v59 }
 0x215   :  { %v8187_v39 = vadd.f32 %v2422_v31, %v8079_v28  ;;  %v8190_v10 = vadd.f32 %v2433_v24, %v8082_v54  ;;  %v8193_v25 = vadd.f32 %v2434_v63, %v8085_v20  ;;  %v8196_v58 = vadd.f32 %v2435_v12, %v8088_v29  ;;  %v4334_v31 = vld [vmem:[#allocation2 + $0xc0] sm:$0xff]  ;;  %v4335_v24 = vld [vmem:[#allocation2 + $0xc8] sm:$0xff] }
 0x216   :  { %v8199_v1 = vadd.f32 %v2436_v55, %v8091_v62  ;;  %v8202_v17 = vadd.f32 %v2437_v46, %v8094_v8  ;;  %v8205_v59 = vadd.f32 %v2438_v2, %v8097_v37  ;;  %v8208_v28 = vadd.f32 %v2439_v23, %v8100_v36 }
 0x217   :  { %v2451_v54 = vmul.f32 %v4320_v45, %v2450_v14  ;;  %v2452_v20 = vmul.f32 %v4321_v5, %v2450_v14  ;;  %v2453_v4 = vmul.f32 %v4322_v60, %v2450_v14  ;;  %v2454_v11 = vmul.f32 %v4323_v33, %v2450_v14 }
 0x218   :  { %v8217_v29 = vadd.f32 %v2440_v7, %v8109_v52  ;;  %v2455_v62 = vmul.f32 %v4324_v61, %v2450_v14  ;;  %v2456_v8 = vmul.f32 %v4325_v34, %v2450_v14  ;;  %v2457_v37 = vmul.f32 %v4326_v32, %v2450_v14  ;;  %v4329_v61 = vld [vmem:[#allocation2 + $0x98] sm:$0xff] }
 0x219   :  { %v2458_v30 = vmul.f32 %v4327_v41, %v2450_v14  ;;  %v8220_v36 = vadd.f32 %v2451_v54, %v8112_v18  ;;  %v8223_v43 = vadd.f32 %v2452_v20, %v8115_v15  ;;  %v8226_v45 = vadd.f32 %v2453_v4, %v8118_v44  ;;  %v4328_v18 = vld [vmem:[#allocation2 + $0x90] sm:$0xff]  ;;  %v4330_v44 = vld [vmem:[#allocation2 + $0xa0] sm:$0xff]  ;;  %v4331_v41 = vld [vmem:[#allocation2 + $0xa8] sm:$0xff] }
 0x21a   :  { %v8229_v5 = vadd.f32 %v2454_v11, %v8123_v53  ;;  %v8232_v60 = vadd.f32 %v2455_v62, %v8126_v40  ;;  %v8235_v52 = vadd.f32 %v2456_v8, %v8129_v51  ;;  %v8238_v33 = vadd.f32 %v2457_v37, %v8132_v9  ;;  %v4332_v14 = vld [vmem:[#allocation2 + $0xb0] sm:$0xff]  ;;  %v4333_v40 = vld [vmem:[#allocation2 + $0xb8] sm:$0xff] }
 0x21b   :  { %v2477_v15 = vmul.f32 %v4328_v18, %v2476_v49  ;;  %v2478_v34 = vmul.f32 %v4329_v61, %v2476_v49  ;;  %v2479_v32 = vmul.f32 %v4330_v44, %v2476_v49  ;;  %v2480_v53 = vmul.f32 %v4331_v41, %v2476_v49 }
 0x21c   :  { %v2481_v13 = vmul.f32 %v4332_v14, %v2476_v49  ;;  %v2482_v51 = vmul.f32 %v4333_v40, %v2476_v49  ;;  %v2483_v9 = vmul.f32 %v4334_v31, %v2476_v49  ;;  %v2484_v63 = vmul.f32 %v4335_v24, %v2476_v49 }
 0x21d   :  { %v8243_v12 = vadd.f32 %v2458_v30, %v8135_v19  ;;  %v8246_v55 = vadd.f32 %v2477_v15, %v8138_v26  ;;  %v8249_v46 = vadd.f32 %v2478_v34, %v8141_v21  ;;  %v8252_v2 = vadd.f32 %v2479_v32, %v8144_v50 }
 0x21e   :  { %v8255_v23 = vadd.f32 %v2480_v53, %v8147_v27  ;;  %v8258_v7 = vadd.f32 %v2481_v13, %v8150_v48  ;;  %v8261_v49 = vadd.f32 %v2482_v51, %v8153_v0  ;;  %v8264_v19 = vadd.f32 %v2483_v9, %v8156_v47 }
 0x21f   :  { %v8267_v26 = vadd.f32 %v2484_v63, %v8159_v35  ;;  %v2494_v21 = vstv %s8210_s3  ;;  %v2512_v54 = vstv %s8212_s27  ;;  %v2530_v50 = vstv %s8214_s11  ;;  %s9010_s3 = sld [smem:[#allocation4 + $0x9c]]  ;;  %s9012_s27 = sld [smem:[#allocation4 + $0x5e]] }
 0x220   :  { %v2495_v20 = vmul.f32 %v4328_v18, %v2494_v21  ;;  %v2496_v4 = vmul.f32 %v4329_v61, %v2494_v21  ;;  %v2497_v27 = vmul.f32 %v4330_v44, %v2494_v21  ;;  %v2498_v11 = vmul.f32 %v4331_v41, %v2494_v21  ;;  %s9116_s11 = sld [smem:[#allocation4 + $0x73]] }
 0x221   :  { %v2499_v62 = vmul.f32 %v4332_v14, %v2494_v21  ;;  %v2500_v48 = vmul.f32 %v4333_v40, %v2494_v21  ;;  %v2501_v8 = vmul.f32 %v4334_v31, %v2494_v21  ;;  %v2502_v37 = vmul.f32 %v4335_v24, %v2494_v21 }
 0x222   :  { %v8273_v0 = vadd.f32 %v2495_v20, %v8166_v3  ;;  %v8276_v47 = vadd.f32 %v2496_v4, %v8169_v22  ;;  %v8279_v35 = vadd.f32 %v2497_v27, %v8172_v56  ;;  %v2556_v30 = vstv %s8240_s12  ;;  %s9121_s12 = sld [smem:[#allocation4 + $0x88]] }
 0x223   :  { %v8283_v15 = vadd.f32 %v2498_v11, %v8175_v38  ;;  %v8286_v34 = vadd.f32 %v2499_v62, %v8178_v6  ;;  %v8289_v32 = vadd.f32 %v2500_v48, %v8181_v57  ;;  %v8292_v53 = vadd.f32 %v2501_v8, %v8184_v16  ;;  %v4340_v8 = vld [vmem:[#allocation2 + $0x21] sm:$0xff] }
 0x224   :  { %v2513_v3 = vmul.f32 %v4328_v18, %v2512_v54  ;;  %v2514_v13 = vmul.f32 %v4329_v61, %v2512_v54  ;;  %v2515_v22 = vmul.f32 %v4330_v44, %v2512_v54  ;;  %v2516_v51 = vmul.f32 %v4331_v41, %v2512_v54 }
 0x225   :  { %v8295_v56 = vadd.f32 %v2502_v37, %v8187_v39  ;;  %v2517_v9 = vmul.f32 %v4332_v14, %v2512_v54  ;;  %v2518_v63 = vmul.f32 %v4333_v40, %v2512_v54  ;;  %v2519_v38 = vmul.f32 %v4334_v31, %v2512_v54 }
 0x226   :  { %v2520_v21 = vmul.f32 %v4335_v24, %v2512_v54  ;;  %v8298_v6 = vadd.f32 %v2513_v3, %v8190_v10  ;;  %v8301_v57 = vadd.f32 %v2514_v13, %v8193_v25  ;;  %v8304_v16 = vadd.f32 %v2515_v22, %v8196_v58  ;;  %v4343_v13 = vld [vmem:[#allocation2 + $0x39] sm:$0xff] }
 0x227   :  { %v8307_v20 = vadd.f32 %v2516_v51, %v8199_v1  ;;  %v8310_v4 = vadd.f32 %v2517_v9, %v8202_v17  ;;  %v8313_v39 = vadd.f32 %v2518_v63, %v8205_v59  ;;  %v8316_v54 = vadd.f32 %v2519_v38, %v8208_v28 }
 0x228   :  { %v2531_v10 = vmul.f32 %v4328_v18, %v2530_v50  ;;  %v2532_v25 = vmul.f32 %v4329_v61, %v2530_v50  ;;  %v2533_v27 = vmul.f32 %v4330_v44, %v2530_v50  ;;  %v2534_v11 = vmul.f32 %v4331_v41, %v2530_v50 }
 0x229   :  { %v2535_v58 = vmul.f32 %v4332_v14, %v2530_v50  ;;  %v2536_v1 = vmul.f32 %v4333_v40, %v2530_v50  ;;  %v2537_v17 = vmul.f32 %v4334_v31, %v2530_v50  ;;  %v2538_v62 = vmul.f32 %v4335_v24, %v2530_v50  ;;  %v4337_v31 = vld [vmem:[#allocation2 + $0x9] sm:$0xff]  ;;  %v4338_v24 = vld [vmem:[#allocation2 + $0x11] sm:$0xff] }
 0x22a   :  { %v8327_v59 = vadd.f32 %v2520_v21, %v8217_v29  ;;  %v8330_v28 = vadd.f32 %v2531_v10, %v8220_v36  ;;  %v8333_v18 = vadd.f32 %v2532_v25, %v8223_v43  ;;  %v8336_v61 = vadd.f32 %v2533_v27, %v8226_v45  ;;  %v4336_v43 = vld [vmem:[#allocation2 + $0x1] sm:$0xff] }
 0x22b   :  { %v8339_v44 = vadd.f32 %v2534_v11, %v8229_v5  ;;  %v8342_v41 = vadd.f32 %v2535_v58, %v8232_v60  ;;  %v8345_v14 = vadd.f32 %v2536_v1, %v8235_v52  ;;  %v8348_v29 = vadd.f32 %v2537_v17, %v8238_v33  ;;  %v4339_v5 = vld [vmem:[#allocation2 + $0x19] sm:$0xff]  ;;  %v4341_v52 = vld [vmem:[#allocation2 + $0x29] sm:$0xff]  ;;  %v4342_v33 = vld [vmem:[#allocation2 + $0x31] sm:$0xff] }
 0x22c   :  { %v8351_v36 = vadd.f32 %v2538_v62, %v8243_v12  ;;  %v2557_v40 = vmul.f32 %v4336_v43, %v2556_v30  ;;  %v2558_v45 = vmul.f32 %v4337_v31, %v2556_v30  ;;  %v2559_v50 = vmul.f32 %v4338_v24, %v2556_v30 }
 0x22d   :  { %v2560_v48 = vmul.f32 %v4339_v5, %v2556_v30  ;;  %v2561_v60 = vmul.f32 %v4340_v8, %v2556_v30  ;;  %v2562_v37 = vmul.f32 %v4341_v52, %v2556_v30  ;;  %v2563_v3 = vmul.f32 %v4342_v33, %v2556_v30 }
 0x22e   :  { %v2564_v12 = vmul.f32 %v4343_v13, %v2556_v30  ;;  %v8354_v22 = vadd.f32 %v2557_v40, %v8246_v55  ;;  %v8357_v51 = vadd.f32 %v2558_v45, %v8249_v46  ;;  %v8360_v9 = vadd.f32 %v2559_v50, %v8252_v2 }
 0x22f   :  { %v8363_v63 = vadd.f32 %v2560_v48, %v8255_v23  ;;  %v8366_v38 = vadd.f32 %v2561_v60, %v8258_v7  ;;  %v8369_v21 = vadd.f32 %v2562_v37, %v8261_v49  ;;  %v8372_v30 = vadd.f32 %v2563_v3, %v8264_v19 }
 0x230   :  { %v8375_v55 = vadd.f32 %v2564_v12, %v8267_v26  ;;  %v2574_v46 = vstv %s8318_s16  ;;  %v2592_v10 = vstv %s8320_s17  ;;  %v2610_v25 = vstv %s8322_s18  ;;  %s9123_s16 = sld [smem:[#allocation4 + $0x9d]]  ;;  %s9125_s17 = sld [smem:[#allocation4 + $0x5f]] }
 0x231   :  { %v2575_v2 = vmul.f32 %v4336_v43, %v2574_v46  ;;  %v2576_v27 = vmul.f32 %v4337_v31, %v2574_v46  ;;  %v2577_v11 = vmul.f32 %v4338_v24, %v2574_v46  ;;  %v8381_v23 = vstv %s8324_s19  ;;  %s9234_s18 = sld [smem:[#allocation4 + $0x74]]  ;;  %s9239_s19 = sld [smem:[#allocation4 + $0x89]] }
 0x232   :  { %v2578_v58 = vmul.f32 %v4339_v5, %v2574_v46  ;;  %v2579_v7 = vmul.f32 %v4340_v8, %v2574_v46  ;;  %v2580_v1 = vmul.f32 %v4341_v52, %v2574_v46  ;;  %v2581_v17 = vmul.f32 %v4342_v33, %v2574_v46 }
 0x233   :  { %v2582_v49 = vmul.f32 %v4343_v13, %v2574_v46  ;;  %v8384_v62 = vadd.f32 %v2575_v2, %v8273_v0  ;;  %v8387_v19 = vadd.f32 %v2576_v27, %v8276_v47  ;;  %v8390_v26 = vadd.f32 %v2577_v11, %v8279_v35 }
 0x234   :  { %v8393_v40 = vadd.f32 %v2578_v58, %v8283_v15  ;;  %v8396_v45 = vadd.f32 %v2579_v7, %v8286_v34  ;;  %v8399_v50 = vadd.f32 %v2580_v1, %v8289_v32  ;;  %v8402_v48 = vadd.f32 %v2581_v17, %v8292_v53  ;;  %v4349_v1 = vld [vmem:[#allocation2 + $0x71] sm:$0xff]  ;;  %v4350_v17 = vld [vmem:[#allocation2 + $0x79] sm:$0xff] }
 0x235   :  { %v8405_v0 = vadd.f32 %v2582_v49, %v8295_v56  ;;  %v2593_v47 = vmul.f32 %v4336_v43, %v2592_v10  ;;  %v2594_v60 = vmul.f32 %v4337_v31, %v2592_v10  ;;  %v2595_v37 = vmul.f32 %v4338_v24, %v2592_v10 }
 0x236   :  { %v2596_v35 = vmul.f32 %v4339_v5, %v2592_v10  ;;  %v2597_v3 = vmul.f32 %v4340_v8, %v2592_v10  ;;  %v2598_v12 = vmul.f32 %v4341_v52, %v2592_v10  ;;  %v2599_v15 = vmul.f32 %v4342_v33, %v2592_v10 }
 0x237   :  { %v2600_v46 = vmul.f32 %v4343_v13, %v2592_v10  ;;  %v8408_v34 = vadd.f32 %v2593_v47, %v8298_v6  ;;  %v8411_v32 = vadd.f32 %v2594_v60, %v8301_v57  ;;  %v8414_v53 = vadd.f32 %v2595_v37, %v8304_v16  ;;  %v4351_v47 = vld [vmem:[#allocation2 + $0x81] sm:$0xff] }
 0x238   :  { %v8417_v56 = vadd.f32 %v2596_v35, %v8307_v20  ;;  %v8420_v2 = vadd.f32 %v2597_v3, %v8310_v4  ;;  %v8423_v27 = vadd.f32 %v2598_v12, %v8313_v39  ;;  %v8426_v10 = vadd.f32 %v2599_v15, %v8316_v54 }
 0x239   :  { %v8431_v6 = vadd.f32 %v2600_v46, %v8327_v59  ;;  %v2611_v57 = vmul.f32 %v4336_v43, %v2610_v25  ;;  %v2612_v16 = vmul.f32 %v4337_v31, %v2610_v25  ;;  %v2613_v11 = vmul.f32 %v4338_v24, %v2610_v25 }
 0x23a   :  { %v2614_v20 = vmul.f32 %v4339_v5, %v2610_v25  ;;  %v2615_v4 = vmul.f32 %v4340_v8, %v2610_v25  ;;  %v2616_v58 = vmul.f32 %v4341_v52, %v2610_v25  ;;  %v2617_v39 = vmul.f32 %v4342_v33, %v2610_v25 }
 0x23b   :  { %v2618_v54 = vmul.f32 %v4343_v13, %v2610_v25  ;;  %v8440_v7 = vadd.f32 %v2611_v57, %v8330_v28  ;;  %v8443_v59 = vadd.f32 %v2612_v16, %v8333_v18  ;;  %v8446_v43 = vadd.f32 %v2613_v11, %v8336_v61  ;;  %v4344_v18 = vld [vmem:[#allocation2 + $0x49] sm:$0xff]  ;;  %v4345_v61 = vld [vmem:[#allocation2 + $0x51] sm:$0xff] }
 0x23c   :  { %v8449_v31 = vadd.f32 %v2614_v20, %v8339_v44  ;;  %v8452_v24 = vadd.f32 %v2615_v4, %v8342_v41  ;;  %v8455_v5 = vadd.f32 %v2616_v58, %v8345_v14  ;;  %v8458_v8 = vadd.f32 %v2617_v39, %v8348_v29  ;;  %v4346_v44 = vld [vmem:[#allocation2 + $0x59] sm:$0xff]  ;;  %v4347_v41 = vld [vmem:[#allocation2 + $0x61] sm:$0xff]  ;;  %v4348_v14 = vld [vmem:[#allocation2 + $0x69] sm:$0xff] }
 0x23d   :  { %v8461_v28 = vadd.f32 %v2618_v54, %v8351_v36  ;;  %v2637_v52 = vmul.f32 %v4344_v18, %v8381_v23  ;;  %v2638_v33 = vmul.f32 %v4345_v61, %v8381_v23  ;;  %v2639_v13 = vmul.f32 %v4346_v44, %v8381_v23 }
 0x23e   :  { %v2640_v25 = vmul.f32 %v4347_v41, %v8381_v23  ;;  %v2641_v29 = vmul.f32 %v4348_v14, %v8381_v23  ;;  %v2642_v36 = vmul.f32 %v4349_v1, %v8381_v23  ;;  %v2643_v49 = vmul.f32 %v4350_v17, %v8381_v23 }
 0x23f   :  { %v2644_v60 = vmul.f32 %v4351_v47, %v8381_v23  ;;  %v8472_v37 = vadd.f32 %v2637_v52, %v8354_v22  ;;  %v8475_v35 = vadd.f32 %v2638_v33, %v8357_v51  ;;  %v8478_v3 = vadd.f32 %v2639_v13, %v8360_v9 }
 0x240   :  { %v8481_v12 = vadd.f32 %v2640_v25, %v8363_v63  ;;  %v8484_v15 = vadd.f32 %v2641_v29, %v8366_v38  ;;  %v8487_v46 = vadd.f32 %v2642_v36, %v8369_v21  ;;  %v8490_v23 = vadd.f32 %v2643_v49, %v8372_v30 }
 0x241   :  { %v8493_v22 = vadd.f32 %v2644_v60, %v8375_v55  ;;  %v2654_v51 = vstv %s8428_s22  ;;  %v2672_v57 = vstv %s8433_s23  ;;  %v2690_v16 = vstv %s8435_s1  ;;  %s9241_s22 = sld [smem:[#allocation4 + $0x9e]]  ;;  %s9264_s23 = sld [smem:[#allocation4 + $0x60]] }
 0x242   :  { %v2655_v9 = vmul.f32 %v4344_v18, %v2654_v51  ;;  %v2656_v11 = vmul.f32 %v4345_v61, %v2654_v51  ;;  %v2657_v20 = vmul.f32 %v4346_v44, %v2654_v51  ;;  %v8499_v63 = vstv %s8437_s0  ;;  %s9350_s1 = sld [smem:[#allocation4 + $0x75]]  ;;  %s9352_s0 = sld [smem:[#allocation4 + $0x8a]] }
 0x243   :  { %v2658_v4 = vmul.f32 %v4347_v41, %v2654_v51  ;;  %v2659_v38 = vmul.f32 %v4348_v14, %v2654_v51  ;;  %v2660_v58 = vmul.f32 %v4349_v1, %v2654_v51  ;;  %v2661_v39 = vmul.f32 %v4350_v17, %v2654_v51 }
 0x244   :  { %v2662_v21 = vmul.f32 %v4351_v47, %v2654_v51  ;;  %v8502_v54 = vadd.f32 %v2655_v9, %v8384_v62  ;;  %v8505_v30 = vadd.f32 %v2656_v11, %v8387_v19  ;;  %v8508_v55 = vadd.f32 %v2657_v20, %v8390_v26 }
 0x245   :  { %v8511_v52 = vadd.f32 %v2658_v4, %v8393_v40  ;;  %v8514_v33 = vadd.f32 %v2659_v38, %v8396_v45  ;;  %v8517_v13 = vadd.f32 %v2660_v58, %v8399_v50  ;;  %v8520_v25 = vadd.f32 %v2661_v39, %v8402_v48  ;;  %v4358_v39 = vld [vmem:[#allocation2 + $0xc1] sm:$0xff] }
 0x246   :  { %v8523_v62 = vadd.f32 %v2662_v21, %v8405_v0  ;;  %v2673_v19 = vmul.f32 %v4344_v18, %v2672_v57  ;;  %v2674_v29 = vmul.f32 %v4345_v61, %v2672_v57  ;;  %v2675_v36 = vmul.f32 %v4346_v44, %v2672_v57 }
 0x247   :  { %v2676_v26 = vmul.f32 %v4347_v41, %v2672_v57  ;;  %v2677_v49 = vmul.f32 %v4348_v14, %v2672_v57  ;;  %v2678_v60 = vmul.f32 %v4349_v1, %v2672_v57  ;;  %v2679_v40 = vmul.f32 %v4350_v17, %v2672_v57 }
 0x248   :  { %v2680_v51 = vmul.f32 %v4351_v47, %v2672_v57  ;;  %v8526_v45 = vadd.f32 %v2673_v19, %v8408_v34  ;;  %v8529_v50 = vadd.f32 %v2674_v29, %v8411_v32  ;;  %v8532_v48 = vadd.f32 %v2675_v36, %v8414_v53  ;;  %v4359_v19 = vld [vmem:[#allocation2 + $0xc9] sm:$0xff] }
 0x249   :  { %v8535_v0 = vadd.f32 %v2676_v26, %v8417_v56  ;;  %v8538_v9 = vadd.f32 %v2677_v49, %v8420_v2  ;;  %v8541_v11 = vadd.f32 %v2678_v60, %v8423_v27  ;;  %v8544_v57 = vadd.f32 %v2679_v40, %v8426_v10 }
 0x24a   :  { %v8549_v34 = vadd.f32 %v2680_v51, %v8431_v6  ;;  %v2691_v32 = vmul.f32 %v4344_v18, %v2690_v16  ;;  %v2692_v53 = vmul.f32 %v4345_v61, %v2690_v16  ;;  %v2693_v20 = vmul.f32 %v4346_v44, %v2690_v16 }
 0x24b   :  { %v2694_v56 = vmul.f32 %v4347_v41, %v2690_v16  ;;  %v2695_v2 = vmul.f32 %v4348_v14, %v2690_v16  ;;  %v2696_v4 = vmul.f32 %v4349_v1, %v2690_v16  ;;  %v2697_v27 = vmul.f32 %v4350_v17, %v2690_v16  ;;  %v4353_v14 = vld [vmem:[#allocation2 + $0x99] sm:$0xff]  ;;  %v4354_v1 = vld [vmem:[#allocation2 + $0xa1] sm:$0xff]  ;;  %v4355_v17 = vld [vmem:[#allocation2 + $0xa9] sm:$0xff] }
 0x24c   :  { %v2698_v38 = vmul.f32 %v4351_v47, %v2690_v16  ;;  %v8556_v10 = vadd.f32 %v2691_v32, %v8440_v7  ;;  %v8559_v58 = vadd.f32 %v2692_v53, %v8443_v59  ;;  %v8562_v6 = vadd.f32 %v2693_v20, %v8446_v43  ;;  %v4352_v7 = vld [vmem:[#allocation2 + $0x91] sm:$0xff] }
 0x24d   :  { %v8565_v18 = vadd.f32 %v2694_v56, %v8449_v31  ;;  %v8568_v61 = vadd.f32 %v2695_v2, %v8452_v24  ;;  %v8571_v44 = vadd.f32 %v2696_v4, %v8455_v5  ;;  %v8574_v41 = vadd.f32 %v2697_v27, %v8458_v8  ;;  %v4356_v47 = vld [vmem:[#allocation2 + $0xb1] sm:$0xff]  ;;  %v4357_v8 = vld [vmem:[#allocation2 + $0xb9] sm:$0xff] }
 0x24e   :  { %v2717_v59 = vmul.f32 %v4352_v7, %v8499_v63  ;;  %v2718_v43 = vmul.f32 %v4353_v14, %v8499_v63  ;;  %v2719_v31 = vmul.f32 %v4354_v1, %v8499_v63  ;;  %v2720_v24 = vmul.f32 %v4355_v17, %v8499_v63 }
 0x24f   :  { %v2721_v5 = vmul.f32 %v4356_v47, %v8499_v63  ;;  %v2722_v16 = vmul.f32 %v4357_v8, %v8499_v63  ;;  %v2723_v21 = vmul.f32 %v4358_v39, %v8499_v63  ;;  %v2724_v29 = vmul.f32 %v4359_v19, %v8499_v63 }
 0x250   :  { %v8587_v36 = vadd.f32 %v2698_v38, %v8461_v28  ;;  %v8590_v26 = vadd.f32 %v2717_v59, %v8472_v37  ;;  %v8593_v49 = vadd.f32 %v2718_v43, %v8475_v35  ;;  %v8596_v60 = vadd.f32 %v2719_v31, %v8478_v3 }
 0x251   :  { %v8599_v40 = vadd.f32 %v2720_v24, %v8481_v12  ;;  %v8602_v51 = vadd.f32 %v2721_v5, %v8484_v15  ;;  %v8605_v63 = vadd.f32 %v2722_v16, %v8487_v46  ;;  %v8608_v28 = vadd.f32 %v2723_v21, %v8490_v23 }
 0x252   :  { %v8611_v37 = vadd.f32 %v2724_v29, %v8493_v22  ;;  %v2734_v35 = vstv %s8546_s24  ;;  %v2752_v32 = vstv %s8551_s25  ;;  %v2770_v3 = vstv %s8553_s26  ;;  %s9354_s24 = sld [smem:[#allocation4 + $0x9f]]  ;;  %s9356_s25 = sld [smem:[#allocation4 + $0x61]] }
 0x253   :  { %v2735_v53 = vmul.f32 %v4352_v7, %v2734_v35  ;;  %v2736_v20 = vmul.f32 %v4353_v14, %v2734_v35  ;;  %v2737_v12 = vmul.f32 %v4354_v1, %v2734_v35  ;;  %v2738_v56 = vmul.f32 %v4355_v17, %v2734_v35  ;;  %s9460_s26 = sld [smem:[#allocation4 + $0x76]] }
 0x254   :  { %v2739_v2 = vmul.f32 %v4356_v47, %v2734_v35  ;;  %v2740_v15 = vmul.f32 %v4357_v8, %v2734_v35  ;;  %v2741_v4 = vmul.f32 %v4358_v39, %v2734_v35  ;;  %v2742_v27 = vmul.f32 %v4359_v19, %v2734_v35 }
 0x255   :  { %v8617_v46 = vadd.f32 %v2735_v53, %v8502_v54  ;;  %v8620_v23 = vadd.f32 %v2736_v20, %v8505_v30  ;;  %v8623_v22 = vadd.f32 %v2737_v12, %v8508_v55  ;;  %v2796_v38 = vstv %s8576_s2  ;;  %s9465_s2 = sld [smem:[#allocation4 + $0x8b]] }
 0x256   :  { %v8627_v59 = vadd.f32 %v2738_v56, %v8511_v52  ;;  %v8630_v43 = vadd.f32 %v2739_v2, %v8514_v33  ;;  %v8633_v31 = vadd.f32 %v2740_v15, %v8517_v13  ;;  %v8636_v24 = vadd.f32 %v2741_v4, %v8520_v25  ;;  %v4364_v4 = vld [vmem:[#allocation2 + $0x22] sm:$0xff] }
 0x257   :  { %v2753_v54 = vmul.f32 %v4352_v7, %v2752_v32  ;;  %v2754_v5 = vmul.f32 %v4353_v14, %v2752_v32  ;;  %v2755_v30 = vmul.f32 %v4354_v1, %v2752_v32  ;;  %v2756_v16 = vmul.f32 %v4355_v17, %v2752_v32 }
 0x258   :  { %v8639_v55 = vadd.f32 %v2742_v27, %v8523_v62  ;;  %v2757_v21 = vmul.f32 %v4356_v47, %v2752_v32  ;;  %v2758_v29 = vmul.f32 %v4357_v8, %v2752_v32  ;;  %v2759_v52 = vmul.f32 %v4358_v39, %v2752_v32 }
 0x259   :  { %v2760_v35 = vmul.f32 %v4359_v19, %v2752_v32  ;;  %v8642_v33 = vadd.f32 %v2753_v54, %v8526_v45  ;;  %v8645_v13 = vadd.f32 %v2754_v5, %v8529_v50  ;;  %v8648_v25 = vadd.f32 %v2755_v30, %v8532_v48  ;;  %v4367_v5 = vld [vmem:[#allocation2 + $0x3a] sm:$0xff] }
 0x25a   :  { %v8651_v53 = vadd.f32 %v2756_v16, %v8535_v0  ;;  %v8654_v20 = vadd.f32 %v2757_v21, %v8538_v9  ;;  %v8657_v62 = vadd.f32 %v2758_v29, %v8541_v11  ;;  %v8660_v32 = vadd.f32 %v2759_v52, %v8544_v57 }
 0x25b   :  { %v2771_v45 = vmul.f32 %v4352_v7, %v2770_v3  ;;  %v2772_v50 = vmul.f32 %v4353_v14, %v2770_v3  ;;  %v2773_v12 = vmul.f32 %v4354_v1, %v2770_v3  ;;  %v2774_v56 = vmul.f32 %v4355_v17, %v2770_v3 }
 0x25c   :  { %v2775_v48 = vmul.f32 %v4356_v47, %v2770_v3  ;;  %v2776_v0 = vmul.f32 %v4357_v8, %v2770_v3  ;;  %v2777_v9 = vmul.f32 %v4358_v39, %v2770_v3  ;;  %v2778_v2 = vmul.f32 %v4359_v19, %v2770_v3  ;;  %v4361_v39 = vld [vmem:[#allocation2 + $0xa] sm:$0xff]  ;;  %v4362_v19 = vld [vmem:[#allocation2 + $0x12] sm:$0xff] }
 0x25d   :  { %v8671_v11 = vadd.f32 %v2760_v35, %v8549_v34  ;;  %v8674_v57 = vadd.f32 %v2771_v45, %v8556_v10  ;;  %v8677_v7 = vadd.f32 %v2772_v50, %v8559_v58  ;;  %v8680_v14 = vadd.f32 %v2773_v12, %v8562_v6  ;;  %v4360_v58 = vld [vmem:[#allocation2 + $0x2] sm:$0xff] }
 0x25e   :  { %v8683_v1 = vadd.f32 %v2774_v56, %v8565_v18  ;;  %v8686_v17 = vadd.f32 %v2775_v48, %v8568_v61  ;;  %v8689_v47 = vadd.f32 %v2776_v0, %v8571_v44  ;;  %v8692_v34 = vadd.f32 %v2777_v9, %v8574_v41  ;;  %v4363_v18 = vld [vmem:[#allocation2 + $0x1a] sm:$0xff]  ;;  %v4365_v44 = vld [vmem:[#allocation2 + $0x2a] sm:$0xff]  ;;  %v4366_v41 = vld [vmem:[#allocation2 + $0x32] sm:$0xff] }
 0x25f   :  { %v8695_v10 = vadd.f32 %v2778_v2, %v8587_v36  ;;  %v2797_v8 = vmul.f32 %v4360_v58, %v2796_v38  ;;  %v2798_v6 = vmul.f32 %v4361_v39, %v2796_v38  ;;  %v2799_v3 = vmul.f32 %v4362_v19, %v2796_v38 }
 0x260   :  { %v2800_v15 = vmul.f32 %v4363_v18, %v2796_v38  ;;  %v2801_v61 = vmul.f32 %v4364_v4, %v2796_v38  ;;  %v2802_v27 = vmul.f32 %v4365_v44, %v2796_v38  ;;  %v2803_v54 = vmul.f32 %v4366_v41, %v2796_v38 }
 0x261   :  { %v2804_v36 = vmul.f32 %v4367_v5, %v2796_v38  ;;  %v8698_v30 = vadd.f32 %v2797_v8, %v8590_v26  ;;  %v8701_v16 = vadd.f32 %v2798_v6, %v8593_v49  ;;  %v8704_v21 = vadd.f32 %v2799_v3, %v8596_v60 }
 0x262   :  { %v8707_v29 = vadd.f32 %v2800_v15, %v8599_v40  ;;  %v8710_v52 = vadd.f32 %v2801_v61, %v8602_v51  ;;  %v8713_v35 = vadd.f32 %v2802_v27, %v8605_v63  ;;  %v8716_v38 = vadd.f32 %v2803_v54, %v8608_v28 }
 0x263   :  { %v8719_v26 = vadd.f32 %v2804_v36, %v8611_v37  ;;  %v2814_v49 = vstv %s8662_s30  ;;  %v2832_v45 = vstv %s8664_s5  ;;  %v2850_v50 = vstv %s8666_s6  ;;  %s9467_s30 = sld [smem:[#allocation4 + $0xa0]]  ;;  %s9469_s5 = sld [smem:[#allocation4 + $0x62]] }
 0x264   :  { %v2815_v60 = vmul.f32 %v4360_v58, %v2814_v49  ;;  %v2816_v12 = vmul.f32 %v4361_v39, %v2814_v49  ;;  %v2817_v56 = vmul.f32 %v4362_v19, %v2814_v49  ;;  %v8725_v40 = vstv %s8668_s7  ;;  %s9578_s6 = sld [smem:[#allocation4 + $0x77]]  ;;  %s9583_s7 = sld [smem:[#allocation4 + $0x8c]] }
 0x265   :  { %v2818_v48 = vmul.f32 %v4363_v18, %v2814_v49  ;;  %v2819_v51 = vmul.f32 %v4364_v4, %v2814_v49  ;;  %v2820_v0 = vmul.f32 %v4365_v44, %v2814_v49  ;;  %v2821_v9 = vmul.f32 %v4366_v41, %v2814_v49 }
 0x266   :  { %v2822_v63 = vmul.f32 %v4367_v5, %v2814_v49  ;;  %v8728_v2 = vadd.f32 %v2815_v60, %v8617_v46  ;;  %v8731_v28 = vadd.f32 %v2816_v12, %v8620_v23  ;;  %v8734_v37 = vadd.f32 %v2817_v56, %v8623_v22 }
 0x267   :  { %v8737_v8 = vadd.f32 %v2818_v48, %v8627_v59  ;;  %v8740_v6 = vadd.f32 %v2819_v51, %v8630_v43  ;;  %v8743_v3 = vadd.f32 %v2820_v0, %v8633_v31  ;;  %v8746_v15 = vadd.f32 %v2821_v9, %v8636_v24  ;;  %v4373_v0 = vld [vmem:[#allocation2 + $0x72] sm:$0xff]  ;;  %v4374_v9 = vld [vmem:[#allocation2 + $0x7a] sm:$0xff] }
 0x268   :  { %v8749_v46 = vadd.f32 %v2822_v63, %v8639_v55  ;;  %v2833_v23 = vmul.f32 %v4360_v58, %v2832_v45  ;;  %v2834_v61 = vmul.f32 %v4361_v39, %v2832_v45  ;;  %v2835_v27 = vmul.f32 %v4362_v19, %v2832_v45 }
 0x269   :  { %v2836_v22 = vmul.f32 %v4363_v18, %v2832_v45  ;;  %v2837_v54 = vmul.f32 %v4364_v4, %v2832_v45  ;;  %v2838_v36 = vmul.f32 %v4365_v44, %v2832_v45  ;;  %v2839_v59 = vmul.f32 %v4366_v41, %v2832_v45 }
 0x26a   :  { %v2840_v49 = vmul.f32 %v4367_v5, %v2832_v45  ;;  %v8752_v43 = vadd.f32 %v2833_v23, %v8642_v33  ;;  %v8755_v31 = vadd.f32 %v2834_v61, %v8645_v13  ;;  %v8758_v24 = vadd.f32 %v2835_v27, %v8648_v25  ;;  %v4375_v23 = vld [vmem:[#allocation2 + $0x82] sm:$0xff] }
 0x26b   :  { %v8761_v55 = vadd.f32 %v2836_v22, %v8651_v53  ;;  %v8764_v60 = vadd.f32 %v2837_v54, %v8654_v20  ;;  %v8767_v12 = vadd.f32 %v2838_v36, %v8657_v62  ;;  %v8770_v45 = vadd.f32 %v2839_v59, %v8660_v32 }
 0x26c   :  { %v8775_v33 = vadd.f32 %v2840_v49, %v8671_v11  ;;  %v2851_v13 = vmul.f32 %v4360_v58, %v2850_v50  ;;  %v2852_v25 = vmul.f32 %v4361_v39, %v2850_v50  ;;  %v2853_v56 = vmul.f32 %v4362_v19, %v2850_v50 }
 0x26d   :  { %v2854_v53 = vmul.f32 %v4363_v18, %v2850_v50  ;;  %v2855_v20 = vmul.f32 %v4364_v4, %v2850_v50  ;;  %v2856_v48 = vmul.f32 %v4365_v44, %v2850_v50  ;;  %v2857_v62 = vmul.f32 %v4366_v41, %v2850_v50 }
 0x26e   :  { %v2858_v32 = vmul.f32 %v4367_v5, %v2850_v50  ;;  %v8784_v51 = vadd.f32 %v2851_v13, %v8674_v57  ;;  %v8787_v11 = vadd.f32 %v2852_v25, %v8677_v7  ;;  %v8790_v58 = vadd.f32 %v2853_v56, %v8680_v14  ;;  %v4368_v7 = vld [vmem:[#allocation2 + $0x4a] sm:$0xff]  ;;  %v4369_v14 = vld [vmem:[#allocation2 + $0x52] sm:$0xff] }
 0x26f   :  { %v8793_v39 = vadd.f32 %v2854_v53, %v8683_v1  ;;  %v8796_v19 = vadd.f32 %v2855_v20, %v8686_v17  ;;  %v8799_v18 = vadd.f32 %v2856_v48, %v8689_v47  ;;  %v8802_v4 = vadd.f32 %v2857_v62, %v8692_v34  ;;  %v4370_v1 = vld [vmem:[#allocation2 + $0x5a] sm:$0xff]  ;;  %v4371_v17 = vld [vmem:[#allocation2 + $0x62] sm:$0xff]  ;;  %v4372_v47 = vld [vmem:[#allocation2 + $0x6a] sm:$0xff] }
 0x270   :  { %v8805_v57 = vadd.f32 %v2858_v32, %v8695_v10  ;;  %v2877_v44 = vmul.f32 %v4368_v7, %v8725_v40  ;;  %v2878_v41 = vmul.f32 %v4369_v14, %v8725_v40  ;;  %v2879_v5 = vmul.f32 %v4370_v1, %v8725_v40 }
 0x271   :  { %v2880_v50 = vmul.f32 %v4371_v17, %v8725_v40  ;;  %v2881_v34 = vmul.f32 %v4372_v47, %v8725_v40  ;;  %v2882_v10 = vmul.f32 %v4373_v0, %v8725_v40  ;;  %v2883_v63 = vmul.f32 %v4374_v9, %v8725_v40 }
 0x272   :  { %v2884_v61 = vmul.f32 %v4375_v23, %v8725_v40  ;;  %v8816_v27 = vadd.f32 %v2877_v44, %v8698_v30  ;;  %v8819_v22 = vadd.f32 %v2878_v41, %v8701_v16  ;;  %v8822_v54 = vadd.f32 %v2879_v5, %v8704_v21 }
 0x273   :  { %v8825_v36 = vadd.f32 %v2880_v50, %v8707_v29  ;;  %v8828_v59 = vadd.f32 %v2881_v34, %v8710_v52  ;;  %v8831_v49 = vadd.f32 %v2882_v10, %v8713_v35  ;;  %v8834_v40 = vadd.f32 %v2883_v63, %v8716_v38 }
 0x274   :  { %v8837_v30 = vadd.f32 %v2884_v61, %v8719_v26  ;;  %v2894_v16 = vstv %s8772_s8  ;;  %v2912_v13 = vstv %s8777_s9  ;;  %v2930_v25 = vstv %s8779_s10  ;;  %s9585_s8 = sld [smem:[#allocation4 + $0xa1]]  ;;  %s9608_s9 = sld [smem:[#allocation4 + $0x63]] }
 0x275   :  { %v2895_v21 = vmul.f32 %v4368_v7, %v2894_v16  ;;  %v2896_v56 = vmul.f32 %v4369_v14, %v2894_v16  ;;  %v2897_v53 = vmul.f32 %v4370_v1, %v2894_v16  ;;  %v8843_v29 = vstv %s8781_s13  ;;  %s9694_s10 = sld [smem:[#allocation4 + $0x78]]  ;;  %s9696_s13 = sld [smem:[#allocation4 + $0x8d]] }
 0x276   :  { %v2898_v20 = vmul.f32 %v4371_v17, %v2894_v16  ;;  %v2899_v52 = vmul.f32 %v4372_v47, %v2894_v16  ;;  %v2900_v48 = vmul.f32 %v4373_v0, %v2894_v16  ;;  %v2901_v62 = vmul.f32 %v4374_v9, %v2894_v16 }
 0x277   :  { %v2902_v35 = vmul.f32 %v4375_v23, %v2894_v16  ;;  %v8846_v32 = vadd.f32 %v2895_v21, %v8728_v2  ;;  %v8849_v38 = vadd.f32 %v2896_v56, %v8731_v28  ;;  %v8852_v26 = vadd.f32 %v2897_v53, %v8734_v37 }
 0x278   :  { %v8855_v44 = vadd.f32 %v2898_v20, %v8737_v8  ;;  %v8858_v41 = vadd.f32 %v2899_v52, %v8740_v6  ;;  %v8861_v5 = vadd.f32 %v2900_v48, %v8743_v3  ;;  %v8864_v50 = vadd.f32 %v2901_v62, %v8746_v15  ;;  %v4382_v62 = vld [vmem:[#allocation2 + $0xc2] sm:$0xff] }
 0x279   :  { %v8867_v2 = vadd.f32 %v2902_v35, %v8749_v46  ;;  %v2913_v28 = vmul.f32 %v4368_v7, %v2912_v13  ;;  %v2914_v34 = vmul.f32 %v4369_v14, %v2912_v13  ;;  %v2915_v10 = vmul.f32 %v4370_v1, %v2912_v13 }
 0x27a   :  { %v2916_v37 = vmul.f32 %v4371_v17, %v2912_v13  ;;  %v2917_v63 = vmul.f32 %v4372_v47, %v2912_v13  ;;  %v2918_v61 = vmul.f32 %v4373_v0, %v2912_v13  ;;  %v2919_v8 = vmul.f32 %v4374_v9, %v2912_v13 }
 0x27b   :  { %v2920_v16 = vmul.f32 %v4375_v23, %v2912_v13  ;;  %v8870_v6 = vadd.f32 %v2913_v28, %v8752_v43  ;;  %v8873_v3 = vadd.f32 %v2914_v34, %v8755_v31  ;;  %v8876_v15 = vadd.f32 %v2915_v10, %v8758_v24  ;;  %v4383_v28 = vld [vmem:[#allocation2 + $0xca] sm:$0xff] }
 0x27c   :  { %v8879_v46 = vadd.f32 %v2916_v37, %v8761_v55  ;;  %v8882_v21 = vadd.f32 %v2917_v63, %v8764_v60  ;;  %v8885_v56 = vadd.f32 %v2918_v61, %v8767_v12  ;;  %v8888_v13 = vadd.f32 %v2919_v8, %v8770_v45 }
 0x27d   :  { %v8893_v43 = vadd.f32 %v2920_v16, %v8775_v33  ;;  %v2931_v31 = vmul.f32 %v4368_v7, %v2930_v25  ;;  %v2932_v24 = vmul.f32 %v4369_v14, %v2930_v25  ;;  %v2933_v53 = vmul.f32 %v4370_v1, %v2930_v25 }
 0x27e   :  { %v2934_v55 = vmul.f32 %v4371_v17, %v2930_v25  ;;  %v2935_v60 = vmul.f32 %v4372_v47, %v2930_v25  ;;  %v2936_v20 = vmul.f32 %v4373_v0, %v2930_v25  ;;  %v2937_v12 = vmul.f32 %v4374_v9, %v2930_v25  ;;  %v4377_v47 = vld [vmem:[#allocation2 + $0x9a] sm:$0xff]  ;;  %v4378_v0 = vld [vmem:[#allocation2 + $0xa2] sm:$0xff]  ;;  %v4379_v9 = vld [vmem:[#allocation2 + $0xaa] sm:$0xff] }
 0x27f   :  { %v2938_v52 = vmul.f32 %v4375_v23, %v2930_v25  ;;  %v8900_v45 = vadd.f32 %v2931_v31, %v8784_v51  ;;  %v8903_v48 = vadd.f32 %v2932_v24, %v8787_v11  ;;  %v8906_v33 = vadd.f32 %v2933_v53, %v8790_v58  ;;  %v4376_v51 = vld [vmem:[#allocation2 + $0x92] sm:$0xff] }
 0x280   :  { %v8909_v7 = vadd.f32 %v2934_v55, %v8793_v39  ;;  %v8912_v14 = vadd.f32 %v2935_v60, %v8796_v19  ;;  %v8915_v1 = vadd.f32 %v2936_v20, %v8799_v18  ;;  %v8918_v17 = vadd.f32 %v2937_v12, %v8802_v4  ;;  %v4380_v23 = vld [vmem:[#allocation2 + $0xb2] sm:$0xff]  ;;  %v4381_v4 = vld [vmem:[#allocation2 + $0xba] sm:$0xff] }
 0x281   :  { %v2957_v11 = vmul.f32 %v4376_v51, %v8843_v29  ;;  %v2958_v58 = vmul.f32 %v4377_v47, %v8843_v29  ;;  %v2959_v39 = vmul.f32 %v4378_v0, %v8843_v29  ;;  %v2960_v19 = vmul.f32 %v4379_v9, %v8843_v29 }
 0x282   :  { %v2961_v18 = vmul.f32 %v4380_v23, %v8843_v29  ;;  %v2962_v25 = vmul.f32 %v4381_v4, %v8843_v29  ;;  %v2963_v35 = vmul.f32 %v4382_v62, %v8843_v29  ;;  %v2964_v34 = vmul.f32 %v4383_v28, %v8843_v29 }
 0x283   :  { %v8931_v10 = vadd.f32 %v2938_v52, %v8805_v57  ;;  %v8934_v37 = vadd.f32 %v2957_v11, %v8816_v27  ;;  %v8937_v63 = vadd.f32 %v2958_v58, %v8819_v22  ;;  %v8940_v61 = vadd.f32 %v2959_v39, %v8822_v54 }
 0x284   :  { %v8943_v8 = vadd.f32 %v2960_v19, %v8825_v36  ;;  %v8946_v16 = vadd.f32 %v2961_v18, %v8828_v59  ;;  %v8949_v29 = vadd.f32 %v2962_v25, %v8831_v49  ;;  %v8952_v57 = vadd.f32 %v2963_v35, %v8834_v40 }
 0x285   :  { %v8955_v27 = vadd.f32 %v2964_v34, %v8837_v30  ;;  %v2974_v22 = vstv %s8890_s14  ;;  %v2992_v31 = vstv %s8895_s15  ;;  %v3010_v54 = vstv %s8897_s20  ;;  %s9698_s14 = sld [smem:[#allocation4 + $0xa2]]  ;;  %s9700_s15 = sld [smem:[#allocation4 + $0x64]] }
 0x286   :  { %v2975_v24 = vmul.f32 %v4376_v51, %v2974_v22  ;;  %v2976_v53 = vmul.f32 %v4377_v47, %v2974_v22  ;;  %v2977_v36 = vmul.f32 %v4378_v0, %v2974_v22  ;;  %v2978_v55 = vmul.f32 %v4379_v9, %v2974_v22  ;;  %s9804_s20 = sld [smem:[#allocation4 + $0x79]] }
 0x287   :  { %v2979_v60 = vmul.f32 %v4380_v23, %v2974_v22  ;;  %v2980_v59 = vmul.f32 %v4381_v4, %v2974_v22  ;;  %v2981_v20 = vmul.f32 %v4382_v62, %v2974_v22  ;;  %v2982_v12 = vmul.f32 %v4383_v28, %v2974_v22 }
 0x288   :  { %v8961_v49 = vadd.f32 %v2975_v24, %v8846_v32  ;;  %v8964_v40 = vadd.f32 %v2976_v53, %v8849_v38  ;;  %v8967_v30 = vadd.f32 %v2977_v36, %v8852_v26  ;;  %v3036_v52 = vstv %s8920_s21  ;;  %s9809_s21 = sld [smem:[#allocation4 + $0x8e]] }
 0x289   :  { %v8971_v11 = vadd.f32 %v2978_v55, %v8855_v44  ;;  %v8974_v58 = vadd.f32 %v2979_v60, %v8858_v41  ;;  %v8977_v39 = vadd.f32 %v2980_v59, %v8861_v5  ;;  %v8980_v19 = vadd.f32 %v2981_v20, %v8864_v50  ;;  %v4388_v20 = vld [vmem:[#allocation2 + $0x23] sm:$0xff] }
 0x28a   :  { %v2993_v32 = vmul.f32 %v4376_v51, %v2992_v31  ;;  %v2994_v18 = vmul.f32 %v4377_v47, %v2992_v31  ;;  %v2995_v38 = vmul.f32 %v4378_v0, %v2992_v31  ;;  %v2996_v25 = vmul.f32 %v4379_v9, %v2992_v31 }
 0x28b   :  { %v8983_v26 = vadd.f32 %v2982_v12, %v8867_v2  ;;  %v2997_v35 = vmul.f32 %v4380_v23, %v2992_v31  ;;  %v2998_v34 = vmul.f32 %v4381_v4, %v2992_v31  ;;  %v2999_v44 = vmul.f32 %v4382_v62, %v2992_v31 }
 0x28c   :  { %v3000_v22 = vmul.f32 %v4383_v28, %v2992_v31  ;;  %v8986_v41 = vadd.f32 %v2993_v32, %v8870_v6  ;;  %v8989_v5 = vadd.f32 %v2994_v18, %v8873_v3  ;;  %v8992_v50 = vadd.f32 %v2995_v38, %v8876_v15  ;;  %v4391_v18 = vld [vmem:[#allocation2 + $0x3b] sm:$0xff] }
 0x28d   :  { %v8995_v24 = vadd.f32 %v2996_v25, %v8879_v46  ;;  %v8998_v53 = vadd.f32 %v2997_v35, %v8882_v21  ;;  %v9001_v2 = vadd.f32 %v2998_v34, %v8885_v56  ;;  %v9004_v31 = vadd.f32 %v2999_v44, %v8888_v13 }
 0x28e   :  { %v3011_v6 = vmul.f32 %v4376_v51, %v3010_v54  ;;  %v3012_v3 = vmul.f32 %v4377_v47, %v3010_v54  ;;  %v3013_v36 = vmul.f32 %v4378_v0, %v3010_v54  ;;  %v3014_v55 = vmul.f32 %v4379_v9, %v3010_v54 }
 0x28f   :  { %v3015_v15 = vmul.f32 %v4380_v23, %v3010_v54  ;;  %v3016_v46 = vmul.f32 %v4381_v4, %v3010_v54  ;;  %v3017_v21 = vmul.f32 %v4382_v62, %v3010_v54  ;;  %v3018_v60 = vmul.f32 %v4383_v28, %v3010_v54  ;;  %v4385_v62 = vld [vmem:[#allocation2 + $0xb] sm:$0xff]  ;;  %v4386_v28 = vld [vmem:[#allocation2 + $0x13] sm:$0xff] }
 0x290   :  { %v9015_v56 = vadd.f32 %v3000_v22, %v8893_v43  ;;  %v9018_v13 = vadd.f32 %v3011_v6, %v8900_v45  ;;  %v9021_v51 = vadd.f32 %v3012_v3, %v8903_v48  ;;  %v9024_v47 = vadd.f32 %v3013_v36, %v8906_v33  ;;  %v4384_v48 = vld [vmem:[#allocation2 + $0x3] sm:$0xff] }
 0x291   :  { %v9027_v0 = vadd.f32 %v3014_v55, %v8909_v7  ;;  %v9030_v9 = vadd.f32 %v3015_v15, %v8912_v14  ;;  %v9033_v23 = vadd.f32 %v3016_v46, %v8915_v1  ;;  %v9036_v43 = vadd.f32 %v3017_v21, %v8918_v17  ;;  %v4387_v7 = vld [vmem:[#allocation2 + $0x1b] sm:$0xff]  ;;  %v4389_v1 = vld [vmem:[#allocation2 + $0x2b] sm:$0xff]  ;;  %v4390_v17 = vld [vmem:[#allocation2 + $0x33] sm:$0xff] }
 0x292   :  { %v9039_v45 = vadd.f32 %v3018_v60, %v8931_v10  ;;  %v3037_v4 = vmul.f32 %v4384_v48, %v3036_v52  ;;  %v3038_v33 = vmul.f32 %v4385_v62, %v3036_v52  ;;  %v3039_v54 = vmul.f32 %v4386_v28, %v3036_v52 }
 0x293   :  { %v3040_v59 = vmul.f32 %v4387_v7, %v3036_v52  ;;  %v3041_v14 = vmul.f32 %v4388_v20, %v3036_v52  ;;  %v3042_v12 = vmul.f32 %v4389_v1, %v3036_v52  ;;  %v3043_v32 = vmul.f32 %v4390_v17, %v3036_v52 }
 0x294   :  { %v3044_v10 = vmul.f32 %v4391_v18, %v3036_v52  ;;  %v9042_v38 = vadd.f32 %v3037_v4, %v8934_v37  ;;  %v9045_v25 = vadd.f32 %v3038_v33, %v8937_v63  ;;  %v9048_v35 = vadd.f32 %v3039_v54, %v8940_v61 }
 0x295   :  { %v9051_v34 = vadd.f32 %v3040_v59, %v8943_v8  ;;  %v9054_v44 = vadd.f32 %v3041_v14, %v8946_v16  ;;  %v9057_v22 = vadd.f32 %v3042_v12, %v8949_v29  ;;  %v9060_v52 = vadd.f32 %v3043_v32, %v8952_v57 }
 0x296   :  { %v9063_v37 = vadd.f32 %v3044_v10, %v8955_v27  ;;  %v3054_v63 = vstv %s9006_s28  ;;  %v3072_v6 = vstv %s9008_s29  ;;  %v3090_v3 = vstv %s9010_s3  ;;  %s9811_s28 = sld [smem:[#allocation4 + $0xa3]]  ;;  %s9813_s29 = sld [smem:[#allocation4 + $0x65]] }
 0x297   :  { %v3055_v61 = vmul.f32 %v4384_v48, %v3054_v63  ;;  %v3056_v36 = vmul.f32 %v4385_v62, %v3054_v63  ;;  %v3057_v55 = vmul.f32 %v4386_v28, %v3054_v63  ;;  %v9069_v8 = vstv %s9012_s27  ;;  %s9922_s3 = sld [smem:[#allocation4 + $0x7a]]  ;;  %s9927_s27 = sld [smem:[#allocation4 + $0x8f]] }
 0x298   :  { %v3058_v15 = vmul.f32 %v4387_v7, %v3054_v63  ;;  %v3059_v16 = vmul.f32 %v4388_v20, %v3054_v63  ;;  %v3060_v46 = vmul.f32 %v4389_v1, %v3054_v63  ;;  %v3061_v21 = vmul.f32 %v4390_v17, %v3054_v63 }
 0x299   :  { %v3062_v29 = vmul.f32 %v4391_v18, %v3054_v63  ;;  %v9072_v60 = vadd.f32 %v3055_v61, %v8961_v49  ;;  %v9075_v57 = vadd.f32 %v3056_v36, %v8964_v40  ;;  %v9078_v27 = vadd.f32 %v3057_v55, %v8967_v30 }
 0x29a   :  { %v9081_v4 = vadd.f32 %v3058_v15, %v8971_v11  ;;  %v9084_v33 = vadd.f32 %v3059_v16, %v8974_v58  ;;  %v9087_v54 = vadd.f32 %v3060_v46, %v8977_v39  ;;  %v9090_v59 = vadd.f32 %v3061_v21, %v8980_v19  ;;  %v4397_v46 = vld [vmem:[#allocation2 + $0x73] sm:$0xff]  ;;  %v4398_v21 = vld [vmem:[#allocation2 + $0x7b] sm:$0xff] }
 0x29b   :  { %v9093_v49 = vadd.f32 %v3062_v29, %v8983_v26  ;;  %v3073_v40 = vmul.f32 %v4384_v48, %v3072_v6  ;;  %v3074_v14 = vmul.f32 %v4385_v62, %v3072_v6  ;;  %v3075_v12 = vmul.f32 %v4386_v28, %v3072_v6 }
 0x29c   :  { %v3076_v30 = vmul.f32 %v4387_v7, %v3072_v6  ;;  %v3077_v32 = vmul.f32 %v4388_v20, %v3072_v6  ;;  %v3078_v10 = vmul.f32 %v4389_v1, %v3072_v6  ;;  %v3079_v11 = vmul.f32 %v4390_v17, %v3072_v6 }
 0x29d   :  { %v3080_v63 = vmul.f32 %v4391_v18, %v3072_v6  ;;  %v9096_v58 = vadd.f32 %v3073_v40, %v8986_v41  ;;  %v9099_v39 = vadd.f32 %v3074_v14, %v8989_v5  ;;  %v9102_v19 = vadd.f32 %v3075_v12, %v8992_v50  ;;  %v4399_v40 = vld [vmem:[#allocation2 + $0x83] sm:$0xff] }
 0x29e   :  { %v9105_v26 = vadd.f32 %v3076_v30, %v8995_v24  ;;  %v9108_v61 = vadd.f32 %v3077_v32, %v8998_v53  ;;  %v9111_v36 = vadd.f32 %v3078_v10, %v9001_v2  ;;  %v9114_v6 = vadd.f32 %v3079_v11, %v9004_v31 }
 0x29f   :  { %v9119_v41 = vadd.f32 %v3080_v63, %v9015_v56  ;;  %v3091_v5 = vmul.f32 %v4384_v48, %v3090_v3  ;;  %v3092_v50 = vmul.f32 %v4385_v62, %v3090_v3  ;;  %v3093_v55 = vmul.f32 %v4386_v28, %v3090_v3 }
 0x2a0   :  { %v3094_v24 = vmul.f32 %v4387_v7, %v3090_v3  ;;  %v3095_v53 = vmul.f32 %v4388_v20, %v3090_v3  ;;  %v3096_v15 = vmul.f32 %v4389_v1, %v3090_v3  ;;  %v3097_v2 = vmul.f32 %v4390_v17, %v3090_v3 }
 0x2a1   :  { %v3098_v31 = vmul.f32 %v4391_v18, %v3090_v3  ;;  %v9128_v16 = vadd.f32 %v3091_v5, %v9018_v13  ;;  %v9131_v56 = vadd.f32 %v3092_v50, %v9021_v51  ;;  %v9134_v48 = vadd.f32 %v3093_v55, %v9024_v47  ;;  %v4392_v51 = vld [vmem:[#allocation2 + $0x4b] sm:$0xff]  ;;  %v4393_v47 = vld [vmem:[#allocation2 + $0x53] sm:$0xff] }
 0x2a2   :  { %v9137_v62 = vadd.f32 %v3094_v24, %v9027_v0  ;;  %v9140_v28 = vadd.f32 %v3095_v53, %v9030_v9  ;;  %v9143_v7 = vadd.f32 %v3096_v15, %v9033_v23  ;;  %v9146_v20 = vadd.f32 %v3097_v2, %v9036_v43  ;;  %v4394_v0 = vld [vmem:[#allocation2 + $0x5b] sm:$0xff]  ;;  %v4395_v9 = vld [vmem:[#allocation2 + $0x63] sm:$0xff]  ;;  %v4396_v23 = vld [vmem:[#allocation2 + $0x6b] sm:$0xff] }
 0x2a3   :  { %v9149_v13 = vadd.f32 %v3098_v31, %v9039_v45  ;;  %v3117_v1 = vmul.f32 %v4392_v51, %v9069_v8  ;;  %v3118_v17 = vmul.f32 %v4393_v47, %v9069_v8  ;;  %v3119_v18 = vmul.f32 %v4394_v0, %v9069_v8 }
 0x2a4   :  { %v3120_v3 = vmul.f32 %v4395_v9, %v9069_v8  ;;  %v3121_v43 = vmul.f32 %v4396_v23, %v9069_v8  ;;  %v3122_v45 = vmul.f32 %v4397_v46, %v9069_v8  ;;  %v3123_v29 = vmul.f32 %v4398_v21, %v9069_v8 }
 0x2a5   :  { %v3124_v14 = vmul.f32 %v4399_v40, %v9069_v8  ;;  %v9160_v12 = vadd.f32 %v3117_v1, %v9042_v38  ;;  %v9163_v30 = vadd.f32 %v3118_v17, %v9045_v25  ;;  %v9166_v32 = vadd.f32 %v3119_v18, %v9048_v35 }
 0x2a6   :  { %v9169_v10 = vadd.f32 %v3120_v3, %v9051_v34  ;;  %v9172_v11 = vadd.f32 %v3121_v43, %v9054_v44  ;;  %v9175_v63 = vadd.f32 %v3122_v45, %v9057_v22  ;;  %v9178_v8 = vadd.f32 %v3123_v29, %v9060_v52 }
 0x2a7   :  { %v9181_v38 = vadd.f32 %v3124_v14, %v9063_v37  ;;  %v3134_v25 = vstv %s9116_s11  ;;  %v3152_v5 = vstv %s9121_s12  ;;  %v3170_v50 = vstv %s9123_s16  ;;  %s9929_s11 = sld [smem:[#allocation4 + $0xa4]]  ;;  %s9952_s12 = sld [smem:[#allocation4 + $0x66]] }
 0x2a8   :  { %v3135_v35 = vmul.f32 %v4392_v51, %v3134_v25  ;;  %v3136_v55 = vmul.f32 %v4393_v47, %v3134_v25  ;;  %v3137_v24 = vmul.f32 %v4394_v0, %v3134_v25  ;;  %v9187_v34 = vstv %s9125_s17  ;;  %s10038_s16 = sld [smem:[#allocation4 + $0x7b]]  ;;  %s10040_s17 = sld [smem:[#allocation4 + $0x90]] }
 0x2a9   :  { %v3138_v53 = vmul.f32 %v4395_v9, %v3134_v25  ;;  %v3139_v44 = vmul.f32 %v4396_v23, %v3134_v25  ;;  %v3140_v15 = vmul.f32 %v4397_v46, %v3134_v25  ;;  %v3141_v2 = vmul.f32 %v4398_v21, %v3134_v25 }
 0x2aa   :  { %v3142_v22 = vmul.f32 %v4399_v40, %v3134_v25  ;;  %v9190_v31 = vadd.f32 %v3135_v35, %v9072_v60  ;;  %v9193_v52 = vadd.f32 %v3136_v55, %v9075_v57  ;;  %v9196_v37 = vadd.f32 %v3137_v24, %v9078_v27 }
 0x2ab   :  { %v9199_v1 = vadd.f32 %v3138_v53, %v9081_v4  ;;  %v9202_v17 = vadd.f32 %v3139_v44, %v9084_v33  ;;  %v9205_v18 = vadd.f32 %v3140_v15, %v9087_v54  ;;  %v9208_v3 = vadd.f32 %v3141_v2, %v9090_v59  ;;  %v4406_v2 = vld [vmem:[#allocation2 + $0xc3] sm:$0xff] }
 0x2ac   :  { %v9211_v60 = vadd.f32 %v3142_v22, %v9093_v49  ;;  %v3153_v57 = vmul.f32 %v4392_v51, %v3152_v5  ;;  %v3154_v43 = vmul.f32 %v4393_v47, %v3152_v5  ;;  %v3155_v45 = vmul.f32 %v4394_v0, %v3152_v5 }
 0x2ad   :  { %v3156_v27 = vmul.f32 %v4395_v9, %v3152_v5  ;;  %v3157_v29 = vmul.f32 %v4396_v23, %v3152_v5  ;;  %v3158_v14 = vmul.f32 %v4397_v46, %v3152_v5  ;;  %v3159_v4 = vmul.f32 %v4398_v21, %v3152_v5 }
 0x2ae   :  { %v3160_v25 = vmul.f32 %v4399_v40, %v3152_v5  ;;  %v9214_v33 = vadd.f32 %v3153_v57, %v9096_v58  ;;  %v9217_v54 = vadd.f32 %v3154_v43, %v9099_v39  ;;  %v9220_v59 = vadd.f32 %v3155_v45, %v9102_v19  ;;  %v4407_v57 = vld [vmem:[#allocation2 + $0xcb] sm:$0xff] }
 0x2af   :  { %v9223_v49 = vadd.f32 %v3156_v27, %v9105_v26  ;;  %v9226_v35 = vadd.f32 %v3157_v29, %v9108_v61  ;;  %v9229_v55 = vadd.f32 %v3158_v14, %v9111_v36  ;;  %v9232_v5 = vadd.f32 %v3159_v4, %v9114_v6 }
 0x2b0   :  { %v9237_v58 = vadd.f32 %v3160_v25, %v9119_v41  ;;  %v3171_v39 = vmul.f32 %v4392_v51, %v3170_v50  ;;  %v3172_v19 = vmul.f32 %v4393_v47, %v3170_v50  ;;  %v3173_v24 = vmul.f32 %v4394_v0, %v3170_v50 }
 0x2b1   :  { %v3174_v26 = vmul.f32 %v4395_v9, %v3170_v50  ;;  %v3175_v61 = vmul.f32 %v4396_v23, %v3170_v50  ;;  %v3176_v53 = vmul.f32 %v4397_v46, %v3170_v50  ;;  %v3177_v36 = vmul.f32 %v4398_v21, %v3170_v50  ;;  %v4401_v23 = vld [vmem:[#allocation2 + $0x9b] sm:$0xff]  ;;  %v4402_v46 = vld [vmem:[#allocation2 + $0xa3] sm:$0xff]  ;;  %v4403_v21 = vld [vmem:[#allocation2 + $0xab] sm:$0xff] }
 0x2b2   :  { %v3178_v44 = vmul.f32 %v4399_v40, %v3170_v50  ;;  %v9244_v6 = vadd.f32 %v3171_v39, %v9128_v16  ;;  %v9247_v15 = vadd.f32 %v3172_v19, %v9131_v56  ;;  %v9250_v41 = vadd.f32 %v3173_v24, %v9134_v48  ;;  %v4400_v16 = vld [vmem:[#allocation2 + $0x93] sm:$0xff] }
 0x2b3   :  { %v9253_v51 = vadd.f32 %v3174_v26, %v9137_v62  ;;  %v9256_v47 = vadd.f32 %v3175_v61, %v9140_v28  ;;  %v9259_v0 = vadd.f32 %v3176_v53, %v9143_v7  ;;  %v9262_v9 = vadd.f32 %v3177_v36, %v9146_v20  ;;  %v4404_v40 = vld [vmem:[#allocation2 + $0xb3] sm:$0xff]  ;;  %v4405_v20 = vld [vmem:[#allocation2 + $0xbb] sm:$0xff] }
 0x2b4   :  { %v3197_v56 = vmul.f32 %v4400_v16, %v9187_v34  ;;  %v3198_v48 = vmul.f32 %v4401_v23, %v9187_v34  ;;  %v3199_v62 = vmul.f32 %v4402_v46, %v9187_v34  ;;  %v3200_v28 = vmul.f32 %v4403_v21, %v9187_v34 }
 0x2b5   :  { %v3201_v7 = vmul.f32 %v4404_v40, %v9187_v34  ;;  %v3202_v50 = vmul.f32 %v4405_v20, %v9187_v34  ;;  %v3203_v22 = vmul.f32 %v4406_v2, %v9187_v34  ;;  %v3204_v43 = vmul.f32 %v4407_v57, %v9187_v34 }
 0x2b6   :  { %v9275_v45 = vadd.f32 %v3178_v44, %v9149_v13  ;;  %v9278_v27 = vadd.f32 %v3197_v56, %v9160_v12  ;;  %v9281_v29 = vadd.f32 %v3198_v48, %v9163_v30  ;;  %v9284_v14 = vadd.f32 %v3199_v62, %v9166_v32 }
 0x2b7   :  { %v9287_v4 = vadd.f32 %v3200_v28, %v9169_v10  ;;  %v9290_v25 = vadd.f32 %v3201_v7, %v9172_v11  ;;  %v9293_v34 = vadd.f32 %v3202_v50, %v9175_v63  ;;  %v9296_v13 = vadd.f32 %v3203_v22, %v9178_v8 }
 0x2b8   :  { %v9299_v12 = vadd.f32 %v3204_v43, %v9181_v38  ;;  %v3214_v30 = vstv %s9234_s18  ;;  %v3232_v39 = vstv %s9239_s19  ;;  %v3250_v32 = vstv %s9241_s22  ;;  %s10042_s18 = sld [smem:[#allocation4 + $0xa5]]  ;;  %s10044_s19 = sld [smem:[#allocation4 + $0x67]] }
 0x2b9   :  { %v3215_v19 = vmul.f32 %v4400_v16, %v3214_v30  ;;  %v3216_v24 = vmul.f32 %v4401_v23, %v3214_v30  ;;  %v3217_v10 = vmul.f32 %v4402_v46, %v3214_v30  ;;  %v3218_v26 = vmul.f32 %v4403_v21, %v3214_v30  ;;  %s10148_s22 = sld [smem:[#allocation4 + $0x7c]] }
 0x2ba   :  { %v3219_v61 = vmul.f32 %v4404_v40, %v3214_v30  ;;  %v3220_v11 = vmul.f32 %v4405_v20, %v3214_v30  ;;  %v3221_v53 = vmul.f32 %v4406_v2, %v3214_v30  ;;  %v3222_v36 = vmul.f32 %v4407_v57, %v3214_v30 }
 0x2bb   :  { %v9305_v63 = vadd.f32 %v3215_v19, %v9190_v31  ;;  %v9308_v8 = vadd.f32 %v3216_v24, %v9193_v52  ;;  %v9311_v38 = vadd.f32 %v3217_v10, %v9196_v37  ;;  %v3276_v44 = vstv %s9264_s23  ;;  %s10153_s23 = sld [smem:[#allocation4 + $0x91]] }
 0x2bc   :  { %v9315_v56 = vadd.f32 %v3218_v26, %v9199_v1  ;;  %v9318_v48 = vadd.f32 %v3219_v61, %v9202_v17  ;;  %v9321_v62 = vadd.f32 %v3220_v11, %v9205_v18  ;;  %v9324_v28 = vadd.f32 %v3221_v53, %v9208_v3  ;;  %v4412_v53 = vld [vmem:[#allocation2 + $0x24] sm:$0xff] }
 0x2bd   :  { %v3233_v31 = vmul.f32 %v4400_v16, %v3232_v39  ;;  %v3234_v7 = vmul.f32 %v4401_v23, %v3232_v39  ;;  %v3235_v52 = vmul.f32 %v4402_v46, %v3232_v39  ;;  %v3236_v50 = vmul.f32 %v4403_v21, %v3232_v39 }
 0x2be   :  { %v9327_v37 = vadd.f32 %v3222_v36, %v9211_v60  ;;  %v3237_v22 = vmul.f32 %v4404_v40, %v3232_v39  ;;  %v3238_v43 = vmul.f32 %v4405_v20, %v3232_v39  ;;  %v3239_v1 = vmul.f32 %v4406_v2, %v3232_v39 }
 0x2bf   :  { %v3240_v30 = vmul.f32 %v4407_v57, %v3232_v39  ;;  %v9330_v17 = vadd.f32 %v3233_v31, %v9214_v33  ;;  %v9333_v18 = vadd.f32 %v3234_v7, %v9217_v54  ;;  %v9336_v3 = vadd.f32 %v3235_v52, %v9220_v59  ;;  %v4415_v7 = vld [vmem:[#allocation2 + $0x3c] sm:$0xff] }
 0x2c0   :  { %v9339_v19 = vadd.f32 %v3236_v50, %v9223_v49  ;;  %v9342_v24 = vadd.f32 %v3237_v22, %v9226_v35  ;;  %v9345_v60 = vadd.f32 %v3238_v43, %v9229_v55  ;;  %v9348_v39 = vadd.f32 %v3239_v1, %v9232_v5 }
 0x2c1   :  { %v3251_v33 = vmul.f32 %v4400_v16, %v3250_v32  ;;  %v3252_v54 = vmul.f32 %v4401_v23, %v3250_v32  ;;  %v3253_v10 = vmul.f32 %v4402_v46, %v3250_v32  ;;  %v3254_v26 = vmul.f32 %v4403_v21, %v3250_v32 }
 0x2c2   :  { %v3255_v59 = vmul.f32 %v4404_v40, %v3250_v32  ;;  %v3256_v49 = vmul.f32 %v4405_v20, %v3250_v32  ;;  %v3257_v35 = vmul.f32 %v4406_v2, %v3250_v32  ;;  %v3258_v61 = vmul.f32 %v4407_v57, %v3250_v32  ;;  %v4409_v2 = vld [vmem:[#allocation2 + $0xc] sm:$0xff]  ;;  %v4410_v57 = vld [vmem:[#allocation2 + $0x14] sm:$0xff] }
 0x2c3   :  { %v9359_v55 = vadd.f32 %v3240_v30, %v9237_v58  ;;  %v9362_v5 = vadd.f32 %v3251_v33, %v9244_v6  ;;  %v9365_v16 = vadd.f32 %v3252_v54, %v9247_v15  ;;  %v9368_v23 = vadd.f32 %v3253_v10, %v9250_v41  ;;  %v4408_v15 = vld [vmem:[#allocation2 + $0x4] sm:$0xff] }
 0x2c4   :  { %v9371_v46 = vadd.f32 %v3254_v26, %v9253_v51  ;;  %v9374_v21 = vadd.f32 %v3255_v59, %v9256_v47  ;;  %v9377_v40 = vadd.f32 %v3256_v49, %v9259_v0  ;;  %v9380_v58 = vadd.f32 %v3257_v35, %v9262_v9  ;;  %v4411_v51 = vld [vmem:[#allocation2 + $0x1c] sm:$0xff]  ;;  %v4413_v0 = vld [vmem:[#allocation2 + $0x2c] sm:$0xff]  ;;  %v4414_v9 = vld [vmem:[#allocation2 + $0x34] sm:$0xff] }
 0x2c5   :  { %v9383_v6 = vadd.f32 %v3258_v61, %v9275_v45  ;;  %v3277_v20 = vmul.f32 %v4408_v15, %v3276_v44  ;;  %v3278_v41 = vmul.f32 %v4409_v2, %v3276_v44  ;;  %v3279_v32 = vmul.f32 %v4410_v57, %v3276_v44 }
 0x2c6   :  { %v3280_v11 = vmul.f32 %v4411_v51, %v3276_v44  ;;  %v3281_v47 = vmul.f32 %v4412_v53, %v3276_v44  ;;  %v3282_v36 = vmul.f32 %v4413_v0, %v3276_v44  ;;  %v3283_v31 = vmul.f32 %v4414_v9, %v3276_v44 }
 0x2c7   :  { %v3284_v45 = vmul.f32 %v4415_v7, %v3276_v44  ;;  %v9386_v52 = vadd.f32 %v3277_v20, %v9278_v27  ;;  %v9389_v50 = vadd.f32 %v3278_v41, %v9281_v29  ;;  %v9392_v22 = vadd.f32 %v3279_v32, %v9284_v14 }
 0x2c8   :  { %v9395_v43 = vadd.f32 %v3280_v11, %v9287_v4  ;;  %v9398_v1 = vadd.f32 %v3281_v47, %v9290_v25  ;;  %v9401_v30 = vadd.f32 %v3282_v36, %v9293_v34  ;;  %v9404_v44 = vadd.f32 %v3283_v31, %v9296_v13 }
 0x2c9   :  { %v9407_v27 = vadd.f32 %v3284_v45, %v9299_v12  ;;  %v3294_v29 = vstv %s9350_s1  ;;  %v3312_v33 = vstv %s9352_s0  ;;  %v3330_v54 = vstv %s9354_s24  ;;  %s10155_s1 = sld [smem:[#allocation4 + $0xa6]]  ;;  %s10157_s0 = sld [smem:[#allocation4 + $0x68]] }
 0x2ca   :  { %v3295_v14 = vmul.f32 %v4408_v15, %v3294_v29  ;;  %v3296_v10 = vmul.f32 %v4409_v2, %v3294_v29  ;;  %v3297_v26 = vmul.f32 %v4410_v57, %v3294_v29  ;;  %v9413_v4 = vstv %s9356_s25  ;;  %s10266_s24 = sld [smem:[#allocation4 + $0x7d]]  ;;  %s10271_s25 = sld [smem:[#allocation4 + $0x92]] }
 0x2cb   :  { %v3298_v59 = vmul.f32 %v4411_v51, %v3294_v29  ;;  %v3299_v25 = vmul.f32 %v4412_v53, %v3294_v29  ;;  %v3300_v49 = vmul.f32 %v4413_v0, %v3294_v29  ;;  %v3301_v35 = vmul.f32 %v4414_v9, %v3294_v29 }
 0x2cc   :  { %v3302_v34 = vmul.f32 %v4415_v7, %v3294_v29  ;;  %v9416_v61 = vadd.f32 %v3295_v14, %v9305_v63  ;;  %v9419_v13 = vadd.f32 %v3296_v10, %v9308_v8  ;;  %v9422_v12 = vadd.f32 %v3297_v26, %v9311_v38 }
 0x2cd   :  { %v9425_v20 = vadd.f32 %v3298_v59, %v9315_v56  ;;  %v9428_v41 = vadd.f32 %v3299_v25, %v9318_v48  ;;  %v9431_v32 = vadd.f32 %v3300_v49, %v9321_v62  ;;  %v9434_v11 = vadd.f32 %v3301_v35, %v9324_v28  ;;  %v4421_v49 = vld [vmem:[#allocation2 + $0x74] sm:$0xff]  ;;  %v4422_v35 = vld [vmem:[#allocation2 + $0x7c] sm:$0xff] }
 0x2ce   :  { %v9437_v63 = vadd.f32 %v3302_v34, %v9327_v37  ;;  %v3313_v8 = vmul.f32 %v4408_v15, %v3312_v33  ;;  %v3314_v47 = vmul.f32 %v4409_v2, %v3312_v33  ;;  %v3315_v36 = vmul.f32 %v4410_v57, %v3312_v33 }
 0x2cf   :  { %v3316_v38 = vmul.f32 %v4411_v51, %v3312_v33  ;;  %v3317_v31 = vmul.f32 %v4412_v53, %v3312_v33  ;;  %v3318_v45 = vmul.f32 %v4413_v0, %v3312_v33  ;;  %v3319_v56 = vmul.f32 %v4414_v9, %v3312_v33 }
 0x2d0   :  { %v3320_v29 = vmul.f32 %v4415_v7, %v3312_v33  ;;  %v9440_v48 = vadd.f32 %v3313_v8, %v9330_v17  ;;  %v9443_v62 = vadd.f32 %v3314_v47, %v9333_v18  ;;  %v9446_v28 = vadd.f32 %v3315_v36, %v9336_v3  ;;  %v4423_v8 = vld [vmem:[#allocation2 + $0x84] sm:$0xff] }
 0x2d1   :  { %v9449_v37 = vadd.f32 %v3316_v38, %v9339_v19  ;;  %v9452_v14 = vadd.f32 %v3317_v31, %v9342_v24  ;;  %v9455_v10 = vadd.f32 %v3318_v45, %v9345_v60  ;;  %v9458_v33 = vadd.f32 %v3319_v56, %v9348_v39 }
 0x2d2   :  { %v9463_v17 = vadd.f32 %v3320_v29, %v9359_v55  ;;  %v3331_v18 = vmul.f32 %v4408_v15, %v3330_v54  ;;  %v3332_v3 = vmul.f32 %v4409_v2, %v3330_v54  ;;  %v3333_v26 = vmul.f32 %v4410_v57, %v3330_v54 }
 0x2d3   :  { %v3334_v19 = vmul.f32 %v4411_v51, %v3330_v54  ;;  %v3335_v24 = vmul.f32 %v4412_v53, %v3330_v54  ;;  %v3336_v59 = vmul.f32 %v4413_v0, %v3330_v54  ;;  %v3337_v60 = vmul.f32 %v4414_v9, %v3330_v54 }
 0x2d4   :  { %v3338_v39 = vmul.f32 %v4415_v7, %v3330_v54  ;;  %v9472_v25 = vadd.f32 %v3331_v18, %v9362_v5  ;;  %v9475_v55 = vadd.f32 %v3332_v3, %v9365_v16  ;;  %v9478_v15 = vadd.f32 %v3333_v26, %v9368_v23  ;;  %v4416_v16 = vld [vmem:[#allocation2 + $0x4c] sm:$0xff]  ;;  %v4417_v23 = vld [vmem:[#allocation2 + $0x54] sm:$0xff] }
 0x2d5   :  { %v9481_v2 = vadd.f32 %v3334_v19, %v9371_v46  ;;  %v9484_v57 = vadd.f32 %v3335_v24, %v9374_v21  ;;  %v9487_v51 = vadd.f32 %v3336_v59, %v9377_v40  ;;  %v9490_v53 = vadd.f32 %v3337_v60, %v9380_v58  ;;  %v4418_v46 = vld [vmem:[#allocation2 + $0x5c] sm:$0xff]  ;;  %v4419_v21 = vld [vmem:[#allocation2 + $0x64] sm:$0xff]  ;;  %v4420_v40 = vld [vmem:[#allocation2 + $0x6c] sm:$0xff] }
 0x2d6   :  { %v9493_v5 = vadd.f32 %v3338_v39, %v9383_v6  ;;  %v3357_v0 = vmul.f32 %v4416_v16, %v9413_v4  ;;  %v3358_v9 = vmul.f32 %v4417_v23, %v9413_v4  ;;  %v3359_v7 = vmul.f32 %v4418_v46, %v9413_v4 }
 0x2d7   :  { %v3360_v54 = vmul.f32 %v4419_v21, %v9413_v4  ;;  %v3361_v58 = vmul.f32 %v4420_v40, %v9413_v4  ;;  %v3362_v6 = vmul.f32 %v4421_v49, %v9413_v4  ;;  %v3363_v34 = vmul.f32 %v4422_v35, %v9413_v4 }
 0x2d8   :  { %v3364_v47 = vmul.f32 %v4423_v8, %v9413_v4  ;;  %v9504_v36 = vadd.f32 %v3357_v0, %v9386_v52  ;;  %v9507_v38 = vadd.f32 %v3358_v9, %v9389_v50  ;;  %v9510_v31 = vadd.f32 %v3359_v7, %v9392_v22 }
 0x2d9   :  { %v9513_v45 = vadd.f32 %v3360_v54, %v9395_v43  ;;  %v9516_v56 = vadd.f32 %v3361_v58, %v9398_v1  ;;  %v9519_v29 = vadd.f32 %v3362_v6, %v9401_v30  ;;  %v9522_v4 = vadd.f32 %v3363_v34, %v9404_v44 }
 0x2da   :  { %v9525_v52 = vadd.f32 %v3364_v47, %v9407_v27  ;;  %v3374_v50 = vstv %s9460_s26  ;;  %v3392_v18 = vstv %s9465_s2  ;;  %v3410_v3 = vstv %s9467_s30  ;;  %s10273_s26 = sld [smem:[#allocation4 + $0xa7]]  ;;  %s10284_s2 = sld [smem:[#allocation8 + $0x4]] }
 0x2db   :  { %v3375_v22 = vmul.f32 %v4416_v16, %v3374_v50  ;;  %v3376_v26 = vmul.f32 %v4417_v23, %v3374_v50  ;;  %v3377_v19 = vmul.f32 %v4418_v46, %v3374_v50  ;;  %v9531_v43 = vstv %s9469_s5  ;;  %s10363_s30 = sld [smem:[#allocation8 + $0x5]]  ;;  %s10375_s5 = sld [smem:[#allocation8 + $0x6]] }
 0x2dc   :  { %v3378_v24 = vmul.f32 %v4419_v21, %v3374_v50  ;;  %v3379_v1 = vmul.f32 %v4420_v40, %v3374_v50  ;;  %v3380_v59 = vmul.f32 %v4421_v49, %v3374_v50  ;;  %v3381_v60 = vmul.f32 %v4422_v35, %v3374_v50 }
 0x2dd   :  { %v3382_v30 = vmul.f32 %v4423_v8, %v3374_v50  ;;  %v9534_v39 = vadd.f32 %v3375_v22, %v9416_v61  ;;  %v9537_v44 = vadd.f32 %v3376_v26, %v9419_v13  ;;  %v9540_v27 = vadd.f32 %v3377_v19, %v9422_v12 }
 0x2de   :  { %v9543_v0 = vadd.f32 %v3378_v24, %v9425_v20  ;;  %v9546_v9 = vadd.f32 %v3379_v1, %v9428_v41  ;;  %v9549_v7 = vadd.f32 %v3380_v59, %v9431_v32  ;;  %v9552_v54 = vadd.f32 %v3381_v60, %v9434_v11  ;;  %v4430_v60 = vld [vmem:[#allocation2 + $0xc4] sm:$0xff] }
 0x2df   :  { %v9555_v61 = vadd.f32 %v3382_v30, %v9437_v63  ;;  %v3393_v13 = vmul.f32 %v4416_v16, %v3392_v18  ;;  %v3394_v58 = vmul.f32 %v4417_v23, %v3392_v18  ;;  %v3395_v6 = vmul.f32 %v4418_v46, %v3392_v18 }
 0x2e0   :  { %v3396_v12 = vmul.f32 %v4419_v21, %v3392_v18  ;;  %v3397_v34 = vmul.f32 %v4420_v40, %v3392_v18  ;;  %v3398_v47 = vmul.f32 %v4421_v49, %v3392_v18  ;;  %v3399_v20 = vmul.f32 %v4422_v35, %v3392_v18 }
 0x2e1   :  { %v3400_v50 = vmul.f32 %v4423_v8, %v3392_v18  ;;  %v9558_v41 = vadd.f32 %v3393_v13, %v9440_v48  ;;  %v9561_v32 = vadd.f32 %v3394_v58, %v9443_v62  ;;  %v9564_v11 = vadd.f32 %v3395_v6, %v9446_v28  ;;  %v4431_v13 = vld [vmem:[#allocation2 + $0xcc] sm:$0xff] }
 0x2e2   :  { %v9567_v63 = vadd.f32 %v3396_v12, %v9449_v37  ;;  %v9570_v22 = vadd.f32 %v3397_v34, %v9452_v14  ;;  %v9573_v26 = vadd.f32 %v3398_v47, %v9455_v10  ;;  %v9576_v18 = vadd.f32 %v3399_v20, %v9458_v33 }
 0x2e3   :  { %v9581_v48 = vadd.f32 %v3400_v50, %v9463_v17  ;;  %v3411_v62 = vmul.f32 %v4416_v16, %v3410_v3  ;;  %v3412_v28 = vmul.f32 %v4417_v23, %v3410_v3  ;;  %v3413_v19 = vmul.f32 %v4418_v46, %v3410_v3 }
 0x2e4   :  { %v3414_v37 = vmul.f32 %v4419_v21, %v3410_v3  ;;  %v3415_v14 = vmul.f32 %v4420_v40, %v3410_v3  ;;  %v3416_v24 = vmul.f32 %v4421_v49, %v3410_v3  ;;  %v3417_v10 = vmul.f32 %v4422_v35, %v3410_v3  ;;  %v4425_v40 = vld [vmem:[#allocation2 + $0x9c] sm:$0xff]  ;;  %v4426_v49 = vld [vmem:[#allocation2 + $0xa4] sm:$0xff]  ;;  %v4427_v35 = vld [vmem:[#allocation2 + $0xac] sm:$0xff] }
 0x2e5   :  { %v3418_v1 = vmul.f32 %v4423_v8, %v3410_v3  ;;  %v9588_v33 = vadd.f32 %v3411_v62, %v9472_v25  ;;  %v9591_v59 = vadd.f32 %v3412_v28, %v9475_v55  ;;  %v9594_v17 = vadd.f32 %v3413_v19, %v9478_v15  ;;  %v4424_v25 = vld [vmem:[#allocation2 + $0x94] sm:$0xff] }
 0x2e6   :  { %v9597_v16 = vadd.f32 %v3414_v37, %v9481_v2  ;;  %v9600_v23 = vadd.f32 %v3415_v14, %v9484_v57  ;;  %v9603_v46 = vadd.f32 %v3416_v24, %v9487_v51  ;;  %v9606_v21 = vadd.f32 %v3417_v10, %v9490_v53  ;;  %v4428_v8 = vld [vmem:[#allocation2 + $0xb4] sm:$0xff]  ;;  %v4429_v53 = vld [vmem:[#allocation2 + $0xbc] sm:$0xff] }
 0x2e7   :  { %v3437_v55 = vmul.f32 %v4424_v25, %v9531_v43  ;;  %v3438_v15 = vmul.f32 %v4425_v40, %v9531_v43  ;;  %v3439_v2 = vmul.f32 %v4426_v49, %v9531_v43  ;;  %v3440_v57 = vmul.f32 %v4427_v35, %v9531_v43 }
 0x2e8   :  { %v3441_v51 = vmul.f32 %v4428_v8, %v9531_v43  ;;  %v3442_v3 = vmul.f32 %v4429_v53, %v9531_v43  ;;  %v3443_v30 = vmul.f32 %v4430_v60, %v9531_v43  ;;  %v3444_v58 = vmul.f32 %v4431_v13, %v9531_v43 }
 0x2e9   :  { %v9619_v6 = vadd.f32 %v3418_v1, %v9493_v5  ;;  %v9622_v12 = vadd.f32 %v3437_v55, %v9504_v36  ;;  %v9625_v34 = vadd.f32 %v3438_v15, %v9507_v38  ;;  %v9628_v47 = vadd.f32 %v3439_v2, %v9510_v31 }
 0x2ea   :  { %v9631_v20 = vadd.f32 %v3440_v57, %v9513_v45  ;;  %v9634_v50 = vadd.f32 %v3441_v51, %v9516_v56  ;;  %v9637_v43 = vadd.f32 %v3442_v3, %v9519_v29  ;;  %v9640_v5 = vadd.f32 %v3443_v30, %v9522_v4 }
 0x2eb   :  { %v9643_v36 = vadd.f32 %v3444_v58, %v9525_v52  ;;  %v3454_v38 = vstv %s9578_s6  ;;  %v3472_v62 = vstv %s9583_s7  ;;  %v3490_v31 = vstv %s9585_s8  ;;  %s10377_s6 = sld [smem:[#allocation8 + $0x7]] }
 0x2ec   :  { %v3455_v28 = vmul.f32 %v4424_v25, %v3454_v38  ;;  %v3456_v19 = vmul.f32 %v4425_v40, %v3454_v38  ;;  %v3457_v45 = vmul.f32 %v4426_v49, %v3454_v38  ;;  %v3458_v37 = vmul.f32 %v4427_v35, %v3454_v38 }
 0x2ed   :  { %v3459_v14 = vmul.f32 %v4428_v8, %v3454_v38  ;;  %v3460_v56 = vmul.f32 %v4429_v53, %v3454_v38  ;;  %v3461_v24 = vmul.f32 %v4430_v60, %v3454_v38  ;;  %v3462_v10 = vmul.f32 %v4431_v13, %v3454_v38 }
 0x2ee   :  { %v9649_v29 = vadd.f32 %v3455_v28, %v9534_v39  ;;  %v9652_v4 = vadd.f32 %v3456_v19, %v9537_v44  ;;  %v9655_v52 = vadd.f32 %v3457_v45, %v9540_v27  ;;  %v3516_v1 = vstv %s9608_s9 }
 0x2ef   :  { %v9659_v55 = vadd.f32 %v3458_v37, %v9543_v0  ;;  %v9662_v15 = vadd.f32 %v3459_v14, %v9546_v9  ;;  %v9665_v2 = vadd.f32 %v3460_v56, %v9549_v7  ;;  %v9668_v57 = vadd.f32 %v3461_v24, %v9552_v54  ;;  %v4436_v24 = vld [vmem:[#allocation2 + $0x25] sm:$0xff] }
 0x2f0   :  { %v3473_v39 = vmul.f32 %v4424_v25, %v3472_v62  ;;  %v3474_v51 = vmul.f32 %v4425_v40, %v3472_v62  ;;  %v3475_v44 = vmul.f32 %v4426_v49, %v3472_v62  ;;  %v3476_v3 = vmul.f32 %v4427_v35, %v3472_v62 }
 0x2f1   :  { %v9671_v27 = vadd.f32 %v3462_v10, %v9555_v61  ;;  %v3477_v30 = vmul.f32 %v4428_v8, %v3472_v62  ;;  %v3478_v58 = vmul.f32 %v4429_v53, %v3472_v62  ;;  %v3479_v0 = vmul.f32 %v4430_v60, %v3472_v62 }
 0x2f2   :  { %v3480_v38 = vmul.f32 %v4431_v13, %v3472_v62  ;;  %v9674_v9 = vadd.f32 %v3473_v39, %v9558_v41  ;;  %v9677_v7 = vadd.f32 %v3474_v51, %v9561_v32  ;;  %v9680_v54 = vadd.f32 %v3475_v44, %v9564_v11  ;;  %v4439_v51 = vld [vmem:[#allocation2 + $0x3d] sm:$0xff] }
 0x2f3   :  { %v9683_v28 = vadd.f32 %v3476_v3, %v9567_v63  ;;  %v9686_v19 = vadd.f32 %v3477_v30, %v9570_v22  ;;  %v9689_v61 = vadd.f32 %v3478_v58, %v9573_v26  ;;  %v9692_v62 = vadd.f32 %v3479_v0, %v9576_v18 }
 0x2f4   :  { %v3491_v41 = vmul.f32 %v4424_v25, %v3490_v31  ;;  %v3492_v32 = vmul.f32 %v4425_v40, %v3490_v31  ;;  %v3493_v45 = vmul.f32 %v4426_v49, %v3490_v31  ;;  %v3494_v37 = vmul.f32 %v4427_v35, %v3490_v31 }
 0x2f5   :  { %v3495_v11 = vmul.f32 %v4428_v8, %v3490_v31  ;;  %v3496_v63 = vmul.f32 %v4429_v53, %v3490_v31  ;;  %v3497_v22 = vmul.f32 %v4430_v60, %v3490_v31  ;;  %v3498_v14 = vmul.f32 %v4431_v13, %v3490_v31  ;;  %v4433_v60 = vld [vmem:[#allocation2 + $0xd] sm:$0xff]  ;;  %v4434_v13 = vld [vmem:[#allocation2 + $0x15] sm:$0xff] }
 0x2f6   :  { %v9703_v26 = vadd.f32 %v3480_v38, %v9581_v48  ;;  %v9706_v18 = vadd.f32 %v3491_v41, %v9588_v33  ;;  %v9709_v25 = vadd.f32 %v3492_v32, %v9591_v59  ;;  %v9712_v40 = vadd.f32 %v3493_v45, %v9594_v17  ;;  %v4432_v59 = vld [vmem:[#allocation2 + $0x5] sm:$0xff] }
 0x2f7   :  { %v9715_v49 = vadd.f32 %v3494_v37, %v9597_v16  ;;  %v9718_v35 = vadd.f32 %v3495_v11, %v9600_v23  ;;  %v9721_v8 = vadd.f32 %v3496_v63, %v9603_v46  ;;  %v9724_v48 = vadd.f32 %v3497_v22, %v9606_v21  ;;  %v4435_v16 = vld [vmem:[#allocation2 + $0x1d] sm:$0xff]  ;;  %v4437_v46 = vld [vmem:[#allocation2 + $0x2d] sm:$0xff]  ;;  %v4438_v21 = vld [vmem:[#allocation2 + $0x35] sm:$0xff] }
 0x2f8   :  { %v9727_v33 = vadd.f32 %v3498_v14, %v9619_v6  ;;  %v3517_v53 = vmul.f32 %v4432_v59, %v3516_v1  ;;  %v3518_v17 = vmul.f32 %v4433_v60, %v3516_v1  ;;  %v3519_v31 = vmul.f32 %v4434_v13, %v3516_v1 }
 0x2f9   :  { %v3520_v56 = vmul.f32 %v4435_v16, %v3516_v1  ;;  %v3521_v23 = vmul.f32 %v4436_v24, %v3516_v1  ;;  %v3522_v10 = vmul.f32 %v4437_v46, %v3516_v1  ;;  %v3523_v39 = vmul.f32 %v4438_v21, %v3516_v1 }
 0x2fa   :  { %v3524_v6 = vmul.f32 %v4439_v51, %v3516_v1  ;;  %v9730_v44 = vadd.f32 %v3517_v53, %v9622_v12  ;;  %v9733_v3 = vadd.f32 %v3518_v17, %v9625_v34  ;;  %v9736_v30 = vadd.f32 %v3519_v31, %v9628_v47 }
 0x2fb   :  { %v9739_v58 = vadd.f32 %v3520_v56, %v9631_v20  ;;  %v9742_v0 = vadd.f32 %v3521_v23, %v9634_v50  ;;  %v9745_v38 = vadd.f32 %v3522_v10, %v9637_v43  ;;  %v9748_v1 = vadd.f32 %v3523_v39, %v9640_v5 }
 0x2fc   :  { %v9751_v12 = vadd.f32 %v3524_v6, %v9643_v36  ;;  %v3534_v34 = vstv %s9694_s10  ;;  %v3552_v41 = vstv %s9696_s13  ;;  %v3570_v32 = vstv %s9698_s14 }
 0x2fd   :  { %v3535_v47 = vmul.f32 %v4432_v59, %v3534_v34  ;;  %v3536_v45 = vmul.f32 %v4433_v60, %v3534_v34  ;;  %v3537_v37 = vmul.f32 %v4434_v13, %v3534_v34  ;;  %v9757_v20 = vstv %s9700_s15 }
 0x2fe   :  { %v3538_v11 = vmul.f32 %v4435_v16, %v3534_v34  ;;  %v3539_v50 = vmul.f32 %v4436_v24, %v3534_v34  ;;  %v3540_v63 = vmul.f32 %v4437_v46, %v3534_v34  ;;  %v3541_v22 = vmul.f32 %v4438_v21, %v3534_v34 }
 0x2ff   :  { %v3542_v43 = vmul.f32 %v4439_v51, %v3534_v34  ;;  %v9760_v14 = vadd.f32 %v3535_v47, %v9649_v29  ;;  %v9763_v5 = vadd.f32 %v3536_v45, %v9652_v4  ;;  %v9766_v36 = vadd.f32 %v3537_v37, %v9655_v52 }
 0x300   :  { %v9769_v53 = vadd.f32 %v3538_v11, %v9659_v55  ;;  %v9772_v17 = vadd.f32 %v3539_v50, %v9662_v15  ;;  %v9775_v31 = vadd.f32 %v3540_v63, %v9665_v2  ;;  %v9778_v56 = vadd.f32 %v3541_v22, %v9668_v57  ;;  %v4445_v63 = vld [vmem:[#allocation2 + $0x75] sm:$0xff]  ;;  %v4446_v22 = vld [vmem:[#allocation2 + $0x7d] sm:$0xff] }
 0x301   :  { %v9781_v29 = vadd.f32 %v3542_v43, %v9671_v27  ;;  %v3553_v4 = vmul.f32 %v4432_v59, %v3552_v41  ;;  %v3554_v23 = vmul.f32 %v4433_v60, %v3552_v41  ;;  %v3555_v10 = vmul.f32 %v4434_v13, %v3552_v41 }
 0x302   :  { %v3556_v52 = vmul.f32 %v4435_v16, %v3552_v41  ;;  %v3557_v39 = vmul.f32 %v4436_v24, %v3552_v41  ;;  %v3558_v6 = vmul.f32 %v4437_v46, %v3552_v41  ;;  %v3559_v55 = vmul.f32 %v4438_v21, %v3552_v41 }
 0x303   :  { %v3560_v34 = vmul.f32 %v4439_v51, %v3552_v41  ;;  %v9784_v15 = vadd.f32 %v3553_v4, %v9674_v9  ;;  %v9787_v2 = vadd.f32 %v3554_v23, %v9677_v7  ;;  %v9790_v57 = vadd.f32 %v3555_v10, %v9680_v54  ;;  %v4447_v4 = vld [vmem:[#allocation2 + $0x85] sm:$0xff] }
 0x304   :  { %v9793_v27 = vadd.f32 %v3556_v52, %v9683_v28  ;;  %v9796_v47 = vadd.f32 %v3557_v39, %v9686_v19  ;;  %v9799_v45 = vadd.f32 %v3558_v6, %v9689_v61  ;;  %v9802_v41 = vadd.f32 %v3559_v55, %v9692_v62 }
 0x305   :  { %v9807_v9 = vadd.f32 %v3560_v34, %v9703_v26  ;;  %v3571_v7 = vmul.f32 %v4432_v59, %v3570_v32  ;;  %v3572_v54 = vmul.f32 %v4433_v60, %v3570_v32  ;;  %v3573_v37 = vmul.f32 %v4434_v13, %v3570_v32 }
 0x306   :  { %v3574_v28 = vmul.f32 %v4435_v16, %v3570_v32  ;;  %v3575_v19 = vmul.f32 %v4436_v24, %v3570_v32  ;;  %v3576_v11 = vmul.f32 %v4437_v46, %v3570_v32  ;;  %v3577_v61 = vmul.f32 %v4438_v21, %v3570_v32 }
 0x307   :  { %v3578_v62 = vmul.f32 %v4439_v51, %v3570_v32  ;;  %v9816_v50 = vadd.f32 %v3571_v7, %v9706_v18  ;;  %v9819_v26 = vadd.f32 %v3572_v54, %v9709_v25  ;;  %v9822_v59 = vadd.f32 %v3573_v37, %v9712_v40  ;;  %v4440_v25 = vld [vmem:[#allocation2 + $0x4d] sm:$0xff]  ;;  %v4441_v40 = vld [vmem:[#allocation2 + $0x55] sm:$0xff] }
 0x308   :  { %v9825_v60 = vadd.f32 %v3574_v28, %v9715_v49  ;;  %v9828_v13 = vadd.f32 %v3575_v19, %v9718_v35  ;;  %v9831_v16 = vadd.f32 %v3576_v11, %v9721_v8  ;;  %v9834_v24 = vadd.f32 %v3577_v61, %v9724_v48  ;;  %v4442_v49 = vld [vmem:[#allocation2 + $0x5d] sm:$0xff]  ;;  %v4443_v35 = vld [vmem:[#allocation2 + $0x65] sm:$0xff]  ;;  %v4444_v8 = vld [vmem:[#allocation2 + $0x6d] sm:$0xff] }
 0x309   :  { %v9837_v18 = vadd.f32 %v3578_v62, %v9727_v33  ;;  %v3597_v46 = vmul.f32 %v4440_v25, %v9757_v20  ;;  %v3598_v21 = vmul.f32 %v4441_v40, %v9757_v20  ;;  %v3599_v51 = vmul.f32 %v4442_v49, %v9757_v20 }
 0x30a   :  { %v3600_v32 = vmul.f32 %v4443_v35, %v9757_v20  ;;  %v3601_v48 = vmul.f32 %v4444_v8, %v9757_v20  ;;  %v3602_v33 = vmul.f32 %v4445_v63, %v9757_v20  ;;  %v3603_v43 = vmul.f32 %v4446_v22, %v9757_v20 }
 0x30b   :  { %v3604_v23 = vmul.f32 %v4447_v4, %v9757_v20  ;;  %v9848_v10 = vadd.f32 %v3597_v46, %v9730_v44  ;;  %v9851_v52 = vadd.f32 %v3598_v21, %v9733_v3  ;;  %v9854_v39 = vadd.f32 %v3599_v51, %v9736_v30 }
 0x30c   :  { %v9857_v6 = vadd.f32 %v3600_v32, %v9739_v58  ;;  %v9860_v55 = vadd.f32 %v3601_v48, %v9742_v0  ;;  %v9863_v34 = vadd.f32 %v3602_v33, %v9745_v38  ;;  %v9866_v20 = vadd.f32 %v3603_v43, %v9748_v1 }
 0x30d   :  { %v9869_v44 = vadd.f32 %v3604_v23, %v9751_v12  ;;  %v3614_v3 = vstv %s9804_s20  ;;  %v3632_v7 = vstv %s9809_s21  ;;  %v3650_v54 = vstv %s9811_s28 }
 0x30e   :  { %v3615_v30 = vmul.f32 %v4440_v25, %v3614_v3  ;;  %v3616_v37 = vmul.f32 %v4441_v40, %v3614_v3  ;;  %v3617_v28 = vmul.f32 %v4442_v49, %v3614_v3  ;;  %v9875_v58 = vstv %s9813_s29 }
 0x30f   :  { %v3618_v19 = vmul.f32 %v4443_v35, %v3614_v3  ;;  %v3619_v0 = vmul.f32 %v4444_v8, %v3614_v3  ;;  %v3620_v11 = vmul.f32 %v4445_v63, %v3614_v3  ;;  %v3621_v61 = vmul.f32 %v4446_v22, %v3614_v3 }
 0x310   :  { %v3622_v38 = vmul.f32 %v4447_v4, %v3614_v3  ;;  %v9878_v62 = vadd.f32 %v3615_v30, %v9760_v14  ;;  %v9881_v1 = vadd.f32 %v3616_v37, %v9763_v5  ;;  %v9884_v12 = vadd.f32 %v3617_v28, %v9766_v36 }
 0x311   :  { %v9887_v46 = vadd.f32 %v3618_v19, %v9769_v53  ;;  %v9890_v21 = vadd.f32 %v3619_v0, %v9772_v17  ;;  %v9893_v51 = vadd.f32 %v3620_v11, %v9775_v31  ;;  %v9896_v32 = vadd.f32 %v3621_v61, %v9778_v56  ;;  %v4454_v61 = vld [vmem:[#allocation2 + $0xc5] sm:$0xff] }
 0x312   :  { %v9899_v14 = vadd.f32 %v3622_v38, %v9781_v29  ;;  %v3633_v5 = vmul.f32 %v4440_v25, %v3632_v7  ;;  %v3634_v48 = vmul.f32 %v4441_v40, %v3632_v7  ;;  %v3635_v33 = vmul.f32 %v4442_v49, %v3632_v7 }
 0x313   :  { %v3636_v36 = vmul.f32 %v4443_v35, %v3632_v7  ;;  %v3637_v43 = vmul.f32 %v4444_v8, %v3632_v7  ;;  %v3638_v23 = vmul.f32 %v4445_v63, %v3632_v7  ;;  %v3639_v53 = vmul.f32 %v4446_v22, %v3632_v7 }
 0x314   :  { %v3640_v3 = vmul.f32 %v4447_v4, %v3632_v7  ;;  %v9902_v17 = vadd.f32 %v3633_v5, %v9784_v15  ;;  %v9905_v31 = vadd.f32 %v3634_v48, %v9787_v2  ;;  %v9908_v56 = vadd.f32 %v3635_v33, %v9790_v57  ;;  %v4455_v5 = vld [vmem:[#allocation2 + $0xcd] sm:$0xff] }
 0x315   :  { %v9911_v29 = vadd.f32 %v3636_v36, %v9793_v27  ;;  %v9914_v30 = vadd.f32 %v3637_v43, %v9796_v47  ;;  %v9917_v37 = vadd.f32 %v3638_v23, %v9799_v45  ;;  %v9920_v7 = vadd.f32 %v3639_v53, %v9802_v41 }
 0x316   :  { %v9925_v15 = vadd.f32 %v3640_v3, %v9807_v9  ;;  %v3651_v2 = vmul.f32 %v4440_v25, %v3650_v54  ;;  %v3652_v57 = vmul.f32 %v4441_v40, %v3650_v54  ;;  %v3653_v28 = vmul.f32 %v4442_v49, %v3650_v54 }
 0x317   :  { %v3654_v27 = vmul.f32 %v4443_v35, %v3650_v54  ;;  %v3655_v47 = vmul.f32 %v4444_v8, %v3650_v54  ;;  %v3656_v19 = vmul.f32 %v4445_v63, %v3650_v54  ;;  %v3657_v45 = vmul.f32 %v4446_v22, %v3650_v54  ;;  %v4449_v8 = vld [vmem:[#allocation2 + $0x9d] sm:$0xff]  ;;  %v4450_v63 = vld [vmem:[#allocation2 + $0xa5] sm:$0xff]  ;;  %v4451_v22 = vld [vmem:[#allocation2 + $0xad] sm:$0xff] }
 0x318   :  { %v3658_v0 = vmul.f32 %v4447_v4, %v3650_v54  ;;  %v9932_v41 = vadd.f32 %v3651_v2, %v9816_v50  ;;  %v9935_v11 = vadd.f32 %v3652_v57, %v9819_v26  ;;  %v9938_v9 = vadd.f32 %v3653_v28, %v9822_v59  ;;  %v4448_v50 = vld [vmem:[#allocation2 + $0x95] sm:$0xff] }
 0x319   :  { %v9941_v25 = vadd.f32 %v3654_v27, %v9825_v60  ;;  %v9944_v40 = vadd.f32 %v3655_v47, %v9828_v13  ;;  %v9947_v49 = vadd.f32 %v3656_v19, %v9831_v16  ;;  %v9950_v35 = vadd.f32 %v3657_v45, %v9834_v24  ;;  %v4452_v4 = vld [vmem:[#allocation2 + $0xb5] sm:$0xff]  ;;  %v4453_v24 = vld [vmem:[#allocation2 + $0xbd] sm:$0xff] }
 0x31a   :  { %v3677_v26 = vmul.f32 %v4448_v50, %v9875_v58  ;;  %v3678_v59 = vmul.f32 %v4449_v8, %v9875_v58  ;;  %v3679_v60 = vmul.f32 %v4450_v63, %v9875_v58  ;;  %v3680_v13 = vmul.f32 %v4451_v22, %v9875_v58 }
 0x31b   :  { %v3681_v16 = vmul.f32 %v4452_v4, %v9875_v58  ;;  %v3682_v54 = vmul.f32 %v4453_v24, %v9875_v58  ;;  %v3683_v38 = vmul.f32 %v4454_v61, %v9875_v58  ;;  %v3684_v48 = vmul.f32 %v4455_v5, %v9875_v58 }
 0x31c   :  { %v9963_v33 = vadd.f32 %v3658_v0, %v9837_v18  ;;  %v9966_v36 = vadd.f32 %v3677_v26, %v9848_v10  ;;  %v9969_v43 = vadd.f32 %v3678_v59, %v9851_v52  ;;  %v9972_v23 = vadd.f32 %v3679_v60, %v9854_v39 }
 0x31d   :  { %v9975_v53 = vadd.f32 %v3680_v13, %v9857_v6  ;;  %v9978_v3 = vadd.f32 %v3681_v16, %v9860_v55  ;;  %v9981_v58 = vadd.f32 %v3682_v54, %v9863_v34  ;;  %v9984_v18 = vadd.f32 %v3683_v38, %v9866_v20 }
 0x31e   :  { %v9987_v10 = vadd.f32 %v3684_v48, %v9869_v44  ;;  %v3694_v52 = vstv %s9922_s3  ;;  %v3712_v2 = vstv %s9927_s27  ;;  %v3730_v39 = vstv %s9929_s11 }
 0x31f   :  { %v3695_v57 = vmul.f32 %v4448_v50, %v3694_v52  ;;  %v3696_v28 = vmul.f32 %v4449_v8, %v3694_v52  ;;  %v3697_v6 = vmul.f32 %v4450_v63, %v3694_v52  ;;  %v3698_v27 = vmul.f32 %v4451_v22, %v3694_v52 }
 0x320   :  { %v3699_v47 = vmul.f32 %v4452_v4, %v3694_v52  ;;  %v3700_v55 = vmul.f32 %v4453_v24, %v3694_v52  ;;  %v3701_v19 = vmul.f32 %v4454_v61, %v3694_v52  ;;  %v3702_v45 = vmul.f32 %v4455_v5, %v3694_v52 }
 0x321   :  { %v9993_v34 = vadd.f32 %v3695_v57, %v9878_v62  ;;  %v9996_v20 = vadd.f32 %v3696_v28, %v9881_v1  ;;  %v9999_v44 = vadd.f32 %v3697_v6, %v9884_v12  ;;  %v3756_v0 = vstv %s9952_s12 }
 0x322   :  { %v10003_v26 = vadd.f32 %v3698_v27, %v9887_v46  ;;  %v10006_v59 = vadd.f32 %v3699_v47, %v9890_v21  ;;  %v10009_v60 = vadd.f32 %v3700_v55, %v9893_v51  ;;  %v10012_v13 = vadd.f32 %v3701_v19, %v9896_v32  ;;  %v4460_v19 = vld [vmem:[#allocation2 + $0x26] sm:$0xff] }
 0x323   :  { %v3713_v62 = vmul.f32 %v4448_v50, %v3712_v2  ;;  %v3714_v16 = vmul.f32 %v4449_v8, %v3712_v2  ;;  %v3715_v1 = vmul.f32 %v4450_v63, %v3712_v2  ;;  %v3716_v54 = vmul.f32 %v4451_v22, %v3712_v2 }
 0x324   :  { %v10015_v12 = vadd.f32 %v3702_v45, %v9899_v14  ;;  %v3717_v38 = vmul.f32 %v4452_v4, %v3712_v2  ;;  %v3718_v48 = vmul.f32 %v4453_v24, %v3712_v2  ;;  %v3719_v46 = vmul.f32 %v4454_v61, %v3712_v2 }
 0x325   :  { %v3720_v52 = vmul.f32 %v4455_v5, %v3712_v2  ;;  %v10018_v21 = vadd.f32 %v3713_v62, %v9902_v17  ;;  %v10021_v51 = vadd.f32 %v3714_v16, %v9905_v31  ;;  %v10024_v32 = vadd.f32 %v3715_v1, %v9908_v56  ;;  %v4463_v16 = vld [vmem:[#allocation2 + $0x3e] sm:$0xff] }
 0x326   :  { %v10027_v57 = vadd.f32 %v3716_v54, %v9911_v29  ;;  %v10030_v28 = vadd.f32 %v3717_v38, %v9914_v30  ;;  %v10033_v14 = vadd.f32 %v3718_v48, %v9917_v37  ;;  %v10036_v2 = vadd.f32 %v3719_v46, %v9920_v7 }
 0x327   :  { %v3731_v17 = vmul.f32 %v4448_v50, %v3730_v39  ;;  %v3732_v31 = vmul.f32 %v4449_v8, %v3730_v39  ;;  %v3733_v6 = vmul.f32 %v4450_v63, %v3730_v39  ;;  %v3734_v27 = vmul.f32 %v4451_v22, %v3730_v39 }
 0x328   :  { %v3735_v56 = vmul.f32 %v4452_v4, %v3730_v39  ;;  %v3736_v29 = vmul.f32 %v4453_v24, %v3730_v39  ;;  %v3737_v30 = vmul.f32 %v4454_v61, %v3730_v39  ;;  %v3738_v47 = vmul.f32 %v4455_v5, %v3730_v39  ;;  %v4457_v61 = vld [vmem:[#allocation2 + $0xe] sm:$0xff]  ;;  %v4458_v5 = vld [vmem:[#allocation2 + $0x16] sm:$0xff] }
 0x329   :  { %v10047_v37 = vadd.f32 %v3720_v52, %v9925_v15  ;;  %v10050_v7 = vadd.f32 %v3731_v17, %v9932_v41  ;;  %v10053_v50 = vadd.f32 %v3732_v31, %v9935_v11  ;;  %v10056_v8 = vadd.f32 %v3733_v6, %v9938_v9  ;;  %v4456_v11 = vld [vmem:[#allocation2 + $0x6] sm:$0xff] }
 0x32a   :  { %v10059_v63 = vadd.f32 %v3734_v27, %v9941_v25  ;;  %v10062_v22 = vadd.f32 %v3735_v56, %v9944_v40  ;;  %v10065_v4 = vadd.f32 %v3736_v29, %v9947_v49  ;;  %v10068_v15 = vadd.f32 %v3737_v30, %v9950_v35  ;;  %v4459_v25 = vld [vmem:[#allocation2 + $0x1e] sm:$0xff]  ;;  %v4461_v49 = vld [vmem:[#allocation2 + $0x2e] sm:$0xff]  ;;  %v4462_v35 = vld [vmem:[#allocation2 + $0x36] sm:$0xff] }
 0x32b   :  { %v10071_v41 = vadd.f32 %v3738_v47, %v9963_v33  ;;  %v3757_v24 = vmul.f32 %v4456_v11, %v3756_v0  ;;  %v3758_v9 = vmul.f32 %v4457_v61, %v3756_v0  ;;  %v3759_v39 = vmul.f32 %v4458_v5, %v3756_v0 }
 0x32c   :  { %v3760_v55 = vmul.f32 %v4459_v25, %v3756_v0  ;;  %v3761_v40 = vmul.f32 %v4460_v19, %v3756_v0  ;;  %v3762_v45 = vmul.f32 %v4461_v49, %v3756_v0  ;;  %v3763_v62 = vmul.f32 %v4462_v35, %v3756_v0 }
 0x32d   :  { %v3764_v33 = vmul.f32 %v4463_v16, %v3756_v0  ;;  %v10074_v1 = vadd.f32 %v3757_v24, %v9966_v36  ;;  %v10077_v54 = vadd.f32 %v3758_v9, %v9969_v43  ;;  %v10080_v38 = vadd.f32 %v3759_v39, %v9972_v23 }
 0x32e   :  { %v10083_v48 = vadd.f32 %v3760_v55, %v9975_v53  ;;  %v10086_v46 = vadd.f32 %v3761_v40, %v9978_v3  ;;  %v10089_v52 = vadd.f32 %v3762_v45, %v9981_v58  ;;  %v10092_v0 = vadd.f32 %v3763_v62, %v9984_v18 }
 0x32f   :  { %v10095_v36 = vadd.f32 %v3764_v33, %v9987_v10  ;;  %v3774_v43 = vstv %s10038_s16  ;;  %v3792_v17 = vstv %s10040_s17  ;;  %v3810_v31 = vstv %s10042_s18 }
 0x330   :  { %v3775_v23 = vmul.f32 %v4456_v11, %v3774_v43  ;;  %v3776_v6 = vmul.f32 %v4457_v61, %v3774_v43  ;;  %v3777_v27 = vmul.f32 %v4458_v5, %v3774_v43  ;;  %v10101_v53 = vstv %s10044_s19 }
 0x331   :  { %v3778_v56 = vmul.f32 %v4459_v25, %v3774_v43  ;;  %v3779_v3 = vmul.f32 %v4460_v19, %v3774_v43  ;;  %v3780_v29 = vmul.f32 %v4461_v49, %v3774_v43  ;;  %v3781_v30 = vmul.f32 %v4462_v35, %v3774_v43 }
 0x332   :  { %v3782_v58 = vmul.f32 %v4463_v16, %v3774_v43  ;;  %v10104_v47 = vadd.f32 %v3775_v23, %v9993_v34  ;;  %v10107_v18 = vadd.f32 %v3776_v6, %v9996_v20  ;;  %v10110_v10 = vadd.f32 %v3777_v27, %v9999_v44 }
 0x333   :  { %v10113_v24 = vadd.f32 %v3778_v56, %v10003_v26  ;;  %v10116_v9 = vadd.f32 %v3779_v3, %v10006_v59  ;;  %v10119_v39 = vadd.f32 %v3780_v29, %v10009_v60  ;;  %v10122_v55 = vadd.f32 %v3781_v30, %v10012_v13  ;;  %v4469_v29 = vld [vmem:[#allocation2 + $0x76] sm:$0xff]  ;;  %v4470_v30 = vld [vmem:[#allocation2 + $0x7e] sm:$0xff] }
 0x334   :  { %v10125_v34 = vadd.f32 %v3782_v58, %v10015_v12  ;;  %v3793_v20 = vmul.f32 %v4456_v11, %v3792_v17  ;;  %v3794_v40 = vmul.f32 %v4457_v61, %v3792_v17  ;;  %v3795_v45 = vmul.f32 %v4458_v5, %v3792_v17 }
 0x335   :  { %v3796_v44 = vmul.f32 %v4459_v25, %v3792_v17  ;;  %v3797_v62 = vmul.f32 %v4460_v19, %v3792_v17  ;;  %v3798_v33 = vmul.f32 %v4461_v49, %v3792_v17  ;;  %v3799_v26 = vmul.f32 %v4462_v35, %v3792_v17 }
 0x336   :  { %v3800_v43 = vmul.f32 %v4463_v16, %v3792_v17  ;;  %v10128_v59 = vadd.f32 %v3793_v20, %v10018_v21  ;;  %v10131_v60 = vadd.f32 %v3794_v40, %v10021_v51  ;;  %v10134_v13 = vadd.f32 %v3795_v45, %v10024_v32  ;;  %v4471_v20 = vld [vmem:[#allocation2 + $0x86] sm:$0xff] }
 0x337   :  { %v10137_v12 = vadd.f32 %v3796_v44, %v10027_v57  ;;  %v10140_v23 = vadd.f32 %v3797_v62, %v10030_v28  ;;  %v10143_v6 = vadd.f32 %v3798_v33, %v10033_v14  ;;  %v10146_v17 = vadd.f32 %v3799_v26, %v10036_v2 }
 0x338   :  { %v10151_v21 = vadd.f32 %v3800_v43, %v10047_v37  ;;  %v3811_v51 = vmul.f32 %v4456_v11, %v3810_v31  ;;  %v3812_v32 = vmul.f32 %v4457_v61, %v3810_v31  ;;  %v3813_v27 = vmul.f32 %v4458_v5, %v3810_v31 }
 0x339   :  { %v3814_v57 = vmul.f32 %v4459_v25, %v3810_v31  ;;  %v3815_v28 = vmul.f32 %v4460_v19, %v3810_v31  ;;  %v3816_v56 = vmul.f32 %v4461_v49, %v3810_v31  ;;  %v3817_v14 = vmul.f32 %v4462_v35, %v3810_v31 }
 0x33a   :  { %v3818_v2 = vmul.f32 %v4463_v16, %v3810_v31  ;;  %v10160_v3 = vadd.f32 %v3811_v51, %v10050_v7  ;;  %v10163_v37 = vadd.f32 %v3812_v32, %v10053_v50  ;;  %v10166_v11 = vadd.f32 %v3813_v27, %v10056_v8  ;;  %v4464_v50 = vld [vmem:[#allocation2 + $0x4e] sm:$0xff]  ;;  %v4465_v8 = vld [vmem:[#allocation2 + $0x56] sm:$0xff] }
 0x33b   :  { %v10169_v61 = vadd.f32 %v3814_v57, %v10059_v63  ;;  %v10172_v5 = vadd.f32 %v3815_v28, %v10062_v22  ;;  %v10175_v25 = vadd.f32 %v3816_v56, %v10065_v4  ;;  %v10178_v19 = vadd.f32 %v3817_v14, %v10068_v15  ;;  %v4466_v63 = vld [vmem:[#allocation2 + $0x5e] sm:$0xff]  ;;  %v4467_v22 = vld [vmem:[#allocation2 + $0x66] sm:$0xff]  ;;  %v4468_v4 = vld [vmem:[#allocation2 + $0x6e] sm:$0xff] }
 0x33c   :  { %v10181_v7 = vadd.f32 %v3818_v2, %v10071_v41  ;;  %v3837_v49 = vmul.f32 %v4464_v50, %v10101_v53  ;;  %v3838_v35 = vmul.f32 %v4465_v8, %v10101_v53  ;;  %v3839_v16 = vmul.f32 %v4466_v63, %v10101_v53 }
 0x33d   :  { %v3840_v31 = vmul.f32 %v4467_v22, %v10101_v53  ;;  %v3841_v15 = vmul.f32 %v4468_v4, %v10101_v53  ;;  %v3842_v41 = vmul.f32 %v4469_v29, %v10101_v53  ;;  %v3843_v58 = vmul.f32 %v4470_v30, %v10101_v53 }
 0x33e   :  { %v3844_v40 = vmul.f32 %v4471_v20, %v10101_v53  ;;  %v10192_v45 = vadd.f32 %v3837_v49, %v10074_v1  ;;  %v10195_v44 = vadd.f32 %v3838_v35, %v10077_v54  ;;  %v10198_v62 = vadd.f32 %v3839_v16, %v10080_v38 }
 0x33f   :  { %v10201_v33 = vadd.f32 %v3840_v31, %v10083_v48  ;;  %v10204_v26 = vadd.f32 %v3841_v15, %v10086_v46  ;;  %v10207_v43 = vadd.f32 %v3842_v41, %v10089_v52  ;;  %v10210_v53 = vadd.f32 %v3843_v58, %v10092_v0 }
 0x340   :  { %v10213_v1 = vadd.f32 %v3844_v40, %v10095_v36  ;;  %v3854_v54 = vstv %s10148_s22  ;;  %v3872_v51 = vstv %s10153_s23  ;;  %v3890_v32 = vstv %s10155_s1 }
 0x341   :  { %v3855_v38 = vmul.f32 %v4464_v50, %v3854_v54  ;;  %v3856_v27 = vmul.f32 %v4465_v8, %v3854_v54  ;;  %v3857_v57 = vmul.f32 %v4466_v63, %v3854_v54  ;;  %v10219_v48 = vstv %s10157_s0 }
 0x342   :  { %v3858_v28 = vmul.f32 %v4467_v22, %v3854_v54  ;;  %v3859_v46 = vmul.f32 %v4468_v4, %v3854_v54  ;;  %v3860_v56 = vmul.f32 %v4469_v29, %v3854_v54  ;;  %v3861_v14 = vmul.f32 %v4470_v30, %v3854_v54 }
 0x343   :  { %v3862_v52 = vmul.f32 %v4471_v20, %v3854_v54  ;;  %v10222_v2 = vadd.f32 %v3855_v38, %v10104_v47  ;;  %v10225_v0 = vadd.f32 %v3856_v27, %v10107_v18  ;;  %v10228_v36 = vadd.f32 %v3857_v57, %v10110_v10 }
 0x344   :  { %v10231_v49 = vadd.f32 %v3858_v28, %v10113_v24  ;;  %v10234_v35 = vadd.f32 %v3859_v46, %v10116_v9  ;;  %v10237_v16 = vadd.f32 %v3860_v56, %v10119_v39  ;;  %v10240_v31 = vadd.f32 %v3861_v14, %v10122_v55  ;;  %v4478_v14 = vld [vmem:[#allocation2 + $0xc6] sm:$0xff] }
 0x345   :  { %v10243_v47 = vadd.f32 %v3862_v52, %v10125_v34  ;;  %v3873_v18 = vmul.f32 %v4464_v50, %v3872_v51  ;;  %v3874_v15 = vmul.f32 %v4465_v8, %v3872_v51  ;;  %v3875_v41 = vmul.f32 %v4466_v63, %v3872_v51 }
 0x346   :  { %v3876_v10 = vmul.f32 %v4467_v22, %v3872_v51  ;;  %v3877_v58 = vmul.f32 %v4468_v4, %v3872_v51  ;;  %v3878_v40 = vmul.f32 %v4469_v29, %v3872_v51  ;;  %v3879_v24 = vmul.f32 %v4470_v30, %v3872_v51 }
 0x347   :  { %v3880_v54 = vmul.f32 %v4471_v20, %v3872_v51  ;;  %v10246_v9 = vadd.f32 %v3873_v18, %v10128_v59  ;;  %v10249_v39 = vadd.f32 %v3874_v15, %v10131_v60  ;;  %v10252_v55 = vadd.f32 %v3875_v41, %v10134_v13  ;;  %v4479_v18 = vld [vmem:[#allocation2 + $0xce] sm:$0xff] }
 0x348   :  { %v10255_v34 = vadd.f32 %v3876_v10, %v10137_v12  ;;  %v10258_v38 = vadd.f32 %v3877_v58, %v10140_v23  ;;  %v10261_v27 = vadd.f32 %v3878_v40, %v10143_v6  ;;  %v10264_v51 = vadd.f32 %v3879_v24, %v10146_v17 }
 0x349   :  { %v10269_v59 = vadd.f32 %v3880_v54, %v10151_v21  ;;  %v3891_v60 = vmul.f32 %v4464_v50, %v3890_v32  ;;  %v3892_v13 = vmul.f32 %v4465_v8, %v3890_v32  ;;  %v3893_v57 = vmul.f32 %v4466_v63, %v3890_v32 }
 0x34a   :  { %v3894_v12 = vmul.f32 %v4467_v22, %v3890_v32  ;;  %v3895_v23 = vmul.f32 %v4468_v4, %v3890_v32  ;;  %v3896_v28 = vmul.f32 %v4469_v29, %v3890_v32  ;;  %v3897_v6 = vmul.f32 %v4470_v30, %v3890_v32  ;;  %v10298_v22 = vld [vmem:[#allocation2 + $0x96] sm:$0xff]  ;;  %v4474_v29 = vld [vmem:[#allocation2 + $0xa6] sm:$0xff]  ;;  %v4475_v30 = vld [vmem:[#allocation2 + $0xae] sm:$0xff] }
 0x34b   :  { %v3898_v46 = vmul.f32 %v4471_v20, %v3890_v32  ;;  %v10276_v17 = vadd.f32 %v3891_v60, %v10160_v3  ;;  %v10279_v56 = vadd.f32 %v3892_v13, %v10163_v37  ;;  %v10282_v21 = vadd.f32 %v3893_v57, %v10166_v11  ;;  %v4473_v11 = vld [vmem:[#allocation2 + $0x9e] sm:$0xff]  ;;  %v4476_v20 = vld [vmem:[#allocation2 + $0xb6] sm:$0xff] }
 0x34c   :  { %v10287_v50 = vadd.f32 %v3894_v12, %v10169_v61  ;;  %v10290_v8 = vadd.f32 %v3895_v23, %v10172_v5  ;;  %v10293_v63 = vadd.f32 %v3896_v28, %v10175_v25  ;;  %v10296_v3 = vadd.f32 %v3897_v6, %v10178_v19  ;;  %v4477_v19 = vld [vmem:[#allocation2 + $0xbe] sm:$0xff] }
 0x34d   :  { %v3917_v37 = vmul.f32 %v10298_v22, %v10219_v48  ;;  %v3918_v4 = vmul.f32 %v4473_v11, %v10219_v48  ;;  %v3919_v61 = vmul.f32 %v4474_v29, %v10219_v48  ;;  %v3920_v5 = vmul.f32 %v4475_v30, %v10219_v48 }
 0x34e   :  { %v3921_v25 = vmul.f32 %v4476_v20, %v10219_v48  ;;  %v3922_v32 = vmul.f32 %v4477_v19, %v10219_v48  ;;  %v3923_v52 = vmul.f32 %v4478_v14, %v10219_v48  ;;  %v3924_v15 = vmul.f32 %v4479_v18, %v10219_v48 }
 0x34f   :  { %v10310_v41 = vadd.f32 %v3898_v46, %v10181_v7  ;;  %v10313_v10 = vadd.f32 %v3917_v37, %v10192_v45  ;;  %v10316_v58 = vadd.f32 %v3918_v4, %v10195_v44  ;;  %v10319_v40 = vadd.f32 %v3919_v61, %v10198_v62 }
 0x350   :  { %v10322_v24 = vadd.f32 %v3920_v5, %v10201_v33  ;;  %v10325_v54 = vadd.f32 %v3921_v25, %v10204_v26  ;;  %v10328_v48 = vadd.f32 %v3922_v32, %v10207_v43  ;;  %v10331_v7 = vadd.f32 %v3923_v52, %v10210_v53 }
 0x351   :  { %v10334_v45 = vadd.f32 %v3924_v15, %v10213_v1  ;;  %v3934_v44 = vstv %s10266_s24  ;;  %v3952_v60 = vstv %s10271_s25  ;;  %v3970_v62 = vstv %s10273_s26 }
 0x352   :  { %v3935_v13 = vmul.f32 %v10298_v22, %v3934_v44  ;;  %v3936_v57 = vmul.f32 %v4473_v11, %v3934_v44  ;;  %v3937_v33 = vmul.f32 %v4474_v29, %v3934_v44  ;;  %v3938_v12 = vmul.f32 %v4475_v30, %v3934_v44 }
 0x353   :  { %v3939_v23 = vmul.f32 %v4476_v20, %v3934_v44  ;;  %v3940_v26 = vmul.f32 %v4477_v19, %v3934_v44  ;;  %v3941_v28 = vmul.f32 %v4478_v14, %v3934_v44  ;;  %v3988_v6 = vstv %s10284_s2 }
 0x354   :  { %v3942_v43 = vmul.f32 %v4479_v18, %v3934_v44  ;;  %v10342_v46 = vadd.f32 %v3935_v13, %v10222_v2  ;;  %v10345_v53 = vadd.f32 %v3936_v57, %v10225_v0  ;;  %v10348_v1 = vadd.f32 %v3937_v33, %v10228_v36 }
 0x355   :  { %v10351_v37 = vadd.f32 %v3938_v12, %v10231_v49  ;;  %v10354_v4 = vadd.f32 %v3939_v23, %v10234_v35  ;;  %v10357_v61 = vadd.f32 %v3940_v26, %v10237_v16  ;;  %v10360_v5 = vadd.f32 %v3941_v28, %v10240_v31 }
 0x356   :  { %v3953_v2 = vmul.f32 %v10298_v22, %v3952_v60  ;;  %v3954_v25 = vmul.f32 %v4473_v11, %v3952_v60  ;;  %v3955_v0 = vmul.f32 %v4474_v29, %v3952_v60  ;;  %v3956_v32 = vmul.f32 %v4475_v30, %v3952_v60 }
 0x357   :  { %v3957_v52 = vmul.f32 %v4476_v20, %v3952_v60  ;;  %v3958_v36 = vmul.f32 %v4477_v19, %v3952_v60  ;;  %v3959_v15 = vmul.f32 %v4478_v14, %v3952_v60  ;;  %v3960_v44 = vmul.f32 %v4479_v18, %v3952_v60 }
 0x358   :  { %v3950_v49 = vadd.f32 %v3942_v43, %v10243_v47  ;;  %v10367_v35 = vadd.f32 %v3953_v2, %v10246_v9  ;;  %v10370_v16 = vadd.f32 %v3954_v25, %v10249_v39  ;;  %v10373_v31 = vadd.f32 %v3955_v0, %v10252_v55 }
 0x359   :  { %v10380_v13 = vadd.f32 %v3956_v32, %v10255_v34  ;;  %v10383_v60 = vadd.f32 %v3957_v52, %v10258_v38  ;;  %v10386_v47 = vadd.f32 %v3958_v36, %v10261_v27  ;;  %v10389_v9 = vadd.f32 %v3959_v15, %v10264_v51 }
 0x35a   :  { %v3971_v39 = vmul.f32 %v10298_v22, %v3970_v62  ;;  %v3972_v55 = vmul.f32 %v4473_v11, %v3970_v62  ;;  %v3973_v57 = vmul.f32 %v4474_v29, %v3970_v62  ;;  %v3974_v33 = vmul.f32 %v4475_v30, %v3970_v62 }
 0x35b   :  { %v10393_v12 = vadd.f32 %v3960_v44, %v10269_v59  ;;  %v3975_v23 = vmul.f32 %v4476_v20, %v3970_v62  ;;  %v3976_v34 = vmul.f32 %v4477_v19, %v3970_v62  ;;  %v3977_v26 = vmul.f32 %v4478_v14, %v3970_v62 }
 0x35c   :  { %v3978_v28 = vmul.f32 %v4479_v18, %v3970_v62  ;;  %v10396_v38 = vadd.f32 %v3971_v39, %v10276_v17  ;;  %v10399_v27 = vadd.f32 %v3972_v55, %v10279_v56  ;;  %v10402_v51 = vadd.f32 %v3973_v57, %v10282_v21 }
 0x35d   :  { %v10405_v22 = vadd.f32 %v3974_v33, %v10287_v50  ;;  %v10408_v11 = vadd.f32 %v3975_v23, %v10290_v8  ;;  %v10411_v59 = vadd.f32 %v3976_v34, %v10293_v63  ;;  %v10414_v29 = vadd.f32 %v3977_v26, %v10296_v3 }
 0x35e   :  { %v3989_v17 = vsel %vm7762_vm6, %v10313_v10, %v3988_v6  ;;  %v3990_v56 = vsel %vm7762_vm6, %v10316_v58, %v3988_v6  ;;  %v3991_v21 = vsel %vm7762_vm6, %v10319_v40, %v3988_v6  ;;  %v3992_v50 = vsel %vm7762_vm6, %v10322_v24, %v3988_v6 }
 0x35f   :  { %v3993_v8 = vsel %vm7762_vm6, %v10325_v54, %v3988_v6  ;;  %v3994_v63 = vsel %vm7762_vm6, %v10328_v48, %v3988_v6  ;;  %v3995_v3 = vsel %vm7762_vm6, %v10331_v7, %v3988_v6  ;;  %v3996_v30 = vsel %vm7762_vm6, %v10334_v45, %v3988_v6  ;;  %4271 = vst.msk [vmem:[%s10646_s4 + $0x100] sm:$0xff] %vm2232_vm5, %v3989_v17 }
 0x360   :  { %4272 = vst.msk [vmem:[%s10646_s4 + $0x108] sm:$0xff] %vm2232_vm5, %v3990_v56  ;;  %4273 = vst.msk [vmem:[%s10646_s4 + $0x110] sm:$0xff] %vm2232_vm5, %v3991_v21  ;;  %v3986_v20 = vadd.f32 %v3978_v28, %v10310_v41  ;;  %v4007_v19 = vstv %s10363_s30  ;;  %v4026_v14 = vstv %s10375_s5 }
 0x361   :  { %4274 = vst.msk [vmem:[%s10646_s4 + $0x118] sm:$0xff] %vm2232_vm5, %v3992_v50  ;;  %4275 = vst.msk [vmem:[%s10646_s4 + $0x120] sm:$0xff] %vm2232_vm5, %v3993_v8  ;;  %v4045_v18 = vstv %s10377_s6  ;;  %v4008_v41 = vsel %vm7762_vm6, %v10342_v46, %v4007_v19  ;;  %v4009_v10 = vsel %vm7762_vm6, %v10345_v53, %v4007_v19  ;;  %v4010_v58 = vsel %vm7762_vm6, %v10348_v1, %v4007_v19 }
 0x362   :  { %4276 = vst.msk [vmem:[%s10646_s4 + $0x128] sm:$0xff] %vm2232_vm5, %v3994_v63  ;;  %4277 = vst.msk [vmem:[%s10646_s4 + $0x130] sm:$0xff] %vm2232_vm5, %v3995_v3  ;;  %v4011_v40 = vsel %vm7762_vm6, %v10351_v37, %v4007_v19  ;;  %v4012_v24 = vsel %vm7762_vm6, %v10354_v4, %v4007_v19  ;;  %v4013_v54 = vsel %vm7762_vm6, %v10357_v61, %v4007_v19 }
 0x363   :  { %4278 = vst.msk [vmem:[%s10646_s4 + $0x138] sm:$0x3] %vm2240_vm7, %v3996_v30  ;;  %v4014_v48 = vsel %vm7762_vm6, %v10360_v5, %v4007_v19  ;;  %v4015_v7 = vsel %vm7762_vm6, %v3950_v49, %v4007_v19  ;;  %v4027_v45 = vsel %vm7762_vm6, %v10367_v35, %v4026_v14  ;;  %v4028_v62 = vsel %vm7762_vm6, %v10370_v16, %v4026_v14 }
 0x364   :  { %4280 = vst.msk [vmem:[%s10646_s4 + $0x140] sm:$0xff] %vm2232_vm5, %v4008_v41  ;;  %4281 = vst.msk [vmem:[%s10646_s4 + $0x148] sm:$0xff] %vm2232_vm5, %v4009_v10  ;;  %v4029_v6 = vsel %vm7762_vm6, %v10373_v31, %v4026_v14  ;;  %v4030_v43 = vsel %vm7762_vm6, %v10380_v13, %v4026_v14  ;;  %v4031_v46 = vsel %vm7762_vm6, %v10383_v60, %v4026_v14 }
 0x365   :  { %4282 = vst.msk [vmem:[%s10646_s4 + $0x150] sm:$0xff] %vm2232_vm5, %v4010_v58  ;;  %4283 = vst.msk [vmem:[%s10646_s4 + $0x158] sm:$0xff] %vm2232_vm5, %v4011_v40  ;;  %v4032_v53 = vsel %vm7762_vm6, %v10386_v47, %v4026_v14  ;;  %v4033_v1 = vsel %vm7762_vm6, %v10389_v9, %v4026_v14  ;;  %v4034_v37 = vsel %vm7762_vm6, %v10393_v12, %v4026_v14 }
 0x366   :  { %4284 = vst.msk [vmem:[%s10646_s4 + $0x160] sm:$0xff] %vm2232_vm5, %v4012_v24  ;;  %4285 = vst.msk [vmem:[%s10646_s4 + $0x168] sm:$0xff] %vm2232_vm5, %v4013_v54  ;;  %v4046_v4 = vsel %vm7762_vm6, %v10396_v38, %v4045_v18  ;;  %v4047_v61 = vsel %vm7762_vm6, %v10399_v27, %v4045_v18  ;;  %v4048_v5 = vsel %vm7762_vm6, %v10402_v51, %v4045_v18 }
 0x367   :  { %4286 = vst.msk [vmem:[%s10646_s4 + $0x170] sm:$0xff] %vm2232_vm5, %v4014_v48  ;;  %4289 = vst.msk [vmem:[%s10646_s4 + $0x180] sm:$0xff] %vm2232_vm5, %v4027_v45  ;;  %v4049_v2 = vsel %vm7762_vm6, %v10405_v22, %v4045_v18  ;;  %v4050_v25 = vsel %vm7762_vm6, %v10408_v11, %v4045_v18  ;;  %v4051_v0 = vsel %vm7762_vm6, %v10411_v59, %v4045_v18 }
 0x368   :  { %4287 = vst.msk [vmem:[%s10646_s4 + $0x178] sm:$0x3] %vm2240_vm7, %v4015_v7  ;;  %4296 = vst.msk [vmem:[%s10646_s4 + $0x1b8] sm:$0x3] %vm2240_vm7, %v4034_v37  ;;  %v4052_v32 = vsel %vm7762_vm6, %v10414_v29, %v4045_v18  ;;  %v4053_v52 = vsel %vm7762_vm6, %v3986_v20, %v4045_v18 }
 0x369   :  { %4290 = vst.msk [vmem:[%s10646_s4 + $0x188] sm:$0xff] %vm2232_vm5, %v4028_v62  ;;  %4291 = vst.msk [vmem:[%s10646_s4 + $0x190] sm:$0xff] %vm2232_vm5, %v4029_v6 }
 0x36a   :  { %4292 = vst.msk [vmem:[%s10646_s4 + $0x198] sm:$0xff] %vm2232_vm5, %v4030_v43  ;;  %4293 = vst.msk [vmem:[%s10646_s4 + $0x1a0] sm:$0xff] %vm2232_vm5, %v4031_v46 }
 0x36b   :  { %4294 = vst.msk [vmem:[%s10646_s4 + $0x1a8] sm:$0xff] %vm2232_vm5, %v4032_v53  ;;  %4295 = vst.msk [vmem:[%s10646_s4 + $0x1b0] sm:$0xff] %vm2232_vm5, %v4033_v1 }
 0x36c   :  { %4298 = vst.msk [vmem:[%s10646_s4 + $0x1c0] sm:$0xff] %vm2232_vm5, %v4046_v4  ;;  %4299 = vst.msk [vmem:[%s10646_s4 + $0x1c8] sm:$0xff] %vm2232_vm5, %v4047_v61 }
 0x36d   :  { %4300 = vst.msk [vmem:[%s10646_s4 + $0x1d0] sm:$0xff] %vm2232_vm5, %v4048_v5  ;;  %4301 = vst.msk [vmem:[%s10646_s4 + $0x1d8] sm:$0xff] %vm2232_vm5, %v4049_v2 }
 0x36e   :  { %4302 = vst.msk [vmem:[%s10646_s4 + $0x1e0] sm:$0xff] %vm2232_vm5, %v4050_v25  ;;  %4303 = vst.msk [vmem:[%s10646_s4 + $0x1e8] sm:$0xff] %vm2232_vm5, %v4051_v0 }
 0x36f   :  { %4304 = vst.msk [vmem:[%s10646_s4 + $0x1f0] sm:$0xff] %vm2232_vm5, %v4052_v32 }
 0x370   :  { %4305 = vst.msk [vmem:[%s10646_s4 + $0x1f8] sm:$0x3] %vm2240_vm7, %v4053_v52 }
 0x371   :  { %4067 = vsyncpa [#allocation5], 1 }
 0x372   :  { %4068 = vsyncpa [#allocation7], 1 }

</bundles_post_ra>
